<compile_context>
chip_gen: v6e
topology: v6e:2x2x1
jax: 0.10.0
libtpu: 0.0.40
codegen_flags: <defaults>
</compile_context>

<pallas_src>
import functools

import jax
import jax.numpy as jnp
import numpy as np
from jax.experimental import pallas as pl
from jax.experimental.pallas import tpu as pltpu

LANE = 128      # vreg lane width (last dim)
SUBLANE = 8     # fp32 sublanes (second-to-last dim)

# kernel gate order (i, f, o, g) <- torch nn.LSTM gate order (i, f, g, o)
_TORCH_TO_KERNEL_GATE = (0, 1, 3, 2)


def _round_up(x, m):
    return ((x + m - 1) // m) * m


# ----------------------------------------------------------------------------
# Pallas kernel: entire (K+1)*N-step 2-layer LSTM recurrence, one invocation.
# ----------------------------------------------------------------------------
def mann_lstm_kernel(x_ref, wih1_ref, whh1_ref, b1_ref, w2_ref, b2_ref,
                     out_ref, xg_ref, *, T, BP):
    """x_ref: [T*BP, DP] time-major, batch- and lane-padded input (f32).

    Weights are bf16, pre-padded so every gate spans a full 128-lane block:
      wih1: [DP, 4*HP], whh1: [HP, 4*HP], w2 (wih2 stacked over whh2):
      [HP+NP, 4*NP].  Biases b1/b2 stay f32.
    out_ref: [T*BP, NP] lane-dense f32 output slab (single HBM writeback).
    xg_ref:  VMEM scratch [T*BP, 4*HP] f32 holding the hoisted input projection.
    """
    HP = whh1_ref.shape[0]          # padded per-gate width, layer 1
    NP = w2_ref.shape[0] - HP       # padded per-gate width, layer 2
    WDT = whh1_ref.dtype            # bf16 weight dtype for MXU inputs

    # Hoist layer-1's non-recurrent input projection out of the time loop:
    # one MXU matmul over all timesteps instead of T tiny ones.
    xg_ref[...] = (jnp.dot(x_ref[...].astype(WDT), wih1_ref[...],
                           preferred_element_type=jnp.float32) + b1_ref[...])

    b2 = b2_ref[...]                # [1, 4*NP] f32, one vreg, loop-invariant

    def gate_update(gates, c, hw):
        # Kernel gate order (i, f, o, g): one sigmoid over the contiguous
        # [BP, 3*hw] slab and one tanh => 2 EUP pushes per layer instead of 4.
        s = jax.nn.sigmoid(gates[:, 0:3 * hw])
        i = s[:, 0 * hw:1 * hw]
        f = s[:, 1 * hw:2 * hw]
        o = s[:, 2 * hw:3 * hw]
        g = jnp.tanh(gates[:, 3 * hw:4 * hw])
        c_new = f * c + i * g
        h_new = o * jnp.tanh(c_new)
        return h_new, c_new

    def step(t, carry):
        h1, c1, h2, c2 = carry
        row = pl.multiple_of(t * BP, BP)            # sublane-aligned window
        # Layer 1: only the recurrent matmul sits on the serial critical path.
        # Read the weight through the ref at the point of use (no big live
        # weight values across the unrolled body -> no spill churn).
        gates1 = xg_ref[pl.ds(row, BP), :] + jnp.dot(
            h1.astype(WDT), whh1_ref[...], preferred_element_type=jnp.float32)
        h1, c1 = gate_update(gates1, c1, HP)
        # Layer 2: ONE fused K = HP+NP matmul (wih2 stacked over whh2).  The
        # [h1 | h2] concat of two full 128-lane blocks is free relabeling.
        hcat = jnp.concatenate([h1.astype(WDT), h2.astype(WDT)], axis=1)
        gates2 = jnp.dot(hcat, w2_ref[...],
                         preferred_element_type=jnp.float32) + b2
        h2, c2 = gate_update(gates2, c2, NP)
        out_ref[pl.ds(row, BP), :] = h2             # lane-dense VMEM store
        return h1, c1, h2, c2

    z1 = jnp.zeros((BP, HP), jnp.float32)
    z2 = jnp.zeros((BP, NP), jnp.float32)
    # Carry is only 4 small vregs; fully unroll generously so the scheduler can
    # overlap layer-2(t) with layer-1(t+1) inside one basic block.
    unroll = True if T <= 64 else 8
    jax.lax.fori_loop(0, T, step, (z1, z1, z2, z2), unroll=unroll)


def two_layer_lstm_pallas(x_flat, kparams, *, T, BP):
    """x_flat: [T*BP, DP] time-major, padded input. Returns [T*BP, NP] f32."""
    wih1, whh1, b1, w2, b2 = kparams
    HP = whh1.shape[0]
    NP = w2.shape[0] - HP
    kernel = functools.partial(mann_lstm_kernel, T=T, BP=BP)
    vmem = pl.BlockSpec(memory_space=pltpu.MemorySpace.VMEM)
    return pl.pallas_call(
        kernel,
        out_shape=jax.ShapeDtypeStruct((T * BP, NP), jnp.float32),
        # No grid: the whole problem is a single invocation.  Pin every operand
        # in VMEM explicitly (~1 MiB total — fine on v5e/v6e/v7x) so a default
        # placement change can't silently insert HBM round-trips.
        in_specs=[vmem] * 6,
        out_specs=vmem,
        scratch_shapes=[pltpu.VMEM((T * BP, 4 * HP), jnp.float32)],
    )(x_flat, wih1, whh1, b1, w2, b2)


# ----------------------------------------------------------------------------
# Parameter packing: PyTorch nn.LSTM layout -> padded, lane-aligned, bf16,
# fused kernel layout.
# ----------------------------------------------------------------------------
def _pad_gate_cols(w_t, h, h_pad):
    """[Din, 4*h] (torch gate order i,f,g,o) -> [Din, 4*h_pad] in kernel gate
    order (i,f,o,g), each gate at a 128-aligned offset.  Padded columns are
    EXACTLY zero (required: keeps padded h/c lanes inert — see header)."""
    din = w_t.shape[0]
    out = jnp.zeros((din, 4 * h_pad), w_t.dtype)
    for k_blk, t_blk in enumerate(_TORCH_TO_KERNEL_GATE):
        out = out.at[:, k_blk * h_pad:k_blk * h_pad + h].set(
            w_t[:, t_blk * h:(t_blk + 1) * h])
    return out


def _pad_rows(w, rows_pad):
    return jnp.pad(w, ((0, rows_pad - w.shape[0]), (0, 0)))


def pack_kernel_params(params):
    (w_ih1, w_hh1, b_ih1, b_hh1, w_ih2, w_hh2, b_ih2, b_hh2) = params
    D = w_ih1.shape[1]
    H1 = w_hh1.shape[1]
    N = w_hh2.shape[1]
    DP = _round_up(D, LANE)
    HP = _round_up(H1, LANE)
    NP = _round_up(N, LANE)
    wdt = jnp.bfloat16   # MXU-native on v5e/v6e/v7x; f32 accumulation in-kernel

    wih1_k = _pad_rows(_pad_gate_cols(w_ih1.T, H1, HP), DP).astype(wdt)  # [DP,4HP]
    whh1_k = _pad_rows(_pad_gate_cols(w_hh1.T, H1, HP), HP).astype(wdt)  # [HP,4HP]
    b1_k = _pad_gate_cols((b_ih1 + b_hh1)[None, :], H1, HP)              # [1, 4HP]

    # Layer 2: stack wih2 over whh2 so gates2 is ONE fused K=HP+NP matmul.
    wih2_k = _pad_rows(_pad_gate_cols(w_ih2.T, N, NP), HP)               # [HP,4NP]
    whh2_k = _pad_rows(_pad_gate_cols(w_hh2.T, N, NP), NP)               # [NP,4NP]
    w2_k = jnp.concatenate([wih2_k, whh2_k], axis=0).astype(wdt)         # [HP+NP,4NP]
    b2_k = _pad_gate_cols((b_ih2 + b_hh2)[None, :], N, NP)               # [1, 4NP]
    return (wih1_k, whh1_k, b1_k, w2_k, b2_k)


# ----------------------------------------------------------------------------
# MANN.forward (glue in plain JAX, recurrence in the Pallas kernel)
# ----------------------------------------------------------------------------
def mann_forward(input_images, input_labels, kparams, *, K, N):
    """input_images: [B, K+1, N, input_size]; input_labels: [B, K+1, N, N]."""
    B = input_labels.shape[0]
    Dtrain = jnp.concatenate(
        [input_images[:, 0:K], input_labels[:, 0:K]], axis=3)
    Dtest = jnp.concatenate(
        [input_images[:, K:K + 1], jnp.zeros_like(input_labels[:, K:K + 1])],
        axis=3)
    x = jnp.concatenate([Dtrain, Dtest], axis=1)         # [B, K+1, N, D]
    T = (K + 1) * N
    D = x.shape[-1]
    DP = _round_up(D, LANE)                              # aligned matmul K
    x = x.reshape(B, T, D)                               # [B, T, D]
    x_tm = jnp.transpose(x, (1, 0, 2))                   # [T, B, D] time-major
    BP = _round_up(B, SUBLANE)                           # fill fp32 sublanes
    x_tm = jnp.pad(x_tm, ((0, 0), (0, BP - B), (0, DP - D)))
    x_flat = x_tm.reshape(T * BP, DP)                    # [T*BP, DP]
    y = two_layer_lstm_pallas(x_flat, kparams, T=T, BP=BP)   # [T*BP, NP]
    y = y.reshape(T, BP, -1)[:, :B, :N]                  # strip batch/lane pad
    y = jnp.transpose(y, (1, 0, 2)).reshape(B, K + 1, N, N)
    return y


# ----------------------------------------------------------------------------
# Deterministic parameter init (nn.LSTM shapes + xavier / zero-bias init)
# ----------------------------------------------------------------------------
def xavier_uniform(key, shape):
    fan_out, fan_in = shape
    bound = float(np.sqrt(6.0 / (fan_in + fan_out)))
    return jax.random.uniform(key, shape, jnp.float32, -bound, bound)


def init_mann_params(key, num_classes, model_size, input_size):
    D = num_classes + input_size
    H1 = model_size
    N = num_classes
    k1, k2, k3, k4 = jax.random.split(key, 4)
    w_ih1 = xavier_uniform(k1, (4 * H1, D))
    w_hh1 = xavier_uniform(k2, (4 * H1, H1))
    w_ih2 = xavier_uniform(k3, (4 * N, H1))
    w_hh2 = xavier_uniform(k4, (4 * N, N))
    b_ih1 = jnp.zeros((4 * H1,), jnp.float32)
    b_hh1 = jnp.zeros((4 * H1,), jnp.float32)
    b_ih2 = jnp.zeros((4 * N,), jnp.float32)
    b_hh2 = jnp.zeros((4 * N,), jnp.float32)
    return (w_ih1, w_hh1, b_ih1, b_hh1, w_ih2, w_hh2, b_ih2, b_hh2)


# ----------------------------------------------------------------------------
# Pure-JAX reference (lax.scan LSTM, f32 weights) for the correctness check
# ----------------------------------------------------------------------------
def lstm_ref(x_tm, w_ih, w_hh, b_ih, b_hh):
    T, B, _ = x_tm.shape
    H = w_hh.shape[1]
    wih, whh = w_ih.T, w_hh.T
    b = (b_ih + b_hh)[None, :]

    def step(carry, x_t):
        h, c = carry
        gates = x_t @ wih + h @ whh + b
        i = jax.nn.sigmoid(gates[:, 0 * H:1 * H])
        f = jax.nn.sigmoid(gates[:, 1 * H:2 * H])
        g = jnp.tanh(gates[:, 2 * H:3 * H])
        o = jax.nn.sigmoid(gates[:, 3 * H:4 * H])
        c = f * c + i * g
        h = o * jnp.tanh(c)
        return (h, c), h

    init = (jnp.zeros((B, H), jnp.float32), jnp.zeros((B, H), jnp.float32))
    _, ys = jax.lax.scan(step, init, x_tm)
    return ys


def mann_forward_ref(input_images, input_labels, params, *, K, N):
    (w_ih1, w_hh1, b_ih1, b_hh1, w_ih2, w_hh2, b_ih2, b_hh2) = params
    B = input_labels.shape[0]
    Dtrain = jnp.concatenate(
        [input_images[:, 0:K], input_labels[:, 0:K]], axis=3)
    Dtest = jnp.concatenate(
        [input_images[:, K:K + 1], jnp.zeros_like(input_labels[:, K:K + 1])],
        axis=3)
    x = jnp.concatenate([Dtrain, Dtest], axis=1).reshape(B, (K + 1) * N, -1)
    x_tm = jnp.transpose(x, (1, 0, 2))
    y1 = lstm_ref(x_tm, w_ih1, w_hh1, b_ih1, b_hh1)
    y2 = lstm_ref(y1, w_ih2, w_hh2, b_ih2, b_hh2)
    return jnp.transpose(y2, (1, 0, 2)).reshape(B, K + 1, N, N)


# ----------------------------------------------------------------------------
if __name__ == "__main__":
    # Small shapes consistent with MANN(num_classes=N, samples_per_class=K,
    # model_size, input_size).
    B, N, K = 2, 4, 2
    MODEL_SIZE, INPUT_SIZE = 32, 128

    key = jax.random.PRNGKey(0)
    k_params, k_img, k_lbl = jax.random.split(key, 3)

    params = init_mann_params(k_params, N, MODEL_SIZE, INPUT_SIZE)
    kparams = pack_kernel_params(params)

    # input_images: [B, K+1, N, input_size]; input_labels: one-hot [B, K+1, N, N]
    input_images = jax.random.normal(
        k_img, (B, K + 1, N, INPUT_SIZE), jnp.float32)
    label_idx = jax.random.randint(k_lbl, (B, K + 1, N), 0, N)
    input_labels = jax.nn.one_hot(label_idx, N, dtype=jnp.float32)

    fwd = jax.jit(functools.partial(mann_forward, K=K, N=N))
    out = fwd(input_images, input_labels, kparams)
    out = jax.block_until_ready(out)

    assert out.shape == (B, K + 1, N, N), out.shape

    # Correctness check against the pure-JAX f32 reference.  Tolerance is
    # slightly loose because kernel weights are bf16 (single-pass MXU); errors
    # stay well inside 2e-2 for these magnitudes.
    ref = mann_forward_ref(input_images, input_labels, params, K=K, N=N)
    np.testing.assert_allclose(np.asarray(out), np.asarray(ref),
                               rtol=2e-2, atol=2e-2)

    # TODO(synk): loss_function (cross-entropy on the query slot) is training
    # glue, not part of forward; left out of the kernel.
    print("KERNEL_OK")
</pallas_src>

<mosaic_0001>
module attributes {stable_mosaic.version = 11 : i64} {
  func.func @mann_lstm_kernel(%arg0: memref<96x256xf32, #tpu.memory_space<vmem>>, %arg1: memref<256x512xbf16, #tpu.memory_space<vmem>>, %arg2: memref<128x512xbf16, #tpu.memory_space<vmem>>, %arg3: memref<1x512xf32, #tpu.memory_space<vmem>>, %arg4: memref<256x512xbf16, #tpu.memory_space<vmem>>, %arg5: memref<1x512xf32, #tpu.memory_space<vmem>>, %arg6: memref<96x128xf32, #tpu.memory_space<vmem>>, %arg7: memref<96x512xf32, #tpu.memory_space<vmem>>) attributes {dimension_semantics = [], scalar_prefetch = 0 : i64, scratch_operands = 1 : i64, tpu.core_type = #tpu.core_type<tc>} {
    %c0 = arith.constant 0 : index
    %c0_0 = arith.constant 0 : index
    %0 = vector.load %arg0[%c0, %c0_0] : memref<96x256xf32, #tpu.memory_space<vmem>>, vector<96x256xf32>
    %1 = arith.truncf %0 : vector<96x256xf32> to vector<96x256xbf16>
    %c0_1 = arith.constant 0 : index
    %c0_2 = arith.constant 0 : index
    %2 = vector.load %arg1[%c0_1, %c0_2] : memref<256x512xbf16, #tpu.memory_space<vmem>>, vector<256x512xbf16>
    %cst = arith.constant dense<0.000000e+00> : vector<96x512xf32>
    %3 = tpu.matmul %1, %2, %cst {dimension_numbers = #tpu.dot_dimension_numbers<[1], [0], [0], [1], [0, 0, 1, 1], [], []>} : vector<96x256xbf16>, vector<256x512xbf16>, vector<96x512xf32> -> vector<96x512xf32>
    %c0_3 = arith.constant 0 : index
    %c0_4 = arith.constant 0 : index
    %4 = vector.load %arg3[%c0_3, %c0_4] : memref<1x512xf32, #tpu.memory_space<vmem>>, vector<1x512xf32>
    %5 = vector.broadcast %4 : vector<1x512xf32> to vector<96x512xf32>
    %6 = arith.addf %3, %5 : vector<96x512xf32>
    %c0_5 = arith.constant 0 : index
    %c0_6 = arith.constant 0 : index
    %7 = vector.load %arg7[%c0_5, %c0_6] : memref<96x512xf32, #tpu.memory_space<vmem>>, vector<96x512xf32>
    tpu.vector_store %arg7[%c0_5, %c0_6], %6 {strides = array<i32>} : memref<96x512xf32, #tpu.memory_space<vmem>>, vector<96x512xf32>,
    %c0_7 = arith.constant 0 : index
    %c0_8 = arith.constant 0 : index
    %8 = vector.load %arg5[%c0_7, %c0_8] : memref<1x512xf32, #tpu.memory_space<vmem>>, vector<1x512xf32>
    %cst_9 = arith.constant 0.000000e+00 : f32
    %9 = vector.broadcast %cst_9 : f32 to vector<8x128xf32>
    %cst_10 = arith.constant 0.000000e+00 : f32
    %10 = vector.broadcast %cst_10 : f32 to vector<8x128xf32>
    %c0_i32 = arith.constant 0 : i32
    %c8_i32 = arith.constant 8 : i32
    %11 = arith.muli %c0_i32, %c8_i32 : i32
    %12 = tpu.assume_multiple %11, 8 : i32
    %13 = arith.index_cast %12 : i32 to index
    %c0_11 = arith.constant 0 : index
    %14 = vector.load %arg7[%13, %c0_11] : memref<96x512xf32, #tpu.memory_space<vmem>>, vector<8x512xf32>
    %15 = arith.truncf %9 : vector<8x128xf32> to vector<8x128xbf16>
    %c0_12 = arith.constant 0 : index
    %c0_13 = arith.constant 0 : index
    %16 = vector.load %arg2[%c0_12, %c0_13] : memref<128x512xbf16, #tpu.memory_space<vmem>>, vector<128x512xbf16>
    %cst_14 = arith.constant dense<0.000000e+00> : vector<8x512xf32>
    %17 = tpu.matmul %15, %16, %cst_14 {dimension_numbers = #tpu.dot_dimension_numbers<[1], [0], [0], [1], [0, 0, 1, 1], [], []>} : vector<8x128xbf16>, vector<128x512xbf16>, vector<8x512xf32> -> vector<8x512xf32>
    %18 = arith.addf %14, %17 : vector<8x512xf32>
    %19 = vector.extract_strided_slice %18 {offsets = [0, 0], sizes = [8, 384], strides = [1, 1]} : vector<8x512xf32> to vector<8x384xf32>
    %20 = arith.negf %19 : vector<8x384xf32>
    %21 = math.exp %20 : vector<8x384xf32>
    %cst_15 = arith.constant 1.000000e+00 : f32
    %22 = vector.broadcast %cst_15 : f32 to vector<8x384xf32>
    %23 = arith.addf %22, %21 : vector<8x384xf32>
    %24 = arith.divf %22, %23 : vector<8x384xf32>
    %25 = vector.extract_strided_slice %24 {offsets = [0, 0], sizes = [8, 128], strides = [1, 1]} : vector<8x384xf32> to vector<8x128xf32>
    %26 = vector.extract_strided_slice %24 {offsets = [0, 128], sizes = [8, 128], strides = [1, 1]} : vector<8x384xf32> to vector<8x128xf32>
    %27 = vector.extract_strided_slice %24 {offsets = [0, 256], sizes = [8, 128], strides = [1, 1]} : vector<8x384xf32> to vector<8x128xf32>
    %28 = vector.extract_strided_slice %18 {offsets = [0, 384], sizes = [8, 128], strides = [1, 1]} : vector<8x512xf32> to vector<8x128xf32>
    %29 = math.tanh %28 : vector<8x128xf32>
    %30 = arith.mulf %26, %9 : vector<8x128xf32>
    %31 = arith.mulf %25, %29 : vector<8x128xf32>
    %32 = arith.addf %30, %31 : vector<8x128xf32>
    %33 = math.tanh %32 : vector<8x128xf32>
    %34 = arith.mulf %27, %33 : vector<8x128xf32>
    %35 = arith.truncf %34 : vector<8x128xf32> to vector<8x128xbf16>
    %36 = arith.truncf %10 : vector<8x128xf32> to vector<8x128xbf16>
    %37 = tpu.concatenate %35, %36 in 1 : vector<8x128xbf16>, vector<8x128xbf16> -> vector<8x256xbf16>
    %c0_16 = arith.constant 0 : index
    %c0_17 = arith.constant 0 : index
    %38 = vector.load %arg4[%c0_16, %c0_17] : memref<256x512xbf16, #tpu.memory_space<vmem>>, vector<256x512xbf16>
    %cst_18 = arith.constant dense<0.000000e+00> : vector<8x512xf32>
    %39 = tpu.matmul %37, %38, %cst_18 {dimension_numbers = #tpu.dot_dimension_numbers<[1], [0], [0], [1], [0, 0, 1, 1], [], []>} : vector<8x256xbf16>, vector<256x512xbf16>, vector<8x512xf32> -> vector<8x512xf32>
    %40 = vector.broadcast %8 : vector<1x512xf32> to vector<8x512xf32>
    %41 = arith.addf %39, %40 : vector<8x512xf32>
    %42 = vector.extract_strided_slice %41 {offsets = [0, 0], sizes = [8, 384], strides = [1, 1]} : vector<8x512xf32> to vector<8x384xf32>
    %43 = arith.negf %42 : vector<8x384xf32>
    %44 = math.exp %43 : vector<8x384xf32>
    %cst_19 = arith.constant 1.000000e+00 : f32
    %45 = vector.broadcast %cst_19 : f32 to vector<8x384xf32>
    %46 = arith.addf %45, %44 : vector<8x384xf32>
    %47 = arith.divf %45, %46 : vector<8x384xf32>
    %48 = vector.extract_strided_slice %47 {offsets = [0, 0], sizes = [8, 128], strides = [1, 1]} : vector<8x384xf32> to vector<8x128xf32>
    %49 = vector.extract_strided_slice %47 {offsets = [0, 128], sizes = [8, 128], strides = [1, 1]} : vector<8x384xf32> to vector<8x128xf32>
    %50 = vector.extract_strided_slice %47 {offsets = [0, 256], sizes = [8, 128], strides = [1, 1]} : vector<8x384xf32> to vector<8x128xf32>
    %51 = vector.extract_strided_slice %41 {offsets = [0, 384], sizes = [8, 128], strides = [1, 1]} : vector<8x512xf32> to vector<8x128xf32>
    %52 = math.tanh %51 : vector<8x128xf32>
    %53 = arith.mulf %49, %10 : vector<8x128xf32>
    %54 = arith.mulf %48, %52 : vector<8x128xf32>
    %55 = arith.addf %53, %54 : vector<8x128xf32>
    %56 = math.tanh %55 : vector<8x128xf32>
    %57 = arith.mulf %50, %56 : vector<8x128xf32>
    %58 = arith.index_cast %12 : i32 to index
    %c0_20 = arith.constant 0 : index
    %59 = vector.load %arg6[%58, %c0_20] : memref<96x128xf32, #tpu.memory_space<vmem>>, vector<8x128xf32>
    tpu.vector_store %arg6[%58, %c0_20], %57 {strides = array<i32>} : memref<96x128xf32, #tpu.memory_space<vmem>>, vector<8x128xf32>,
    %c1_i32 = arith.constant 1 : i32
    %c8_i32_21 = arith.constant 8 : i32
    %60 = arith.muli %c1_i32, %c8_i32_21 : i32
    %61 = tpu.assume_multiple %60, 8 : i32
    %62 = arith.index_cast %61 : i32 to index
    %c0_22 = arith.constant 0 : index
    %63 = vector.load %arg7[%62, %c0_22] : memref<96x512xf32, #tpu.memory_space<vmem>>, vector<8x512xf32>
    %64 = arith.truncf %34 : vector<8x128xf32> to vector<8x128xbf16>
    %c0_23 = arith.constant 0 : index
    %c0_24 = arith.constant 0 : index
    %65 = vector.load %arg2[%c0_23, %c0_24] : memref<128x512xbf16, #tpu.memory_space<vmem>>, vector<128x512xbf16>
    %cst_25 = arith.constant dense<0.000000e+00> : vector<8x512xf32>
    %66 = tpu.matmul %64, %65, %cst_25 {dimension_numbers = #tpu.dot_dimension_numbers<[1], [0], [0], [1], [0, 0, 1, 1], [], []>} : vector<8x128xbf16>, vector<128x512xbf16>, vector<8x512xf32> -> vector<8x512xf32>
    %67 = arith.addf %63, %66 : vector<8x512xf32>
    %68 = vector.extract_strided_slice %67 {offsets = [0, 0], sizes = [8, 384], strides = [1, 1]} : vector<8x512xf32> to vector<8x384xf32>
    %69 = arith.negf %68 : vector<8x384xf32>
    %70 = math.exp %69 : vector<8x384xf32>
    %cst_26 = arith.constant 1.000000e+00 : f32
    %71 = vector.broadcast %cst_26 : f32 to vector<8x384xf32>
    %72 = arith.addf %71, %70 : vector<8x384xf32>
    %73 = arith.divf %71, %72 : vector<8x384xf32>
    %74 = vector.extract_strided_slice %73 {offsets = [0, 0], sizes = [8, 128], strides = [1, 1]} : vector<8x384xf32> to vector<8x128xf32>
    %75 = vector.extract_strided_slice %73 {offsets = [0, 128], sizes = [8, 128], strides = [1, 1]} : vector<8x384xf32> to vector<8x128xf32>
    %76 = vector.extract_strided_slice %73 {offsets = [0, 256], sizes = [8, 128], strides = [1, 1]} : vector<8x384xf32> to vector<8x128xf32>
    %77 = vector.extract_strided_slice %67 {offsets = [0, 384], sizes = [8, 128], strides = [1, 1]} : vector<8x512xf32> to vector<8x128xf32>
    %78 = math.tanh %77 : vector<8x128xf32>
    %79 = arith.mulf %75, %32 : vector<8x128xf32>
    %80 = arith.mulf %74, %78 : vector<8x128xf32>
    %81 = arith.addf %79, %80 : vector<8x128xf32>
    %82 = math.tanh %81 : vector<8x128xf32>
    %83 = arith.mulf %76, %82 : vector<8x128xf32>
    %84 = arith.truncf %83 : vector<8x128xf32> to vector<8x128xbf16>
    %85 = arith.truncf %57 : vector<8x128xf32> to vector<8x128xbf16>
    %86 = tpu.concatenate %84, %85 in 1 : vector<8x128xbf16>, vector<8x128xbf16> -> vector<8x256xbf16>
    %c0_27 = arith.constant 0 : index
    %c0_28 = arith.constant 0 : index
    %87 = vector.load %arg4[%c0_27, %c0_28] : memref<256x512xbf16, #tpu.memory_space<vmem>>, vector<256x512xbf16>
    %cst_29 = arith.constant dense<0.000000e+00> : vector<8x512xf32>
    %88 = tpu.matmul %86, %87, %cst_29 {dimension_numbers = #tpu.dot_dimension_numbers<[1], [0], [0], [1], [0, 0, 1, 1], [], []>} : vector<8x256xbf16>, vector<256x512xbf16>, vector<8x512xf32> -> vector<8x512xf32>
    %89 = vector.broadcast %8 : vector<1x512xf32> to vector<8x512xf32>
    %90 = arith.addf %88, %89 : vector<8x512xf32>
    %91 = vector.extract_strided_slice %90 {offsets = [0, 0], sizes = [8, 384], strides = [1, 1]} : vector<8x512xf32> to vector<8x384xf32>
    %92 = arith.negf %91 : vector<8x384xf32>
    %93 = math.exp %92 : vector<8x384xf32>
    %cst_30 = arith.constant 1.000000e+00 : f32
    %94 = vector.broadcast %cst_30 : f32 to vector<8x384xf32>
    %95 = arith.addf %94, %93 : vector<8x384xf32>
    %96 = arith.divf %94, %95 : vector<8x384xf32>
    %97 = vector.extract_strided_slice %96 {offsets = [0, 0], sizes = [8, 128], strides = [1, 1]} : vector<8x384xf32> to vector<8x128xf32>
    %98 = vector.extract_strided_slice %96 {offsets = [0, 128], sizes = [8, 128], strides = [1, 1]} : vector<8x384xf32> to vector<8x128xf32>
    %99 = vector.extract_strided_slice %96 {offsets = [0, 256], sizes = [8, 128], strides = [1, 1]} : vector<8x384xf32> to vector<8x128xf32>
    %100 = vector.extract_strided_slice %90 {offsets = [0, 384], sizes = [8, 128], strides = [1, 1]} : vector<8x512xf32> to vector<8x128xf32>
    %101 = math.tanh %100 : vector<8x128xf32>
    %102 = arith.mulf %98, %55 : vector<8x128xf32>
    %103 = arith.mulf %97, %101 : vector<8x128xf32>
    %104 = arith.addf %102, %103 : vector<8x128xf32>
    %105 = math.tanh %104 : vector<8x128xf32>
    %106 = arith.mulf %99, %105 : vector<8x128xf32>
    %107 = arith.index_cast %61 : i32 to index
    %c0_31 = arith.constant 0 : index
    %108 = vector.load %arg6[%107, %c0_31] : memref<96x128xf32, #tpu.memory_space<vmem>>, vector<8x128xf32>
    tpu.vector_store %arg6[%107, %c0_31], %106 {strides = array<i32>} : memref<96x128xf32, #tpu.memory_space<vmem>>, vector<8x128xf32>,
    %c2_i32 = arith.constant 2 : i32
    %c8_i32_32 = arith.constant 8 : i32
    %109 = arith.muli %c2_i32, %c8_i32_32 : i32
    %110 = tpu.assume_multiple %109, 8 : i32
    %111 = arith.index_cast %110 : i32 to index
    %c0_33 = arith.constant 0 : index
    %112 = vector.load %arg7[%111, %c0_33] : memref<96x512xf32, #tpu.memory_space<vmem>>, vector<8x512xf32>
    %113 = arith.truncf %83 : vector<8x128xf32> to vector<8x128xbf16>
    %c0_34 = arith.constant 0 : index
    %c0_35 = arith.constant 0 : index
    %114 = vector.load %arg2[%c0_34, %c0_35] : memref<128x512xbf16, #tpu.memory_space<vmem>>, vector<128x512xbf16>
    %cst_36 = arith.constant dense<0.000000e+00> : vector<8x512xf32>
    %115 = tpu.matmul %113, %114, %cst_36 {dimension_numbers = #tpu.dot_dimension_numbers<[1], [0], [0], [1], [0, 0, 1, 1], [], []>} : vector<8x128xbf16>, vector<128x512xbf16>, vector<8x512xf32> -> vector<8x512xf32>
    %116 = arith.addf %112, %115 : vector<8x512xf32>
    %117 = vector.extract_strided_slice %116 {offsets = [0, 0], sizes = [8, 384], strides = [1, 1]} : vector<8x512xf32> to vector<8x384xf32>
    %118 = arith.negf %117 : vector<8x384xf32>
    %119 = math.exp %118 : vector<8x384xf32>
    %cst_37 = arith.constant 1.000000e+00 : f32
    %120 = vector.broadcast %cst_37 : f32 to vector<8x384xf32>
    %121 = arith.addf %120, %119 : vector<8x384xf32>
    %122 = arith.divf %120, %121 : vector<8x384xf32>
    %123 = vector.extract_strided_slice %122 {offsets = [0, 0], sizes = [8, 128], strides = [1, 1]} : vector<8x384xf32> to vector<8x128xf32>
    %124 = vector.extract_strided_slice %122 {offsets = [0, 128], sizes = [8, 128], strides = [1, 1]} : vector<8x384xf32> to vector<8x128xf32>
    %125 = vector.extract_strided_slice %122 {offsets = [0, 256], sizes = [8, 128], strides = [1, 1]} : vector<8x384xf32> to vector<8x128xf32>
    %126 = vector.extract_strided_slice %116 {offsets = [0, 384], sizes = [8, 128], strides = [1, 1]} : vector<8x512xf32> to vector<8x128xf32>
    %127 = math.tanh %126 : vector<8x128xf32>
    %128 = arith.mulf %124, %81 : vector<8x128xf32>
    %129 = arith.mulf %123, %127 : vector<8x128xf32>
    %130 = arith.addf %128, %129 : vector<8x128xf32>
    %131 = math.tanh %130 : vector<8x128xf32>
    %132 = arith.mulf %125, %131 : vector<8x128xf32>
    %133 = arith.truncf %132 : vector<8x128xf32> to vector<8x128xbf16>
    %134 = arith.truncf %106 : vector<8x128xf32> to vector<8x128xbf16>
    %135 = tpu.concatenate %133, %134 in 1 : vector<8x128xbf16>, vector<8x128xbf16> -> vector<8x256xbf16>
    %c0_38 = arith.constant 0 : index
    %c0_39 = arith.constant 0 : index
    %136 = vector.load %arg4[%c0_38, %c0_39] : memref<256x512xbf16, #tpu.memory_space<vmem>>, vector<256x512xbf16>
    %cst_40 = arith.constant dense<0.000000e+00> : vector<8x512xf32>
    %137 = tpu.matmul %135, %136, %cst_40 {dimension_numbers = #tpu.dot_dimension_numbers<[1], [0], [0], [1], [0, 0, 1, 1], [], []>} : vector<8x256xbf16>, vector<256x512xbf16>, vector<8x512xf32> -> vector<8x512xf32>
    %138 = vector.broadcast %8 : vector<1x512xf32> to vector<8x512xf32>
    %139 = arith.addf %137, %138 : vector<8x512xf32>
    %140 = vector.extract_strided_slice %139 {offsets = [0, 0], sizes = [8, 384], strides = [1, 1]} : vector<8x512xf32> to vector<8x384xf32>
    %141 = arith.negf %140 : vector<8x384xf32>
    %142 = math.exp %141 : vector<8x384xf32>
    %cst_41 = arith.constant 1.000000e+00 : f32
    %143 = vector.broadcast %cst_41 : f32 to vector<8x384xf32>
    %144 = arith.addf %143, %142 : vector<8x384xf32>
    %145 = arith.divf %143, %144 : vector<8x384xf32>
    %146 = vector.extract_strided_slice %145 {offsets = [0, 0], sizes = [8, 128], strides = [1, 1]} : vector<8x384xf32> to vector<8x128xf32>
    %147 = vector.extract_strided_slice %145 {offsets = [0, 128], sizes = [8, 128], strides = [1, 1]} : vector<8x384xf32> to vector<8x128xf32>
    %148 = vector.extract_strided_slice %145 {offsets = [0, 256], sizes = [8, 128], strides = [1, 1]} : vector<8x384xf32> to vector<8x128xf32>
    %149 = vector.extract_strided_slice %139 {offsets = [0, 384], sizes = [8, 128], strides = [1, 1]} : vector<8x512xf32> to vector<8x128xf32>
    %150 = math.tanh %149 : vector<8x128xf32>
    %151 = arith.mulf %147, %104 : vector<8x128xf32>
    %152 = arith.mulf %146, %150 : vector<8x128xf32>
    %153 = arith.addf %151, %152 : vector<8x128xf32>
    %154 = math.tanh %153 : vector<8x128xf32>
    %155 = arith.mulf %148, %154 : vector<8x128xf32>
    %156 = arith.index_cast %110 : i32 to index
    %c0_42 = arith.constant 0 : index
    %157 = vector.load %arg6[%156, %c0_42] : memref<96x128xf32, #tpu.memory_space<vmem>>, vector<8x128xf32>
    tpu.vector_store %arg6[%156, %c0_42], %155 {strides = array<i32>} : memref<96x128xf32, #tpu.memory_space<vmem>>, vector<8x128xf32>,
    %c3_i32 = arith.constant 3 : i32
    %c8_i32_43 = arith.constant 8 : i32
    %158 = arith.muli %c3_i32, %c8_i32_43 : i32
    %159 = tpu.assume_multiple %158, 8 : i32
    %160 = arith.index_cast %159 : i32 to index
    %c0_44 = arith.constant 0 : index
    %161 = vector.load %arg7[%160, %c0_44] : memref<96x512xf32, #tpu.memory_space<vmem>>, vector<8x512xf32>
    %162 = arith.truncf %132 : vector<8x128xf32> to vector<8x128xbf16>
    %c0_45 = arith.constant 0 : index
    %c0_46 = arith.constant 0 : index
    %163 = vector.load %arg2[%c0_45, %c0_46] : memref<128x512xbf16, #tpu.memory_space<vmem>>, vector<128x512xbf16>
    %cst_47 = arith.constant dense<0.000000e+00> : vector<8x512xf32>
    %164 = tpu.matmul %162, %163, %cst_47 {dimension_numbers = #tpu.dot_dimension_numbers<[1], [0], [0], [1], [0, 0, 1, 1], [], []>} : vector<8x128xbf16>, vector<128x512xbf16>, vector<8x512xf32> -> vector<8x512xf32>
    %165 = arith.addf %161, %164 : vector<8x512xf32>
    %166 = vector.extract_strided_slice %165 {offsets = [0, 0], sizes = [8, 384], strides = [1, 1]} : vector<8x512xf32> to vector<8x384xf32>
    %167 = arith.negf %166 : vector<8x384xf32>
    %168 = math.exp %167 : vector<8x384xf32>
    %cst_48 = arith.constant 1.000000e+00 : f32
    %169 = vector.broadcast %cst_48 : f32 to vector<8x384xf32>
    %170 = arith.addf %169, %168 : vector<8x384xf32>
    %171 = arith.divf %169, %170 : vector<8x384xf32>
    %172 = vector.extract_strided_slice %171 {offsets = [0, 0], sizes = [8, 128], strides = [1, 1]} : vector<8x384xf32> to vector<8x128xf32>
    %173 = vector.extract_strided_slice %171 {offsets = [0, 128], sizes = [8, 128], strides = [1, 1]} : vector<8x384xf32> to vector<8x128xf32>
    %174 = vector.extract_strided_slice %171 {offsets = [0, 256], sizes = [8, 128], strides = [1, 1]} : vector<8x384xf32> to vector<8x128xf32>
    %175 = vector.extract_strided_slice %165 {offsets = [0, 384], sizes = [8, 128], strides = [1, 1]} : vector<8x512xf32> to vector<8x128xf32>
    %176 = math.tanh %175 : vector<8x128xf32>
    %177 = arith.mulf %173, %130 : vector<8x128xf32>
    %178 = arith.mulf %172, %176 : vector<8x128xf32>
    %179 = arith.addf %177, %178 : vector<8x128xf32>
    %180 = math.tanh %179 : vector<8x128xf32>
    %181 = arith.mulf %174, %180 : vector<8x128xf32>
    %182 = arith.truncf %181 : vector<8x128xf32> to vector<8x128xbf16>
    %183 = arith.truncf %155 : vector<8x128xf32> to vector<8x128xbf16>
    %184 = tpu.concatenate %182, %183 in 1 : vector<8x128xbf16>, vector<8x128xbf16> -> vector<8x256xbf16>
    %c0_49 = arith.constant 0 : index
    %c0_50 = arith.constant 0 : index
    %185 = vector.load %arg4[%c0_49, %c0_50] : memref<256x512xbf16, #tpu.memory_space<vmem>>, vector<256x512xbf16>
    %cst_51 = arith.constant dense<0.000000e+00> : vector<8x512xf32>
    %186 = tpu.matmul %184, %185, %cst_51 {dimension_numbers = #tpu.dot_dimension_numbers<[1], [0], [0], [1], [0, 0, 1, 1], [], []>} : vector<8x256xbf16>, vector<256x512xbf16>, vector<8x512xf32> -> vector<8x512xf32>
    %187 = vector.broadcast %8 : vector<1x512xf32> to vector<8x512xf32>
    %188 = arith.addf %186, %187 : vector<8x512xf32>
    %189 = vector.extract_strided_slice %188 {offsets = [0, 0], sizes = [8, 384], strides = [1, 1]} : vector<8x512xf32> to vector<8x384xf32>
    %190 = arith.negf %189 : vector<8x384xf32>
    %191 = math.exp %190 : vector<8x384xf32>
    %cst_52 = arith.constant 1.000000e+00 : f32
    %192 = vector.broadcast %cst_52 : f32 to vector<8x384xf32>
    %193 = arith.addf %192, %191 : vector<8x384xf32>
    %194 = arith.divf %192, %193 : vector<8x384xf32>
    %195 = vector.extract_strided_slice %194 {offsets = [0, 0], sizes = [8, 128], strides = [1, 1]} : vector<8x384xf32> to vector<8x128xf32>
    %196 = vector.extract_strided_slice %194 {offsets = [0, 128], sizes = [8, 128], strides = [1, 1]} : vector<8x384xf32> to vector<8x128xf32>
    %197 = vector.extract_strided_slice %194 {offsets = [0, 256], sizes = [8, 128], strides = [1, 1]} : vector<8x384xf32> to vector<8x128xf32>
    %198 = vector.extract_strided_slice %188 {offsets = [0, 384], sizes = [8, 128], strides = [1, 1]} : vector<8x512xf32> to vector<8x128xf32>
    %199 = math.tanh %198 : vector<8x128xf32>
    %200 = arith.mulf %196, %153 : vector<8x128xf32>
    %201 = arith.mulf %195, %199 : vector<8x128xf32>
    %202 = arith.addf %200, %201 : vector<8x128xf32>
    %203 = math.tanh %202 : vector<8x128xf32>
    %204 = arith.mulf %197, %203 : vector<8x128xf32>
    %205 = arith.index_cast %159 : i32 to index
    %c0_53 = arith.constant 0 : index
    %206 = vector.load %arg6[%205, %c0_53] : memref<96x128xf32, #tpu.memory_space<vmem>>, vector<8x128xf32>
    tpu.vector_store %arg6[%205, %c0_53], %204 {strides = array<i32>} : memref<96x128xf32, #tpu.memory_space<vmem>>, vector<8x128xf32>,
    %c4_i32 = arith.constant 4 : i32
    %c8_i32_54 = arith.constant 8 : i32
    %207 = arith.muli %c4_i32, %c8_i32_54 : i32
    %208 = tpu.assume_multiple %207, 8 : i32
    %209 = arith.index_cast %208 : i32 to index
    %c0_55 = arith.constant 0 : index
    %210 = vector.load %arg7[%209, %c0_55] : memref<96x512xf32, #tpu.memory_space<vmem>>, vector<8x512xf32>
    %211 = arith.truncf %181 : vector<8x128xf32> to vector<8x128xbf16>
    %c0_56 = arith.constant 0 : index
    %c0_57 = arith.constant 0 : index
    %212 = vector.load %arg2[%c0_56, %c0_57] : memref<128x512xbf16, #tpu.memory_space<vmem>>, vector<128x512xbf16>
    %cst_58 = arith.constant dense<0.000000e+00> : vector<8x512xf32>
    %213 = tpu.matmul %211, %212, %cst_58 {dimension_numbers = #tpu.dot_dimension_numbers<[1], [0], [0], [1], [0, 0, 1, 1], [], []>} : vector<8x128xbf16>, vector<128x512xbf16>, vector<8x512xf32> -> vector<8x512xf32>
    %214 = arith.addf %210, %213 : vector<8x512xf32>
    %215 = vector.extract_strided_slice %214 {offsets = [0, 0], sizes = [8, 384], strides = [1, 1]} : vector<8x512xf32> to vector<8x384xf32>
    %216 = arith.negf %215 : vector<8x384xf32>
    %217 = math.exp %216 : vector<8x384xf32>
    %cst_59 = arith.constant 1.000000e+00 : f32
    %218 = vector.broadcast %cst_59 : f32 to vector<8x384xf32>
    %219 = arith.addf %218, %217 : vector<8x384xf32>
    %220 = arith.divf %218, %219 : vector<8x384xf32>
    %221 = vector.extract_strided_slice %220 {offsets = [0, 0], sizes = [8, 128], strides = [1, 1]} : vector<8x384xf32> to vector<8x128xf32>
    %222 = vector.extract_strided_slice %220 {offsets = [0, 128], sizes = [8, 128], strides = [1, 1]} : vector<8x384xf32> to vector<8x128xf32>
    %223 = vector.extract_strided_slice %220 {offsets = [0, 256], sizes = [8, 128], strides = [1, 1]} : vector<8x384xf32> to vector<8x128xf32>
    %224 = vector.extract_strided_slice %214 {offsets = [0, 384], sizes = [8, 128], strides = [1, 1]} : vector<8x512xf32> to vector<8x128xf32>
    %225 = math.tanh %224 : vector<8x128xf32>
    %226 = arith.mulf %222, %179 : vector<8x128xf32>
    %227 = arith.mulf %221, %225 : vector<8x128xf32>
    %228 = arith.addf %226, %227 : vector<8x128xf32>
    %229 = math.tanh %228 : vector<8x128xf32>
    %230 = arith.mulf %223, %229 : vector<8x128xf32>
    %231 = arith.truncf %230 : vector<8x128xf32> to vector<8x128xbf16>
    %232 = arith.truncf %204 : vector<8x128xf32> to vector<8x128xbf16>
    %233 = tpu.concatenate %231, %232 in 1 : vector<8x128xbf16>, vector<8x128xbf16> -> vector<8x256xbf16>
    %c0_60 = arith.constant 0 : index
    %c0_61 = arith.constant 0 : index
    %234 = vector.load %arg4[%c0_60, %c0_61] : memref<256x512xbf16, #tpu.memory_space<vmem>>, vector<256x512xbf16>
    %cst_62 = arith.constant dense<0.000000e+00> : vector<8x512xf32>
    %235 = tpu.matmul %233, %234, %cst_62 {dimension_numbers = #tpu.dot_dimension_numbers<[1], [0], [0], [1], [0, 0, 1, 1], [], []>} : vector<8x256xbf16>, vector<256x512xbf16>, vector<8x512xf32> -> vector<8x512xf32>
    %236 = vector.broadcast %8 : vector<1x512xf32> to vector<8x512xf32>
    %237 = arith.addf %235, %236 : vector<8x512xf32>
    %238 = vector.extract_strided_slice %237 {offsets = [0, 0], sizes = [8, 384], strides = [1, 1]} : vector<8x512xf32> to vector<8x384xf32>
    %239 = arith.negf %238 : vector<8x384xf32>
    %240 = math.exp %239 : vector<8x384xf32>
    %cst_63 = arith.constant 1.000000e+00 : f32
    %241 = vector.broadcast %cst_63 : f32 to vector<8x384xf32>
    %242 = arith.addf %241, %240 : vector<8x384xf32>
    %243 = arith.divf %241, %242 : vector<8x384xf32>
    %244 = vector.extract_strided_slice %243 {offsets = [0, 0], sizes = [8, 128], strides = [1, 1]} : vector<8x384xf32> to vector<8x128xf32>
    %245 = vector.extract_strided_slice %243 {offsets = [0, 128], sizes = [8, 128], strides = [1, 1]} : vector<8x384xf32> to vector<8x128xf32>
    %246 = vector.extract_strided_slice %243 {offsets = [0, 256], sizes = [8, 128], strides = [1, 1]} : vector<8x384xf32> to vector<8x128xf32>
    %247 = vector.extract_strided_slice %237 {offsets = [0, 384], sizes = [8, 128], strides = [1, 1]} : vector<8x512xf32> to vector<8x128xf32>
    %248 = math.tanh %247 : vector<8x128xf32>
    %249 = arith.mulf %245, %202 : vector<8x128xf32>
    %250 = arith.mulf %244, %248 : vector<8x128xf32>
    %251 = arith.addf %249, %250 : vector<8x128xf32>
    %252 = math.tanh %251 : vector<8x128xf32>
    %253 = arith.mulf %246, %252 : vector<8x128xf32>
    %254 = arith.index_cast %208 : i32 to index
    %c0_64 = arith.constant 0 : index
    %255 = vector.load %arg6[%254, %c0_64] : memref<96x128xf32, #tpu.memory_space<vmem>>, vector<8x128xf32>
    tpu.vector_store %arg6[%254, %c0_64], %253 {strides = array<i32>} : memref<96x128xf32, #tpu.memory_space<vmem>>, vector<8x128xf32>,
    %c5_i32 = arith.constant 5 : i32
    %c8_i32_65 = arith.constant 8 : i32
    %256 = arith.muli %c5_i32, %c8_i32_65 : i32
    %257 = tpu.assume_multiple %256, 8 : i32
    %258 = arith.index_cast %257 : i32 to index
    %c0_66 = arith.constant 0 : index
    %259 = vector.load %arg7[%258, %c0_66] : memref<96x512xf32, #tpu.memory_space<vmem>>, vector<8x512xf32>
    %260 = arith.truncf %230 : vector<8x128xf32> to vector<8x128xbf16>
    %c0_67 = arith.constant 0 : index
    %c0_68 = arith.constant 0 : index
    %261 = vector.load %arg2[%c0_67, %c0_68] : memref<128x512xbf16, #tpu.memory_space<vmem>>, vector<128x512xbf16>
    %cst_69 = arith.constant dense<0.000000e+00> : vector<8x512xf32>
    %262 = tpu.matmul %260, %261, %cst_69 {dimension_numbers = #tpu.dot_dimension_numbers<[1], [0], [0], [1], [0, 0, 1, 1], [], []>} : vector<8x128xbf16>, vector<128x512xbf16>, vector<8x512xf32> -> vector<8x512xf32>
    %263 = arith.addf %259, %262 : vector<8x512xf32>
    %264 = vector.extract_strided_slice %263 {offsets = [0, 0], sizes = [8, 384], strides = [1, 1]} : vector<8x512xf32> to vector<8x384xf32>
    %265 = arith.negf %264 : vector<8x384xf32>
    %266 = math.exp %265 : vector<8x384xf32>
    %cst_70 = arith.constant 1.000000e+00 : f32
    %267 = vector.broadcast %cst_70 : f32 to vector<8x384xf32>
    %268 = arith.addf %267, %266 : vector<8x384xf32>
    %269 = arith.divf %267, %268 : vector<8x384xf32>
    %270 = vector.extract_strided_slice %269 {offsets = [0, 0], sizes = [8, 128], strides = [1, 1]} : vector<8x384xf32> to vector<8x128xf32>
    %271 = vector.extract_strided_slice %269 {offsets = [0, 128], sizes = [8, 128], strides = [1, 1]} : vector<8x384xf32> to vector<8x128xf32>
    %272 = vector.extract_strided_slice %269 {offsets = [0, 256], sizes = [8, 128], strides = [1, 1]} : vector<8x384xf32> to vector<8x128xf32>
    %273 = vector.extract_strided_slice %263 {offsets = [0, 384], sizes = [8, 128], strides = [1, 1]} : vector<8x512xf32> to vector<8x128xf32>
    %274 = math.tanh %273 : vector<8x128xf32>
    %275 = arith.mulf %271, %228 : vector<8x128xf32>
    %276 = arith.mulf %270, %274 : vector<8x128xf32>
    %277 = arith.addf %275, %276 : vector<8x128xf32>
    %278 = math.tanh %277 : vector<8x128xf32>
    %279 = arith.mulf %272, %278 : vector<8x128xf32>
    %280 = arith.truncf %279 : vector<8x128xf32> to vector<8x128xbf16>
    %281 = arith.truncf %253 : vector<8x128xf32> to vector<8x128xbf16>
    %282 = tpu.concatenate %280, %281 in 1 : vector<8x128xbf16>, vector<8x128xbf16> -> vector<8x256xbf16>
    %c0_71 = arith.constant 0 : index
    %c0_72 = arith.constant 0 : index
    %283 = vector.load %arg4[%c0_71, %c0_72] : memref<256x512xbf16, #tpu.memory_space<vmem>>, vector<256x512xbf16>
    %cst_73 = arith.constant dense<0.000000e+00> : vector<8x512xf32>
    %284 = tpu.matmul %282, %283, %cst_73 {dimension_numbers = #tpu.dot_dimension_numbers<[1], [0], [0], [1], [0, 0, 1, 1], [], []>} : vector<8x256xbf16>, vector<256x512xbf16>, vector<8x512xf32> -> vector<8x512xf32>
    %285 = vector.broadcast %8 : vector<1x512xf32> to vector<8x512xf32>
    %286 = arith.addf %284, %285 : vector<8x512xf32>
    %287 = vector.extract_strided_slice %286 {offsets = [0, 0], sizes = [8, 384], strides = [1, 1]} : vector<8x512xf32> to vector<8x384xf32>
    %288 = arith.negf %287 : vector<8x384xf32>
    %289 = math.exp %288 : vector<8x384xf32>
    %cst_74 = arith.constant 1.000000e+00 : f32
    %290 = vector.broadcast %cst_74 : f32 to vector<8x384xf32>
    %291 = arith.addf %290, %289 : vector<8x384xf32>
    %292 = arith.divf %290, %291 : vector<8x384xf32>
    %293 = vector.extract_strided_slice %292 {offsets = [0, 0], sizes = [8, 128], strides = [1, 1]} : vector<8x384xf32> to vector<8x128xf32>
    %294 = vector.extract_strided_slice %292 {offsets = [0, 128], sizes = [8, 128], strides = [1, 1]} : vector<8x384xf32> to vector<8x128xf32>
    %295 = vector.extract_strided_slice %292 {offsets = [0, 256], sizes = [8, 128], strides = [1, 1]} : vector<8x384xf32> to vector<8x128xf32>
    %296 = vector.extract_strided_slice %286 {offsets = [0, 384], sizes = [8, 128], strides = [1, 1]} : vector<8x512xf32> to vector<8x128xf32>
    %297 = math.tanh %296 : vector<8x128xf32>
    %298 = arith.mulf %294, %251 : vector<8x128xf32>
    %299 = arith.mulf %293, %297 : vector<8x128xf32>
    %300 = arith.addf %298, %299 : vector<8x128xf32>
    %301 = math.tanh %300 : vector<8x128xf32>
    %302 = arith.mulf %295, %301 : vector<8x128xf32>
    %303 = arith.index_cast %257 : i32 to index
    %c0_75 = arith.constant 0 : index
    %304 = vector.load %arg6[%303, %c0_75] : memref<96x128xf32, #tpu.memory_space<vmem>>, vector<8x128xf32>
    tpu.vector_store %arg6[%303, %c0_75], %302 {strides = array<i32>} : memref<96x128xf32, #tpu.memory_space<vmem>>, vector<8x128xf32>,
    %c6_i32 = arith.constant 6 : i32
    %c8_i32_76 = arith.constant 8 : i32
    %305 = arith.muli %c6_i32, %c8_i32_76 : i32
    %306 = tpu.assume_multiple %305, 8 : i32
    %307 = arith.index_cast %306 : i32 to index
    %c0_77 = arith.constant 0 : index
    %308 = vector.load %arg7[%307, %c0_77] : memref<96x512xf32, #tpu.memory_space<vmem>>, vector<8x512xf32>
    %309 = arith.truncf %279 : vector<8x128xf32> to vector<8x128xbf16>
    %c0_78 = arith.constant 0 : index
    %c0_79 = arith.constant 0 : index
    %310 = vector.load %arg2[%c0_78, %c0_79] : memref<128x512xbf16, #tpu.memory_space<vmem>>, vector<128x512xbf16>
    %cst_80 = arith.constant dense<0.000000e+00> : vector<8x512xf32>
    %311 = tpu.matmul %309, %310, %cst_80 {dimension_numbers = #tpu.dot_dimension_numbers<[1], [0], [0], [1], [0, 0, 1, 1], [], []>} : vector<8x128xbf16>, vector<128x512xbf16>, vector<8x512xf32> -> vector<8x512xf32>
    %312 = arith.addf %308, %311 : vector<8x512xf32>
    %313 = vector.extract_strided_slice %312 {offsets = [0, 0], sizes = [8, 384], strides = [1, 1]} : vector<8x512xf32> to vector<8x384xf32>
    %314 = arith.negf %313 : vector<8x384xf32>
    %315 = math.exp %314 : vector<8x384xf32>
    %cst_81 = arith.constant 1.000000e+00 : f32
    %316 = vector.broadcast %cst_81 : f32 to vector<8x384xf32>
    %317 = arith.addf %316, %315 : vector<8x384xf32>
    %318 = arith.divf %316, %317 : vector<8x384xf32>
    %319 = vector.extract_strided_slice %318 {offsets = [0, 0], sizes = [8, 128], strides = [1, 1]} : vector<8x384xf32> to vector<8x128xf32>
    %320 = vector.extract_strided_slice %318 {offsets = [0, 128], sizes = [8, 128], strides = [1, 1]} : vector<8x384xf32> to vector<8x128xf32>
    %321 = vector.extract_strided_slice %318 {offsets = [0, 256], sizes = [8, 128], strides = [1, 1]} : vector<8x384xf32> to vector<8x128xf32>
    %322 = vector.extract_strided_slice %312 {offsets = [0, 384], sizes = [8, 128], strides = [1, 1]} : vector<8x512xf32> to vector<8x128xf32>
    %323 = math.tanh %322 : vector<8x128xf32>
    %324 = arith.mulf %320, %277 : vector<8x128xf32>
    %325 = arith.mulf %319, %323 : vector<8x128xf32>
    %326 = arith.addf %324, %325 : vector<8x128xf32>
    %327 = math.tanh %326 : vector<8x128xf32>
    %328 = arith.mulf %321, %327 : vector<8x128xf32>
    %329 = arith.truncf %328 : vector<8x128xf32> to vector<8x128xbf16>
    %330 = arith.truncf %302 : vector<8x128xf32> to vector<8x128xbf16>
    %331 = tpu.concatenate %329, %330 in 1 : vector<8x128xbf16>, vector<8x128xbf16> -> vector<8x256xbf16>
    %c0_82 = arith.constant 0 : index
    %c0_83 = arith.constant 0 : index
    %332 = vector.load %arg4[%c0_82, %c0_83] : memref<256x512xbf16, #tpu.memory_space<vmem>>, vector<256x512xbf16>
    %cst_84 = arith.constant dense<0.000000e+00> : vector<8x512xf32>
    %333 = tpu.matmul %331, %332, %cst_84 {dimension_numbers = #tpu.dot_dimension_numbers<[1], [0], [0], [1], [0, 0, 1, 1], [], []>} : vector<8x256xbf16>, vector<256x512xbf16>, vector<8x512xf32> -> vector<8x512xf32>
    %334 = vector.broadcast %8 : vector<1x512xf32> to vector<8x512xf32>
    %335 = arith.addf %333, %334 : vector<8x512xf32>
    %336 = vector.extract_strided_slice %335 {offsets = [0, 0], sizes = [8, 384], strides = [1, 1]} : vector<8x512xf32> to vector<8x384xf32>
    %337 = arith.negf %336 : vector<8x384xf32>
    %338 = math.exp %337 : vector<8x384xf32>
    %cst_85 = arith.constant 1.000000e+00 : f32
    %339 = vector.broadcast %cst_85 : f32 to vector<8x384xf32>
    %340 = arith.addf %339, %338 : vector<8x384xf32>
    %341 = arith.divf %339, %340 : vector<8x384xf32>
    %342 = vector.extract_strided_slice %341 {offsets = [0, 0], sizes = [8, 128], strides = [1, 1]} : vector<8x384xf32> to vector<8x128xf32>
    %343 = vector.extract_strided_slice %341 {offsets = [0, 128], sizes = [8, 128], strides = [1, 1]} : vector<8x384xf32> to vector<8x128xf32>
    %344 = vector.extract_strided_slice %341 {offsets = [0, 256], sizes = [8, 128], strides = [1, 1]} : vector<8x384xf32> to vector<8x128xf32>
    %345 = vector.extract_strided_slice %335 {offsets = [0, 384], sizes = [8, 128], strides = [1, 1]} : vector<8x512xf32> to vector<8x128xf32>
    %346 = math.tanh %345 : vector<8x128xf32>
    %347 = arith.mulf %343, %300 : vector<8x128xf32>
    %348 = arith.mulf %342, %346 : vector<8x128xf32>
    %349 = arith.addf %347, %348 : vector<8x128xf32>
    %350 = math.tanh %349 : vector<8x128xf32>
    %351 = arith.mulf %344, %350 : vector<8x128xf32>
    %352 = arith.index_cast %306 : i32 to index
    %c0_86 = arith.constant 0 : index
    %353 = vector.load %arg6[%352, %c0_86] : memref<96x128xf32, #tpu.memory_space<vmem>>, vector<8x128xf32>
    tpu.vector_store %arg6[%352, %c0_86], %351 {strides = array<i32>} : memref<96x128xf32, #tpu.memory_space<vmem>>, vector<8x128xf32>,
    %c7_i32 = arith.constant 7 : i32
    %c8_i32_87 = arith.constant 8 : i32
    %354 = arith.muli %c7_i32, %c8_i32_87 : i32
    %355 = tpu.assume_multiple %354, 8 : i32
    %356 = arith.index_cast %355 : i32 to index
    %c0_88 = arith.constant 0 : index
    %357 = vector.load %arg7[%356, %c0_88] : memref<96x512xf32, #tpu.memory_space<vmem>>, vector<8x512xf32>
    %358 = arith.truncf %328 : vector<8x128xf32> to vector<8x128xbf16>
    %c0_89 = arith.constant 0 : index
    %c0_90 = arith.constant 0 : index
    %359 = vector.load %arg2[%c0_89, %c0_90] : memref<128x512xbf16, #tpu.memory_space<vmem>>, vector<128x512xbf16>
    %cst_91 = arith.constant dense<0.000000e+00> : vector<8x512xf32>
    %360 = tpu.matmul %358, %359, %cst_91 {dimension_numbers = #tpu.dot_dimension_numbers<[1], [0], [0], [1], [0, 0, 1, 1], [], []>} : vector<8x128xbf16>, vector<128x512xbf16>, vector<8x512xf32> -> vector<8x512xf32>
    %361 = arith.addf %357, %360 : vector<8x512xf32>
    %362 = vector.extract_strided_slice %361 {offsets = [0, 0], sizes = [8, 384], strides = [1, 1]} : vector<8x512xf32> to vector<8x384xf32>
    %363 = arith.negf %362 : vector<8x384xf32>
    %364 = math.exp %363 : vector<8x384xf32>
    %cst_92 = arith.constant 1.000000e+00 : f32
    %365 = vector.broadcast %cst_92 : f32 to vector<8x384xf32>
    %366 = arith.addf %365, %364 : vector<8x384xf32>
    %367 = arith.divf %365, %366 : vector<8x384xf32>
    %368 = vector.extract_strided_slice %367 {offsets = [0, 0], sizes = [8, 128], strides = [1, 1]} : vector<8x384xf32> to vector<8x128xf32>
    %369 = vector.extract_strided_slice %367 {offsets = [0, 128], sizes = [8, 128], strides = [1, 1]} : vector<8x384xf32> to vector<8x128xf32>
    %370 = vector.extract_strided_slice %367 {offsets = [0, 256], sizes = [8, 128], strides = [1, 1]} : vector<8x384xf32> to vector<8x128xf32>
    %371 = vector.extract_strided_slice %361 {offsets = [0, 384], sizes = [8, 128], strides = [1, 1]} : vector<8x512xf32> to vector<8x128xf32>
    %372 = math.tanh %371 : vector<8x128xf32>
    %373 = arith.mulf %369, %326 : vector<8x128xf32>
    %374 = arith.mulf %368, %372 : vector<8x128xf32>
    %375 = arith.addf %373, %374 : vector<8x128xf32>
    %376 = math.tanh %375 : vector<8x128xf32>
    %377 = arith.mulf %370, %376 : vector<8x128xf32>
    %378 = arith.truncf %377 : vector<8x128xf32> to vector<8x128xbf16>
    %379 = arith.truncf %351 : vector<8x128xf32> to vector<8x128xbf16>
    %380 = tpu.concatenate %378, %379 in 1 : vector<8x128xbf16>, vector<8x128xbf16> -> vector<8x256xbf16>
    %c0_93 = arith.constant 0 : index
    %c0_94 = arith.constant 0 : index
    %381 = vector.load %arg4[%c0_93, %c0_94] : memref<256x512xbf16, #tpu.memory_space<vmem>>, vector<256x512xbf16>
    %cst_95 = arith.constant dense<0.000000e+00> : vector<8x512xf32>
    %382 = tpu.matmul %380, %381, %cst_95 {dimension_numbers = #tpu.dot_dimension_numbers<[1], [0], [0], [1], [0, 0, 1, 1], [], []>} : vector<8x256xbf16>, vector<256x512xbf16>, vector<8x512xf32> -> vector<8x512xf32>
    %383 = vector.broadcast %8 : vector<1x512xf32> to vector<8x512xf32>
    %384 = arith.addf %382, %383 : vector<8x512xf32>
    %385 = vector.extract_strided_slice %384 {offsets = [0, 0], sizes = [8, 384], strides = [1, 1]} : vector<8x512xf32> to vector<8x384xf32>
    %386 = arith.negf %385 : vector<8x384xf32>
    %387 = math.exp %386 : vector<8x384xf32>
    %cst_96 = arith.constant 1.000000e+00 : f32
    %388 = vector.broadcast %cst_96 : f32 to vector<8x384xf32>
    %389 = arith.addf %388, %387 : vector<8x384xf32>
    %390 = arith.divf %388, %389 : vector<8x384xf32>
    %391 = vector.extract_strided_slice %390 {offsets = [0, 0], sizes = [8, 128], strides = [1, 1]} : vector<8x384xf32> to vector<8x128xf32>
    %392 = vector.extract_strided_slice %390 {offsets = [0, 128], sizes = [8, 128], strides = [1, 1]} : vector<8x384xf32> to vector<8x128xf32>
    %393 = vector.extract_strided_slice %390 {offsets = [0, 256], sizes = [8, 128], strides = [1, 1]} : vector<8x384xf32> to vector<8x128xf32>
    %394 = vector.extract_strided_slice %384 {offsets = [0, 384], sizes = [8, 128], strides = [1, 1]} : vector<8x512xf32> to vector<8x128xf32>
    %395 = math.tanh %394 : vector<8x128xf32>
    %396 = arith.mulf %392, %349 : vector<8x128xf32>
    %397 = arith.mulf %391, %395 : vector<8x128xf32>
    %398 = arith.addf %396, %397 : vector<8x128xf32>
    %399 = math.tanh %398 : vector<8x128xf32>
    %400 = arith.mulf %393, %399 : vector<8x128xf32>
    %401 = arith.index_cast %355 : i32 to index
    %c0_97 = arith.constant 0 : index
    %402 = vector.load %arg6[%401, %c0_97] : memref<96x128xf32, #tpu.memory_space<vmem>>, vector<8x128xf32>
    tpu.vector_store %arg6[%401, %c0_97], %400 {strides = array<i32>} : memref<96x128xf32, #tpu.memory_space<vmem>>, vector<8x128xf32>,
    %c8_i32_98 = arith.constant 8 : i32
    %c8_i32_99 = arith.constant 8 : i32
    %403 = arith.muli %c8_i32_98, %c8_i32_99 : i32
    %404 = tpu.assume_multiple %403, 8 : i32
    %405 = arith.index_cast %404 : i32 to index
    %c0_100 = arith.constant 0 : index
    %406 = vector.load %arg7[%405, %c0_100] : memref<96x512xf32, #tpu.memory_space<vmem>>, vector<8x512xf32>
    %407 = arith.truncf %377 : vector<8x128xf32> to vector<8x128xbf16>
    %c0_101 = arith.constant 0 : index
    %c0_102 = arith.constant 0 : index
    %408 = vector.load %arg2[%c0_101, %c0_102] : memref<128x512xbf16, #tpu.memory_space<vmem>>, vector<128x512xbf16>
    %cst_103 = arith.constant dense<0.000000e+00> : vector<8x512xf32>
    %409 = tpu.matmul %407, %408, %cst_103 {dimension_numbers = #tpu.dot_dimension_numbers<[1], [0], [0], [1], [0, 0, 1, 1], [], []>} : vector<8x128xbf16>, vector<128x512xbf16>, vector<8x512xf32> -> vector<8x512xf32>
    %410 = arith.addf %406, %409 : vector<8x512xf32>
    %411 = vector.extract_strided_slice %410 {offsets = [0, 0], sizes = [8, 384], strides = [1, 1]} : vector<8x512xf32> to vector<8x384xf32>
    %412 = arith.negf %411 : vector<8x384xf32>
    %413 = math.exp %412 : vector<8x384xf32>
    %cst_104 = arith.constant 1.000000e+00 : f32
    %414 = vector.broadcast %cst_104 : f32 to vector<8x384xf32>
    %415 = arith.addf %414, %413 : vector<8x384xf32>
    %416 = arith.divf %414, %415 : vector<8x384xf32>
    %417 = vector.extract_strided_slice %416 {offsets = [0, 0], sizes = [8, 128], strides = [1, 1]} : vector<8x384xf32> to vector<8x128xf32>
    %418 = vector.extract_strided_slice %416 {offsets = [0, 128], sizes = [8, 128], strides = [1, 1]} : vector<8x384xf32> to vector<8x128xf32>
    %419 = vector.extract_strided_slice %416 {offsets = [0, 256], sizes = [8, 128], strides = [1, 1]} : vector<8x384xf32> to vector<8x128xf32>
    %420 = vector.extract_strided_slice %410 {offsets = [0, 384], sizes = [8, 128], strides = [1, 1]} : vector<8x512xf32> to vector<8x128xf32>
    %421 = math.tanh %420 : vector<8x128xf32>
    %422 = arith.mulf %418, %375 : vector<8x128xf32>
    %423 = arith.mulf %417, %421 : vector<8x128xf32>
    %424 = arith.addf %422, %423 : vector<8x128xf32>
    %425 = math.tanh %424 : vector<8x128xf32>
    %426 = arith.mulf %419, %425 : vector<8x128xf32>
    %427 = arith.truncf %426 : vector<8x128xf32> to vector<8x128xbf16>
    %428 = arith.truncf %400 : vector<8x128xf32> to vector<8x128xbf16>
    %429 = tpu.concatenate %427, %428 in 1 : vector<8x128xbf16>, vector<8x128xbf16> -> vector<8x256xbf16>
    %c0_105 = arith.constant 0 : index
    %c0_106 = arith.constant 0 : index
    %430 = vector.load %arg4[%c0_105, %c0_106] : memref<256x512xbf16, #tpu.memory_space<vmem>>, vector<256x512xbf16>
    %cst_107 = arith.constant dense<0.000000e+00> : vector<8x512xf32>
    %431 = tpu.matmul %429, %430, %cst_107 {dimension_numbers = #tpu.dot_dimension_numbers<[1], [0], [0], [1], [0, 0, 1, 1], [], []>} : vector<8x256xbf16>, vector<256x512xbf16>, vector<8x512xf32> -> vector<8x512xf32>
    %432 = vector.broadcast %8 : vector<1x512xf32> to vector<8x512xf32>
    %433 = arith.addf %431, %432 : vector<8x512xf32>
    %434 = vector.extract_strided_slice %433 {offsets = [0, 0], sizes = [8, 384], strides = [1, 1]} : vector<8x512xf32> to vector<8x384xf32>
    %435 = arith.negf %434 : vector<8x384xf32>
    %436 = math.exp %435 : vector<8x384xf32>
    %cst_108 = arith.constant 1.000000e+00 : f32
    %437 = vector.broadcast %cst_108 : f32 to vector<8x384xf32>
    %438 = arith.addf %437, %436 : vector<8x384xf32>
    %439 = arith.divf %437, %438 : vector<8x384xf32>
    %440 = vector.extract_strided_slice %439 {offsets = [0, 0], sizes = [8, 128], strides = [1, 1]} : vector<8x384xf32> to vector<8x128xf32>
    %441 = vector.extract_strided_slice %439 {offsets = [0, 128], sizes = [8, 128], strides = [1, 1]} : vector<8x384xf32> to vector<8x128xf32>
    %442 = vector.extract_strided_slice %439 {offsets = [0, 256], sizes = [8, 128], strides = [1, 1]} : vector<8x384xf32> to vector<8x128xf32>
    %443 = vector.extract_strided_slice %433 {offsets = [0, 384], sizes = [8, 128], strides = [1, 1]} : vector<8x512xf32> to vector<8x128xf32>
    %444 = math.tanh %443 : vector<8x128xf32>
    %445 = arith.mulf %441, %398 : vector<8x128xf32>
    %446 = arith.mulf %440, %444 : vector<8x128xf32>
    %447 = arith.addf %445, %446 : vector<8x128xf32>
    %448 = math.tanh %447 : vector<8x128xf32>
    %449 = arith.mulf %442, %448 : vector<8x128xf32>
    %450 = arith.index_cast %404 : i32 to index
    %c0_109 = arith.constant 0 : index
    %451 = vector.load %arg6[%450, %c0_109] : memref<96x128xf32, #tpu.memory_space<vmem>>, vector<8x128xf32>
    tpu.vector_store %arg6[%450, %c0_109], %449 {strides = array<i32>} : memref<96x128xf32, #tpu.memory_space<vmem>>, vector<8x128xf32>,
    %c9_i32 = arith.constant 9 : i32
    %c8_i32_110 = arith.constant 8 : i32
    %452 = arith.muli %c9_i32, %c8_i32_110 : i32
    %453 = tpu.assume_multiple %452, 8 : i32
    %454 = arith.index_cast %453 : i32 to index
    %c0_111 = arith.constant 0 : index
    %455 = vector.load %arg7[%454, %c0_111] : memref<96x512xf32, #tpu.memory_space<vmem>>, vector<8x512xf32>
    %456 = arith.truncf %426 : vector<8x128xf32> to vector<8x128xbf16>
    %c0_112 = arith.constant 0 : index
    %c0_113 = arith.constant 0 : index
    %457 = vector.load %arg2[%c0_112, %c0_113] : memref<128x512xbf16, #tpu.memory_space<vmem>>, vector<128x512xbf16>
    %cst_114 = arith.constant dense<0.000000e+00> : vector<8x512xf32>
    %458 = tpu.matmul %456, %457, %cst_114 {dimension_numbers = #tpu.dot_dimension_numbers<[1], [0], [0], [1], [0, 0, 1, 1], [], []>} : vector<8x128xbf16>, vector<128x512xbf16>, vector<8x512xf32> -> vector<8x512xf32>
    %459 = arith.addf %455, %458 : vector<8x512xf32>
    %460 = vector.extract_strided_slice %459 {offsets = [0, 0], sizes = [8, 384], strides = [1, 1]} : vector<8x512xf32> to vector<8x384xf32>
    %461 = arith.negf %460 : vector<8x384xf32>
    %462 = math.exp %461 : vector<8x384xf32>
    %cst_115 = arith.constant 1.000000e+00 : f32
    %463 = vector.broadcast %cst_115 : f32 to vector<8x384xf32>
    %464 = arith.addf %463, %462 : vector<8x384xf32>
    %465 = arith.divf %463, %464 : vector<8x384xf32>
    %466 = vector.extract_strided_slice %465 {offsets = [0, 0], sizes = [8, 128], strides = [1, 1]} : vector<8x384xf32> to vector<8x128xf32>
    %467 = vector.extract_strided_slice %465 {offsets = [0, 128], sizes = [8, 128], strides = [1, 1]} : vector<8x384xf32> to vector<8x128xf32>
    %468 = vector.extract_strided_slice %465 {offsets = [0, 256], sizes = [8, 128], strides = [1, 1]} : vector<8x384xf32> to vector<8x128xf32>
    %469 = vector.extract_strided_slice %459 {offsets = [0, 384], sizes = [8, 128], strides = [1, 1]} : vector<8x512xf32> to vector<8x128xf32>
    %470 = math.tanh %469 : vector<8x128xf32>
    %471 = arith.mulf %467, %424 : vector<8x128xf32>
    %472 = arith.mulf %466, %470 : vector<8x128xf32>
    %473 = arith.addf %471, %472 : vector<8x128xf32>
    %474 = math.tanh %473 : vector<8x128xf32>
    %475 = arith.mulf %468, %474 : vector<8x128xf32>
    %476 = arith.truncf %475 : vector<8x128xf32> to vector<8x128xbf16>
    %477 = arith.truncf %449 : vector<8x128xf32> to vector<8x128xbf16>
    %478 = tpu.concatenate %476, %477 in 1 : vector<8x128xbf16>, vector<8x128xbf16> -> vector<8x256xbf16>
    %c0_116 = arith.constant 0 : index
    %c0_117 = arith.constant 0 : index
    %479 = vector.load %arg4[%c0_116, %c0_117] : memref<256x512xbf16, #tpu.memory_space<vmem>>, vector<256x512xbf16>
    %cst_118 = arith.constant dense<0.000000e+00> : vector<8x512xf32>
    %480 = tpu.matmul %478, %479, %cst_118 {dimension_numbers = #tpu.dot_dimension_numbers<[1], [0], [0], [1], [0, 0, 1, 1], [], []>} : vector<8x256xbf16>, vector<256x512xbf16>, vector<8x512xf32> -> vector<8x512xf32>
    %481 = vector.broadcast %8 : vector<1x512xf32> to vector<8x512xf32>
    %482 = arith.addf %480, %481 : vector<8x512xf32>
    %483 = vector.extract_strided_slice %482 {offsets = [0, 0], sizes = [8, 384], strides = [1, 1]} : vector<8x512xf32> to vector<8x384xf32>
    %484 = arith.negf %483 : vector<8x384xf32>
    %485 = math.exp %484 : vector<8x384xf32>
    %cst_119 = arith.constant 1.000000e+00 : f32
    %486 = vector.broadcast %cst_119 : f32 to vector<8x384xf32>
    %487 = arith.addf %486, %485 : vector<8x384xf32>
    %488 = arith.divf %486, %487 : vector<8x384xf32>
    %489 = vector.extract_strided_slice %488 {offsets = [0, 0], sizes = [8, 128], strides = [1, 1]} : vector<8x384xf32> to vector<8x128xf32>
    %490 = vector.extract_strided_slice %488 {offsets = [0, 128], sizes = [8, 128], strides = [1, 1]} : vector<8x384xf32> to vector<8x128xf32>
    %491 = vector.extract_strided_slice %488 {offsets = [0, 256], sizes = [8, 128], strides = [1, 1]} : vector<8x384xf32> to vector<8x128xf32>
    %492 = vector.extract_strided_slice %482 {offsets = [0, 384], sizes = [8, 128], strides = [1, 1]} : vector<8x512xf32> to vector<8x128xf32>
    %493 = math.tanh %492 : vector<8x128xf32>
    %494 = arith.mulf %490, %447 : vector<8x128xf32>
    %495 = arith.mulf %489, %493 : vector<8x128xf32>
    %496 = arith.addf %494, %495 : vector<8x128xf32>
    %497 = math.tanh %496 : vector<8x128xf32>
    %498 = arith.mulf %491, %497 : vector<8x128xf32>
    %499 = arith.index_cast %453 : i32 to index
    %c0_120 = arith.constant 0 : index
    %500 = vector.load %arg6[%499, %c0_120] : memref<96x128xf32, #tpu.memory_space<vmem>>, vector<8x128xf32>
    tpu.vector_store %arg6[%499, %c0_120], %498 {strides = array<i32>} : memref<96x128xf32, #tpu.memory_space<vmem>>, vector<8x128xf32>,
    %c10_i32 = arith.constant 10 : i32
    %c8_i32_121 = arith.constant 8 : i32
    %501 = arith.muli %c10_i32, %c8_i32_121 : i32
    %502 = tpu.assume_multiple %501, 8 : i32
    %503 = arith.index_cast %502 : i32 to index
    %c0_122 = arith.constant 0 : index
    %504 = vector.load %arg7[%503, %c0_122] : memref<96x512xf32, #tpu.memory_space<vmem>>, vector<8x512xf32>
    %505 = arith.truncf %475 : vector<8x128xf32> to vector<8x128xbf16>
    %c0_123 = arith.constant 0 : index
    %c0_124 = arith.constant 0 : index
    %506 = vector.load %arg2[%c0_123, %c0_124] : memref<128x512xbf16, #tpu.memory_space<vmem>>, vector<128x512xbf16>
    %cst_125 = arith.constant dense<0.000000e+00> : vector<8x512xf32>
    %507 = tpu.matmul %505, %506, %cst_125 {dimension_numbers = #tpu.dot_dimension_numbers<[1], [0], [0], [1], [0, 0, 1, 1], [], []>} : vector<8x128xbf16>, vector<128x512xbf16>, vector<8x512xf32> -> vector<8x512xf32>
    %508 = arith.addf %504, %507 : vector<8x512xf32>
    %509 = vector.extract_strided_slice %508 {offsets = [0, 0], sizes = [8, 384], strides = [1, 1]} : vector<8x512xf32> to vector<8x384xf32>
    %510 = arith.negf %509 : vector<8x384xf32>
    %511 = math.exp %510 : vector<8x384xf32>
    %cst_126 = arith.constant 1.000000e+00 : f32
    %512 = vector.broadcast %cst_126 : f32 to vector<8x384xf32>
    %513 = arith.addf %512, %511 : vector<8x384xf32>
    %514 = arith.divf %512, %513 : vector<8x384xf32>
    %515 = vector.extract_strided_slice %514 {offsets = [0, 0], sizes = [8, 128], strides = [1, 1]} : vector<8x384xf32> to vector<8x128xf32>
    %516 = vector.extract_strided_slice %514 {offsets = [0, 128], sizes = [8, 128], strides = [1, 1]} : vector<8x384xf32> to vector<8x128xf32>
    %517 = vector.extract_strided_slice %514 {offsets = [0, 256], sizes = [8, 128], strides = [1, 1]} : vector<8x384xf32> to vector<8x128xf32>
    %518 = vector.extract_strided_slice %508 {offsets = [0, 384], sizes = [8, 128], strides = [1, 1]} : vector<8x512xf32> to vector<8x128xf32>
    %519 = math.tanh %518 : vector<8x128xf32>
    %520 = arith.mulf %516, %473 : vector<8x128xf32>
    %521 = arith.mulf %515, %519 : vector<8x128xf32>
    %522 = arith.addf %520, %521 : vector<8x128xf32>
    %523 = math.tanh %522 : vector<8x128xf32>
    %524 = arith.mulf %517, %523 : vector<8x128xf32>
    %525 = arith.truncf %524 : vector<8x128xf32> to vector<8x128xbf16>
    %526 = arith.truncf %498 : vector<8x128xf32> to vector<8x128xbf16>
    %527 = tpu.concatenate %525, %526 in 1 : vector<8x128xbf16>, vector<8x128xbf16> -> vector<8x256xbf16>
    %c0_127 = arith.constant 0 : index
    %c0_128 = arith.constant 0 : index
    %528 = vector.load %arg4[%c0_127, %c0_128] : memref<256x512xbf16, #tpu.memory_space<vmem>>, vector<256x512xbf16>
    %cst_129 = arith.constant dense<0.000000e+00> : vector<8x512xf32>
    %529 = tpu.matmul %527, %528, %cst_129 {dimension_numbers = #tpu.dot_dimension_numbers<[1], [0], [0], [1], [0, 0, 1, 1], [], []>} : vector<8x256xbf16>, vector<256x512xbf16>, vector<8x512xf32> -> vector<8x512xf32>
    %530 = vector.broadcast %8 : vector<1x512xf32> to vector<8x512xf32>
    %531 = arith.addf %529, %530 : vector<8x512xf32>
    %532 = vector.extract_strided_slice %531 {offsets = [0, 0], sizes = [8, 384], strides = [1, 1]} : vector<8x512xf32> to vector<8x384xf32>
    %533 = arith.negf %532 : vector<8x384xf32>
    %534 = math.exp %533 : vector<8x384xf32>
    %cst_130 = arith.constant 1.000000e+00 : f32
    %535 = vector.broadcast %cst_130 : f32 to vector<8x384xf32>
    %536 = arith.addf %535, %534 : vector<8x384xf32>
    %537 = arith.divf %535, %536 : vector<8x384xf32>
    %538 = vector.extract_strided_slice %537 {offsets = [0, 0], sizes = [8, 128], strides = [1, 1]} : vector<8x384xf32> to vector<8x128xf32>
    %539 = vector.extract_strided_slice %537 {offsets = [0, 128], sizes = [8, 128], strides = [1, 1]} : vector<8x384xf32> to vector<8x128xf32>
    %540 = vector.extract_strided_slice %537 {offsets = [0, 256], sizes = [8, 128], strides = [1, 1]} : vector<8x384xf32> to vector<8x128xf32>
    %541 = vector.extract_strided_slice %531 {offsets = [0, 384], sizes = [8, 128], strides = [1, 1]} : vector<8x512xf32> to vector<8x128xf32>
    %542 = math.tanh %541 : vector<8x128xf32>
    %543 = arith.mulf %539, %496 : vector<8x128xf32>
    %544 = arith.mulf %538, %542 : vector<8x128xf32>
    %545 = arith.addf %543, %544 : vector<8x128xf32>
    %546 = math.tanh %545 : vector<8x128xf32>
    %547 = arith.mulf %540, %546 : vector<8x128xf32>
    %548 = arith.index_cast %502 : i32 to index
    %c0_131 = arith.constant 0 : index
    %549 = vector.load %arg6[%548, %c0_131] : memref<96x128xf32, #tpu.memory_space<vmem>>, vector<8x128xf32>
    tpu.vector_store %arg6[%548, %c0_131], %547 {strides = array<i32>} : memref<96x128xf32, #tpu.memory_space<vmem>>, vector<8x128xf32>,
    %c11_i32 = arith.constant 11 : i32
    %c8_i32_132 = arith.constant 8 : i32
    %550 = arith.muli %c11_i32, %c8_i32_132 : i32
    %551 = tpu.assume_multiple %550, 8 : i32
    %552 = arith.index_cast %551 : i32 to index
    %c0_133 = arith.constant 0 : index
    %553 = vector.load %arg7[%552, %c0_133] : memref<96x512xf32, #tpu.memory_space<vmem>>, vector<8x512xf32>
    %554 = arith.truncf %524 : vector<8x128xf32> to vector<8x128xbf16>
    %c0_134 = arith.constant 0 : index
    %c0_135 = arith.constant 0 : index
    %555 = vector.load %arg2[%c0_134, %c0_135] : memref<128x512xbf16, #tpu.memory_space<vmem>>, vector<128x512xbf16>
    %cst_136 = arith.constant dense<0.000000e+00> : vector<8x512xf32>
    %556 = tpu.matmul %554, %555, %cst_136 {dimension_numbers = #tpu.dot_dimension_numbers<[1], [0], [0], [1], [0, 0, 1, 1], [], []>} : vector<8x128xbf16>, vector<128x512xbf16>, vector<8x512xf32> -> vector<8x512xf32>
    %557 = arith.addf %553, %556 : vector<8x512xf32>
    %558 = vector.extract_strided_slice %557 {offsets = [0, 0], sizes = [8, 384], strides = [1, 1]} : vector<8x512xf32> to vector<8x384xf32>
    %559 = arith.negf %558 : vector<8x384xf32>
    %560 = math.exp %559 : vector<8x384xf32>
    %cst_137 = arith.constant 1.000000e+00 : f32
    %561 = vector.broadcast %cst_137 : f32 to vector<8x384xf32>
    %562 = arith.addf %561, %560 : vector<8x384xf32>
    %563 = arith.divf %561, %562 : vector<8x384xf32>
    %564 = vector.extract_strided_slice %563 {offsets = [0, 0], sizes = [8, 128], strides = [1, 1]} : vector<8x384xf32> to vector<8x128xf32>
    %565 = vector.extract_strided_slice %563 {offsets = [0, 128], sizes = [8, 128], strides = [1, 1]} : vector<8x384xf32> to vector<8x128xf32>
    %566 = vector.extract_strided_slice %563 {offsets = [0, 256], sizes = [8, 128], strides = [1, 1]} : vector<8x384xf32> to vector<8x128xf32>
    %567 = vector.extract_strided_slice %557 {offsets = [0, 384], sizes = [8, 128], strides = [1, 1]} : vector<8x512xf32> to vector<8x128xf32>
    %568 = math.tanh %567 : vector<8x128xf32>
    %569 = arith.mulf %565, %522 : vector<8x128xf32>
    %570 = arith.mulf %564, %568 : vector<8x128xf32>
    %571 = arith.addf %569, %570 : vector<8x128xf32>
    %572 = math.tanh %571 : vector<8x128xf32>
    %573 = arith.mulf %566, %572 : vector<8x128xf32>
    %574 = arith.truncf %573 : vector<8x128xf32> to vector<8x128xbf16>
    %575 = arith.truncf %547 : vector<8x128xf32> to vector<8x128xbf16>
    %576 = tpu.concatenate %574, %575 in 1 : vector<8x128xbf16>, vector<8x128xbf16> -> vector<8x256xbf16>
    %c0_138 = arith.constant 0 : index
    %c0_139 = arith.constant 0 : index
    %577 = vector.load %arg4[%c0_138, %c0_139] : memref<256x512xbf16, #tpu.memory_space<vmem>>, vector<256x512xbf16>
    %cst_140 = arith.constant dense<0.000000e+00> : vector<8x512xf32>
    %578 = tpu.matmul %576, %577, %cst_140 {dimension_numbers = #tpu.dot_dimension_numbers<[1], [0], [0], [1], [0, 0, 1, 1], [], []>} : vector<8x256xbf16>, vector<256x512xbf16>, vector<8x512xf32> -> vector<8x512xf32>
    %579 = vector.broadcast %8 : vector<1x512xf32> to vector<8x512xf32>
    %580 = arith.addf %578, %579 : vector<8x512xf32>
    %581 = vector.extract_strided_slice %580 {offsets = [0, 0], sizes = [8, 384], strides = [1, 1]} : vector<8x512xf32> to vector<8x384xf32>
    %582 = arith.negf %581 : vector<8x384xf32>
    %583 = math.exp %582 : vector<8x384xf32>
    %cst_141 = arith.constant 1.000000e+00 : f32
    %584 = vector.broadcast %cst_141 : f32 to vector<8x384xf32>
    %585 = arith.addf %584, %583 : vector<8x384xf32>
    %586 = arith.divf %584, %585 : vector<8x384xf32>
    %587 = vector.extract_strided_slice %586 {offsets = [0, 0], sizes = [8, 128], strides = [1, 1]} : vector<8x384xf32> to vector<8x128xf32>
    %588 = vector.extract_strided_slice %586 {offsets = [0, 128], sizes = [8, 128], strides = [1, 1]} : vector<8x384xf32> to vector<8x128xf32>
    %589 = vector.extract_strided_slice %586 {offsets = [0, 256], sizes = [8, 128], strides = [1, 1]} : vector<8x384xf32> to vector<8x128xf32>
    %590 = vector.extract_strided_slice %580 {offsets = [0, 384], sizes = [8, 128], strides = [1, 1]} : vector<8x512xf32> to vector<8x128xf32>
    %591 = math.tanh %590 : vector<8x128xf32>
    %592 = arith.mulf %588, %545 : vector<8x128xf32>
    %593 = arith.mulf %587, %591 : vector<8x128xf32>
    %594 = arith.addf %592, %593 : vector<8x128xf32>
    %595 = math.tanh %594 : vector<8x128xf32>
    %596 = arith.mulf %589, %595 : vector<8x128xf32>
    %597 = arith.index_cast %551 : i32 to index
    %c0_142 = arith.constant 0 : index
    %598 = vector.load %arg6[%597, %c0_142] : memref<96x128xf32, #tpu.memory_space<vmem>>, vector<8x128xf32>
    tpu.vector_store %arg6[%597, %c0_142], %596 {strides = array<i32>} : memref<96x128xf32, #tpu.memory_space<vmem>>, vector<8x128xf32>,
    %c12_i32 = arith.constant 12 : i32
    return
  }
}

</mosaic_0001>

<bundles_post_ra>
// kernel: mann_forward.1
= control target key start
LH: loop header
LB: loop body
LE: loop exit
PB: predicated region body
PF: predicated region fallthrough
CT: control target
= control target key end

     0   :  { %11 = vsyncpa [#allocation4], 0  ;;  %s17113_s0 = inlined_call_operand.vmem [shape: f32[96,256], index: 0, kind: input, shape index: {}]   ;;  %s17114_s1 = inlined_call_operand.hbm [shape: bf16[256,512], index: 1, kind: input, shape index: {}]   ;;  %s17115_s2 = inlined_call_operand.hbm [shape: bf16[128,512], index: 2, kind: input, shape index: {}]   ;;  %s17116_s3 = inlined_call_operand.hbm [shape: f32[1,512], index: 3, kind: input, shape index: {}]   ;;  %s17117_s4 = inlined_call_operand.vmem [shape: bf16[256,512], index: 4, kind: input, shape index: {}]   ;;  %s17118_s5 = inlined_call_operand.hbm [shape: f32[1,512], index: 5, kind: input, shape index: {}]   ;;  %s17119_s6 = inlined_call_operand.vmem [shape: f32[96,128], index: 6, kind: output, shape index: {}]  }
   0x1   :  { %12 = vsyncpa [#allocation6], 0 }
   0x2   :  { %13 = vsyncpa [#allocation9], 0  ;;  %s13205_s21 = smov [#allocation5]   ;;  %s13206_s23 = smov [#allocation3]  }
   0x3   :  { %s33_s22 = sshll.u32 %s13205_s21, 4  ;;  %s21_s24 = sshll.u32 %s13206_s23, 4  ;;  %s34_s22 = int_to_ptr.vmem [resolvable:$true] %s33_s22  ;;  %s22_s24 = int_to_ptr.vmem [resolvable:$true] %s21_s24 }
   0x4   :  { %s13127_s25 = scalar_lea.vmem %s34_s22, 4096  ;;  %p13132_p1 = scmp.lt.s32.totalorder %s34_s22, %s34_s22 }
   0x5   :  { %p13128_p0 = scmp.ne.s32.totalorder %s34_s22, %s13127_s25  ;;  %p13133_p2 = scmp.lt.s32.totalorder %s13127_s25, %s13127_s25 }
   0x7   :  { %p13134_p3 = por %p13133_p2, %p13132_p1 }
   0x9   :  { %p13135_p4 = pnand %p13134_p3, %p13128_p0 }
   0xb   :  { %13138 = shalt.err (!%p13135_p4)
}
   0xc   :  { %s13207_s26 = smov 256   ;;  %s13208_s27 = smov 16  }
   0xd   :  { %39 = dma.hbm_to_vmem [thread:$0]  %s17115_s2, 4096, %s34_s22, [#allocation6], %s13207_s26, %s13207_s26, %s13208_s27  }
   0xe   :  { %s13147_s30 = scalar_lea.vmem %s22_s24, 8192  ;;  %p13152_p6 = scmp.lt.s32.totalorder %s22_s24, %s22_s24 }
   0xf   :  { %p13148_p5 = scmp.ne.s32.totalorder %s22_s24, %s13147_s30  ;;  %p13153_p7 = scmp.lt.s32.totalorder %s13147_s30, %s13147_s30 }
  0x11   :  { %p13154_p8 = por %p13153_p7, %p13152_p6 }
  0x13   :  { %p13155_p9 = pnand %p13154_p8, %p13148_p5 }
  0x15   :  { %13158 = shalt.err (!%p13155_p9)
}
  0x16   :  { %27 = dma.hbm_to_vmem [thread:$0]  %s17114_s1, 8192, %s22_s24, [#allocation4], %s13207_s26, %s13207_s26, %s13208_s27  }
  0x17   :  { %s13209_s9 = smov [#allocation7]   ;;  %s13210_s11 = smov [#allocation8]  }
  0x18   :  { %s46_s10 = sshll.u32 %s13209_s9, 4  ;;  %s58_s12 = sshll.u32 %s13210_s11, 4  ;;  %s47_s10 = int_to_ptr.vmem [resolvable:$true] %s46_s10  ;;  %s59_s12 = int_to_ptr.vmem [resolvable:$true] %s58_s12 }
  0x19   :  { %s13167_s13 = scalar_lea.vmem %s47_s10, 64  ;;  %p13172_p11 = scmp.lt.s32.totalorder %s47_s10, %s47_s10 }
  0x1a   :  { %p13168_p10 = scmp.ne.s32.totalorder %s47_s10, %s13167_s13  ;;  %p13173_p12 = scmp.lt.s32.totalorder %s13167_s13, %s13167_s13 }
  0x1c   :  { %p13174_p13 = por %p13173_p12, %p13172_p11 }
  0x1e   :  { %p13175_p0 = pnand %p13174_p13, %p13168_p10 }
  0x20   :  { %13178 = shalt.err (!%p13175_p0)
}
  0x21   :  { %49 = dma.hbm_to_vmem [thread:$0]  %s17116_s3, 64, %s47_s10, [#allocation6]  }
  0x22   :  { %s13187_s15 = scalar_lea.vmem %s59_s12, 64  ;;  %p13192_p2 = scmp.lt.s32.totalorder %s59_s12, %s59_s12 }
  0x23   :  { %p13188_p1 = scmp.ne.s32.totalorder %s59_s12, %s13187_s15  ;;  %p13193_p3 = scmp.lt.s32.totalorder %s13187_s15, %s13187_s15 }
  0x25   :  { %p13194_p4 = por %p13193_p3, %p13192_p2 }
  0x27   :  { %p13195_p5 = pnand %p13194_p4, %p13188_p1 }
  0x29   :  { %13198 = shalt.err (!%p13195_p5)
}
  0x2a   :  { %61 = dma.hbm_to_vmem [thread:$0]  %s17118_s5, 64, %s59_s12, [#allocation9]  }
  0x2b   :  { %13199 = dma.done.wait [#allocation4], 8192  }
  0x2c   :  { %13200 = vsyncadd [#allocation4], 4294959104 }
  0x2d   :  { %13201 = dma.done.wait [#allocation6], 4160  }
  0x2e   :  { %13202 = vsyncadd [#allocation6], 4294963136 }
  0x2f   :  { %13203 = dma.done.wait [#allocation9], 64  }
  0x30   :  { %13204 = vsyncadd [#allocation9], 4294967232  ;;  %v11731_v0 = vld [vmem:[#allocation3 + $0xe4] ss:$16 sps:$4 sm:$0xff]   ;;  %v11733_v1 = vld [vmem:[#allocation3 + $0xec] ss:$16 sps:$4 sm:$0xff]  }
  0x31   :  { %517 = vmatprep.subr.bf16.mxu0 %v11731_v0  ;;  %v11735_v2 = vld [vmem:[#allocation3 + $0xe0] ss:$16 sps:$4 sm:$0xff]   ;;  %v11736_v3 = vld [vmem:[#allocation3 + $0xe8] ss:$16 sps:$4 sm:$0xff]   ;;  %610 = vmatprep.subr.bf16.mxu1 %v11733_v1  ;;  %v11737_v4 = vld [vmem:[#allocation3 + $0xc4] ss:$16 sps:$4 sm:$0xff]  }
  0x32   :  { %518 = vmatpush1.bf16.msra.mxu0 %v11735_v2  ;;  %611 = vmatpush1.bf16.msra.mxu1 %v11736_v3  ;;  %v11739_v5 = vld [vmem:[#allocation3 + $0xcc] ss:$16 sps:$4 sm:$0xff]   ;;  %v11741_v6 = vld [vmem:[#allocation3 + $0xc0] ss:$16 sps:$4 sm:$0xff]   ;;  %v11742_v7 = vld [vmem:[#allocation3 + $0xc8] ss:$16 sps:$4 sm:$0xff]  }
  0x33   :  { %519 = vmatprep.subr.bf16.mxu0 %v11737_v4  ;;  %612 = vmatprep.subr.bf16.mxu1 %v11739_v5  ;;  %v11743_v8 = vld [vmem:[#allocation3 + $0xa4] ss:$16 sps:$4 sm:$0xff]   ;;  %v11745_v9 = vld [vmem:[#allocation3 + $0xac] ss:$16 sps:$4 sm:$0xff]   ;;  %v11747_v10 = vld [vmem:[#allocation3 + $0xa0] ss:$16 sps:$4 sm:$0xff]  }
  0x34   :  { %v11748_v11 = vld [vmem:[#allocation3 + $0xa8] ss:$16 sps:$4 sm:$0xff]   ;;  %v11749_v12 = vld [vmem:[#allocation3 + $0x84] ss:$16 sps:$4 sm:$0xff]   ;;  %v11751_v13 = vld [vmem:[#allocation3 + $0x8c] ss:$16 sps:$4 sm:$0xff]  }
  0x35   :  { %v11753_v14 = vld [vmem:[#allocation3 + $0x80] ss:$16 sps:$4 sm:$0xff]   ;;  %v11754_v15 = vld [vmem:[#allocation3 + $0x88] ss:$16 sps:$4 sm:$0xff]   ;;  %v11755_v16 = vld [vmem:[#allocation3 + $0x64] ss:$16 sps:$4 sm:$0xff]  }
  0x36   :  { %520 = vmatpush1.bf16.msra.mxu0 %v11741_v6  ;;  %613 = vmatpush1.bf16.msra.mxu1 %v11742_v7  ;;  %v11757_v17 = vld [vmem:[#allocation3 + $0x6c] ss:$16 sps:$4 sm:$0xff]   ;;  %v11759_v18 = vld [vmem:[#allocation3 + $0x60] ss:$16 sps:$4 sm:$0xff]   ;;  %v11760_v19 = vld [vmem:[#allocation3 + $0x68] ss:$16 sps:$4 sm:$0xff]  }
  0x37   :  { %521 = vmatprep.subr.bf16.mxu0 %v11743_v8  ;;  %614 = vmatprep.subr.bf16.mxu1 %v11745_v9  ;;  %v11761_v20 = vld [vmem:[#allocation3 + $0x44] ss:$16 sps:$4 sm:$0xff]   ;;  %v11763_v21 = vld [vmem:[#allocation3 + $0x4c] ss:$16 sps:$4 sm:$0xff]   ;;  %v11765_v22 = vld [vmem:[#allocation3 + $0x40] ss:$16 sps:$4 sm:$0xff]  }
  0x38   :  { %v11766_v23 = vld [vmem:[#allocation3 + $0x48] ss:$16 sps:$4 sm:$0xff]   ;;  %v11767_v24 = vld [vmem:[#allocation3 + $0x24] ss:$16 sps:$4 sm:$0xff]   ;;  %v11769_v25 = vld [vmem:[#allocation3 + $0x2c] ss:$16 sps:$4 sm:$0xff]  }
  0x39   :  { %v11771_v26 = vld [vmem:[#allocation3 + $0x20] ss:$16 sps:$4 sm:$0xff]   ;;  %v11772_v27 = vld [vmem:[#allocation3 + $0x28] ss:$16 sps:$4 sm:$0xff]   ;;  %v11773_v28 = vld [vmem:[#allocation3 + $0x4] ss:$16 sps:$4 sm:$0xff]  }
  0x3a   :  { %522 = vmatpush1.bf16.msra.mxu0 %v11747_v10  ;;  %615 = vmatpush1.bf16.msra.mxu1 %v11748_v11  ;;  %v11775_v29 = vld [vmem:[#allocation3 + $0xc] ss:$16 sps:$4 sm:$0xff]   ;;  %v11777_v30 = vld [vmem:[#allocation3] ss:$16 sps:$4 sm:$0xff]   ;;  %v11778_v31 = vld [vmem:[#allocation3 + $0x8] ss:$16 sps:$4 sm:$0xff]  }
  0x3b   :  { %523 = vmatprep.subr.bf16.mxu0 %v11749_v12  ;;  %616 = vmatprep.subr.bf16.mxu1 %v11751_v13  ;;  %v11779_v32 = vld [vmem:[#allocation3 + $0x1e4] ss:$16 sps:$4 sm:$0xff]   ;;  %v11781_v33 = vld [vmem:[#allocation3 + $0x1ec] ss:$16 sps:$4 sm:$0xff]   ;;  %v11783_v34 = vld [vmem:[#allocation3 + $0x1e0] ss:$16 sps:$4 sm:$0xff]  }
  0x3c   :  { %v11784_v35 = vld [vmem:[#allocation3 + $0x1e8] ss:$16 sps:$4 sm:$0xff]   ;;  %v11785_v36 = vld [vmem:[#allocation3 + $0x1c4] ss:$16 sps:$4 sm:$0xff]   ;;  %v11787_v37 = vld [vmem:[#allocation3 + $0x1cc] ss:$16 sps:$4 sm:$0xff]  }
  0x3d   :  { %v11789_v38 = vld [vmem:[#allocation3 + $0x1c0] ss:$16 sps:$4 sm:$0xff]   ;;  %v11790_v39 = vld [vmem:[#allocation3 + $0x1c8] ss:$16 sps:$4 sm:$0xff]   ;;  %v11791_v40 = vld [vmem:[#allocation3 + $0x1a4] ss:$16 sps:$4 sm:$0xff]  }
  0x3e   :  { %524 = vmatpush1.bf16.msra.mxu0 %v11753_v14  ;;  %617 = vmatpush1.bf16.msra.mxu1 %v11754_v15  ;;  %v11793_v41 = vld [vmem:[#allocation3 + $0x1ac] ss:$16 sps:$4 sm:$0xff]   ;;  %v11795_v42 = vld [vmem:[#allocation3 + $0x1a0] ss:$16 sps:$4 sm:$0xff]   ;;  %v11796_v43 = vld [vmem:[#allocation3 + $0x1a8] ss:$16 sps:$4 sm:$0xff]  }
  0x3f   :  { %525 = vmatprep.subr.bf16.mxu0 %v11755_v16  ;;  %618 = vmatprep.subr.bf16.mxu1 %v11757_v17  ;;  %v11797_v44 = vld [vmem:[#allocation3 + $0x184] ss:$16 sps:$4 sm:$0xff]   ;;  %v11799_v45 = vld [vmem:[#allocation3 + $0x18c] ss:$16 sps:$4 sm:$0xff]   ;;  %v11801_v47 = vld [vmem:[#allocation3 + $0x180] ss:$16 sps:$4 sm:$0xff]  }
  0x40   :  { %v76_v46 = vld [vmem:[%s17113_s0 + $0x8] sm:$0xff]  ;;  %v78_v49 = vld [vmem:[%s17113_s0 + $0x18] sm:$0xff]  ;;  %v11803_v50 = vld [vmem:[#allocation3 + $0x164] ss:$16 sps:$4 sm:$0xff]  }
  0x41   :  { %v11802_v48 = vld [vmem:[#allocation3 + $0x188] ss:$16 sps:$4 sm:$0xff]   ;;  %v100_v51 = vpack.c.bf16 %v78_v49, %v76_v46  ;;  %v11805_v52 = vld [vmem:[#allocation3 + $0x16c] ss:$16 sps:$4 sm:$0xff]   ;;  %v11807_v53 = vld [vmem:[#allocation3 + $0x160] ss:$16 sps:$4 sm:$0xff]  }
  0x42   :  { %526 = vmatpush1.bf16.msra.mxu0 %v11759_v18  ;;  %619 = vmatpush1.bf16.msra.mxu1 %v11760_v19  ;;  %v11808_v54 = vld [vmem:[#allocation3 + $0x168] ss:$16 sps:$4 sm:$0xff]   ;;  %v11809_v55 = vld [vmem:[#allocation3 + $0x144] ss:$16 sps:$4 sm:$0xff]   ;;  %v11811_v56 = vld [vmem:[#allocation3 + $0x14c] ss:$16 sps:$4 sm:$0xff]  }
  0x43   :  { %527 = vmatprep.subr.bf16.mxu0 %v11761_v20  ;;  %620 = vmatprep.subr.bf16.mxu1 %v11763_v21  ;;  %v11813_v57 = vld [vmem:[#allocation3 + $0x140] ss:$16 sps:$4 sm:$0xff]   ;;  %v11814_v58 = vld [vmem:[#allocation3 + $0x148] ss:$16 sps:$4 sm:$0xff]   ;;  %v11815_v59 = vld [vmem:[#allocation3 + $0x124] ss:$16 sps:$4 sm:$0xff]  }
  0x44   :  { %549 = vmatprep.mubr.bf16.mxu0 %v100_v51  ;;  %642 = vmatprep.mubr.bf16.mxu1 %v100_v51  ;;  %v11817_v60 = vld [vmem:[#allocation3 + $0x12c] ss:$16 sps:$4 sm:$0xff]   ;;  %v11819_v61 = vld [vmem:[#allocation3 + $0x120] ss:$16 sps:$4 sm:$0xff]   ;;  %v11820_v62 = vld [vmem:[#allocation3 + $0x128] ss:$16 sps:$4 sm:$0xff]  }
  0x45   :  { %v11821_v63 = vld [vmem:[#allocation3 + $0x104] ss:$16 sps:$4 sm:$0xff]   ;;  %v11823_v0 = vld [vmem:[#allocation3 + $0x10c] ss:$16 sps:$4 sm:$0xff]   ;;  %v11825_v1 = vld [vmem:[#allocation3 + $0x100] ss:$16 sps:$4 sm:$0xff]  }
  0x46   :  { %528 = vmatpush1.bf16.msra.mxu0 %v11765_v22  ;;  %621 = vmatpush1.bf16.msra.mxu1 %v11766_v23  ;;  %v11826_v2 = vld [vmem:[#allocation3 + $0x108] ss:$16 sps:$4 sm:$0xff]   ;;  %v75_v3 = vld [vmem:[%s17113_s0] sm:$0xff]  ;;  %v77_v4 = vld [vmem:[%s17113_s0 + $0x10] sm:$0xff] }
  0x47   :  { %529 = vmatprep.subr.bf16.mxu0 %v11767_v24  ;;  %622 = vmatprep.subr.bf16.mxu1 %v11769_v25  ;;  %v11829_v5 = vld [vmem:[#allocation5 + $0xe4] ss:$16 sps:$4 sm:$0xff]   ;;  %v80_v6 = vld [vmem:[%s17113_s0 + $0x28] sm:$0xff]  ;;  %v82_v7 = vld [vmem:[%s17113_s0 + $0x38] sm:$0xff]  ;;  %v99_v9 = vpack.c.bf16 %v77_v4, %v75_v3  ;;  %v17120_v4 = vmov 0  }
  0x48   :  { %v11838_v8 = vld [vmem:[#allocation5 + $0xec] ss:$16 sps:$4 sm:$0xff]   ;;  %v11827_v10 = vld [vmem:[#allocation5 + $0xe0] ss:$16 sps:$4 sm:$0xff]   ;;  %v102_v11 = vpack.c.bf16 %v82_v7, %v80_v6  ;;  %v11832_v12 = vld [vmem:[#allocation5 + $0xc4] ss:$16 sps:$4 sm:$0xff]  }
  0x49   :  { %v11830_v13 = vld [vmem:[#allocation5 + $0xc0] ss:$16 sps:$4 sm:$0xff]   ;;  %v11836_v15 = vld [vmem:[#allocation5 + $0xe8] ss:$16 sps:$4 sm:$0xff]   ;;  %v11835_v17 = vld [vmem:[#allocation5 + $0xa4] ss:$16 sps:$4 sm:$0xff]  }
  0x4a   :  { %530 = vmatpush1.bf16.msra.mxu0 %v11771_v26  ;;  %623 = vmatpush1.bf16.msra.mxu1 %v11772_v27  ;;  %v79_v14 = vld [vmem:[%s17113_s0 + $0x20] sm:$0xff]  ;;  %v81_v16 = vld [vmem:[%s17113_s0 + $0x30] sm:$0xff]  ;;  %v11844_v18 = vld [vmem:[#allocation5 + $0xcc] ss:$16 sps:$4 sm:$0xff]  }
  0x4b   :  { %531 = vmatprep.subr.bf16.mxu0 %v11773_v28  ;;  %624 = vmatprep.subr.bf16.mxu1 %v11775_v29  ;;  %v84_v19 = vld [vmem:[%s17113_s0 + $0x48] sm:$0xff]  ;;  %v86_v20 = vld [vmem:[%s17113_s0 + $0x58] sm:$0xff]  ;;  %v101_v22 = vpack.c.bf16 %v81_v16, %v79_v14  ;;  %v11833_v23 = vld [vmem:[#allocation5 + $0xa0] ss:$16 sps:$4 sm:$0xff]  }
  0x4c   :  { %v11842_v21 = vld [vmem:[#allocation5 + $0xc8] ss:$16 sps:$4 sm:$0xff]   ;;  %v11841_v24 = vld [vmem:[#allocation5 + $0x84] ss:$16 sps:$4 sm:$0xff]   ;;  %v104_v25 = vpack.c.bf16 %v86_v20, %v84_v19  ;;  %v11850_v26 = vld [vmem:[#allocation5 + $0xac] ss:$16 sps:$4 sm:$0xff]  }
  0x4d   :  { %v11848_v27 = vld [vmem:[#allocation5 + $0xa8] ss:$16 sps:$4 sm:$0xff]   ;;  %v83_v28 = vld [vmem:[%s17113_s0 + $0x40] sm:$0xff]  ;;  %v85_v29 = vld [vmem:[%s17113_s0 + $0x50] sm:$0xff] }
  0x4e   :  { %532 = vmatpush1.bf16.msra.mxu0 %v11777_v30  ;;  %625 = vmatpush1.bf16.msra.mxu1 %v11778_v31  ;;  %v11839_v30 = vld [vmem:[#allocation5 + $0x80] ss:$16 sps:$4 sm:$0xff]   ;;  %v11853_v31 = vld [vmem:[#allocation5 + $0x8c] ss:$16 sps:$4 sm:$0xff]   ;;  %v11857_v46 = vld [vmem:[#allocation5 + $0x68] ss:$16 sps:$4 sm:$0xff]  }
  0x4f   :  { %533 = vmatprep.subr.bf16.mxu0 %v11779_v32  ;;  %626 = vmatprep.subr.bf16.mxu1 %v11781_v33  ;;  %v88_v32 = vld [vmem:[%s17113_s0 + $0x68] sm:$0xff]  ;;  %v90_v33 = vld [vmem:[%s17113_s0 + $0x78] sm:$0xff]  ;;  %v11875_v7 = vld [vmem:[%s17117_s4 + $0xe0] ss:$16 sps:$4 sm:$0xff]  }
  0x50   :  { %v11863_v51 = vld [vmem:[#allocation5 + $0x48] ss:$16 sps:$4 sm:$0xff]   ;;  %v11880_v6 = vld [vmem:[%s17117_s4 + $0xec] ss:$16 sps:$4 sm:$0xff]   ;;  %v13386_v19 = vld [vmem:[%s17117_s4 + $0x80] ss:$16 sps:$4 sm:$0xff]  }
  0x51   :  { %v11892_v14 = vld [vmem:[%s17117_s4 + $0xac] ss:$16 sps:$4 sm:$0xff]   ;;  %v11890_v16 = vld [vmem:[%s17117_s4 + $0xa8] ss:$16 sps:$4 sm:$0xff]  }
  0x52   :  { %534 = vmatpush2.bf16.msra.mxu0 %v11783_v34  ;;  %627 = vmatpush2.bf16.msra.mxu1 %v11784_v35  ;;  %v11847_v34 = vld [vmem:[#allocation5 + $0x64] ss:$16 sps:$4 sm:$0xff]   ;;  %v103_v35 = vpack.c.bf16 %v85_v29, %v83_v28  ;;  %v13391_v20 = vld [vmem:[%s17117_s4 + $0x88] ss:$16 sps:$4 sm:$0xff]  }
  0x53   :  { %535 = vmatprep.subr.bf16.mxu0 %v11785_v36  ;;  %628 = vmatprep.subr.bf16.mxu1 %v11787_v37  ;;  %v11845_v36 = vld [vmem:[#allocation5 + $0x60] ss:$16 sps:$4 sm:$0xff]   ;;  %v11851_v37 = vld [vmem:[#allocation5 + $0x88] ss:$16 sps:$4 sm:$0xff]   ;;  %v13448_v29 = vld [vmem:[%s17117_s4 + $0x24] ss:$16 sps:$4 sm:$0xff]  }
  0x54   :  { %v13439_v28 = vld [vmem:[%s17117_s4 + $0x48] ss:$16 sps:$4 sm:$0xff]  }
  0x56   :  { %536 = vmatpush2.bf16.msra.mxu0 %v11789_v38  ;;  %629 = vmatpush2.bf16.msra.mxu1 %v11790_v39  ;;  %v106_v38 = vpack.c.bf16 %v90_v33, %v88_v32  ;;  %v11856_v39 = vld [vmem:[#allocation5 + $0x44] ss:$16 sps:$4 sm:$0xff]   ;;  %v13463_v32 = vld [vmem:[%s17117_s4 + $0x28] ss:$16 sps:$4 sm:$0xff]  }
  0x57   :  { %537 = vmatprep.subr.bf16.mxu0 %v11791_v40  ;;  %630 = vmatprep.subr.bf16.mxu1 %v11793_v41  ;;  %v11859_v40 = vld [vmem:[#allocation5 + $0x6c] ss:$16 sps:$4 sm:$0xff]   ;;  %v87_v41 = vld [vmem:[%s17113_s0 + $0x60] sm:$0xff] }
  0x58   :  { %v13472_v33 = vld [vmem:[%s17117_s4 + $0x4] ss:$16 sps:$4 sm:$0xff]  }
  0x5a   :  { %538 = vmatpush2.bf16.msra.mxu0 %v11795_v42  ;;  %631 = vmatpush2.bf16.msra.mxu1 %v11796_v43  ;;  %v89_v42 = vld [vmem:[%s17113_s0 + $0x70] sm:$0xff] }
  0x5b   :  { %539 = vmatprep.subr.bf16.mxu0 %v11797_v44  ;;  %632 = vmatprep.subr.bf16.mxu1 %v11799_v45  ;;  %v11854_v43 = vld [vmem:[#allocation5 + $0x40] ss:$16 sps:$4 sm:$0xff]   ;;  %v92_v44 = vld [vmem:[%s17113_s0 + $0x88] sm:$0xff]  ;;  %v94_v45 = vld [vmem:[%s17113_s0 + $0x98] sm:$0xff]  ;;  %v105_v49 = vpack.c.bf16 %v89_v42, %v87_v41 }
  0x5c   :  { %v13520_v41 = vld [vmem:[%s17117_s4 + $0x1c4] ss:$16 sps:$4 sm:$0xff]   ;;  %v13525_v42 = vld [vmem:[%s17117_s4 + $0x1cc] ss:$16 sps:$4 sm:$0xff]  }
  0x5e   :  { %540 = vmatpush2.bf16.msra.mxu0 %v11801_v47  ;;  %633 = vmatpush2.bf16.msra.mxu1 %v11802_v48  ;;  %v11862_v47 = vld [vmem:[#allocation5 + $0x24] ss:$16 sps:$4 sm:$0xff]   ;;  %v11865_v48 = vld [vmem:[#allocation5 + $0x4c] ss:$16 sps:$4 sm:$0xff]  }
  0x5f   :  { %541 = vmatprep.subr.bf16.mxu0 %v11803_v50  ;;  %634 = vmatprep.subr.bf16.mxu1 %v11805_v52  ;;  %v11860_v50 = vld [vmem:[#allocation5 + $0x20] ss:$16 sps:$4 sm:$0xff]   ;;  %v108_v52 = vpack.c.bf16 %v94_v45, %v92_v44  ;;  %v13535_v44 = vld [vmem:[%s17117_s4 + $0x1c8] ss:$16 sps:$4 sm:$0xff]   ;;  %v13544_v45 = vld [vmem:[%s17117_s4 + $0x1a4] ss:$16 sps:$4 sm:$0xff]  }
  0x62   :  { %542 = vmatpush2.bf16.msra.mxu0 %v11807_v53  ;;  %635 = vmatpush2.bf16.msra.mxu1 %v11808_v54  ;;  %v11868_v53 = vld [vmem:[#allocation5 + $0x2c] ss:$16 sps:$4 sm:$0xff]   ;;  %v11871_v54 = vld [vmem:[#allocation5 + $0x4] ss:$16 sps:$4 sm:$0xff]  }
  0x63   :  { %543 = vmatprep.subr.bf16.mxu0 %v11809_v55  ;;  %636 = vmatprep.subr.bf16.mxu1 %v11811_v56  ;;  %v91_v55 = vld [vmem:[%s17113_s0 + $0x80] sm:$0xff]  ;;  %v93_v56 = vld [vmem:[%s17113_s0 + $0x90] sm:$0xff] }
  0x66   :  { %544 = vmatpush2.bf16.msra.mxu0 %v11813_v57  ;;  %637 = vmatpush2.bf16.msra.mxu1 %v11814_v58  ;;  %v96_v57 = vld [vmem:[%s17113_s0 + $0xa8] sm:$0xff]  ;;  %v98_v58 = vld [vmem:[%s17113_s0 + $0xb8] sm:$0xff] }
  0x67   :  { %545 = vmatprep.subr.bf16.mxu0 %v11815_v59  ;;  %638 = vmatprep.subr.bf16.mxu1 %v11817_v60  ;;  %v11866_v59 = vld [vmem:[#allocation5 + $0x28] ss:$16 sps:$4 sm:$0xff]   ;;  %v11869_v60 = vld [vmem:[#allocation5] ss:$16 sps:$4 sm:$0xff]  }
  0x6a   :  { %546 = vmatpush2.bf16.msra.mxu0 %v11819_v61  ;;  %639 = vmatpush2.bf16.msra.mxu1 %v11820_v62  ;;  %v11874_v61 = vld [vmem:[#allocation5 + $0xc] ss:$16 sps:$4 sm:$0xff]   ;;  %v107_v62 = vpack.c.bf16 %v93_v56, %v91_v55  ;;  %v13602_v55 = vld [vmem:[%s17117_s4 + $0x168] ss:$16 sps:$4 sm:$0xff]  }
  0x6b   :  { %547 = vmatprep.subr.bf16.mxu0 %v11821_v63  ;;  %640 = vmatprep.subr.bf16.mxu1 %v11823_v0  ;;  %v11872_v63 = vld [vmem:[#allocation5 + $0x8] ss:$16 sps:$4 sm:$0xff]   ;;  %v110_v0 = vpack.c.bf16 %v98_v58, %v96_v57  ;;  %v13607_v56 = vld [vmem:[%s17117_s4 + $0x16c] ss:$16 sps:$4 sm:$0xff]   ;;  %v13613_v57 = vld [vmem:[%s17117_s4 + $0x144] ss:$16 sps:$4 sm:$0xff]  }
  0x6c   :  { %v13618_v58 = vld [vmem:[%s17117_s4 + $0x14c] ss:$16 sps:$4 sm:$0xff]  }
  0x6d   :  { %17441 = vst [vmem:[#allocation13_spill] sm:$0xff] %v13618_v58 }
  0x6e   :  { %548 = vmatpush2.bf16.msra.mxu0 %v11825_v1  ;;  %641 = vmatpush2.bf16.msra.mxu1 %v11826_v2  ;;  %v95_v1 = vld [vmem:[%s17113_s0 + $0xa0] sm:$0xff]  ;;  %v97_v2 = vld [vmem:[%s17113_s0 + $0xb0] sm:$0xff] }
  0x6f   :  { %951 = vmatprep.subr.bf16.mxu0 %v11829_v5  ;;  %992 = vmatprep.subr.bf16.mxu1 %v11838_v8  ;;  %v109_v3 = vpack.c.bf16 %v97_v2, %v95_v1  ;;  %v11877_v5 = vld [vmem:[%s17117_s4 + $0xe4] ss:$16 sps:$4 sm:$0xff]   ;;  %v11878_v8 = vld [vmem:[%s17117_s4 + $0xe8] ss:$16 sps:$4 sm:$0xff]   ;;  %v13663_v2 = vld [vmem:[%s17117_s4 + $0x10c] ss:$16 sps:$4 sm:$0xff]  }
  0x70   :  { %v13658_v1 = vld [vmem:[%s17117_s4 + $0x104] ss:$16 sps:$4 sm:$0xff]   ;;  %17449 = vst [vmem:[#allocation21_spill] sm:$0xff] %v13663_v2 }
  0x71   :  { %550 = vmatmul.mubr.bf16.vlgmr.msra.gmra.mxu0 %v99_v9  ;;  %643 = vmatmul.mubr.bf16.vlgmr.msra.gmra.mxu1 %v99_v9  ;;  %v11883_v9 = vld [vmem:[%s17117_s4 + $0xc4] ss:$16 sps:$4 sm:$0xff]   ;;  %17448 = vst [vmem:[#allocation20_spill] sm:$0xff] %v13658_v1 }
  0x72   :  { %952 = vmatpush1.bf16.msra.mxu0 %v11827_v10  ;;  %559 = vmatprep.mubr.bf16.mxu0 %v102_v11  ;;  %v11886_v10 = vld [vmem:[%s17117_s4 + $0xcc] ss:$16 sps:$4 sm:$0xff]  }
  0x73   :  { %953 = vmatprep.subr.bf16.mxu0 %v11832_v12  ;;  %652 = vmatprep.mubr.bf16.mxu1 %v102_v11  ;;  %v11881_v11 = vld [vmem:[%s17117_s4 + $0xc0] ss:$16 sps:$4 sm:$0xff]   ;;  %v11884_v12 = vld [vmem:[%s17117_s4 + $0xc8] ss:$16 sps:$4 sm:$0xff]  }
  0x74   :  { %993 = vmatpush1.bf16.msra.mxu1 %v11836_v15  ;;  %v11887_v15 = vld [vmem:[%s17117_s4 + $0xa0] ss:$16 sps:$4 sm:$0xff]  }
  0x75   :  { %994 = vmatprep.subr.bf16.mxu1 %v11844_v18  ;;  %v13381_v18 = vld [vmem:[%s17117_s4 + $0x8c] ss:$16 sps:$4 sm:$0xff]  }
  0x76   :  { %954 = vmatpush1.bf16.msra.mxu0 %v11830_v13  ;;  %v11889_v13 = vld [vmem:[%s17117_s4 + $0xa4] ss:$16 sps:$4 sm:$0xff]  }
  0x77   :  { %955 = vmatprep.subr.bf16.mxu0 %v11835_v17  ;;  %v13376_v17 = vld [vmem:[%s17117_s4 + $0x84] ss:$16 sps:$4 sm:$0xff]  }
  0x78   :  { %995 = vmatpush1.bf16.msra.mxu1 %v11842_v21  ;;  %v13400_v21 = vld [vmem:[%s17117_s4 + $0x64] ss:$16 sps:$4 sm:$0xff]  }
  0x79   :  { %560 = vmatmul.mubr.bf16.gmra.mxu0 %v101_v22  ;;  %653 = vmatmul.mubr.bf16.gmra.mxu1 %v101_v22  ;;  %v13405_v22 = vld [vmem:[%s17117_s4 + $0x6c] ss:$16 sps:$4 sm:$0xff]  }
  0x7a   :  { %956 = vmatpush1.bf16.msra.mxu0 %v11833_v23  ;;  %569 = vmatprep.mubr.bf16.mxu0 %v104_v25  ;;  %v13410_v23 = vld [vmem:[%s17117_s4 + $0x60] ss:$16 sps:$4 sm:$0xff]  }
  0x7b   :  { %662 = vmatprep.mubr.bf16.mxu1 %v104_v25  ;;  %957 = vmatprep.subr.bf16.mxu0 %v11841_v24  ;;  %v13415_v24 = vld [vmem:[%s17117_s4 + $0x68] ss:$16 sps:$4 sm:$0xff]   ;;  %v13424_v25 = vld [vmem:[%s17117_s4 + $0x44] ss:$16 sps:$4 sm:$0xff]  }
  0x7c   :  { %996 = vmatprep.subr.bf16.mxu1 %v11850_v26  ;;  %v13429_v26 = vld [vmem:[%s17117_s4 + $0x4c] ss:$16 sps:$4 sm:$0xff]  }
  0x7d   :  { %997 = vmatpush1.bf16.msra.mxu1 %v11848_v27  ;;  %v13434_v27 = vld [vmem:[%s17117_s4 + $0x40] ss:$16 sps:$4 sm:$0xff]  }
  0x7e   :  { %958 = vmatpush1.bf16.msra.mxu0 %v11839_v30  ;;  %998 = vmatprep.subr.bf16.mxu1 %v11853_v31  ;;  %v13453_v30 = vld [vmem:[%s17117_s4 + $0x2c] ss:$16 sps:$4 sm:$0xff]   ;;  %v13458_v31 = vld [vmem:[%s17117_s4 + $0x20] ss:$16 sps:$4 sm:$0xff]  }
  0x7f   :  { %959 = vmatprep.subr.bf16.mxu0 %v11847_v34  ;;  %v13477_v34 = vld [vmem:[%s17117_s4 + $0xc] ss:$16 sps:$4 sm:$0xff]  }
  0x81   :  { %570 = vmatmul.mubr.bf16.gmra.mxu0 %v103_v35  ;;  %663 = vmatmul.mubr.bf16.gmra.mxu1 %v103_v35  ;;  %v13482_v35 = vld [vmem:[%s17117_s4] ss:$16 sps:$4 sm:$0xff]  }
  0x82   :  { %579 = vmatprep.mubr.bf16.mxu0 %v106_v38  ;;  %672 = vmatprep.mubr.bf16.mxu1 %v106_v38  ;;  %v13501_v38 = vld [vmem:[%s17117_s4 + $0x1ec] ss:$16 sps:$4 sm:$0xff]  }
  0x83   :  { %960 = vmatpush1.bf16.msra.mxu0 %v11845_v36  ;;  %999 = vmatpush1.bf16.msra.mxu1 %v11851_v37  ;;  %v13487_v36 = vld [vmem:[%s17117_s4 + $0x8] ss:$16 sps:$4 sm:$0xff]   ;;  %v13496_v37 = vld [vmem:[%s17117_s4 + $0x1e4] ss:$16 sps:$4 sm:$0xff]  }
  0x84   :  { %961 = vmatprep.subr.bf16.mxu0 %v11856_v39  ;;  %1000 = vmatprep.subr.bf16.mxu1 %v11859_v40  ;;  %v13506_v39 = vld [vmem:[%s17117_s4 + $0x1e0] ss:$16 sps:$4 sm:$0xff]   ;;  %v13511_v40 = vld [vmem:[%s17117_s4 + $0x1e8] ss:$16 sps:$4 sm:$0xff]  }
  0x87   :  { %962 = vmatpush1.bf16.msra.mxu0 %v11854_v43  ;;  %1001 = vmatpush1.bf16.msra.mxu1 %v11857_v46  ;;  %v13530_v43 = vld [vmem:[%s17117_s4 + $0x1c0] ss:$16 sps:$4 sm:$0xff]   ;;  %v13549_v46 = vld [vmem:[%s17117_s4 + $0x1ac] ss:$16 sps:$4 sm:$0xff]  }
  0x88   :  { %963 = vmatprep.subr.bf16.mxu0 %v11862_v47  ;;  %1002 = vmatprep.subr.bf16.mxu1 %v11865_v48  ;;  %v13554_v47 = vld [vmem:[%s17117_s4 + $0x1a0] ss:$16 sps:$4 sm:$0xff]   ;;  %v13559_v48 = vld [vmem:[%s17117_s4 + $0x1a8] ss:$16 sps:$4 sm:$0xff]  }
  0x89   :  { %580 = vmatmul.mubr.bf16.gmra.mxu0 %v105_v49  ;;  %673 = vmatmul.mubr.bf16.gmra.mxu1 %v105_v49  ;;  %v13568_v49 = vld [vmem:[%s17117_s4 + $0x184] ss:$16 sps:$4 sm:$0xff]  }
  0x8a   :  { %589 = vmatprep.mubr.bf16.mxu0 %v108_v52  ;;  %682 = vmatprep.mubr.bf16.mxu1 %v108_v52  ;;  %v13583_v52 = vld [vmem:[%s17117_s4 + $0x188] ss:$16 sps:$4 sm:$0xff]  }
  0x8b   :  { %964 = vmatpush1.bf16.msra.mxu0 %v11860_v50  ;;  %1003 = vmatpush1.bf16.msra.mxu1 %v11863_v51  ;;  %v13573_v50 = vld [vmem:[%s17117_s4 + $0x18c] ss:$16 sps:$4 sm:$0xff]   ;;  %v13578_v51 = vld [vmem:[%s17117_s4 + $0x180] ss:$16 sps:$4 sm:$0xff]  }
  0x8c   :  { %1004 = vmatprep.subr.bf16.mxu1 %v11868_v53  ;;  %965 = vmatprep.subr.bf16.mxu0 %v11871_v54  ;;  %v13590_v53 = vld [vmem:[%s17117_s4 + $0x164] ss:$16 sps:$4 sm:$0xff]   ;;  %v13597_v54 = vld [vmem:[%s17117_s4 + $0x160] ss:$16 sps:$4 sm:$0xff]  }
  0x8f   :  { %1005 = vmatpush1.bf16.msra.mxu1 %v11866_v59  ;;  %966 = vmatpush1.bf16.msra.mxu0 %v11869_v60  ;;  %v13624_v59 = vld [vmem:[%s17117_s4 + $0x140] ss:$16 sps:$4 sm:$0xff]   ;;  %v13629_v60 = vld [vmem:[%s17117_s4 + $0x148] ss:$16 sps:$4 sm:$0xff]  }
  0x90   :  { %1006 = vmatprep.subr.bf16.mxu1 %v11874_v61  ;;  %1467 = vmatprep.subr.bf16.mxu0 %v11877_v5  ;;  %17442 = vst [vmem:[#allocation14_spill] sm:$0xff] %v13624_v59  ;;  %17443 = vst [vmem:[#allocation15_spill] sm:$0xff] %v13629_v60  ;;  %v13634_v61 = vld [vmem:[%s17117_s4 + $0x124] ss:$16 sps:$4 sm:$0xff]   ;;  %v13677_v5 = vld [vmem:[%s17117_s4 + $0x108] ss:$16 sps:$4 sm:$0xff]  }
  0x91   :  { %590 = vmatmul.mubr.bf16.gmra.mxu0 %v107_v62  ;;  %683 = vmatmul.mubr.bf16.gmra.mxu1 %v107_v62  ;;  %17444 = vst [vmem:[#allocation16_spill] sm:$0xff] %v13634_v61  ;;  %v13641_v62 = vld [vmem:[%s17117_s4 + $0x12c] ss:$16 sps:$4 sm:$0xff]   ;;  %17451 = vst [vmem:[#allocation23_spill] sm:$0xff] %v13677_v5 }
  0x92   :  { %599 = vmatprep.mubr.bf16.mxu0 %v110_v0  ;;  %692 = vmatprep.mubr.bf16.mxu1 %v110_v0  ;;  %17445 = vst [vmem:[#allocation17_spill] sm:$0xff] %v13641_v62  ;;  %v13653_v0 = vld [vmem:[%s17117_s4 + $0x128] ss:$16 sps:$4 sm:$0xff]  }
  0x93   :  { %1007 = vmatpush1.bf16.msra.mxu1 %v11872_v63  ;;  %v13648_v63 = vld [vmem:[%s17117_s4 + $0x120] ss:$16 sps:$4 sm:$0xff]   ;;  %17447 = vst [vmem:[#allocation19_spill] sm:$0xff] %v13653_v0 }
  0x94   :  { %1508 = vmatprep.subr.bf16.mxu1 %v11880_v6  ;;  %17446 = vst [vmem:[#allocation18_spill] sm:$0xff] %v13648_v63  ;;  %v13075_v6 = vld [vmem:[#allocation5 + $0xe4] ss:$16 sps:$4 sm:$0xff]  }
  0x99   :  { %600 = vmatmul.mubr.bf16.gmra.mxu0 %v109_v3  ;;  %693 = vmatmul.mubr.bf16.gmra.mxu1 %v109_v3  ;;  %v13672_v3 = vld [vmem:[%s17117_s4 + $0x100] ss:$16 sps:$4 sm:$0xff]  }
  0x9a   :  { %983 = vmatprep.mubr.bf16.mxu0 %v17120_v4  ;;  %1024 = vmatprep.mubr.bf16.mxu1 %v17120_v4  ;;  %17450 = vst [vmem:[#allocation22_spill] sm:$0xff] %v13672_v3 }
  0xa1   :  { %984 = vmatmul.mubr.bf16.vlgmr.msra.gmra.mxu0 %v17120_v4  ;;  %1025 = vmatmul.mubr.bf16.vlgmr.msra.gmra.mxu1 %v17120_v4 }
  0xa2   :  { %1499 = vmatprep.mubr.bf16.mxu0 %v17120_v4  ;;  %1540 = vmatprep.mubr.bf16.mxu1 %v17120_v4 }
  0xa3   :  { %1468 = vmatpush1.bf16.msra.mxu0 %v11875_v7  ;;  %1509 = vmatpush1.bf16.msra.mxu1 %v11878_v8  ;;  %v13076_v7 = vld [vmem:[#allocation5 + $0xec] ss:$16 sps:$4 sm:$0xff]   ;;  %v177_v8 = vlaneseq }
  0xa4   :  { %1469 = vmatprep.subr.bf16.mxu0 %v11883_v9  ;;  %1510 = vmatprep.subr.bf16.mxu1 %v11886_v10 }
  0xa5   :  { %v13685_v9 = vshrl.u32 %v177_v8, 7 }
  0xa7   :  { %1470 = vmatpush1.bf16.msra.mxu0 %v11881_v11  ;;  %1511 = vmatpush1.bf16.msra.mxu1 %v11884_v12  ;;  %17452 = vst [vmem:[#allocation24_spill] sm:$0xff] %v13685_v9  ;;  %v17125_v10 = vsub.s32 2, %v13685_v9  ;;  %v175_v11 = vld [vmem:[#allocation7] sm:$0xf]  ;;  %v17130_v12 = vsub.s32 0, %v13685_v9 }
  0xa8   :  { %1471 = vmatprep.subr.bf16.mxu0 %v11889_v13  ;;  %1512 = vmatprep.subr.bf16.mxu1 %v11892_v14 }
  0xab   :  { %1472 = vmatpush1.bf16.msra.mxu0 %v11887_v15  ;;  %1513 = vmatpush1.bf16.msra.mxu1 %v11890_v16  ;;  %v13695_v15 = vrot.slane %v175_v11, %v17125_v10 }
  0xac   :  { %1473 = vmatprep.subr.bf16.mxu0 %v13376_v17  ;;  %1514 = vmatprep.subr.bf16.mxu1 %v13381_v18 }
  0xaf   :  { %1474 = vmatpush1.bf16.msra.mxu0 %v13386_v19  ;;  %1515 = vmatpush1.bf16.msra.mxu1 %v13391_v20 }
  0xb0   :  { %1475 = vmatprep.subr.bf16.mxu0 %v13400_v21  ;;  %1516 = vmatprep.subr.bf16.mxu1 %v13405_v22 }
  0xb3   :  { %1476 = vmatpush1.bf16.msra.mxu0 %v13410_v23  ;;  %1517 = vmatpush1.bf16.msra.mxu1 %v13415_v24 }
  0xb4   :  { %1477 = vmatprep.subr.bf16.mxu0 %v13424_v25  ;;  %1518 = vmatprep.subr.bf16.mxu1 %v13429_v26 }
  0xb7   :  { %1478 = vmatpush1.bf16.msra.mxu0 %v13434_v27  ;;  %1519 = vmatpush1.bf16.msra.mxu1 %v13439_v28 }
  0xb8   :  { %1479 = vmatprep.subr.bf16.mxu0 %v13448_v29  ;;  %1520 = vmatprep.subr.bf16.mxu1 %v13453_v30 }
  0xbb   :  { %1480 = vmatpush1.bf16.msra.mxu0 %v13458_v31  ;;  %1521 = vmatpush1.bf16.msra.mxu1 %v13463_v32 }
  0xbc   :  { %1481 = vmatprep.subr.bf16.mxu0 %v13472_v33  ;;  %1522 = vmatprep.subr.bf16.mxu1 %v13477_v34 }
  0xbf   :  { %1482 = vmatpush1.bf16.msra.mxu0 %v13482_v35  ;;  %1523 = vmatpush1.bf16.msra.mxu1 %v13487_v36 }
  0xc0   :  { %1483 = vmatprep.subr.bf16.mxu0 %v13496_v37  ;;  %1524 = vmatprep.subr.bf16.mxu1 %v13501_v38 }
  0xc3   :  { %1484 = vmatpush2.bf16.msra.mxu0 %v13506_v39  ;;  %1525 = vmatpush2.bf16.msra.mxu1 %v13511_v40 }
  0xc4   :  { %1485 = vmatprep.subr.bf16.mxu0 %v13520_v41  ;;  %1526 = vmatprep.subr.bf16.mxu1 %v13525_v42 }
  0xc7   :  { %1486 = vmatpush2.bf16.msra.mxu0 %v13530_v43  ;;  %1527 = vmatpush2.bf16.msra.mxu1 %v13535_v44 }
  0xc8   :  { %1487 = vmatprep.subr.bf16.mxu0 %v13544_v45  ;;  %1528 = vmatprep.subr.bf16.mxu1 %v13549_v46 }
  0xcb   :  { %1488 = vmatpush2.bf16.msra.mxu0 %v13554_v47  ;;  %1529 = vmatpush2.bf16.msra.mxu1 %v13559_v48 }
  0xcc   :  { %1489 = vmatprep.subr.bf16.mxu0 %v13568_v49  ;;  %1530 = vmatprep.subr.bf16.mxu1 %v13573_v50 }
  0xcf   :  { %1490 = vmatpush2.bf16.msra.mxu0 %v13578_v51  ;;  %1531 = vmatpush2.bf16.msra.mxu1 %v13583_v52 }
  0xd0   :  { %1491 = vmatprep.subr.bf16.mxu0 %v13590_v53  ;;  %1532 = vmatprep.subr.bf16.mxu1 %v13607_v56 }
  0xd3   :  { %1492 = vmatpush2.bf16.msra.mxu0 %v13597_v54  ;;  %1533 = vmatpush2.bf16.msra.mxu1 %v13602_v55 }
  0xd4   :  { %1493 = vmatprep.subr.bf16.mxu0 %v13613_v57  ;;  %1534 = vmatprep.subr.bf16.mxu1 %v13618_v58 }
  0xd7   :  { %1494 = vmatpush2.bf16.msra.mxu0 %v13624_v59  ;;  %1535 = vmatpush2.bf16.msra.mxu1 %v13629_v60 }
  0xd8   :  { %1495 = vmatprep.subr.bf16.mxu0 %v13634_v61  ;;  %1536 = vmatprep.subr.bf16.mxu1 %v13641_v62 }
  0xdb   :  { %1496 = vmatpush2.bf16.msra.mxu0 %v13648_v63  ;;  %1537 = vmatpush2.bf16.msra.mxu1 %v13653_v0 }
  0xdc   :  { %1497 = vmatprep.subr.bf16.mxu0 %v13658_v1  ;;  %1538 = vmatprep.subr.bf16.mxu1 %v13663_v2 }
  0xdf   :  { %1498 = vmatpush2.bf16.msra.mxu0 %v13672_v3  ;;  %1539 = vmatpush2.bf16.msra.mxu1 %v13677_v5  ;;  %v17132_v5 = vsub.s32 1, %v13685_v9  ;;  %v17136_v3 = vsub.s32 3, %v13685_v9 }
  0xe0   :  { %1773 = vmatprep.subr.bf16.mxu0 %v13075_v6  ;;  %1814 = vmatprep.subr.bf16.mxu1 %v13076_v7  ;;  %v13703_v7 = vrot.slane %v175_v11, %v17130_v12 }
  0xe1   :  { %v13719_v12 = vrot.slane %v175_v11, %v17132_v5  ;;  %v13723_v61 = vrot.slane %v175_v11, %v17136_v3 }
  0xe3   :  { %17457 = vst [vmem:[#allocation29_spill] sm:$0xff] %v13719_v12  ;;  %17458 = vst [vmem:[#allocation30_spill] sm:$0xff] %v13723_v61 }
 0x131   :  { %v13689_v13 = vpop.f32.mrf.mxu0  ;;  %v13691_v14 = vpop.f32.mrf.mxu1 }
 0x133   :  { %v13697_v16 = vpop.f32.mrf.mxu0  ;;  %v13699_v6 = vpop.f32.mrf.mxu1 }
 0x135   :  { %v555_v8 = vpop.f32.mrf.mxu0  ;;  %v648_v4 = vpop.f32.mrf.mxu1 }
 0x136   :  { %v13708_v2 = vadd.f32 %v555_v8, %v13703_v7  ;;  %v13711_v10 = vadd.f32 %v648_v4, %v13695_v15 }
 0x137   :  { %v13713_v1 = vpop.f32.mrf.mxu0  ;;  %v13715_v0 = vpop.f32.mrf.mxu1 }
 0x138   :  { %17453 = vst [vmem:[#allocation25_spill] sm:$0xff] %v13708_v2  ;;  %17454 = vst [vmem:[#allocation26_spill] sm:$0xff] %v13711_v10 }
 0x139   :  { %17455 = vst [vmem:[#allocation27_spill] sm:$0xff] %v13713_v1  ;;  %17456 = vst [vmem:[#allocation28_spill] sm:$0xff] %v13715_v0  ;;  %v561_v63 = vpop.f32.mrf.mxu0  ;;  %v654_v62 = vpop.f32.mrf.mxu1 }
 0x13a   :  { %v13726_v8 = vadd.f32 %v561_v63, %v13703_v7  ;;  %v13729_v4 = vadd.f32 %v654_v62, %v13695_v15 }
 0x13b   :  { %v563_v10 = vpop.f32.mrf.mxu0  ;;  %v656_v2 = vpop.f32.mrf.mxu1 }
 0x13c   :  { %17459 = vst [vmem:[#allocation31_spill] sm:$0xff] %v13726_v8  ;;  %17460 = vst [vmem:[#allocation32_spill] sm:$0xff] %v13729_v4  ;;  %v13732_v0 = vadd.f32 %v563_v10, %v13719_v12  ;;  %v13735_v1 = vadd.f32 %v656_v2, %v13723_v61 }
 0x13d   :  { %v565_v5 = vpop.f32.mrf.mxu0  ;;  %v658_v60 = vpop.f32.mrf.mxu1 }
 0x13e   :  { %17461 = vst [vmem:[#allocation33_spill] sm:$0xff] %v13732_v0  ;;  %17462 = vst [vmem:[#allocation34_spill] sm:$0xff] %v13735_v1  ;;  %v13738_v9 = vadd.f32 %v565_v5, %v13703_v7  ;;  %v13741_v11 = vadd.f32 %v658_v60, %v13695_v15 }
 0x13f   :  { %v13743_v63 = vpop.f32.mrf.mxu0  ;;  %v13745_v62 = vpop.f32.mrf.mxu1 }
 0x140   :  { %17463 = vst [vmem:[#allocation35_spill] sm:$0xff] %v13738_v9  ;;  %17464 = vst [vmem:[#allocation36_spill] sm:$0xff] %v13741_v11 }
 0x141   :  { %17465 = vst [vmem:[#allocation37_spill] sm:$0xff] %v13743_v63  ;;  %17466 = vst [vmem:[#allocation38_spill] sm:$0xff] %v13745_v62  ;;  %v571_v3 = vpop.f32.mrf.mxu0  ;;  %v664_v4 = vpop.f32.mrf.mxu1 }
 0x142   :  { %v13748_v10 = vadd.f32 %v571_v3, %v13703_v7  ;;  %v13751_v2 = vadd.f32 %v664_v4, %v13695_v15 }
 0x143   :  { %v573_v1 = vpop.f32.mrf.mxu0  ;;  %v666_v0 = vpop.f32.mrf.mxu1 }
 0x144   :  { %17467 = vst [vmem:[#allocation39_spill] sm:$0xff] %v13748_v10  ;;  %17468 = vst [vmem:[#allocation40_spill] sm:$0xff] %v13751_v2  ;;  %v13754_v5 = vadd.f32 %v573_v1, %v13719_v12  ;;  %v13757_v60 = vadd.f32 %v666_v0, %v13723_v61 }
 0x145   :  { %v575_v11 = vpop.f32.mrf.mxu0  ;;  %v668_v9 = vpop.f32.mrf.mxu1 }
 0x146   :  { %17469 = vst [vmem:[#allocation41_spill] sm:$0xff] %v13754_v5  ;;  %17470 = vst [vmem:[#allocation42_spill] sm:$0xff] %v13757_v60  ;;  %v13760_v62 = vadd.f32 %v575_v11, %v13703_v7  ;;  %v13763_v63 = vadd.f32 %v668_v9, %v13695_v15 }
 0x147   :  { %v577_v3 = vpop.f32.mrf.mxu0  ;;  %v670_v10 = vpop.f32.mrf.mxu1 }
 0x148   :  { %17471 = vst [vmem:[#allocation43_spill] sm:$0xff] %v13760_v62  ;;  %17472 = vst [vmem:[#allocation44_spill] sm:$0xff] %v13763_v63  ;;  %v13766_v4 = vadd.f32 %v577_v3, %v13719_v12  ;;  %v13769_v2 = vadd.f32 %v670_v10, %v13723_v61 }
 0x149   :  { %v581_v1 = vpop.f32.mrf.mxu0  ;;  %v674_v5 = vpop.f32.mrf.mxu1 }
 0x14a   :  { %17473 = vst [vmem:[#allocation45_spill] sm:$0xff] %v13766_v4  ;;  %17474 = vst [vmem:[#allocation46_spill] sm:$0xff] %v13769_v2  ;;  %v13772_v0 = vadd.f32 %v581_v1, %v13703_v7  ;;  %v13775_v60 = vadd.f32 %v674_v5, %v13695_v15 }
 0x14b   :  { %v583_v11 = vpop.f32.mrf.mxu0  ;;  %v676_v62 = vpop.f32.mrf.mxu1 }
 0x14c   :  { %17475 = vst [vmem:[#allocation47_spill] sm:$0xff] %v13772_v0  ;;  %17476 = vst [vmem:[#allocation48_spill] sm:$0xff] %v13775_v60  ;;  %v13778_v9 = vadd.f32 %v583_v11, %v13719_v12  ;;  %v13781_v63 = vadd.f32 %v676_v62, %v13723_v61 }
 0x14d   :  { %v585_v3 = vpop.f32.mrf.mxu0  ;;  %v678_v4 = vpop.f32.mrf.mxu1 }
 0x14e   :  { %17477 = vst [vmem:[#allocation49_spill] sm:$0xff] %v13778_v9  ;;  %17478 = vst [vmem:[#allocation50_spill] sm:$0xff] %v13781_v63  ;;  %v13784_v10 = vadd.f32 %v585_v3, %v13703_v7  ;;  %v13787_v2 = vadd.f32 %v678_v4, %v13695_v15 }
 0x14f   :  { %v587_v1 = vpop.f32.mrf.mxu0  ;;  %v680_v0 = vpop.f32.mrf.mxu1 }
 0x150   :  { %17479 = vst [vmem:[#allocation51_spill] sm:$0xff] %v13784_v10  ;;  %17480 = vst [vmem:[#allocation52_spill] sm:$0xff] %v13787_v2  ;;  %v13790_v5 = vadd.f32 %v587_v1, %v13719_v12  ;;  %v13793_v60 = vadd.f32 %v680_v0, %v13723_v61 }
 0x151   :  { %v591_v11 = vpop.f32.mrf.mxu0  ;;  %v684_v9 = vpop.f32.mrf.mxu1 }
 0x152   :  { %17481 = vst [vmem:[#allocation53_spill] sm:$0xff] %v13790_v5  ;;  %17482 = vst [vmem:[#allocation54_spill] sm:$0xff] %v13793_v60  ;;  %v13796_v62 = vadd.f32 %v591_v11, %v13703_v7  ;;  %v13799_v63 = vadd.f32 %v684_v9, %v13695_v15 }
 0x153   :  { %v593_v3 = vpop.f32.mrf.mxu0  ;;  %v686_v10 = vpop.f32.mrf.mxu1 }
 0x154   :  { %17483 = vst [vmem:[#allocation55_spill] sm:$0xff] %v13796_v62  ;;  %17484 = vst [vmem:[#allocation56_spill] sm:$0xff] %v13799_v63  ;;  %v13802_v4 = vadd.f32 %v593_v3, %v13719_v12  ;;  %v13805_v2 = vadd.f32 %v686_v10, %v13723_v61 }
 0x155   :  { %v595_v1 = vpop.f32.mrf.mxu0  ;;  %v688_v5 = vpop.f32.mrf.mxu1 }
 0x156   :  { %17485 = vst [vmem:[#allocation57_spill] sm:$0xff] %v13802_v4  ;;  %17486 = vst [vmem:[#allocation58_spill] sm:$0xff] %v13805_v2  ;;  %v13808_v0 = vadd.f32 %v595_v1, %v13703_v7  ;;  %v13811_v60 = vadd.f32 %v688_v5, %v13695_v15 }
 0x157   :  { %v597_v11 = vpop.f32.mrf.mxu0  ;;  %v690_v62 = vpop.f32.mrf.mxu1 }
 0x158   :  { %17487 = vst [vmem:[#allocation59_spill] sm:$0xff] %v13808_v0  ;;  %17488 = vst [vmem:[#allocation60_spill] sm:$0xff] %v13811_v60  ;;  %v13814_v9 = vadd.f32 %v597_v11, %v13719_v12  ;;  %v13817_v63 = vadd.f32 %v690_v62, %v13723_v61 }
 0x159   :  { %v601_v3 = vpop.f32.mrf.mxu0  ;;  %v694_v4 = vpop.f32.mrf.mxu1 }
 0x15a   :  { %17489 = vst [vmem:[#allocation61_spill] sm:$0xff] %v13814_v9  ;;  %17490 = vst [vmem:[#allocation62_spill] sm:$0xff] %v13817_v63  ;;  %v13820_v10 = vadd.f32 %v601_v3, %v13703_v7  ;;  %v13823_v2 = vadd.f32 %v694_v4, %v13695_v15  ;;  %v552_v4 = vadd.f32 %v13689_v13, %v13703_v7 }
 0x15b   :  { %v603_v1 = vpop.f32.mrf.mxu0  ;;  %v696_v0 = vpop.f32.mrf.mxu1 }
 0x15c   :  { %17491 = vst [vmem:[#allocation63_spill] sm:$0xff] %v13820_v10  ;;  %17492 = vst [vmem:[#allocation64_spill] sm:$0xff] %v13823_v2  ;;  %v13826_v5 = vadd.f32 %v603_v1, %v13719_v12  ;;  %v13829_v60 = vadd.f32 %v696_v0, %v13723_v61 }
 0x15d   :  { %v605_v11 = vpop.f32.mrf.mxu0  ;;  %v698_v9 = vpop.f32.mrf.mxu1 }
 0x15e   :  { %17493 = vst [vmem:[#allocation65_spill] sm:$0xff] %v13826_v5  ;;  %17494 = vst [vmem:[#allocation66_spill] sm:$0xff] %v13829_v60  ;;  %v13832_v62 = vadd.f32 %v605_v11, %v13703_v7  ;;  %v13835_v63 = vadd.f32 %v698_v9, %v13695_v15  ;;  %v554_v11 = vadd.f32 %v13697_v16, %v13719_v12 }
 0x15f   :  { %v607_v3 = vpop.f32.mrf.mxu0  ;;  %v700_v10 = vpop.f32.mrf.mxu1 }
 0x160   :  { %17495 = vst [vmem:[#allocation67_spill] sm:$0xff] %v13832_v62  ;;  %17496 = vst [vmem:[#allocation68_spill] sm:$0xff] %v13835_v63  ;;  %v13840_v2 = vadd.f32 %v607_v3, %v13719_v12  ;;  %v13843_v1 = vadd.f32 %v700_v10, %v13723_v61  ;;  %v645_v10 = vadd.f32 %v13691_v14, %v13695_v15 }
 0x161   :  { %v985_v0 = vpop.f32.mrf.mxu0  ;;  %v1026_v60 = vpop.f32.mrf.mxu1 }
 0x162   :  { %17497 = vst [vmem:[#allocation69_spill] sm:$0xff] %v13840_v2  ;;  %17498 = vst [vmem:[#allocation70_spill] sm:$0xff] %v13843_v1  ;;  %v1033_v62 = vadd.f32 %v985_v0, %v552_v4  ;;  %v1035_v1 = vadd.f32 %v1026_v60, %v645_v10  ;;  %v647_v2 = vadd.f32 %v13699_v6, %v13723_v61  ;;  %v17499_v10 = vmov 0  }
 0x163   :  { %v987_v5 = vpop.f32.mrf.mxu0  ;;  %v1028_v9 = vpop.f32.mrf.mxu1 }
 0x164   :  { %v10521_v63 = vmul.f32 -1.442695, %v1033_v62  ;;  %v1034_v8 = vadd.f32 %v987_v5, %v554_v11  ;;  %v10523_v16 = vmul.f32 -1.442695, %v1035_v1  ;;  %v1036_v0 = vadd.f32 %v1028_v9, %v647_v2 }
 0x165   :  { %v989_v59 = vpop.f32.mrf.mxu0  ;;  %v1030_v58 = vpop.f32.mrf.mxu1 }
 0x166   :  { %12691 = vpow2.f32 %v10521_v63  ;;  %v10522_v13 = vmul.f32 -1.442695, %v1034_v8 }
 0x167   :  { %v990_v7 = vpop.f32.mrf.mxu0  ;;  %v1031_v3 = vpop.f32.mrf.mxu1 }
 0x168   :  { %12693 = vpow2.f32 %v10522_v13  ;;  %v13078_v13 = vld [vmem:[#allocation5 + $0xe8] ss:$16 sps:$4 sm:$0xff]   ;;  %v13079_v7 = vld [vmem:[#allocation5 + $0xc4] ss:$16 sps:$4 sm:$0xff]   ;;  %v13080_v3 = vld [vmem:[#allocation5 + $0xcc] ss:$16 sps:$4 sm:$0xff]  }
 0x169   :  { %12695 = vpow2.f32 %v10523_v16  ;;  %v13081_v16 = vld [vmem:[#allocation5 + $0xc0] ss:$16 sps:$4 sm:$0xff]  }
 0x173   :  { %v12692_v4 = vpop.eup %12691 }
 0x174   :  { %v1046_v12 = vadd.f32 1.0, %v12692_v4  ;;  %v13082_v4 = vld [vmem:[#allocation5 + $0xc8] ss:$16 sps:$4 sm:$0xff]  }
 0x175   :  { %v12694_v62 = vpop.eup %12693 }
 0x176   :  { %12697 = vrcp.f32 %v1046_v12  ;;  %v1047_v58 = vadd.f32 1.0, %v12694_v62  ;;  %v12696_v59 = vpop.eup %12695  ;;  %v13077_v12 = vld [vmem:[#allocation5 + $0xe0] ss:$16 sps:$4 sm:$0xff]   ;;  %v13084_v62 = vld [vmem:[#allocation5 + $0xac] ss:$16 sps:$4 sm:$0xff]  }
 0x177   :  { %12699 = vtanh.f32 %v1036_v0  ;;  %v1048_v11 = vadd.f32 1.0, %v12696_v59  ;;  %v13083_v0 = vld [vmem:[#allocation5 + $0xa4] ss:$16 sps:$4 sm:$0xff]   ;;  %v13086_v59 = vld [vmem:[#allocation5 + $0xa8] ss:$16 sps:$4 sm:$0xff]  }
 0x178   :  { %12701 = vrcp.f32 %v1047_v58  ;;  %v13085_v58 = vld [vmem:[#allocation5 + $0xa0] ss:$16 sps:$4 sm:$0xff]  }
 0x179   :  { %12703 = vrcp.f32 %v1048_v11  ;;  %v13090_v11 = vld [vmem:[#allocation5 + $0x88] ss:$16 sps:$4 sm:$0xff]  }
 0x183   :  { %v12698_v8 = vpop.eup %12697 }
 0x184   :  { %v12700_v63 = vpop.eup %12699 }
 0x185   :  { %v12702_v5 = vpop.eup %12701  ;;  %v1057_v15 = vmul.f32 %v12700_v63, %v12698_v8  ;;  %v13087_v8 = vld [vmem:[#allocation5 + $0x84] ss:$16 sps:$4 sm:$0xff]   ;;  %v13088_v63 = vld [vmem:[#allocation5 + $0x8c] ss:$16 sps:$4 sm:$0xff]  }
 0x186   :  { %v1056_v14 = vmul.f32 0.0, %v12702_v5  ;;  %v12704_v6 = vpop.eup %12703  ;;  %v13089_v5 = vld [vmem:[#allocation5 + $0x80] ss:$16 sps:$4 sm:$0xff]  }
 0x188   :  { %v13851_v60 = vadd.f32 %v1057_v15, %v1056_v14  ;;  %v13091_v14 = vld [vmem:[#allocation5 + $0x64] ss:$16 sps:$4 sm:$0xff]   ;;  %v13092_v15 = vld [vmem:[#allocation5 + $0x6c] ss:$16 sps:$4 sm:$0xff]  }
 0x18a   :  { %12705 = vtanh.f32 %v13851_v60 }
 0x197   :  { %v12706_v2 = vpop.eup %12705 }
 0x198   :  { %v1060_v1 = vmul.f32 %v12706_v2, %v12704_v6  ;;  %v13093_v6 = vld [vmem:[#allocation5 + $0x60] ss:$16 sps:$4 sm:$0xff]   ;;  %v13094_v2 = vld [vmem:[#allocation5 + $0x68] ss:$16 sps:$4 sm:$0xff]  }
 0x19a   :  { %v13854_v9 = vpack.c.bf16 %v1060_v1, %v1060_v1  ;;  %v13095_v1 = vld [vmem:[#allocation5 + $0x44] ss:$16 sps:$4 sm:$0xff]  }
 0x19c   :  { %1500 = vmatmul.mubr.bf16.vlgmr.msra.gmra.mxu0 %v13854_v9  ;;  %1541 = vmatmul.mubr.bf16.vlgmr.msra.gmra.mxu1 %v13854_v9 }
 0x19d   :  { %1774 = vmatpush1.bf16.msra.mxu0 %v13077_v12  ;;  %1815 = vmatpush1.bf16.msra.mxu1 %v13078_v13  ;;  %v13096_v12 = vld [vmem:[#allocation5 + $0x4c] ss:$16 sps:$4 sm:$0xff]   ;;  %v13097_v13 = vld [vmem:[#allocation5 + $0x40] ss:$16 sps:$4 sm:$0xff]  }
 0x19e   :  { %1775 = vmatprep.subr.bf16.mxu0 %v13079_v7  ;;  %1816 = vmatprep.subr.bf16.mxu1 %v13080_v3  ;;  %v13098_v7 = vld [vmem:[#allocation5 + $0x48] ss:$16 sps:$4 sm:$0xff]   ;;  %v13099_v3 = vld [vmem:[#allocation5 + $0x24] ss:$16 sps:$4 sm:$0xff]  }
 0x19f   :  { %1805 = vmatprep.mubr.bf16.mxu0 %v17499_v10  ;;  %1846 = vmatprep.mubr.bf16.mxu1 %v17499_v10 }
 0x1a1   :  { %1776 = vmatpush1.bf16.msra.mxu0 %v13081_v16  ;;  %1817 = vmatpush1.bf16.msra.mxu1 %v13082_v4  ;;  %v13100_v16 = vld [vmem:[#allocation5 + $0x2c] ss:$16 sps:$4 sm:$0xff]   ;;  %v13101_v4 = vld [vmem:[#allocation5 + $0x20] ss:$16 sps:$4 sm:$0xff]  }
 0x1a2   :  { %1777 = vmatprep.subr.bf16.mxu0 %v13083_v0  ;;  %1818 = vmatprep.subr.bf16.mxu1 %v13084_v62  ;;  %v13102_v0 = vld [vmem:[#allocation5 + $0x28] ss:$16 sps:$4 sm:$0xff]   ;;  %v13103_v62 = vld [vmem:[#allocation5 + $0x4] ss:$16 sps:$4 sm:$0xff]  }
 0x1a5   :  { %1778 = vmatpush1.bf16.msra.mxu0 %v13085_v58  ;;  %1819 = vmatpush1.bf16.msra.mxu1 %v13086_v59  ;;  %v13104_v58 = vld [vmem:[#allocation5 + $0xc] ss:$16 sps:$4 sm:$0xff]   ;;  %v13105_v59 = vld [vmem:[#allocation5] ss:$16 sps:$4 sm:$0xff]  }
 0x1a6   :  { %1779 = vmatprep.subr.bf16.mxu0 %v13087_v8  ;;  %1820 = vmatprep.subr.bf16.mxu1 %v13088_v63  ;;  %v13106_v8 = vld [vmem:[#allocation5 + $0x8] ss:$16 sps:$4 sm:$0xff]   ;;  %v13107_v63 = vld [vmem:[%s17117_s4 + $0xe4] ss:$16 sps:$4 sm:$0xff]  }
 0x1a9   :  { %1780 = vmatpush1.bf16.msra.mxu0 %v13089_v5  ;;  %1821 = vmatpush1.bf16.msra.mxu1 %v13090_v11  ;;  %v13108_v5 = vld [vmem:[%s17117_s4 + $0xec] ss:$16 sps:$4 sm:$0xff]   ;;  %v13109_v11 = vld [vmem:[%s17117_s4 + $0xe0] ss:$16 sps:$4 sm:$0xff]  }
 0x1aa   :  { %1781 = vmatprep.subr.bf16.mxu0 %v13091_v14  ;;  %1822 = vmatprep.subr.bf16.mxu1 %v13092_v15  ;;  %v13110_v14 = vld [vmem:[%s17117_s4 + $0xe8] ss:$16 sps:$4 sm:$0xff]   ;;  %v13111_v15 = vld [vmem:[%s17117_s4 + $0xc4] ss:$16 sps:$4 sm:$0xff]  }
 0x1ad   :  { %1782 = vmatpush1.bf16.msra.mxu0 %v13093_v6  ;;  %1823 = vmatpush1.bf16.msra.mxu1 %v13094_v2  ;;  %v13112_v6 = vld [vmem:[%s17117_s4 + $0xcc] ss:$16 sps:$4 sm:$0xff]   ;;  %v13114_v2 = vld [vmem:[%s17117_s4 + $0xc8] ss:$16 sps:$4 sm:$0xff]  }
 0x1ae   :  { %1783 = vmatprep.subr.bf16.mxu0 %v13095_v1  ;;  %1824 = vmatprep.subr.bf16.mxu1 %v13096_v12  ;;  %v13115_v1 = vld [vmem:[%s17117_s4 + $0xa4] ss:$16 sps:$4 sm:$0xff]   ;;  %v13116_v12 = vld [vmem:[%s17117_s4 + $0xac] ss:$16 sps:$4 sm:$0xff]  }
 0x1b1   :  { %1784 = vmatpush1.bf16.msra.mxu0 %v13097_v13  ;;  %1825 = vmatpush1.bf16.msra.mxu1 %v13098_v7  ;;  %v13117_v13 = vld [vmem:[%s17117_s4 + $0xa0] ss:$16 sps:$4 sm:$0xff]   ;;  %v13118_v7 = vld [vmem:[%s17117_s4 + $0xa8] ss:$16 sps:$4 sm:$0xff]  }
 0x1b2   :  { %1785 = vmatprep.subr.bf16.mxu0 %v13099_v3  ;;  %1826 = vmatprep.subr.bf16.mxu1 %v13100_v16 }
 0x1b5   :  { %1786 = vmatpush1.bf16.msra.mxu0 %v13101_v4  ;;  %1827 = vmatpush1.bf16.msra.mxu1 %v13102_v0 }
 0x1b6   :  { %1787 = vmatprep.subr.bf16.mxu0 %v13103_v62  ;;  %1828 = vmatprep.subr.bf16.mxu1 %v13104_v58  ;;  %v17520_v62 = vld [vmem:[#allocation29_spill] sm:$0xff]  ;;  %v17521_v58 = vld [vmem:[#allocation27_spill] sm:$0xff] }
 0x1b9   :  { %1788 = vmatpush1.bf16.msra.mxu0 %v13105_v59  ;;  %1829 = vmatpush1.bf16.msra.mxu1 %v13106_v8  ;;  %v558_v59 = vadd.f32 %v17521_v58, %v17520_v62  ;;  %v17522_v8 = vld [vmem:[#allocation25_spill] sm:$0xff]  ;;  %v14237_v62 = vld [vmem:[%s17117_s4 + $0x24] ss:$16 sps:$4 sm:$0xff]  }
 0x1ba   :  { %2269 = vmatprep.subr.bf16.mxu0 %v13107_v63  ;;  %2310 = vmatprep.subr.bf16.mxu1 %v13108_v5  ;;  %v14022_v58 = vld [vmem:[#allocation5 + $0xa8] ss:$16 sps:$4 sm:$0xff]   ;;  %17540 = vst [vmem:[#allocation74_spill] sm:$0xff] %v14237_v62 }
 0x1bc   :  { %1806 = vmatmul.mubr.bf16.vlgmr.msra.gmra.mxu0 %v13854_v9  ;;  %1847 = vmatmul.mubr.bf16.vlgmr.msra.gmra.mxu1 %v13854_v9  ;;  %v13113_v9 = vld [vmem:[%s17117_s4 + $0xc0] ss:$16 sps:$4 sm:$0xff]  }
 0x1bd   :  { %2270 = vmatpush1.bf16.msra.mxu0 %v13109_v11  ;;  %2311 = vmatpush1.bf16.msra.mxu1 %v13110_v14 }
 0x1be   :  { %2271 = vmatprep.subr.bf16.mxu0 %v13111_v15  ;;  %2312 = vmatprep.subr.bf16.mxu1 %v13112_v6 }
 0x1c1   :  { %2272 = vmatpush1.bf16.msra.mxu0 %v13113_v9  ;;  %2313 = vmatpush1.bf16.msra.mxu1 %v13114_v2 }
 0x1c2   :  { %2273 = vmatprep.subr.bf16.mxu0 %v13115_v1  ;;  %2314 = vmatprep.subr.bf16.mxu1 %v13116_v12 }
 0x1c5   :  { %2274 = vmatpush1.bf16.msra.mxu0 %v13117_v13  ;;  %2315 = vmatpush1.bf16.msra.mxu1 %v13118_v7 }
 0x1c6   :  { %2275 = vmatprep.subr.bf16.mxu0 %v13376_v17  ;;  %2316 = vmatprep.subr.bf16.mxu1 %v13381_v18  ;;  %v17500_v17 = vld [vmem:[#allocation13_spill] sm:$0xff]  ;;  %v17501_v18 = vld [vmem:[#allocation14_spill] sm:$0xff] }
 0x1c9   :  { %2276 = vmatpush1.bf16.msra.mxu0 %v13386_v19  ;;  %2317 = vmatpush1.bf16.msra.mxu1 %v13391_v20  ;;  %v17502_v19 = vld [vmem:[#allocation15_spill] sm:$0xff]  ;;  %v17503_v20 = vld [vmem:[#allocation16_spill] sm:$0xff] }
 0x1ca   :  { %2277 = vmatprep.subr.bf16.mxu0 %v13400_v21  ;;  %2318 = vmatprep.subr.bf16.mxu1 %v13405_v22  ;;  %v17504_v21 = vld [vmem:[#allocation17_spill] sm:$0xff]  ;;  %v17505_v22 = vld [vmem:[#allocation18_spill] sm:$0xff] }
 0x1cd   :  { %2278 = vmatpush1.bf16.msra.mxu0 %v13410_v23  ;;  %2319 = vmatpush1.bf16.msra.mxu1 %v13415_v24  ;;  %v17506_v23 = vld [vmem:[#allocation19_spill] sm:$0xff]  ;;  %v17507_v24 = vld [vmem:[#allocation20_spill] sm:$0xff] }
 0x1ce   :  { %2279 = vmatprep.subr.bf16.mxu0 %v13424_v25  ;;  %2320 = vmatprep.subr.bf16.mxu1 %v13429_v26  ;;  %v17508_v25 = vld [vmem:[#allocation21_spill] sm:$0xff]  ;;  %v17509_v26 = vld [vmem:[#allocation22_spill] sm:$0xff] }
 0x1d1   :  { %2280 = vmatpush1.bf16.msra.mxu0 %v13434_v27  ;;  %2321 = vmatpush1.bf16.msra.mxu1 %v13439_v28  ;;  %v17510_v27 = vld [vmem:[#allocation23_spill] sm:$0xff]  ;;  %v13950_v28 = vld [vmem:[#allocation5 + $0xe4] ss:$16 sps:$4 sm:$0xff]  }
 0x1d2   :  { %2281 = vmatprep.subr.bf16.mxu0 %v13448_v29  ;;  %2322 = vmatprep.subr.bf16.mxu1 %v13453_v30  ;;  %v13952_v29 = vld [vmem:[#allocation5 + $0xec] ss:$16 sps:$4 sm:$0xff]   ;;  %v751_v30 = vld [vmem:[#allocation8] sm:$0xf] }
 0x1d5   :  { %2282 = vmatpush1.bf16.msra.mxu0 %v13458_v31  ;;  %2323 = vmatpush1.bf16.msra.mxu1 %v13463_v32  ;;  %v17511_v31 = vld [vmem:[#allocation24_spill] sm:$0xff] }
 0x1d6   :  { %2283 = vmatprep.subr.bf16.mxu0 %v13472_v33  ;;  %2324 = vmatprep.subr.bf16.mxu1 %v13477_v34  ;;  %v17512_v32 = vsub.s32 0, %v17511_v31  ;;  %v17514_v34 = vsub.s32 1, %v17511_v31 }
 0x1d8   :  { %v13958_v33 = vrot.slane %v751_v30, %v17512_v32 }
 0x1d9   :  { %2284 = vmatpush1.bf16.msra.mxu0 %v13482_v35  ;;  %2325 = vmatpush1.bf16.msra.mxu1 %v13487_v36  ;;  %v13962_v35 = vrot.slane %v751_v30, %v17514_v34 }
 0x1da   :  { %2285 = vmatprep.subr.bf16.mxu0 %v13496_v37  ;;  %2326 = vmatprep.subr.bf16.mxu1 %v13501_v38  ;;  %17513 = vst [vmem:[#allocation13_spill] sm:$0xff] %v13958_v33 }
 0x1db   :  { %17515 = vst [vmem:[#allocation14_spill] sm:$0xff] %v13962_v35 }
 0x1dd   :  { %2286 = vmatpush2.bf16.msra.mxu0 %v13506_v39  ;;  %2327 = vmatpush2.bf16.msra.mxu1 %v13511_v40 }
 0x1de   :  { %2287 = vmatprep.subr.bf16.mxu0 %v13520_v41  ;;  %2328 = vmatprep.subr.bf16.mxu1 %v13525_v42 }
 0x1e1   :  { %2288 = vmatpush2.bf16.msra.mxu0 %v13530_v43  ;;  %2329 = vmatpush2.bf16.msra.mxu1 %v13535_v44 }
 0x1e2   :  { %2289 = vmatprep.subr.bf16.mxu0 %v13544_v45  ;;  %2330 = vmatprep.subr.bf16.mxu1 %v13549_v46 }
 0x1e5   :  { %2290 = vmatpush2.bf16.msra.mxu0 %v13554_v47  ;;  %2331 = vmatpush2.bf16.msra.mxu1 %v13559_v48  ;;  %v17516_v48 = vsub.s32 2, %v17511_v31 }
 0x1e6   :  { %2291 = vmatprep.subr.bf16.mxu0 %v13568_v49  ;;  %2332 = vmatprep.subr.bf16.mxu1 %v13573_v50 }
 0x1e7   :  { %v13968_v49 = vrot.slane %v751_v30, %v17516_v48 }
 0x1e9   :  { %2292 = vmatpush2.bf16.msra.mxu0 %v13578_v51  ;;  %2333 = vmatpush2.bf16.msra.mxu1 %v13583_v52  ;;  %17517 = vst [vmem:[#allocation15_spill] sm:$0xff] %v13968_v49  ;;  %v17518_v51 = vsub.s32 3, %v17511_v31 }
 0x1ea   :  { %2293 = vmatprep.subr.bf16.mxu0 %v13590_v53  ;;  %2334 = vmatprep.subr.bf16.mxu1 %v13607_v56 }
 0x1eb   :  { %v13973_v52 = vrot.slane %v751_v30, %v17518_v51 }
 0x1ed   :  { %2294 = vmatpush2.bf16.msra.mxu0 %v13597_v54  ;;  %2335 = vmatpush2.bf16.msra.mxu1 %v13602_v55  ;;  %17519 = vst [vmem:[#allocation16_spill] sm:$0xff] %v13973_v52 }
 0x1ee   :  { %2295 = vmatprep.subr.bf16.mxu0 %v13613_v57  ;;  %2336 = vmatprep.subr.bf16.mxu1 %v17500_v17 }
 0x1f1   :  { %2296 = vmatpush2.bf16.msra.mxu0 %v17501_v18  ;;  %2337 = vmatpush2.bf16.msra.mxu1 %v17502_v19 }
 0x1f2   :  { %2297 = vmatprep.subr.bf16.mxu0 %v17503_v20  ;;  %2338 = vmatprep.subr.bf16.mxu1 %v17504_v21 }
 0x1f5   :  { %2298 = vmatpush2.bf16.msra.mxu0 %v17505_v22  ;;  %2339 = vmatpush2.bf16.msra.mxu1 %v17506_v23  ;;  %v17523_v22 = vld [vmem:[#allocation26_spill] sm:$0xff] }
 0x1f6   :  { %2299 = vmatprep.subr.bf16.mxu0 %v17507_v24  ;;  %2340 = vmatprep.subr.bf16.mxu1 %v17508_v25  ;;  %v17524_v24 = vld [vmem:[#allocation28_spill] sm:$0xff] }
 0x1f7   :  { %v651_v25 = vadd.f32 %v17524_v24, %v13723_v61  ;;  %v14093_v24 = vld [vmem:[%s17117_s4 + $0xe4] ss:$16 sps:$4 sm:$0xff]   ;;  %v14228_v61 = vld [vmem:[%s17117_s4 + $0x48] ss:$16 sps:$4 sm:$0xff]  }
 0x1f8   :  { %17539 = vst [vmem:[#allocation73_spill] sm:$0xff] %v14228_v61 }
 0x1f9   :  { %2300 = vmatpush2.bf16.msra.mxu0 %v17509_v26  ;;  %2341 = vmatpush2.bf16.msra.mxu1 %v17510_v27 }
 0x1fa   :  { %2576 = vmatprep.subr.bf16.mxu0 %v13950_v28  ;;  %2617 = vmatprep.subr.bf16.mxu1 %v13952_v29 }
 0x25c   :  { %v1501_v36 = vpop.f32.mrf.mxu0  ;;  %v1542_v37 = vpop.f32.mrf.mxu1 }
 0x25d   :  { %v1502_v38 = vadd.f32 %v1501_v36, %v13958_v33  ;;  %v1543_v50 = vadd.f32 %v1542_v37, %v13968_v49 }
 0x25e   :  { %v1503_v39 = vpop.f32.mrf.mxu0  ;;  %v1544_v40 = vpop.f32.mrf.mxu1 }
 0x25f   :  { %v10588_v41 = vmul.f32 -1.442695, %v1502_v38  ;;  %v1504_v42 = vadd.f32 %v1503_v39, %v13962_v35  ;;  %v10590_v53 = vmul.f32 -1.442695, %v1543_v50  ;;  %v1545_v55 = vadd.f32 %v1544_v40, %v13973_v52 }
 0x260   :  { %v1505_v43 = vpop.f32.mrf.mxu0  ;;  %v1546_v44 = vpop.f32.mrf.mxu1 }
 0x261   :  { %12707 = vpow2.f32 %v10588_v41  ;;  %v10589_v45 = vmul.f32 -1.442695, %v1504_v42 }
 0x262   :  { %v1506_v46 = vpop.f32.mrf.mxu0  ;;  %v1547_v47 = vpop.f32.mrf.mxu1 }
 0x263   :  { %12709 = vpow2.f32 %v10589_v45 }
 0x264   :  { %12711 = vpow2.f32 %v10590_v53  ;;  %v13992_v53 = vld [vmem:[#allocation5 + $0xe0] ss:$16 sps:$4 sm:$0xff]  }
 0x26e   :  { %v12708_v54 = vpop.eup %12707 }
 0x26f   :  { %v1558_v56 = vadd.f32 1.0, %v12708_v54  ;;  %v13994_v54 = vld [vmem:[#allocation5 + $0xe8] ss:$16 sps:$4 sm:$0xff]  }
 0x270   :  { %v12710_v57 = vpop.eup %12709 }
 0x271   :  { %12713 = vrcp.f32 %v1558_v56  ;;  %v1559_v3 = vadd.f32 1.0, %v12710_v57  ;;  %v12712_v0 = vpop.eup %12711  ;;  %v13998_v56 = vld [vmem:[#allocation5 + $0xc4] ss:$16 sps:$4 sm:$0xff]   ;;  %v14000_v57 = vld [vmem:[#allocation5 + $0xcc] ss:$16 sps:$4 sm:$0xff]  }
 0x272   :  { %12715 = vtanh.f32 %v1545_v55  ;;  %v1560_v1 = vadd.f32 1.0, %v12712_v0  ;;  %v14020_v0 = vld [vmem:[#allocation5 + $0xa0] ss:$16 sps:$4 sm:$0xff]  }
 0x273   :  { %12717 = vrcp.f32 %v1559_v3  ;;  %v14008_v3 = vld [vmem:[#allocation5 + $0xc8] ss:$16 sps:$4 sm:$0xff]  }
 0x27c   :  { %v1807_v16 = vpop.f32.mrf.mxu0  ;;  %v1848_v4 = vpop.f32.mrf.mxu1 }
 0x27d   :  { %v1855_v63 = vadd.f32 %v1807_v16, %v17522_v8  ;;  %v1857_v23 = vadd.f32 %v1848_v4, %v17523_v22  ;;  %v14012_v16 = vld [vmem:[#allocation5 + $0xa4] ss:$16 sps:$4 sm:$0xff]   ;;  %v14014_v4 = vld [vmem:[#allocation5 + $0xac] ss:$16 sps:$4 sm:$0xff]   ;;  %v14080_v22 = vld [vmem:[#allocation5] ss:$16 sps:$4 sm:$0xff]  }
 0x27e   :  { %v12714_v5 = vpop.eup %12713  ;;  %v1809_v11 = vpop.f32.mrf.mxu0  ;;  %v14028_v8 = vld [vmem:[#allocation5 + $0x8c] ss:$16 sps:$4 sm:$0xff]  }
 0x27f   :  { %v1850_v14 = vpop.f32.mrf.mxu1  ;;  %v12716_v15 = vpop.eup %12715  ;;  %v10623_v6 = vmul.f32 -1.442695, %v1855_v63  ;;  %v1856_v9 = vadd.f32 %v1809_v11, %v558_v59  ;;  %v10625_v26 = vmul.f32 -1.442695, %v1857_v23  ;;  %v14026_v59 = vld [vmem:[#allocation5 + $0x84] ss:$16 sps:$4 sm:$0xff]  }
 0x280   :  { %v12718_v2 = vpop.eup %12717  ;;  %v1811_v12 = vpop.f32.mrf.mxu0  ;;  %v1569_v17 = vmul.f32 %v12716_v15, %v12714_v5  ;;  %v1858_v27 = vadd.f32 %v1850_v14, %v651_v25  ;;  %v14032_v63 = vld [vmem:[#allocation5 + $0x80] ss:$16 sps:$4 sm:$0xff]   ;;  %v14034_v5 = vld [vmem:[#allocation5 + $0x88] ss:$16 sps:$4 sm:$0xff]   ;;  %v14038_v11 = vld [vmem:[#allocation5 + $0x64] ss:$16 sps:$4 sm:$0xff]  }
 0x281   :  { %v1852_v13 = vpop.f32.mrf.mxu1  ;;  %v1568_v7 = vmul.f32 0.0, %v12718_v2  ;;  %12719 = vpow2.f32 %v10623_v6  ;;  %v10624_v18 = vmul.f32 -1.442695, %v1856_v9  ;;  %v14040_v14 = vld [vmem:[#allocation5 + $0x6c] ss:$16 sps:$4 sm:$0xff]  }
 0x282   :  { %v1812_v19 = vpop.f32.mrf.mxu0  ;;  %v14044_v15 = vld [vmem:[#allocation5 + $0x60] ss:$16 sps:$4 sm:$0xff]   ;;  %v14046_v6 = vld [vmem:[#allocation5 + $0x68] ss:$16 sps:$4 sm:$0xff]   ;;  %v14050_v9 = vld [vmem:[#allocation5 + $0x44] ss:$16 sps:$4 sm:$0xff]  }
 0x283   :  { %v1853_v20 = vpop.f32.mrf.mxu1  ;;  %v13979_v21 = vadd.f32 %v1569_v17, %v1568_v7  ;;  %12721 = vpow2.f32 %v10624_v18  ;;  %v14052_v2 = vld [vmem:[#allocation5 + $0x4c] ss:$16 sps:$4 sm:$0xff]   ;;  %v14058_v12 = vld [vmem:[#allocation5 + $0x48] ss:$16 sps:$4 sm:$0xff]   ;;  %v14062_v13 = vld [vmem:[#allocation5 + $0x24] ss:$16 sps:$4 sm:$0xff]  }
 0x284   :  { %12723 = vrcp.f32 %v1560_v1  ;;  %v14056_v1 = vld [vmem:[#allocation5 + $0x40] ss:$16 sps:$4 sm:$0xff]   ;;  %v14064_v7 = vld [vmem:[#allocation5 + $0x2c] ss:$16 sps:$4 sm:$0xff]   ;;  %v14070_v18 = vld [vmem:[#allocation5 + $0x28] ss:$16 sps:$4 sm:$0xff]  }
 0x285   :  { %12725 = vtanh.f32 %v13979_v21  ;;  %v14068_v17 = vld [vmem:[#allocation5 + $0x20] ss:$16 sps:$4 sm:$0xff]   ;;  %v14074_v19 = vld [vmem:[#allocation5 + $0x4] ss:$16 sps:$4 sm:$0xff]   ;;  %v14076_v20 = vld [vmem:[#allocation5 + $0xc] ss:$16 sps:$4 sm:$0xff]  }
 0x286   :  { %12727 = vpow2.f32 %v10625_v26  ;;  %v14082_v23 = vld [vmem:[#allocation5 + $0x8] ss:$16 sps:$4 sm:$0xff]   ;;  %v14098_v25 = vld [vmem:[%s17117_s4 + $0xec] ss:$16 sps:$4 sm:$0xff]   ;;  %v14103_v26 = vld [vmem:[%s17117_s4 + $0xe0] ss:$16 sps:$4 sm:$0xff]  }
 0x287   :  { %12729 = vtanh.f32 %v1858_v27  ;;  %v14108_v27 = vld [vmem:[%s17117_s4 + $0xe8] ss:$16 sps:$4 sm:$0xff]  }
 0x28e   :  { %v12720_v30 = vpop.eup %12719 }
 0x28f   :  { %v1868_v31 = vadd.f32 1.0, %v12720_v30  ;;  %v14117_v30 = vld [vmem:[%s17117_s4 + $0xc4] ss:$16 sps:$4 sm:$0xff]  }
 0x290   :  { %v12722_v32 = vpop.eup %12721 }
 0x291   :  { %v12724_v34 = vpop.eup %12723  ;;  %12731 = vrcp.f32 %v1868_v31  ;;  %v1869_v36 = vadd.f32 1.0, %v12722_v32  ;;  %v14122_v31 = vld [vmem:[%s17117_s4 + $0xcc] ss:$16 sps:$4 sm:$0xff]   ;;  %v14127_v32 = vld [vmem:[%s17117_s4 + $0xc0] ss:$16 sps:$4 sm:$0xff]  }
 0x292   :  { %v12726_v37 = vpop.eup %12725 }
 0x293   :  { %12733 = vrcp.f32 %v1869_v36  ;;  %v1572_v38 = vmul.f32 %v12726_v37, %v12724_v34  ;;  %v12728_v40 = vpop.eup %12727  ;;  %v14132_v34 = vld [vmem:[%s17117_s4 + $0xc8] ss:$16 sps:$4 sm:$0xff]   ;;  %v14141_v36 = vld [vmem:[%s17117_s4 + $0xa4] ss:$16 sps:$4 sm:$0xff]   ;;  %v14146_v37 = vld [vmem:[%s17117_s4 + $0xac] ss:$16 sps:$4 sm:$0xff]  }
 0x294   :  { %v12730_v41 = vpop.eup %12729  ;;  %v1870_v45 = vadd.f32 1.0, %v12728_v40  ;;  %17525 = vst [vmem:[#allocation17_spill] sm:$0xff] %v14146_v37  ;;  %v14165_v40 = vld [vmem:[%s17117_s4 + $0x84] ss:$16 sps:$4 sm:$0xff]  }
 0x295   :  { %1573 = vst [vmem:[%s17119_s6] sm:$0xff] %v1572_v38  ;;  %v1884_v39 = vpack.c.bf16 %v1572_v38, %v1572_v38  ;;  %v14151_v38 = vld [vmem:[%s17117_s4 + $0xa0] ss:$16 sps:$4 sm:$0xff]   ;;  %17528 = vst [vmem:[#allocation20_spill] sm:$0xff] %v14165_v40 }
 0x296   :  { %12735 = vrcp.f32 %v1870_v45  ;;  %17526 = vst [vmem:[#allocation18_spill] sm:$0xff] %v14151_v38  ;;  %v14194_v45 = vld [vmem:[%s17117_s4 + $0x6c] ss:$16 sps:$4 sm:$0xff]  }
 0x297   :  { %2301 = vmatprep.mubr.bf16.mxu0 %v1884_v39  ;;  %2342 = vmatprep.mubr.bf16.mxu1 %v1884_v39  ;;  %v14156_v39 = vld [vmem:[%s17117_s4 + $0xa8] ss:$16 sps:$4 sm:$0xff]   ;;  %17533 = vst [vmem:[#allocation27_spill] sm:$0xff] %v14194_v45 }
 0x298   :  { %17527 = vst [vmem:[#allocation19_spill] sm:$0xff] %v14156_v39 }
 0x29e   :  { %v12732_v42 = vpop.eup %12731 }
 0x29f   :  { %v1879_v43 = vmul.f32 %v12732_v42, %v12730_v41  ;;  %v14170_v41 = vld [vmem:[%s17117_s4 + $0x8c] ss:$16 sps:$4 sm:$0xff]   ;;  %v14175_v42 = vld [vmem:[%s17117_s4 + $0x80] ss:$16 sps:$4 sm:$0xff]  }
 0x2a0   :  { %v12734_v44 = vpop.eup %12733  ;;  %17529 = vst [vmem:[#allocation21_spill] sm:$0xff] %v14170_v41  ;;  %17530 = vst [vmem:[#allocation22_spill] sm:$0xff] %v14175_v42 }
 0x2a1   :  { %v1878_v46 = vmul.f32 %v12734_v44, %v13851_v60  ;;  %v14006_v60 = vld [vmem:[#allocation5 + $0xc0] ss:$16 sps:$4 sm:$0xff]   ;;  %v14189_v44 = vld [vmem:[%s17117_s4 + $0x64] ss:$16 sps:$4 sm:$0xff]  }
 0x2a2   :  { %17532 = vst [vmem:[#allocation24_spill] sm:$0xff] %v14189_v44 }
 0x2a3   :  { %v13989_v47 = vadd.f32 %v1879_v43, %v1878_v46  ;;  %v12736_v48 = vpop.eup %12735  ;;  %v14180_v43 = vld [vmem:[%s17117_s4 + $0x88] ss:$16 sps:$4 sm:$0xff]   ;;  %v14199_v46 = vld [vmem:[%s17117_s4 + $0x60] ss:$16 sps:$4 sm:$0xff]  }
 0x2a4   :  { %17531 = vst [vmem:[#allocation23_spill] sm:$0xff] %v14180_v43  ;;  %17534 = vst [vmem:[#allocation25_spill] sm:$0xff] %v14199_v46 }
 0x2a5   :  { %12737 = vtanh.f32 %v13989_v47 }
 0x2b2   :  { %v12738_v50 = vpop.eup %12737 }
 0x2b3   :  { %v1882_v51 = vmul.f32 %v12738_v50, %v12736_v48  ;;  %v14204_v48 = vld [vmem:[%s17117_s4 + $0x68] ss:$16 sps:$4 sm:$0xff]   ;;  %v14213_v50 = vld [vmem:[%s17117_s4 + $0x44] ss:$16 sps:$4 sm:$0xff]  }
 0x2b4   :  { %17535 = vst [vmem:[#allocation26_spill] sm:$0xff] %v14204_v48  ;;  %17536 = vst [vmem:[#allocation28_spill] sm:$0xff] %v14213_v50 }
 0x2b5   :  { %v13996_v55 = vpack.c.bf16 %v1882_v51, %v1882_v51  ;;  %v14218_v51 = vld [vmem:[%s17117_s4 + $0x4c] ss:$16 sps:$4 sm:$0xff]  }
 0x2b6   :  { %17537 = vst [vmem:[#allocation71_spill] sm:$0xff] %v14218_v51 }
 0x2b7   :  { %2302 = vmatmul.mubr.bf16.vlgmr.msra.gmra.mxu0 %v13996_v55  ;;  %2343 = vmatmul.mubr.bf16.vlgmr.msra.gmra.mxu1 %v13996_v55 }
 0x2b8   :  { %2577 = vmatpush1.bf16.msra.mxu0 %v13992_v53  ;;  %2618 = vmatpush1.bf16.msra.mxu1 %v13994_v54 }
 0x2b9   :  { %2578 = vmatprep.subr.bf16.mxu0 %v13998_v56  ;;  %2619 = vmatprep.subr.bf16.mxu1 %v14000_v57 }
 0x2ba   :  { %2608 = vmatprep.mubr.bf16.mxu0 %v17499_v10  ;;  %2649 = vmatprep.mubr.bf16.mxu1 %v17499_v10 }
 0x2bc   :  { %2579 = vmatpush1.bf16.msra.mxu0 %v14006_v60  ;;  %2620 = vmatpush1.bf16.msra.mxu1 %v14008_v3 }
 0x2bd   :  { %2580 = vmatprep.subr.bf16.mxu0 %v14012_v16  ;;  %2621 = vmatprep.subr.bf16.mxu1 %v14014_v4 }
 0x2c0   :  { %2581 = vmatpush1.bf16.msra.mxu0 %v14020_v0  ;;  %2622 = vmatpush1.bf16.msra.mxu1 %v14022_v58 }
 0x2c1   :  { %2582 = vmatprep.subr.bf16.mxu0 %v14026_v59  ;;  %2623 = vmatprep.subr.bf16.mxu1 %v14028_v8 }
 0x2c4   :  { %2583 = vmatpush1.bf16.msra.mxu0 %v14032_v63  ;;  %2624 = vmatpush1.bf16.msra.mxu1 %v14034_v5 }
 0x2c5   :  { %2584 = vmatprep.subr.bf16.mxu0 %v14038_v11  ;;  %2625 = vmatprep.subr.bf16.mxu1 %v14040_v14 }
 0x2c8   :  { %2585 = vmatpush1.bf16.msra.mxu0 %v14044_v15  ;;  %2626 = vmatpush1.bf16.msra.mxu1 %v14046_v6 }
 0x2c9   :  { %2586 = vmatprep.subr.bf16.mxu0 %v14050_v9  ;;  %2627 = vmatprep.subr.bf16.mxu1 %v14052_v2 }
 0x2cc   :  { %2587 = vmatpush1.bf16.msra.mxu0 %v14056_v1  ;;  %2628 = vmatpush1.bf16.msra.mxu1 %v14058_v12 }
 0x2cd   :  { %2588 = vmatprep.subr.bf16.mxu0 %v14062_v13  ;;  %2629 = vmatprep.subr.bf16.mxu1 %v14064_v7 }
 0x2d0   :  { %2589 = vmatpush1.bf16.msra.mxu0 %v14068_v17  ;;  %2630 = vmatpush1.bf16.msra.mxu1 %v14070_v18 }
 0x2d1   :  { %2590 = vmatprep.subr.bf16.mxu0 %v14074_v19  ;;  %2631 = vmatprep.subr.bf16.mxu1 %v14076_v20 }
 0x2d4   :  { %2591 = vmatpush1.bf16.msra.mxu0 %v14080_v22  ;;  %2632 = vmatpush1.bf16.msra.mxu1 %v14082_v23 }
 0x2d5   :  { %3072 = vmatprep.subr.bf16.mxu0 %v14093_v24  ;;  %3113 = vmatprep.subr.bf16.mxu1 %v14098_v25 }
 0x2d7   :  { %2609 = vmatmul.mubr.bf16.vlgmr.msra.gmra.mxu0 %v13996_v55  ;;  %2650 = vmatmul.mubr.bf16.vlgmr.msra.gmra.mxu1 %v13996_v55  ;;  %v14223_v55 = vld [vmem:[%s17117_s4 + $0x40] ss:$16 sps:$4 sm:$0xff]  }
 0x2d8   :  { %3073 = vmatpush1.bf16.msra.mxu0 %v14103_v26  ;;  %3114 = vmatpush1.bf16.msra.mxu1 %v14108_v27  ;;  %17538 = vst [vmem:[#allocation72_spill] sm:$0xff] %v14223_v55 }
 0x2d9   :  { %3074 = vmatprep.subr.bf16.mxu0 %v14117_v30  ;;  %3115 = vmatprep.subr.bf16.mxu1 %v14122_v31 }
 0x2dc   :  { %3075 = vmatpush1.bf16.msra.mxu0 %v14127_v32  ;;  %3116 = vmatpush1.bf16.msra.mxu1 %v14132_v34 }
 0x2dd   :  { %3076 = vmatprep.subr.bf16.mxu0 %v14141_v36  ;;  %3117 = vmatprep.subr.bf16.mxu1 %v14146_v37 }
 0x2e0   :  { %3077 = vmatpush1.bf16.msra.mxu0 %v14151_v38  ;;  %3118 = vmatpush1.bf16.msra.mxu1 %v14156_v39 }
 0x2e1   :  { %3078 = vmatprep.subr.bf16.mxu0 %v14165_v40  ;;  %3119 = vmatprep.subr.bf16.mxu1 %v14170_v41 }
 0x2e4   :  { %3079 = vmatpush1.bf16.msra.mxu0 %v14175_v42  ;;  %3120 = vmatpush1.bf16.msra.mxu1 %v14180_v43 }
 0x2e5   :  { %3080 = vmatprep.subr.bf16.mxu0 %v14189_v44  ;;  %3121 = vmatprep.subr.bf16.mxu1 %v14194_v45 }
 0x2e8   :  { %3081 = vmatpush1.bf16.msra.mxu0 %v14199_v46  ;;  %3122 = vmatpush1.bf16.msra.mxu1 %v14204_v48  ;;  %v14242_v48 = vld [vmem:[%s17117_s4 + $0x2c] ss:$16 sps:$4 sm:$0xff]   ;;  %v14420_v46 = vld [vmem:[%s17117_s4 + $0x148] ss:$16 sps:$4 sm:$0xff]  }
 0x2e9   :  { %3082 = vmatprep.subr.bf16.mxu0 %v14213_v50  ;;  %3123 = vmatprep.subr.bf16.mxu1 %v14218_v51  ;;  %17541 = vst [vmem:[#allocation75_spill] sm:$0xff] %v14242_v48  ;;  %v14247_v50 = vld [vmem:[%s17117_s4 + $0x20] ss:$16 sps:$4 sm:$0xff]   ;;  %v14266_v51 = vld [vmem:[%s17117_s4 + $0xc] ss:$16 sps:$4 sm:$0xff]   ;;  %17571 = vst [vmem:[#allocation105_spill] sm:$0xff] %v14420_v46 }
 0x2ea   :  { %17542 = vst [vmem:[#allocation76_spill] sm:$0xff] %v14247_v50  ;;  %17545 = vst [vmem:[#allocation79_spill] sm:$0xff] %v14266_v51 }
 0x2ec   :  { %3083 = vmatpush1.bf16.msra.mxu0 %v14223_v55  ;;  %3124 = vmatpush1.bf16.msra.mxu1 %v14228_v61  ;;  %v14252_v55 = vld [vmem:[%s17117_s4 + $0x28] ss:$16 sps:$4 sm:$0xff]   ;;  %v14261_v61 = vld [vmem:[%s17117_s4 + $0x4] ss:$16 sps:$4 sm:$0xff]  }
 0x2ed   :  { %17543 = vst [vmem:[#allocation77_spill] sm:$0xff] %v14252_v55  ;;  %3084 = vmatprep.subr.bf16.mxu0 %v14237_v62  ;;  %3125 = vmatprep.subr.bf16.mxu1 %v14242_v48  ;;  %17544 = vst [vmem:[#allocation78_spill] sm:$0xff] %v14261_v61  ;;  %v14271_v62 = vld [vmem:[%s17117_s4] ss:$16 sps:$4 sm:$0xff]   ;;  %v14290_v48 = vld [vmem:[%s17117_s4 + $0x1ec] ss:$16 sps:$4 sm:$0xff]  }
 0x2ee   :  { %17546 = vst [vmem:[#allocation80_spill] sm:$0xff] %v14271_v62  ;;  %17549 = vst [vmem:[#allocation83_spill] sm:$0xff] %v14290_v48 }
 0x2f0   :  { %3085 = vmatpush1.bf16.msra.mxu0 %v14247_v50  ;;  %3126 = vmatpush1.bf16.msra.mxu1 %v14252_v55  ;;  %v14276_v50 = vld [vmem:[%s17117_s4 + $0x8] ss:$16 sps:$4 sm:$0xff]   ;;  %v14285_v55 = vld [vmem:[%s17117_s4 + $0x1e4] ss:$16 sps:$4 sm:$0xff]  }
 0x2f1   :  { %17547 = vst [vmem:[#allocation81_spill] sm:$0xff] %v14276_v50  ;;  %3086 = vmatprep.subr.bf16.mxu0 %v14261_v61  ;;  %3127 = vmatprep.subr.bf16.mxu1 %v14266_v51  ;;  %17548 = vst [vmem:[#allocation82_spill] sm:$0xff] %v14285_v55  ;;  %v14295_v61 = vld [vmem:[%s17117_s4 + $0x1e0] ss:$16 sps:$4 sm:$0xff]   ;;  %v14314_v51 = vld [vmem:[%s17117_s4 + $0x1cc] ss:$16 sps:$4 sm:$0xff]  }
 0x2f2   :  { %17550 = vst [vmem:[#allocation84_spill] sm:$0xff] %v14295_v61  ;;  %17553 = vst [vmem:[#allocation87_spill] sm:$0xff] %v14314_v51 }
 0x2f4   :  { %3087 = vmatpush1.bf16.msra.mxu0 %v14271_v62  ;;  %3128 = vmatpush1.bf16.msra.mxu1 %v14276_v50  ;;  %v14300_v62 = vld [vmem:[%s17117_s4 + $0x1e8] ss:$16 sps:$4 sm:$0xff]   ;;  %v14309_v50 = vld [vmem:[%s17117_s4 + $0x1c4] ss:$16 sps:$4 sm:$0xff]  }
 0x2f5   :  { %17551 = vst [vmem:[#allocation85_spill] sm:$0xff] %v14300_v62  ;;  %3088 = vmatprep.subr.bf16.mxu0 %v14285_v55  ;;  %3129 = vmatprep.subr.bf16.mxu1 %v14290_v48  ;;  %17552 = vst [vmem:[#allocation86_spill] sm:$0xff] %v14309_v50  ;;  %v14319_v55 = vld [vmem:[%s17117_s4 + $0x1c0] ss:$16 sps:$4 sm:$0xff]   ;;  %v14338_v48 = vld [vmem:[%s17117_s4 + $0x1ac] ss:$16 sps:$4 sm:$0xff]  }
 0x2f6   :  { %17554 = vst [vmem:[#allocation88_spill] sm:$0xff] %v14319_v55  ;;  %17557 = vst [vmem:[#allocation91_spill] sm:$0xff] %v14338_v48 }
 0x2f8   :  { %3089 = vmatpush2.bf16.msra.mxu0 %v14295_v61  ;;  %3130 = vmatpush2.bf16.msra.mxu1 %v14300_v62  ;;  %v14324_v61 = vld [vmem:[%s17117_s4 + $0x1c8] ss:$16 sps:$4 sm:$0xff]   ;;  %v14333_v62 = vld [vmem:[%s17117_s4 + $0x1a4] ss:$16 sps:$4 sm:$0xff]  }
 0x2f9   :  { %17555 = vst [vmem:[#allocation89_spill] sm:$0xff] %v14324_v61  ;;  %3090 = vmatprep.subr.bf16.mxu0 %v14309_v50  ;;  %3131 = vmatprep.subr.bf16.mxu1 %v14314_v51  ;;  %17556 = vst [vmem:[#allocation90_spill] sm:$0xff] %v14333_v62  ;;  %v14343_v50 = vld [vmem:[%s17117_s4 + $0x1a0] ss:$16 sps:$4 sm:$0xff]   ;;  %v14362_v51 = vld [vmem:[%s17117_s4 + $0x18c] ss:$16 sps:$4 sm:$0xff]  }
 0x2fa   :  { %17558 = vst [vmem:[#allocation92_spill] sm:$0xff] %v14343_v50  ;;  %17561 = vst [vmem:[#allocation95_spill] sm:$0xff] %v14362_v51 }
 0x2fc   :  { %3091 = vmatpush2.bf16.msra.mxu0 %v14319_v55  ;;  %3132 = vmatpush2.bf16.msra.mxu1 %v14324_v61  ;;  %v14348_v55 = vld [vmem:[%s17117_s4 + $0x1a8] ss:$16 sps:$4 sm:$0xff]   ;;  %v14357_v61 = vld [vmem:[%s17117_s4 + $0x184] ss:$16 sps:$4 sm:$0xff]  }
 0x2fd   :  { %17559 = vst [vmem:[#allocation93_spill] sm:$0xff] %v14348_v55  ;;  %3092 = vmatprep.subr.bf16.mxu0 %v14333_v62  ;;  %3133 = vmatprep.subr.bf16.mxu1 %v14338_v48  ;;  %17560 = vst [vmem:[#allocation94_spill] sm:$0xff] %v14357_v61  ;;  %v14367_v62 = vld [vmem:[%s17117_s4 + $0x180] ss:$16 sps:$4 sm:$0xff]  }
 0x2fe   :  { %17562 = vst [vmem:[#allocation96_spill] sm:$0xff] %v14367_v62  ;;  %v14386_v48 = vld [vmem:[%s17117_s4 + $0x160] ss:$16 sps:$4 sm:$0xff]  }
 0x2ff   :  { %17565 = vst [vmem:[#allocation99_spill] sm:$0xff] %v14386_v48 }
 0x300   :  { %3093 = vmatpush2.bf16.msra.mxu0 %v14343_v50  ;;  %3134 = vmatpush2.bf16.msra.mxu1 %v14348_v55  ;;  %v14372_v50 = vld [vmem:[%s17117_s4 + $0x188] ss:$16 sps:$4 sm:$0xff]   ;;  %v14379_v55 = vld [vmem:[%s17117_s4 + $0x164] ss:$16 sps:$4 sm:$0xff]  }
 0x301   :  { %17563 = vst [vmem:[#allocation97_spill] sm:$0xff] %v14372_v50  ;;  %3094 = vmatprep.subr.bf16.mxu0 %v14357_v61  ;;  %3135 = vmatprep.subr.bf16.mxu1 %v14362_v51  ;;  %17564 = vst [vmem:[#allocation98_spill] sm:$0xff] %v14379_v55  ;;  %v14391_v61 = vld [vmem:[%s17117_s4 + $0x168] ss:$16 sps:$4 sm:$0xff]   ;;  %v14396_v51 = vld [vmem:[%s17117_s4 + $0x16c] ss:$16 sps:$4 sm:$0xff]  }
 0x302   :  { %17566 = vst [vmem:[#allocation100_spill] sm:$0xff] %v14391_v61  ;;  %17567 = vst [vmem:[#allocation101_spill] sm:$0xff] %v14396_v51 }
 0x304   :  { %3095 = vmatpush2.bf16.msra.mxu0 %v14367_v62  ;;  %3136 = vmatpush2.bf16.msra.mxu1 %v14372_v50  ;;  %v14402_v50 = vld [vmem:[%s17117_s4 + $0x144] ss:$16 sps:$4 sm:$0xff]   ;;  %v14407_v62 = vld [vmem:[%s17117_s4 + $0x14c] ss:$16 sps:$4 sm:$0xff]  }
 0x305   :  { %3096 = vmatprep.subr.bf16.mxu0 %v14379_v55  ;;  %17568 = vst [vmem:[#allocation102_spill] sm:$0xff] %v14402_v50  ;;  %17569 = vst [vmem:[#allocation103_spill] sm:$0xff] %v14407_v62  ;;  %3137 = vmatprep.subr.bf16.mxu1 %v14396_v51  ;;  %v14415_v55 = vld [vmem:[%s17117_s4 + $0x140] ss:$16 sps:$4 sm:$0xff]  }
 0x306   :  { %17570 = vst [vmem:[#allocation104_spill] sm:$0xff] %v14415_v55 }
 0x308   :  { %3097 = vmatpush2.bf16.msra.mxu0 %v14386_v48  ;;  %3138 = vmatpush2.bf16.msra.mxu1 %v14391_v61  ;;  %v14427_v48 = vld [vmem:[%s17117_s4 + $0x124] ss:$16 sps:$4 sm:$0xff]   ;;  %v14432_v61 = vld [vmem:[%s17117_s4 + $0x12c] ss:$16 sps:$4 sm:$0xff]  }
 0x309   :  { %3098 = vmatprep.subr.bf16.mxu0 %v14402_v50  ;;  %3139 = vmatprep.subr.bf16.mxu1 %v14407_v62  ;;  %17572 = vst [vmem:[#allocation106_spill] sm:$0xff] %v14427_v48  ;;  %17573 = vst [vmem:[#allocation107_spill] sm:$0xff] %v14432_v61  ;;  %v14439_v50 = vld [vmem:[%s17117_s4 + $0x120] ss:$16 sps:$4 sm:$0xff]   ;;  %v14444_v62 = vld [vmem:[%s17117_s4 + $0x128] ss:$16 sps:$4 sm:$0xff]  }
 0x30a   :  { %17574 = vst [vmem:[#allocation108_spill] sm:$0xff] %v14439_v50  ;;  %17575 = vst [vmem:[#allocation109_spill] sm:$0xff] %v14444_v62 }
 0x30c   :  { %3099 = vmatpush2.bf16.msra.mxu0 %v14415_v55  ;;  %3140 = vmatpush2.bf16.msra.mxu1 %v14420_v46  ;;  %v14451_v55 = vld [vmem:[%s17117_s4 + $0x104] ss:$16 sps:$4 sm:$0xff]   ;;  %v14456_v46 = vld [vmem:[%s17117_s4 + $0x10c] ss:$16 sps:$4 sm:$0xff]  }
 0x30d   :  { %3100 = vmatprep.subr.bf16.mxu0 %v14427_v48  ;;  %3141 = vmatprep.subr.bf16.mxu1 %v14432_v61  ;;  %17576 = vst [vmem:[#allocation110_spill] sm:$0xff] %v14451_v55  ;;  %17577 = vst [vmem:[#allocation111_spill] sm:$0xff] %v14456_v46  ;;  %v14463_v48 = vld [vmem:[%s17117_s4 + $0x100] ss:$16 sps:$4 sm:$0xff]   ;;  %v14468_v61 = vld [vmem:[%s17117_s4 + $0x108] ss:$16 sps:$4 sm:$0xff]  }
 0x30e   :  { %17578 = vst [vmem:[#allocation112_spill] sm:$0xff] %v14463_v48  ;;  %17579 = vst [vmem:[#allocation113_spill] sm:$0xff] %v14468_v61 }
 0x310   :  { %3101 = vmatpush2.bf16.msra.mxu0 %v14439_v50  ;;  %3142 = vmatpush2.bf16.msra.mxu1 %v14444_v62 }
 0x311   :  { %3102 = vmatprep.subr.bf16.mxu0 %v14451_v55  ;;  %3143 = vmatprep.subr.bf16.mxu1 %v14456_v46 }
 0x314   :  { %3103 = vmatpush2.bf16.msra.mxu0 %v14463_v48  ;;  %3144 = vmatpush2.bf16.msra.mxu1 %v14468_v61 }
 0x315   :  { %3379 = vmatprep.subr.bf16.mxu0 %v13950_v28  ;;  %3420 = vmatprep.subr.bf16.mxu1 %v13952_v29 }
 0x377   :  { %v2303_v62 = vpop.f32.mrf.mxu0  ;;  %v2344_v50 = vpop.f32.mrf.mxu1 }
 0x378   :  { %v2304_v51 = vadd.f32 %v2303_v62, %v13958_v33  ;;  %v2345_v28 = vadd.f32 %v2344_v50, %v13968_v49  ;;  %v17581_v49 = vld [vmem:[#allocation33_spill] sm:$0xff] }
 0x379   :  { %v2305_v45 = vpop.f32.mrf.mxu0  ;;  %v2346_v44 = vpop.f32.mrf.mxu1 }
 0x37a   :  { %v10690_v43 = vmul.f32 -1.442695, %v2304_v51  ;;  %v2306_v42 = vadd.f32 %v2305_v45, %v13962_v35  ;;  %v10692_v61 = vmul.f32 -1.442695, %v2345_v28  ;;  %v2347_v39 = vadd.f32 %v2346_v44, %v13973_v52 }
 0x37b   :  { %v2307_v55 = vpop.f32.mrf.mxu0  ;;  %v2348_v41 = vpop.f32.mrf.mxu1 }
 0x37c   :  { %12739 = vpow2.f32 %v10690_v43  ;;  %v10691_v46 = vmul.f32 -1.442695, %v2306_v42  ;;  %v17580_v42 = vld [vmem:[#allocation31_spill] sm:$0xff] }
 0x37d   :  { %v2308_v48 = vpop.f32.mrf.mxu0  ;;  %v2349_v40 = vpop.f32.mrf.mxu1 }
 0x37e   :  { %12741 = vpow2.f32 %v10691_v46 }
 0x37f   :  { %12743 = vpow2.f32 %v10692_v61 }
 0x389   :  { %v12740_v29 = vpop.eup %12739 }
 0x38a   :  { %v2360_v38 = vadd.f32 1.0, %v12740_v29 }
 0x38b   :  { %v12742_v62 = vpop.eup %12741 }
 0x38c   :  { %12745 = vrcp.f32 %v2360_v38  ;;  %v2361_v51 = vadd.f32 1.0, %v12742_v62  ;;  %v12744_v43 = vpop.eup %12743 }
 0x38d   :  { %12747 = vtanh.f32 %v2347_v39  ;;  %v2362_v29 = vadd.f32 1.0, %v12744_v43 }
 0x38e   :  { %12749 = vrcp.f32 %v2361_v51 }
 0x397   :  { %v2610_v45 = vpop.f32.mrf.mxu0  ;;  %v2651_v41 = vpop.f32.mrf.mxu1 }
 0x398   :  { %v2658_v48 = vadd.f32 %v2610_v45, %v17580_v42  ;;  %v17582_v45 = vld [vmem:[#allocation32_spill] sm:$0xff] }
 0x399   :  { %v12746_v40 = vpop.eup %12745  ;;  %v2612_v46 = vpop.f32.mrf.mxu0  ;;  %v2660_v42 = vadd.f32 %v2651_v41, %v17582_v45 }
 0x39a   :  { %v2653_v55 = vpop.f32.mrf.mxu1  ;;  %v12748_v50 = vpop.eup %12747  ;;  %v10726_v28 = vmul.f32 -1.442695, %v2658_v48  ;;  %v2659_v35 = vadd.f32 %v2612_v46, %v17581_v49  ;;  %v17583_v48 = vld [vmem:[#allocation34_spill] sm:$0xff] }
 0x39b   :  { %v12750_v44 = vpop.eup %12749  ;;  %v2614_v52 = vpop.f32.mrf.mxu0  ;;  %v2371_v39 = vmul.f32 %v12748_v50, %v12746_v40  ;;  %v10728_v49 = vmul.f32 -1.442695, %v2660_v42  ;;  %v2661_v43 = vadd.f32 %v2653_v55, %v17583_v48  ;;  %v17624_v48 = vld [vmem:[#allocation101_spill] sm:$0xff] }
 0x39c   :  { %v2655_v61 = vpop.f32.mrf.mxu1  ;;  %v2370_v38 = vmul.f32 %v12750_v44, %v13979_v21  ;;  %12751 = vpow2.f32 %v10726_v28  ;;  %v10727_v62 = vmul.f32 -1.442695, %v2659_v35 }
 0x39d   :  { %v2615_v51 = vpop.f32.mrf.mxu0 }
 0x39e   :  { %v2656_v33 = vpop.f32.mrf.mxu1  ;;  %v14483_v37 = vadd.f32 %v2371_v39, %v2370_v38  ;;  %12753 = vpow2.f32 %v10727_v62 }
 0x39f   :  { %12755 = vrcp.f32 %v2362_v29 }
 0x3a0   :  { %12757 = vtanh.f32 %v14483_v37 }
 0x3a1   :  { %12759 = vpow2.f32 %v10728_v49 }
 0x3a2   :  { %12761 = vtanh.f32 %v2661_v43  ;;  %v17625_v43 = vld [vmem:[#allocation99_spill] sm:$0xff] }
 0x3a9   :  { %v12752_v52 = vpop.eup %12751 }
 0x3aa   :  { %v2671_v46 = vadd.f32 1.0, %v12752_v52  ;;  %v17626_v52 = vld [vmem:[#allocation100_spill] sm:$0xff] }
 0x3ab   :  { %v12754_v21 = vpop.eup %12753 }
 0x3ac   :  { %v12756_v40 = vpop.eup %12755  ;;  %12763 = vrcp.f32 %v2671_v46  ;;  %v2672_v35 = vadd.f32 1.0, %v12754_v21  ;;  %v17627_v46 = vld [vmem:[#allocation102_spill] sm:$0xff]  ;;  %v17628_v21 = vld [vmem:[#allocation103_spill] sm:$0xff] }
 0x3ad   :  { %v12758_v33 = vpop.eup %12757 }
 0x3ae   :  { %12765 = vrcp.f32 %v2672_v35  ;;  %v2374_v50 = vmul.f32 %v12758_v33, %v12756_v40  ;;  %v12760_v41 = vpop.eup %12759  ;;  %v17629_v40 = vld [vmem:[#allocation104_spill] sm:$0xff]  ;;  %v17630_v35 = vld [vmem:[#allocation105_spill] sm:$0xff]  ;;  %v17631_v33 = vld [vmem:[#allocation106_spill] sm:$0xff] }
 0x3af   :  { %v12762_v55 = vpop.eup %12761  ;;  %v2673_v38 = vadd.f32 1.0, %v12760_v41  ;;  %v17634_v41 = vld [vmem:[#allocation109_spill] sm:$0xff] }
 0x3b0   :  { %10693 = vst [vmem:[%s17119_s6 + $0x8] sm:$0xff] %v2374_v50  ;;  %v2687_v28 = vpack.c.bf16 %v2374_v50, %v2374_v50  ;;  %v17632_v50 = vld [vmem:[#allocation107_spill] sm:$0xff] }
 0x3b1   :  { %12767 = vrcp.f32 %v2673_v38  ;;  %v14591_v38 = vld [vmem:[#allocation5 + $0xe4] ss:$16 sps:$4 sm:$0xff]  }
 0x3b2   :  { %3104 = vmatprep.mubr.bf16.mxu0 %v2687_v28  ;;  %3145 = vmatprep.mubr.bf16.mxu1 %v2687_v28  ;;  %v17633_v28 = vld [vmem:[#allocation108_spill] sm:$0xff] }
 0x3b9   :  { %v12764_v44 = vpop.eup %12763 }
 0x3ba   :  { %v2682_v29 = vmul.f32 %v12764_v44, %v12762_v55  ;;  %v17635_v55 = vld [vmem:[#allocation110_spill] sm:$0xff]  ;;  %v17636_v44 = vld [vmem:[#allocation111_spill] sm:$0xff] }
 0x3bb   :  { %v12766_v61 = vpop.eup %12765 }
 0x3bc   :  { %v2681_v39 = vmul.f32 %v12766_v61, %v13989_v47  ;;  %v17584_v47 = vld [vmem:[#allocation17_spill] sm:$0xff] }
 0x3bd   :  { %v17638_v61 = vld [vmem:[#allocation113_spill] sm:$0xff] }
 0x3be   :  { %v14492_v62 = vadd.f32 %v2682_v29, %v2681_v39  ;;  %v12768_v51 = vpop.eup %12767  ;;  %v17637_v29 = vld [vmem:[#allocation112_spill] sm:$0xff]  ;;  %v14593_v39 = vld [vmem:[#allocation5 + $0xec] ss:$16 sps:$4 sm:$0xff]  }
 0x3c0   :  { %12769 = vtanh.f32 %v14492_v62 }
 0x3cd   :  { %v12770_v45 = vpop.eup %12769 }
 0x3ce   :  { %v2685_v42 = vmul.f32 %v12770_v45, %v12768_v51 }
 0x3d0   :  { %v2686_v49 = vpack.c.bf16 %v2685_v42, %v2685_v42  ;;  %v17639_v42 = vld [vmem:[#allocation13_spill] sm:$0xff] }
 0x3d2   :  { %3105 = vmatmul.mubr.bf16.vlgmr.msra.gmra.mxu0 %v2686_v49  ;;  %3146 = vmatmul.mubr.bf16.vlgmr.msra.gmra.mxu1 %v2686_v49 }
 0x3d3   :  { %3380 = vmatpush1.bf16.msra.mxu0 %v13992_v53  ;;  %3421 = vmatpush1.bf16.msra.mxu1 %v13994_v54  ;;  %v17585_v53 = vld [vmem:[#allocation18_spill] sm:$0xff]  ;;  %v17586_v54 = vld [vmem:[#allocation19_spill] sm:$0xff] }
 0x3d4   :  { %3381 = vmatprep.subr.bf16.mxu0 %v13998_v56  ;;  %3422 = vmatprep.subr.bf16.mxu1 %v14000_v57  ;;  %v17587_v56 = vld [vmem:[#allocation20_spill] sm:$0xff]  ;;  %v17588_v57 = vld [vmem:[#allocation21_spill] sm:$0xff] }
 0x3d5   :  { %3411 = vmatprep.mubr.bf16.mxu0 %v17499_v10  ;;  %3452 = vmatprep.mubr.bf16.mxu1 %v17499_v10 }
 0x3d7   :  { %3382 = vmatpush1.bf16.msra.mxu0 %v14006_v60  ;;  %3423 = vmatpush1.bf16.msra.mxu1 %v14008_v3  ;;  %v17589_v60 = vld [vmem:[#allocation22_spill] sm:$0xff]  ;;  %v17590_v3 = vld [vmem:[#allocation23_spill] sm:$0xff] }
 0x3d8   :  { %3383 = vmatprep.subr.bf16.mxu0 %v14012_v16  ;;  %3424 = vmatprep.subr.bf16.mxu1 %v14014_v4  ;;  %v17591_v16 = vld [vmem:[#allocation24_spill] sm:$0xff]  ;;  %v17592_v4 = vld [vmem:[#allocation27_spill] sm:$0xff] }
 0x3db   :  { %3384 = vmatpush1.bf16.msra.mxu0 %v14020_v0  ;;  %3425 = vmatpush1.bf16.msra.mxu1 %v14022_v58  ;;  %v17593_v0 = vld [vmem:[#allocation25_spill] sm:$0xff]  ;;  %v17594_v58 = vld [vmem:[#allocation26_spill] sm:$0xff] }
 0x3dc   :  { %3385 = vmatprep.subr.bf16.mxu0 %v14026_v59  ;;  %3426 = vmatprep.subr.bf16.mxu1 %v14028_v8  ;;  %v17595_v59 = vld [vmem:[#allocation28_spill] sm:$0xff]  ;;  %v17596_v8 = vld [vmem:[#allocation71_spill] sm:$0xff] }
 0x3df   :  { %3386 = vmatpush1.bf16.msra.mxu0 %v14032_v63  ;;  %3427 = vmatpush1.bf16.msra.mxu1 %v14034_v5  ;;  %v17597_v63 = vld [vmem:[#allocation72_spill] sm:$0xff]  ;;  %v17598_v5 = vld [vmem:[#allocation73_spill] sm:$0xff] }
 0x3e0   :  { %3387 = vmatprep.subr.bf16.mxu0 %v14038_v11  ;;  %3428 = vmatprep.subr.bf16.mxu1 %v14040_v14  ;;  %v17599_v11 = vld [vmem:[#allocation74_spill] sm:$0xff]  ;;  %v17600_v14 = vld [vmem:[#allocation75_spill] sm:$0xff] }
 0x3e3   :  { %3388 = vmatpush1.bf16.msra.mxu0 %v14044_v15  ;;  %3429 = vmatpush1.bf16.msra.mxu1 %v14046_v6  ;;  %v17601_v15 = vld [vmem:[#allocation76_spill] sm:$0xff]  ;;  %v17602_v6 = vld [vmem:[#allocation77_spill] sm:$0xff] }
 0x3e4   :  { %3389 = vmatprep.subr.bf16.mxu0 %v14050_v9  ;;  %3430 = vmatprep.subr.bf16.mxu1 %v14052_v2  ;;  %v17603_v9 = vld [vmem:[#allocation78_spill] sm:$0xff]  ;;  %v17604_v2 = vld [vmem:[#allocation79_spill] sm:$0xff] }
 0x3e7   :  { %3390 = vmatpush1.bf16.msra.mxu0 %v14056_v1  ;;  %3431 = vmatpush1.bf16.msra.mxu1 %v14058_v12  ;;  %v17605_v1 = vld [vmem:[#allocation80_spill] sm:$0xff]  ;;  %v17606_v12 = vld [vmem:[#allocation81_spill] sm:$0xff] }
 0x3e8   :  { %3391 = vmatprep.subr.bf16.mxu0 %v14062_v13  ;;  %3432 = vmatprep.subr.bf16.mxu1 %v14064_v7  ;;  %v17607_v13 = vld [vmem:[#allocation82_spill] sm:$0xff]  ;;  %v17608_v7 = vld [vmem:[#allocation83_spill] sm:$0xff] }
 0x3eb   :  { %3392 = vmatpush1.bf16.msra.mxu0 %v14068_v17  ;;  %3433 = vmatpush1.bf16.msra.mxu1 %v14070_v18  ;;  %v17609_v17 = vld [vmem:[#allocation84_spill] sm:$0xff]  ;;  %v17610_v18 = vld [vmem:[#allocation85_spill] sm:$0xff] }
 0x3ec   :  { %3393 = vmatprep.subr.bf16.mxu0 %v14074_v19  ;;  %3434 = vmatprep.subr.bf16.mxu1 %v14076_v20  ;;  %v17611_v19 = vld [vmem:[#allocation86_spill] sm:$0xff]  ;;  %v17612_v20 = vld [vmem:[#allocation87_spill] sm:$0xff] }
 0x3ef   :  { %3394 = vmatpush1.bf16.msra.mxu0 %v14080_v22  ;;  %3435 = vmatpush1.bf16.msra.mxu1 %v14082_v23  ;;  %v17613_v22 = vld [vmem:[#allocation88_spill] sm:$0xff]  ;;  %v17614_v23 = vld [vmem:[#allocation89_spill] sm:$0xff] }
 0x3f0   :  { %3875 = vmatprep.subr.bf16.mxu0 %v14093_v24  ;;  %3916 = vmatprep.subr.bf16.mxu1 %v14098_v25  ;;  %v17615_v24 = vld [vmem:[#allocation90_spill] sm:$0xff]  ;;  %v17616_v25 = vld [vmem:[#allocation91_spill] sm:$0xff] }
 0x3f2   :  { %3412 = vmatmul.mubr.bf16.vlgmr.msra.gmra.mxu0 %v2686_v49  ;;  %3453 = vmatmul.mubr.bf16.vlgmr.msra.gmra.mxu1 %v2686_v49 }
 0x3f3   :  { %3876 = vmatpush1.bf16.msra.mxu0 %v14103_v26  ;;  %3917 = vmatpush1.bf16.msra.mxu1 %v14108_v27  ;;  %v17617_v26 = vld [vmem:[#allocation92_spill] sm:$0xff]  ;;  %v17618_v27 = vld [vmem:[#allocation93_spill] sm:$0xff] }
 0x3f4   :  { %3877 = vmatprep.subr.bf16.mxu0 %v14117_v30  ;;  %3918 = vmatprep.subr.bf16.mxu1 %v14122_v31  ;;  %v17619_v30 = vld [vmem:[#allocation94_spill] sm:$0xff]  ;;  %v17620_v31 = vld [vmem:[#allocation95_spill] sm:$0xff] }
 0x3f7   :  { %3878 = vmatpush1.bf16.msra.mxu0 %v14127_v32  ;;  %3919 = vmatpush1.bf16.msra.mxu1 %v14132_v34  ;;  %v17621_v32 = vld [vmem:[#allocation96_spill] sm:$0xff]  ;;  %v17622_v34 = vld [vmem:[#allocation97_spill] sm:$0xff] }
 0x3f8   :  { %3879 = vmatprep.subr.bf16.mxu0 %v14141_v36  ;;  %3920 = vmatprep.subr.bf16.mxu1 %v17584_v47  ;;  %v17623_v36 = vld [vmem:[#allocation98_spill] sm:$0xff] }
 0x3fb   :  { %3880 = vmatpush1.bf16.msra.mxu0 %v17585_v53  ;;  %3921 = vmatpush1.bf16.msra.mxu1 %v17586_v54 }
 0x3fc   :  { %3881 = vmatprep.subr.bf16.mxu0 %v17587_v56  ;;  %3922 = vmatprep.subr.bf16.mxu1 %v17588_v57  ;;  %v17640_v56 = vld [vmem:[#allocation14_spill] sm:$0xff] }
 0x3ff   :  { %3882 = vmatpush1.bf16.msra.mxu0 %v17589_v60  ;;  %3923 = vmatpush1.bf16.msra.mxu1 %v17590_v3 }
 0x400   :  { %3883 = vmatprep.subr.bf16.mxu0 %v17591_v16  ;;  %3924 = vmatprep.subr.bf16.mxu1 %v17592_v4 }
 0x403   :  { %3884 = vmatpush1.bf16.msra.mxu0 %v17593_v0  ;;  %3925 = vmatpush1.bf16.msra.mxu1 %v17594_v58  ;;  %v17641_v58 = vld [vmem:[#allocation15_spill] sm:$0xff] }
 0x404   :  { %3885 = vmatprep.subr.bf16.mxu0 %v17595_v59  ;;  %3926 = vmatprep.subr.bf16.mxu1 %v17596_v8 }
 0x407   :  { %3886 = vmatpush1.bf16.msra.mxu0 %v17597_v63  ;;  %3927 = vmatpush1.bf16.msra.mxu1 %v17598_v5  ;;  %v17642_v5 = vld [vmem:[#allocation16_spill] sm:$0xff] }
 0x408   :  { %3887 = vmatprep.subr.bf16.mxu0 %v17599_v11  ;;  %3928 = vmatprep.subr.bf16.mxu1 %v17600_v14 }
 0x40b   :  { %3888 = vmatpush1.bf16.msra.mxu0 %v17601_v15  ;;  %3929 = vmatpush1.bf16.msra.mxu1 %v17602_v6 }
 0x40c   :  { %3889 = vmatprep.subr.bf16.mxu0 %v17603_v9  ;;  %3930 = vmatprep.subr.bf16.mxu1 %v17604_v2 }
 0x40f   :  { %3890 = vmatpush1.bf16.msra.mxu0 %v17605_v1  ;;  %3931 = vmatpush1.bf16.msra.mxu1 %v17606_v12  ;;  %v17643_v12 = vld [vmem:[#allocation29_spill] sm:$0xff] }
 0x410   :  { %3891 = vmatprep.subr.bf16.mxu0 %v17607_v13  ;;  %3932 = vmatprep.subr.bf16.mxu1 %v17608_v7  ;;  %v17644_v13 = vld [vmem:[#allocation37_spill] sm:$0xff] }
 0x411   :  { %v568_v7 = vadd.f32 %v17644_v13, %v17643_v12  ;;  %v14648_v12 = vld [vmem:[#allocation5 + $0xa8] ss:$16 sps:$4 sm:$0xff]   ;;  %v14652_v13 = vld [vmem:[#allocation5 + $0x84] ss:$16 sps:$4 sm:$0xff]  }
 0x413   :  { %3892 = vmatpush2.bf16.msra.mxu0 %v17609_v17  ;;  %3933 = vmatpush2.bf16.msra.mxu1 %v17610_v18  ;;  %v17645_v17 = vld [vmem:[#allocation35_spill] sm:$0xff] }
 0x414   :  { %3893 = vmatprep.subr.bf16.mxu0 %v17611_v19  ;;  %3934 = vmatprep.subr.bf16.mxu1 %v17612_v20 }
 0x417   :  { %3894 = vmatpush2.bf16.msra.mxu0 %v17613_v22  ;;  %3935 = vmatpush2.bf16.msra.mxu1 %v17614_v23 }
 0x418   :  { %3895 = vmatprep.subr.bf16.mxu0 %v17615_v24  ;;  %3936 = vmatprep.subr.bf16.mxu1 %v17616_v25 }
 0x41b   :  { %3896 = vmatpush2.bf16.msra.mxu0 %v17617_v26  ;;  %3937 = vmatpush2.bf16.msra.mxu1 %v17618_v27 }
 0x41c   :  { %3897 = vmatprep.subr.bf16.mxu0 %v17619_v30  ;;  %3938 = vmatprep.subr.bf16.mxu1 %v17620_v31 }
 0x41f   :  { %3898 = vmatpush2.bf16.msra.mxu0 %v17621_v32  ;;  %3939 = vmatpush2.bf16.msra.mxu1 %v17622_v34 }
 0x420   :  { %3899 = vmatprep.subr.bf16.mxu0 %v17623_v36  ;;  %3940 = vmatprep.subr.bf16.mxu1 %v17624_v48 }
 0x423   :  { %3900 = vmatpush2.bf16.msra.mxu0 %v17625_v43  ;;  %3941 = vmatpush2.bf16.msra.mxu1 %v17626_v52 }
 0x424   :  { %3901 = vmatprep.subr.bf16.mxu0 %v17627_v46  ;;  %3942 = vmatprep.subr.bf16.mxu1 %v17628_v21  ;;  %v17646_v46 = vld [vmem:[#allocation36_spill] sm:$0xff] }
 0x427   :  { %3902 = vmatpush2.bf16.msra.mxu0 %v17629_v40  ;;  %3943 = vmatpush2.bf16.msra.mxu1 %v17630_v35  ;;  %v17647_v40 = vld [vmem:[#allocation30_spill] sm:$0xff] }
 0x428   :  { %3903 = vmatprep.subr.bf16.mxu0 %v17631_v33  ;;  %3944 = vmatprep.subr.bf16.mxu1 %v17632_v50  ;;  %v17648_v35 = vld [vmem:[#allocation38_spill] sm:$0xff] }
 0x429   :  { %v661_v33 = vadd.f32 %v17648_v35, %v17647_v40  ;;  %v14724_v40 = vld [vmem:[%s17117_s4 + $0xec] ss:$16 sps:$4 sm:$0xff]   ;;  %v14729_v35 = vld [vmem:[%s17117_s4 + $0xe0] ss:$16 sps:$4 sm:$0xff]  }
 0x42b   :  { %3904 = vmatpush2.bf16.msra.mxu0 %v17633_v28  ;;  %3945 = vmatpush2.bf16.msra.mxu1 %v17634_v41 }
 0x42c   :  { %3905 = vmatprep.subr.bf16.mxu0 %v17635_v55  ;;  %3946 = vmatprep.subr.bf16.mxu1 %v17636_v44 }
 0x42f   :  { %3906 = vmatpush2.bf16.msra.mxu0 %v17637_v29  ;;  %3947 = vmatpush2.bf16.msra.mxu1 %v17638_v61 }
 0x430   :  { %4182 = vmatprep.subr.bf16.mxu0 %v14591_v38  ;;  %4223 = vmatprep.subr.bf16.mxu1 %v14593_v39 }
 0x492   :  { %v3106_v51 = vpop.f32.mrf.mxu0  ;;  %v3147_v45 = vpop.f32.mrf.mxu1 }
 0x493   :  { %v3107_v49 = vadd.f32 %v3106_v51, %v17639_v42  ;;  %v3148_v59 = vadd.f32 %v3147_v45, %v17641_v58 }
 0x494   :  { %v3108_v47 = vpop.f32.mrf.mxu0  ;;  %v3149_v53 = vpop.f32.mrf.mxu1 }
 0x495   :  { %v10793_v54 = vmul.f32 -1.442695, %v3107_v49  ;;  %v3109_v57 = vadd.f32 %v3108_v47, %v17640_v56  ;;  %v10795_v8 = vmul.f32 -1.442695, %v3148_v59  ;;  %v3150_v11 = vadd.f32 %v3149_v53, %v17642_v5 }
 0x496   :  { %v3110_v60 = vpop.f32.mrf.mxu0  ;;  %v3151_v3 = vpop.f32.mrf.mxu1 }
 0x497   :  { %12771 = vpow2.f32 %v10793_v54  ;;  %v10794_v16 = vmul.f32 -1.442695, %v3109_v57 }
 0x498   :  { %v3111_v4 = vpop.f32.mrf.mxu0  ;;  %v3152_v0 = vpop.f32.mrf.mxu1 }
 0x499   :  { %12773 = vpow2.f32 %v10794_v16 }
 0x49a   :  { %12775 = vpow2.f32 %v10795_v8  ;;  %v14618_v8 = vld [vmem:[#allocation5 + $0xe0] ss:$16 sps:$4 sm:$0xff]  }
 0x4a4   :  { %v12772_v63 = vpop.eup %12771 }
 0x4a5   :  { %v3163_v14 = vadd.f32 1.0, %v12772_v63  ;;  %v14620_v63 = vld [vmem:[#allocation5 + $0xe8] ss:$16 sps:$4 sm:$0xff]  }
 0x4a6   :  { %v12774_v15 = vpop.eup %12773 }
 0x4a7   :  { %12777 = vrcp.f32 %v3163_v14  ;;  %v3164_v6 = vadd.f32 1.0, %v12774_v15  ;;  %v12776_v1 = vpop.eup %12775  ;;  %v14624_v14 = vld [vmem:[#allocation5 + $0xc4] ss:$16 sps:$4 sm:$0xff]   ;;  %v14626_v15 = vld [vmem:[#allocation5 + $0xcc] ss:$16 sps:$4 sm:$0xff]  }
 0x4a8   :  { %12779 = vtanh.f32 %v3150_v11  ;;  %v3165_v27 = vadd.f32 1.0, %v12776_v1  ;;  %v14646_v1 = vld [vmem:[#allocation5 + $0xa0] ss:$16 sps:$4 sm:$0xff]  }
 0x4a9   :  { %12781 = vrcp.f32 %v3164_v6  ;;  %v14634_v6 = vld [vmem:[#allocation5 + $0xc8] ss:$16 sps:$4 sm:$0xff]  }
 0x4b2   :  { %v3413_v9 = vpop.f32.mrf.mxu0  ;;  %v3454_v2 = vpop.f32.mrf.mxu1 }
 0x4b3   :  { %v3461_v18 = vadd.f32 %v3413_v9, %v17645_v17  ;;  %v3463_v21 = vadd.f32 %v3454_v2, %v17646_v46  ;;  %v14638_v9 = vld [vmem:[#allocation5 + $0xa4] ss:$16 sps:$4 sm:$0xff]   ;;  %v14640_v2 = vld [vmem:[#allocation5 + $0xac] ss:$16 sps:$4 sm:$0xff]   ;;  %v14658_v17 = vld [vmem:[#allocation5 + $0x80] ss:$16 sps:$4 sm:$0xff]  }
 0x4b4   :  { %v12778_v19 = vpop.eup %12777  ;;  %v3415_v20 = vpop.f32.mrf.mxu0  ;;  %v14708_v46 = vld [vmem:[#allocation5 + $0x8] ss:$16 sps:$4 sm:$0xff]  }
 0x4b5   :  { %v3456_v22 = vpop.f32.mrf.mxu1  ;;  %v12780_v23 = vpop.eup %12779  ;;  %v10829_v24 = vmul.f32 -1.442695, %v3461_v18  ;;  %v3462_v25 = vadd.f32 %v3415_v20, %v568_v7  ;;  %v10831_v50 = vmul.f32 -1.442695, %v3463_v21  ;;  %v14654_v7 = vld [vmem:[#allocation5 + $0x8c] ss:$16 sps:$4 sm:$0xff]  }
 0x4b6   :  { %v12782_v26 = vpop.eup %12781  ;;  %v3417_v30 = vpop.f32.mrf.mxu0  ;;  %v3174_v34 = vmul.f32 %v12780_v23, %v12778_v19  ;;  %v3464_v28 = vadd.f32 %v3456_v22, %v661_v33  ;;  %v14660_v18 = vld [vmem:[#allocation5 + $0x88] ss:$16 sps:$4 sm:$0xff]   ;;  %v14664_v19 = vld [vmem:[#allocation5 + $0x64] ss:$16 sps:$4 sm:$0xff]   ;;  %v14666_v20 = vld [vmem:[#allocation5 + $0x6c] ss:$16 sps:$4 sm:$0xff]  }
 0x4b7   :  { %v3458_v31 = vpop.f32.mrf.mxu1  ;;  %v3173_v32 = vmul.f32 %v12782_v26, %v14483_v37  ;;  %12783 = vpow2.f32 %v10829_v24  ;;  %v10830_v36 = vmul.f32 -1.442695, %v3462_v25  ;;  %v14670_v22 = vld [vmem:[#allocation5 + $0x60] ss:$16 sps:$4 sm:$0xff]   ;;  %v14672_v23 = vld [vmem:[#allocation5 + $0x68] ss:$16 sps:$4 sm:$0xff]  }
 0x4b8   :  { %v3418_v48 = vpop.f32.mrf.mxu0  ;;  %v14676_v24 = vld [vmem:[#allocation5 + $0x44] ss:$16 sps:$4 sm:$0xff]   ;;  %v14678_v25 = vld [vmem:[#allocation5 + $0x4c] ss:$16 sps:$4 sm:$0xff]   ;;  %v14682_v26 = vld [vmem:[#allocation5 + $0x40] ss:$16 sps:$4 sm:$0xff]  }
 0x4b9   :  { %v3459_v43 = vpop.f32.mrf.mxu1  ;;  %v14605_v52 = vadd.f32 %v3174_v34, %v3173_v32  ;;  %12785 = vpow2.f32 %v10830_v36  ;;  %v14688_v30 = vld [vmem:[#allocation5 + $0x24] ss:$16 sps:$4 sm:$0xff]   ;;  %v14690_v31 = vld [vmem:[#allocation5 + $0x2c] ss:$16 sps:$4 sm:$0xff]   ;;  %v14694_v32 = vld [vmem:[#allocation5 + $0x20] ss:$16 sps:$4 sm:$0xff]  }
 0x4ba   :  { %12787 = vrcp.f32 %v3165_v27  ;;  %v14684_v27 = vld [vmem:[#allocation5 + $0x48] ss:$16 sps:$4 sm:$0xff]   ;;  %v14700_v36 = vld [vmem:[#allocation5 + $0x4] ss:$16 sps:$4 sm:$0xff]   ;;  %v14702_v48 = vld [vmem:[#allocation5 + $0xc] ss:$16 sps:$4 sm:$0xff]  }
 0x4bb   :  { %12789 = vtanh.f32 %v14605_v52  ;;  %v14696_v34 = vld [vmem:[#allocation5 + $0x28] ss:$16 sps:$4 sm:$0xff]   ;;  %v14706_v43 = vld [vmem:[#allocation5] ss:$16 sps:$4 sm:$0xff]   ;;  %v14719_v21 = vld [vmem:[%s17117_s4 + $0xe4] ss:$16 sps:$4 sm:$0xff]  }
 0x4bc   :  { %12791 = vpow2.f32 %v10831_v50  ;;  %v14734_v33 = vld [vmem:[%s17117_s4 + $0xe8] ss:$16 sps:$4 sm:$0xff]   ;;  %v14743_v50 = vld [vmem:[%s17117_s4 + $0xc4] ss:$16 sps:$4 sm:$0xff]  }
 0x4bd   :  { %12793 = vtanh.f32 %v3464_v28  ;;  %v14748_v28 = vld [vmem:[%s17117_s4 + $0xcc] ss:$16 sps:$4 sm:$0xff]  }
 0x4c4   :  { %v12784_v41 = vpop.eup %12783 }
 0x4c5   :  { %v3474_v37 = vadd.f32 1.0, %v12784_v41  ;;  %v14753_v41 = vld [vmem:[%s17117_s4 + $0xc0] ss:$16 sps:$4 sm:$0xff]  }
 0x4c6   :  { %v12786_v55 = vpop.eup %12785 }
 0x4c7   :  { %v12788_v44 = vpop.eup %12787  ;;  %12795 = vrcp.f32 %v3474_v37  ;;  %v3475_v29 = vadd.f32 1.0, %v12786_v55  ;;  %v14758_v37 = vld [vmem:[%s17117_s4 + $0xc8] ss:$16 sps:$4 sm:$0xff]   ;;  %v14767_v55 = vld [vmem:[%s17117_s4 + $0xa4] ss:$16 sps:$4 sm:$0xff]  }
 0x4c8   :  { %v12790_v61 = vpop.eup %12789 }
 0x4c9   :  { %12797 = vrcp.f32 %v3475_v29  ;;  %v3177_v51 = vmul.f32 %v12790_v61, %v12788_v44  ;;  %v12792_v49 = vpop.eup %12791  ;;  %v14772_v44 = vld [vmem:[%s17117_s4 + $0xac] ss:$16 sps:$4 sm:$0xff]   ;;  %v14777_v29 = vld [vmem:[%s17117_s4 + $0xa0] ss:$16 sps:$4 sm:$0xff]   ;;  %v14782_v61 = vld [vmem:[%s17117_s4 + $0xa8] ss:$16 sps:$4 sm:$0xff]  }
 0x4ca   :  { %v12794_v47 = vpop.eup %12793  ;;  %v3476_v60 = vadd.f32 1.0, %v12792_v49  ;;  %17649 = vst [vmem:[#allocation31_spill] sm:$0xff] %v14772_v44  ;;  %17650 = vst [vmem:[#allocation33_spill] sm:$0xff] %v14777_v29  ;;  %v14801_v49 = vld [vmem:[%s17117_s4 + $0x80] ss:$16 sps:$4 sm:$0xff]  }
 0x4cb   :  { %10796 = vst [vmem:[%s17119_s6 + $0x10] sm:$0xff] %v3177_v51  ;;  %v3490_v45 = vpack.c.bf16 %v3177_v51, %v3177_v51  ;;  %17651 = vst [vmem:[#allocation32_spill] sm:$0xff] %v14782_v61  ;;  %v14791_v51 = vld [vmem:[%s17117_s4 + $0x84] ss:$16 sps:$4 sm:$0xff]  }
 0x4cc   :  { %12799 = vrcp.f32 %v3476_v60  ;;  %17652 = vst [vmem:[#allocation34_spill] sm:$0xff] %v14791_v51  ;;  %17654 = vst [vmem:[#allocation18_spill] sm:$0xff] %v14801_v49  ;;  %v14830_v60 = vld [vmem:[%s17117_s4 + $0x68] ss:$16 sps:$4 sm:$0xff]  }
 0x4cd   :  { %3907 = vmatprep.mubr.bf16.mxu0 %v3490_v45  ;;  %3948 = vmatprep.mubr.bf16.mxu1 %v3490_v45  ;;  %v14796_v45 = vld [vmem:[%s17117_s4 + $0x8c] ss:$16 sps:$4 sm:$0xff]   ;;  %17659 = vst [vmem:[#allocation23_spill] sm:$0xff] %v14830_v60 }
 0x4ce   :  { %17653 = vst [vmem:[#allocation17_spill] sm:$0xff] %v14796_v45 }
 0x4d4   :  { %v12796_v53 = vpop.eup %12795 }
 0x4d5   :  { %v3485_v54 = vmul.f32 %v12796_v53, %v12794_v47  ;;  %v14806_v47 = vld [vmem:[%s17117_s4 + $0x88] ss:$16 sps:$4 sm:$0xff]   ;;  %v14815_v53 = vld [vmem:[%s17117_s4 + $0x64] ss:$16 sps:$4 sm:$0xff]  }
 0x4d6   :  { %v12798_v57 = vpop.eup %12797  ;;  %17655 = vst [vmem:[#allocation19_spill] sm:$0xff] %v14806_v47  ;;  %17656 = vst [vmem:[#allocation20_spill] sm:$0xff] %v14815_v53 }
 0x4d7   :  { %v3484_v3 = vmul.f32 %v12798_v57, %v14492_v62  ;;  %v14632_v62 = vld [vmem:[#allocation5 + $0xc0] ss:$16 sps:$4 sm:$0xff]  }
 0x4d8   :  { %v14825_v57 = vld [vmem:[%s17117_s4 + $0x60] ss:$16 sps:$4 sm:$0xff]  }
 0x4d9   :  { %v14615_v16 = vadd.f32 %v3485_v54, %v3484_v3  ;;  %v12800_v4 = vpop.eup %12799  ;;  %v14820_v54 = vld [vmem:[%s17117_s4 + $0x6c] ss:$16 sps:$4 sm:$0xff]   ;;  %17658 = vst [vmem:[#allocation22_spill] sm:$0xff] %v14825_v57  ;;  %v14839_v3 = vld [vmem:[%s17117_s4 + $0x44] ss:$16 sps:$4 sm:$0xff]  }
 0x4da   :  { %17657 = vst [vmem:[#allocation21_spill] sm:$0xff] %v14820_v54  ;;  %17660 = vst [vmem:[#allocation24_spill] sm:$0xff] %v14839_v3 }
 0x4db   :  { %12801 = vtanh.f32 %v14615_v16 }
 0x4e8   :  { %v12802_v0 = vpop.eup %12801 }
 0x4e9   :  { %v3488_v59 = vmul.f32 %v12802_v0, %v12800_v4  ;;  %v14844_v4 = vld [vmem:[%s17117_s4 + $0x4c] ss:$16 sps:$4 sm:$0xff]   ;;  %v14849_v0 = vld [vmem:[%s17117_s4 + $0x40] ss:$16 sps:$4 sm:$0xff]  }
 0x4ea   :  { %17661 = vst [vmem:[#allocation27_spill] sm:$0xff] %v14844_v4  ;;  %17662 = vst [vmem:[#allocation25_spill] sm:$0xff] %v14849_v0 }
 0x4eb   :  { %v14622_v11 = vpack.c.bf16 %v3488_v59, %v3488_v59  ;;  %v14854_v59 = vld [vmem:[%s17117_s4 + $0x48] ss:$16 sps:$4 sm:$0xff]  }
 0x4ec   :  { %17663 = vst [vmem:[#allocation26_spill] sm:$0xff] %v14854_v59 }
 0x4ed   :  { %3908 = vmatmul.mubr.bf16.vlgmr.msra.gmra.mxu0 %v14622_v11  ;;  %3949 = vmatmul.mubr.bf16.vlgmr.msra.gmra.mxu1 %v14622_v11 }
 0x4ee   :  { %4183 = vmatpush1.bf16.msra.mxu0 %v14618_v8  ;;  %4224 = vmatpush1.bf16.msra.mxu1 %v14620_v63 }
 0x4ef   :  { %4184 = vmatprep.subr.bf16.mxu0 %v14624_v14  ;;  %4225 = vmatprep.subr.bf16.mxu1 %v14626_v15 }
 0x4f0   :  { %4214 = vmatprep.mubr.bf16.mxu0 %v17499_v10  ;;  %4255 = vmatprep.mubr.bf16.mxu1 %v17499_v10 }
 0x4f2   :  { %4185 = vmatpush1.bf16.msra.mxu0 %v14632_v62  ;;  %4226 = vmatpush1.bf16.msra.mxu1 %v14634_v6 }
 0x4f3   :  { %4186 = vmatprep.subr.bf16.mxu0 %v14638_v9  ;;  %4227 = vmatprep.subr.bf16.mxu1 %v14640_v2 }
 0x4f6   :  { %4187 = vmatpush1.bf16.msra.mxu0 %v14646_v1  ;;  %4228 = vmatpush1.bf16.msra.mxu1 %v14648_v12 }
 0x4f7   :  { %4188 = vmatprep.subr.bf16.mxu0 %v14652_v13  ;;  %4229 = vmatprep.subr.bf16.mxu1 %v14654_v7 }
 0x4fa   :  { %4189 = vmatpush1.bf16.msra.mxu0 %v14658_v17  ;;  %4230 = vmatpush1.bf16.msra.mxu1 %v14660_v18 }
 0x4fb   :  { %4190 = vmatprep.subr.bf16.mxu0 %v14664_v19  ;;  %4231 = vmatprep.subr.bf16.mxu1 %v14666_v20 }
 0x4fe   :  { %4191 = vmatpush1.bf16.msra.mxu0 %v14670_v22  ;;  %4232 = vmatpush1.bf16.msra.mxu1 %v14672_v23 }
 0x4ff   :  { %4192 = vmatprep.subr.bf16.mxu0 %v14676_v24  ;;  %4233 = vmatprep.subr.bf16.mxu1 %v14678_v25 }
 0x502   :  { %4193 = vmatpush1.bf16.msra.mxu0 %v14682_v26  ;;  %4234 = vmatpush1.bf16.msra.mxu1 %v14684_v27 }
 0x503   :  { %4194 = vmatprep.subr.bf16.mxu0 %v14688_v30  ;;  %4235 = vmatprep.subr.bf16.mxu1 %v14690_v31 }
 0x506   :  { %4195 = vmatpush1.bf16.msra.mxu0 %v14694_v32  ;;  %4236 = vmatpush1.bf16.msra.mxu1 %v14696_v34 }
 0x507   :  { %4196 = vmatprep.subr.bf16.mxu0 %v14700_v36  ;;  %4237 = vmatprep.subr.bf16.mxu1 %v14702_v48 }
 0x50a   :  { %4197 = vmatpush1.bf16.msra.mxu0 %v14706_v43  ;;  %4238 = vmatpush1.bf16.msra.mxu1 %v14708_v46 }
 0x50b   :  { %4678 = vmatprep.subr.bf16.mxu0 %v14719_v21  ;;  %4719 = vmatprep.subr.bf16.mxu1 %v14724_v40 }
 0x50d   :  { %4215 = vmatmul.mubr.bf16.vlgmr.msra.gmra.mxu0 %v14622_v11  ;;  %4256 = vmatmul.mubr.bf16.vlgmr.msra.gmra.mxu1 %v14622_v11  ;;  %v14863_v11 = vld [vmem:[%s17117_s4 + $0x24] ss:$16 sps:$4 sm:$0xff]  }
 0x50e   :  { %4679 = vmatpush1.bf16.msra.mxu0 %v14729_v35  ;;  %4720 = vmatpush1.bf16.msra.mxu1 %v14734_v33  ;;  %17664 = vst [vmem:[#allocation28_spill] sm:$0xff] %v14863_v11 }
 0x50f   :  { %4680 = vmatprep.subr.bf16.mxu0 %v14743_v50  ;;  %4721 = vmatprep.subr.bf16.mxu1 %v14748_v28 }
 0x512   :  { %4681 = vmatpush1.bf16.msra.mxu0 %v14753_v41  ;;  %4722 = vmatpush1.bf16.msra.mxu1 %v14758_v37 }
 0x513   :  { %4682 = vmatprep.subr.bf16.mxu0 %v14767_v55  ;;  %4723 = vmatprep.subr.bf16.mxu1 %v14772_v44 }
 0x516   :  { %4683 = vmatpush1.bf16.msra.mxu0 %v14777_v29  ;;  %4724 = vmatpush1.bf16.msra.mxu1 %v14782_v61 }
 0x517   :  { %4684 = vmatprep.subr.bf16.mxu0 %v14791_v51  ;;  %4725 = vmatprep.subr.bf16.mxu1 %v14796_v45 }
 0x51a   :  { %4685 = vmatpush1.bf16.msra.mxu0 %v14801_v49  ;;  %4726 = vmatpush1.bf16.msra.mxu1 %v14806_v47 }
 0x51b   :  { %4686 = vmatprep.subr.bf16.mxu0 %v14815_v53  ;;  %4727 = vmatprep.subr.bf16.mxu1 %v14820_v54 }
 0x51e   :  { %4687 = vmatpush1.bf16.msra.mxu0 %v14825_v57  ;;  %4728 = vmatpush1.bf16.msra.mxu1 %v14830_v60  ;;  %v14868_v60 = vld [vmem:[%s17117_s4 + $0x2c] ss:$16 sps:$4 sm:$0xff]   ;;  %v15046_v57 = vld [vmem:[%s17117_s4 + $0x148] ss:$16 sps:$4 sm:$0xff]  }
 0x51f   :  { %4688 = vmatprep.subr.bf16.mxu0 %v14839_v3  ;;  %4729 = vmatprep.subr.bf16.mxu1 %v14844_v4  ;;  %17665 = vst [vmem:[#allocation71_spill] sm:$0xff] %v14868_v60  ;;  %v14873_v3 = vld [vmem:[%s17117_s4 + $0x20] ss:$16 sps:$4 sm:$0xff]   ;;  %v14892_v4 = vld [vmem:[%s17117_s4 + $0xc] ss:$16 sps:$4 sm:$0xff]   ;;  %17695 = vst [vmem:[#allocation100_spill] sm:$0xff] %v15046_v57 }
 0x520   :  { %17666 = vst [vmem:[#allocation72_spill] sm:$0xff] %v14873_v3  ;;  %17669 = vst [vmem:[#allocation75_spill] sm:$0xff] %v14892_v4 }
 0x522   :  { %4689 = vmatpush1.bf16.msra.mxu0 %v14849_v0  ;;  %4730 = vmatpush1.bf16.msra.mxu1 %v14854_v59  ;;  %v14878_v0 = vld [vmem:[%s17117_s4 + $0x28] ss:$16 sps:$4 sm:$0xff]   ;;  %v14887_v59 = vld [vmem:[%s17117_s4 + $0x4] ss:$16 sps:$4 sm:$0xff]  }
 0x523   :  { %17667 = vst [vmem:[#allocation73_spill] sm:$0xff] %v14878_v0  ;;  %4690 = vmatprep.subr.bf16.mxu0 %v14863_v11  ;;  %4731 = vmatprep.subr.bf16.mxu1 %v14868_v60  ;;  %17668 = vst [vmem:[#allocation74_spill] sm:$0xff] %v14887_v59  ;;  %v14897_v11 = vld [vmem:[%s17117_s4] ss:$16 sps:$4 sm:$0xff]   ;;  %v14916_v60 = vld [vmem:[%s17117_s4 + $0x1ec] ss:$16 sps:$4 sm:$0xff]  }
 0x524   :  { %17670 = vst [vmem:[#allocation76_spill] sm:$0xff] %v14897_v11  ;;  %17673 = vst [vmem:[#allocation79_spill] sm:$0xff] %v14916_v60 }
 0x526   :  { %4691 = vmatpush1.bf16.msra.mxu0 %v14873_v3  ;;  %4732 = vmatpush1.bf16.msra.mxu1 %v14878_v0  ;;  %v14902_v3 = vld [vmem:[%s17117_s4 + $0x8] ss:$16 sps:$4 sm:$0xff]   ;;  %v14911_v0 = vld [vmem:[%s17117_s4 + $0x1e4] ss:$16 sps:$4 sm:$0xff]  }
 0x527   :  { %17671 = vst [vmem:[#allocation77_spill] sm:$0xff] %v14902_v3  ;;  %4692 = vmatprep.subr.bf16.mxu0 %v14887_v59  ;;  %4733 = vmatprep.subr.bf16.mxu1 %v14892_v4  ;;  %17672 = vst [vmem:[#allocation78_spill] sm:$0xff] %v14911_v0  ;;  %v14921_v59 = vld [vmem:[%s17117_s4 + $0x1e0] ss:$16 sps:$4 sm:$0xff]   ;;  %v14940_v4 = vld [vmem:[%s17117_s4 + $0x1cc] ss:$16 sps:$4 sm:$0xff]  }
 0x528   :  { %17674 = vst [vmem:[#allocation80_spill] sm:$0xff] %v14921_v59  ;;  %17677 = vst [vmem:[#allocation83_spill] sm:$0xff] %v14940_v4 }
 0x52a   :  { %4693 = vmatpush1.bf16.msra.mxu0 %v14897_v11  ;;  %4734 = vmatpush1.bf16.msra.mxu1 %v14902_v3  ;;  %v14926_v11 = vld [vmem:[%s17117_s4 + $0x1e8] ss:$16 sps:$4 sm:$0xff]   ;;  %v14935_v3 = vld [vmem:[%s17117_s4 + $0x1c4] ss:$16 sps:$4 sm:$0xff]  }
 0x52b   :  { %17675 = vst [vmem:[#allocation81_spill] sm:$0xff] %v14926_v11  ;;  %4694 = vmatprep.subr.bf16.mxu0 %v14911_v0  ;;  %4735 = vmatprep.subr.bf16.mxu1 %v14916_v60  ;;  %17676 = vst [vmem:[#allocation82_spill] sm:$0xff] %v14935_v3  ;;  %v14945_v0 = vld [vmem:[%s17117_s4 + $0x1c0] ss:$16 sps:$4 sm:$0xff]   ;;  %v14964_v60 = vld [vmem:[%s17117_s4 + $0x1ac] ss:$16 sps:$4 sm:$0xff]  }
 0x52c   :  { %17678 = vst [vmem:[#allocation84_spill] sm:$0xff] %v14945_v0  ;;  %17681 = vst [vmem:[#allocation87_spill] sm:$0xff] %v14964_v60 }
 0x52e   :  { %4695 = vmatpush2.bf16.msra.mxu0 %v14921_v59  ;;  %4736 = vmatpush2.bf16.msra.mxu1 %v14926_v11  ;;  %v14950_v59 = vld [vmem:[%s17117_s4 + $0x1c8] ss:$16 sps:$4 sm:$0xff]   ;;  %v14959_v11 = vld [vmem:[%s17117_s4 + $0x1a4] ss:$16 sps:$4 sm:$0xff]  }
 0x52f   :  { %17679 = vst [vmem:[#allocation85_spill] sm:$0xff] %v14950_v59  ;;  %4696 = vmatprep.subr.bf16.mxu0 %v14935_v3  ;;  %4737 = vmatprep.subr.bf16.mxu1 %v14940_v4  ;;  %17680 = vst [vmem:[#allocation86_spill] sm:$0xff] %v14959_v11  ;;  %v14969_v3 = vld [vmem:[%s17117_s4 + $0x1a0] ss:$16 sps:$4 sm:$0xff]   ;;  %v14988_v4 = vld [vmem:[%s17117_s4 + $0x18c] ss:$16 sps:$4 sm:$0xff]  }
 0x530   :  { %17682 = vst [vmem:[#allocation88_spill] sm:$0xff] %v14969_v3  ;;  %17685 = vst [vmem:[#allocation91_spill] sm:$0xff] %v14988_v4 }
 0x532   :  { %4697 = vmatpush2.bf16.msra.mxu0 %v14945_v0  ;;  %4738 = vmatpush2.bf16.msra.mxu1 %v14950_v59  ;;  %v14974_v0 = vld [vmem:[%s17117_s4 + $0x1a8] ss:$16 sps:$4 sm:$0xff]   ;;  %v14983_v59 = vld [vmem:[%s17117_s4 + $0x184] ss:$16 sps:$4 sm:$0xff]  }
 0x533   :  { %17683 = vst [vmem:[#allocation89_spill] sm:$0xff] %v14974_v0  ;;  %4698 = vmatprep.subr.bf16.mxu0 %v14959_v11  ;;  %4739 = vmatprep.subr.bf16.mxu1 %v14964_v60  ;;  %17684 = vst [vmem:[#allocation90_spill] sm:$0xff] %v14983_v59  ;;  %v14993_v11 = vld [vmem:[%s17117_s4 + $0x180] ss:$16 sps:$4 sm:$0xff]  }
 0x534   :  { %17686 = vst [vmem:[#allocation92_spill] sm:$0xff] %v14993_v11  ;;  %v15012_v60 = vld [vmem:[%s17117_s4 + $0x160] ss:$16 sps:$4 sm:$0xff]  }
 0x535   :  { %17689 = vst [vmem:[#allocation95_spill] sm:$0xff] %v15012_v60 }
 0x536   :  { %4699 = vmatpush2.bf16.msra.mxu0 %v14969_v3  ;;  %4740 = vmatpush2.bf16.msra.mxu1 %v14974_v0  ;;  %v14998_v3 = vld [vmem:[%s17117_s4 + $0x188] ss:$16 sps:$4 sm:$0xff]   ;;  %v15005_v0 = vld [vmem:[%s17117_s4 + $0x164] ss:$16 sps:$4 sm:$0xff]  }
 0x537   :  { %17687 = vst [vmem:[#allocation93_spill] sm:$0xff] %v14998_v3  ;;  %4700 = vmatprep.subr.bf16.mxu0 %v14983_v59  ;;  %4741 = vmatprep.subr.bf16.mxu1 %v14988_v4  ;;  %17688 = vst [vmem:[#allocation94_spill] sm:$0xff] %v15005_v0  ;;  %v15017_v59 = vld [vmem:[%s17117_s4 + $0x168] ss:$16 sps:$4 sm:$0xff]   ;;  %v15022_v4 = vld [vmem:[%s17117_s4 + $0x16c] ss:$16 sps:$4 sm:$0xff]  }
 0x538   :  { %17690 = vst [vmem:[#allocation96_spill] sm:$0xff] %v15017_v59  ;;  %17691 = vst [vmem:[#allocation97_spill] sm:$0xff] %v15022_v4 }
 0x53a   :  { %4701 = vmatpush2.bf16.msra.mxu0 %v14993_v11  ;;  %4742 = vmatpush2.bf16.msra.mxu1 %v14998_v3  ;;  %v15028_v3 = vld [vmem:[%s17117_s4 + $0x144] ss:$16 sps:$4 sm:$0xff]   ;;  %v15033_v11 = vld [vmem:[%s17117_s4 + $0x14c] ss:$16 sps:$4 sm:$0xff]  }
 0x53b   :  { %4702 = vmatprep.subr.bf16.mxu0 %v15005_v0  ;;  %17692 = vst [vmem:[#allocation98_spill] sm:$0xff] %v15028_v3  ;;  %17693 = vst [vmem:[#allocation101_spill] sm:$0xff] %v15033_v11  ;;  %4743 = vmatprep.subr.bf16.mxu1 %v15022_v4  ;;  %v15041_v0 = vld [vmem:[%s17117_s4 + $0x140] ss:$16 sps:$4 sm:$0xff]  }
 0x53c   :  { %17694 = vst [vmem:[#allocation99_spill] sm:$0xff] %v15041_v0 }
 0x53e   :  { %4703 = vmatpush2.bf16.msra.mxu0 %v15012_v60  ;;  %4744 = vmatpush2.bf16.msra.mxu1 %v15017_v59  ;;  %v15053_v60 = vld [vmem:[%s17117_s4 + $0x124] ss:$16 sps:$4 sm:$0xff]   ;;  %v15058_v59 = vld [vmem:[%s17117_s4 + $0x12c] ss:$16 sps:$4 sm:$0xff]  }
 0x53f   :  { %4704 = vmatprep.subr.bf16.mxu0 %v15028_v3  ;;  %4745 = vmatprep.subr.bf16.mxu1 %v15033_v11  ;;  %17696 = vst [vmem:[#allocation102_spill] sm:$0xff] %v15053_v60  ;;  %17697 = vst [vmem:[#allocation103_spill] sm:$0xff] %v15058_v59  ;;  %v15065_v3 = vld [vmem:[%s17117_s4 + $0x120] ss:$16 sps:$4 sm:$0xff]   ;;  %v15070_v11 = vld [vmem:[%s17117_s4 + $0x128] ss:$16 sps:$4 sm:$0xff]  }
 0x540   :  { %17698 = vst [vmem:[#allocation104_spill] sm:$0xff] %v15065_v3  ;;  %17699 = vst [vmem:[#allocation105_spill] sm:$0xff] %v15070_v11 }
 0x542   :  { %4705 = vmatpush2.bf16.msra.mxu0 %v15041_v0  ;;  %4746 = vmatpush2.bf16.msra.mxu1 %v15046_v57  ;;  %v15077_v0 = vld [vmem:[%s17117_s4 + $0x104] ss:$16 sps:$4 sm:$0xff]   ;;  %v15082_v57 = vld [vmem:[%s17117_s4 + $0x10c] ss:$16 sps:$4 sm:$0xff]  }
 0x543   :  { %4706 = vmatprep.subr.bf16.mxu0 %v15053_v60  ;;  %4747 = vmatprep.subr.bf16.mxu1 %v15058_v59  ;;  %17700 = vst [vmem:[#allocation106_spill] sm:$0xff] %v15077_v0  ;;  %17701 = vst [vmem:[#allocation107_spill] sm:$0xff] %v15082_v57  ;;  %v15089_v60 = vld [vmem:[%s17117_s4 + $0x100] ss:$16 sps:$4 sm:$0xff]   ;;  %v15094_v59 = vld [vmem:[%s17117_s4 + $0x108] ss:$16 sps:$4 sm:$0xff]  }
 0x544   :  { %17702 = vst [vmem:[#allocation108_spill] sm:$0xff] %v15089_v60  ;;  %17703 = vst [vmem:[#allocation109_spill] sm:$0xff] %v15094_v59 }
 0x546   :  { %4707 = vmatpush2.bf16.msra.mxu0 %v15065_v3  ;;  %4748 = vmatpush2.bf16.msra.mxu1 %v15070_v11 }
 0x547   :  { %4708 = vmatprep.subr.bf16.mxu0 %v15077_v0  ;;  %4749 = vmatprep.subr.bf16.mxu1 %v15082_v57 }
 0x54a   :  { %4709 = vmatpush2.bf16.msra.mxu0 %v15089_v60  ;;  %4750 = vmatpush2.bf16.msra.mxu1 %v15094_v59 }
 0x54b   :  { %4985 = vmatprep.subr.bf16.mxu0 %v14591_v38  ;;  %5026 = vmatprep.subr.bf16.mxu1 %v14593_v39 }
 0x5ad   :  { %v3909_v11 = vpop.f32.mrf.mxu0  ;;  %v3950_v3 = vpop.f32.mrf.mxu1 }
 0x5ae   :  { %v3910_v4 = vadd.f32 %v3909_v11, %v17639_v42  ;;  %v3951_v38 = vadd.f32 %v3950_v3, %v17641_v58  ;;  %v17705_v58 = vld [vmem:[#allocation41_spill] sm:$0xff] }
 0x5af   :  { %v3911_v54 = vpop.f32.mrf.mxu0  ;;  %v3952_v53 = vpop.f32.mrf.mxu1 }
 0x5b0   :  { %v10896_v47 = vmul.f32 -1.442695, %v3910_v4  ;;  %v3912_v49 = vadd.f32 %v3911_v54, %v17640_v56  ;;  %v10898_v59 = vmul.f32 -1.442695, %v3951_v38  ;;  %v3953_v61 = vadd.f32 %v3952_v53, %v17642_v5 }
 0x5b1   :  { %v3913_v0 = vpop.f32.mrf.mxu0  ;;  %v3954_v45 = vpop.f32.mrf.mxu1 }
 0x5b2   :  { %12803 = vpow2.f32 %v10896_v47  ;;  %v10897_v57 = vmul.f32 -1.442695, %v3912_v49  ;;  %v17704_v49 = vld [vmem:[#allocation39_spill] sm:$0xff] }
 0x5b3   :  { %v3914_v60 = vpop.f32.mrf.mxu0  ;;  %v3955_v51 = vpop.f32.mrf.mxu1 }
 0x5b4   :  { %12805 = vpow2.f32 %v10897_v57 }
 0x5b5   :  { %12807 = vpow2.f32 %v10898_v59 }
 0x5bf   :  { %v12804_v39 = vpop.eup %12803 }
 0x5c0   :  { %v3966_v29 = vadd.f32 1.0, %v12804_v39 }
 0x5c1   :  { %v12806_v11 = vpop.eup %12805 }
 0x5c2   :  { %12809 = vrcp.f32 %v3966_v29  ;;  %v3967_v4 = vadd.f32 1.0, %v12806_v11  ;;  %v12808_v47 = vpop.eup %12807 }
 0x5c3   :  { %12811 = vtanh.f32 %v3953_v61  ;;  %v3968_v39 = vadd.f32 1.0, %v12808_v47 }
 0x5c4   :  { %12813 = vrcp.f32 %v3967_v4 }
 0x5cd   :  { %v4216_v54 = vpop.f32.mrf.mxu0  ;;  %v4257_v45 = vpop.f32.mrf.mxu1 }
 0x5ce   :  { %v4264_v60 = vadd.f32 %v4216_v54, %v17704_v49  ;;  %v17706_v54 = vld [vmem:[#allocation40_spill] sm:$0xff] }
 0x5cf   :  { %v12810_v51 = vpop.eup %12809  ;;  %v4218_v57 = vpop.f32.mrf.mxu0  ;;  %v4266_v49 = vadd.f32 %v4257_v45, %v17706_v54 }
 0x5d0   :  { %v4259_v0 = vpop.f32.mrf.mxu1  ;;  %v12812_v3 = vpop.eup %12811  ;;  %v10932_v38 = vmul.f32 -1.442695, %v4264_v60  ;;  %v4265_v56 = vadd.f32 %v4218_v57, %v17705_v58  ;;  %v17707_v60 = vld [vmem:[#allocation42_spill] sm:$0xff] }
 0x5d1   :  { %v12814_v53 = vpop.eup %12813  ;;  %v4220_v5 = vpop.f32.mrf.mxu0  ;;  %v3977_v61 = vmul.f32 %v12812_v3, %v12810_v51  ;;  %v10934_v58 = vmul.f32 -1.442695, %v4266_v49  ;;  %v4267_v47 = vadd.f32 %v4259_v0, %v17707_v60  ;;  %v17748_v60 = vld [vmem:[#allocation97_spill] sm:$0xff] }
 0x5d2   :  { %v4261_v59 = vpop.f32.mrf.mxu1  ;;  %v3976_v29 = vmul.f32 %v12814_v53, %v14605_v52  ;;  %12815 = vpow2.f32 %v10932_v38  ;;  %v10933_v11 = vmul.f32 -1.442695, %v4265_v56 }
 0x5d3   :  { %v4221_v4 = vpop.f32.mrf.mxu0 }
 0x5d4   :  { %v4262_v42 = vpop.f32.mrf.mxu1  ;;  %v15109_v44 = vadd.f32 %v3977_v61, %v3976_v29  ;;  %12817 = vpow2.f32 %v10933_v11 }
 0x5d5   :  { %12819 = vrcp.f32 %v3968_v39 }
 0x5d6   :  { %12821 = vtanh.f32 %v15109_v44 }
 0x5d7   :  { %12823 = vpow2.f32 %v10934_v58 }
 0x5d8   :  { %12825 = vtanh.f32 %v4267_v47  ;;  %v17749_v47 = vld [vmem:[#allocation95_spill] sm:$0xff] }
 0x5df   :  { %v12816_v5 = vpop.eup %12815 }
 0x5e0   :  { %v4277_v57 = vadd.f32 1.0, %v12816_v5  ;;  %v17750_v5 = vld [vmem:[#allocation96_spill] sm:$0xff] }
 0x5e1   :  { %v12818_v52 = vpop.eup %12817 }
 0x5e2   :  { %v12820_v51 = vpop.eup %12819  ;;  %12827 = vrcp.f32 %v4277_v57  ;;  %v4278_v56 = vadd.f32 1.0, %v12818_v52  ;;  %v17751_v57 = vld [vmem:[#allocation98_spill] sm:$0xff]  ;;  %v17752_v52 = vld [vmem:[#allocation101_spill] sm:$0xff] }
 0x5e3   :  { %v12822_v42 = vpop.eup %12821 }
 0x5e4   :  { %12829 = vrcp.f32 %v4278_v56  ;;  %v3980_v3 = vmul.f32 %v12822_v42, %v12820_v51  ;;  %v12824_v45 = vpop.eup %12823  ;;  %v17753_v51 = vld [vmem:[#allocation99_spill] sm:$0xff]  ;;  %v17754_v56 = vld [vmem:[#allocation100_spill] sm:$0xff]  ;;  %v17755_v42 = vld [vmem:[#allocation102_spill] sm:$0xff] }
 0x5e5   :  { %v12826_v0 = vpop.eup %12825  ;;  %v4279_v29 = vadd.f32 1.0, %v12824_v45  ;;  %v17758_v45 = vld [vmem:[#allocation105_spill] sm:$0xff] }
 0x5e6   :  { %10899 = vst [vmem:[%s17119_s6 + $0x18] sm:$0xff] %v3980_v3  ;;  %v4293_v38 = vpack.c.bf16 %v3980_v3, %v3980_v3  ;;  %v17756_v3 = vld [vmem:[#allocation103_spill] sm:$0xff] }
 0x5e7   :  { %12831 = vrcp.f32 %v4279_v29  ;;  %v15217_v29 = vld [vmem:[#allocation5 + $0xe4] ss:$16 sps:$4 sm:$0xff]  }
 0x5e8   :  { %4710 = vmatprep.mubr.bf16.mxu0 %v4293_v38  ;;  %4751 = vmatprep.mubr.bf16.mxu1 %v4293_v38  ;;  %v17757_v38 = vld [vmem:[#allocation104_spill] sm:$0xff] }
 0x5ef   :  { %v12828_v53 = vpop.eup %12827 }
 0x5f0   :  { %v4288_v39 = vmul.f32 %v12828_v53, %v12826_v0  ;;  %v17759_v0 = vld [vmem:[#allocation106_spill] sm:$0xff]  ;;  %v17760_v53 = vld [vmem:[#allocation107_spill] sm:$0xff] }
 0x5f1   :  { %v12830_v59 = vpop.eup %12829 }
 0x5f2   :  { %v4287_v61 = vmul.f32 %v12830_v59, %v14615_v16  ;;  %v17708_v16 = vld [vmem:[#allocation31_spill] sm:$0xff]  ;;  %v17762_v59 = vld [vmem:[#allocation109_spill] sm:$0xff] }
 0x5f4   :  { %v15118_v11 = vadd.f32 %v4288_v39, %v4287_v61  ;;  %v12832_v4 = vpop.eup %12831  ;;  %v17761_v39 = vld [vmem:[#allocation108_spill] sm:$0xff]  ;;  %v15219_v61 = vld [vmem:[#allocation5 + $0xec] ss:$16 sps:$4 sm:$0xff]  }
 0x5f6   :  { %12833 = vtanh.f32 %v15118_v11 }
 0x603   :  { %v12834_v54 = vpop.eup %12833 }
 0x604   :  { %v4291_v49 = vmul.f32 %v12834_v54, %v12832_v4 }
 0x606   :  { %v4292_v58 = vpack.c.bf16 %v4291_v49, %v4291_v49  ;;  %v17763_v49 = vld [vmem:[#allocation13_spill] sm:$0xff] }
 0x608   :  { %4711 = vmatmul.mubr.bf16.vlgmr.msra.gmra.mxu0 %v4292_v58  ;;  %4752 = vmatmul.mubr.bf16.vlgmr.msra.gmra.mxu1 %v4292_v58 }
 0x609   :  { %4986 = vmatpush1.bf16.msra.mxu0 %v14618_v8  ;;  %5027 = vmatpush1.bf16.msra.mxu1 %v14620_v63  ;;  %v17709_v8 = vld [vmem:[#allocation33_spill] sm:$0xff]  ;;  %v17710_v63 = vld [vmem:[#allocation32_spill] sm:$0xff] }
 0x60a   :  { %4987 = vmatprep.subr.bf16.mxu0 %v14624_v14  ;;  %5028 = vmatprep.subr.bf16.mxu1 %v14626_v15  ;;  %v17711_v14 = vld [vmem:[#allocation34_spill] sm:$0xff]  ;;  %v17712_v15 = vld [vmem:[#allocation17_spill] sm:$0xff] }
 0x60b   :  { %5017 = vmatprep.mubr.bf16.mxu0 %v17499_v10  ;;  %5058 = vmatprep.mubr.bf16.mxu1 %v17499_v10 }
 0x60d   :  { %4988 = vmatpush1.bf16.msra.mxu0 %v14632_v62  ;;  %5029 = vmatpush1.bf16.msra.mxu1 %v14634_v6  ;;  %v17713_v62 = vld [vmem:[#allocation18_spill] sm:$0xff]  ;;  %v17714_v6 = vld [vmem:[#allocation19_spill] sm:$0xff] }
 0x60e   :  { %4989 = vmatprep.subr.bf16.mxu0 %v14638_v9  ;;  %5030 = vmatprep.subr.bf16.mxu1 %v14640_v2  ;;  %v17715_v9 = vld [vmem:[#allocation20_spill] sm:$0xff]  ;;  %v17716_v2 = vld [vmem:[#allocation21_spill] sm:$0xff] }
 0x611   :  { %4990 = vmatpush1.bf16.msra.mxu0 %v14646_v1  ;;  %5031 = vmatpush1.bf16.msra.mxu1 %v14648_v12  ;;  %v17717_v1 = vld [vmem:[#allocation22_spill] sm:$0xff]  ;;  %v17718_v12 = vld [vmem:[#allocation23_spill] sm:$0xff] }
 0x612   :  { %4991 = vmatprep.subr.bf16.mxu0 %v14652_v13  ;;  %5032 = vmatprep.subr.bf16.mxu1 %v14654_v7  ;;  %v17719_v13 = vld [vmem:[#allocation24_spill] sm:$0xff]  ;;  %v17720_v7 = vld [vmem:[#allocation27_spill] sm:$0xff] }
 0x615   :  { %4992 = vmatpush1.bf16.msra.mxu0 %v14658_v17  ;;  %5033 = vmatpush1.bf16.msra.mxu1 %v14660_v18  ;;  %v17721_v17 = vld [vmem:[#allocation25_spill] sm:$0xff]  ;;  %v17722_v18 = vld [vmem:[#allocation26_spill] sm:$0xff] }
 0x616   :  { %4993 = vmatprep.subr.bf16.mxu0 %v14664_v19  ;;  %5034 = vmatprep.subr.bf16.mxu1 %v14666_v20  ;;  %v17723_v19 = vld [vmem:[#allocation28_spill] sm:$0xff]  ;;  %v17724_v20 = vld [vmem:[#allocation71_spill] sm:$0xff] }
 0x619   :  { %4994 = vmatpush1.bf16.msra.mxu0 %v14670_v22  ;;  %5035 = vmatpush1.bf16.msra.mxu1 %v14672_v23  ;;  %v17725_v22 = vld [vmem:[#allocation72_spill] sm:$0xff]  ;;  %v17726_v23 = vld [vmem:[#allocation73_spill] sm:$0xff] }
 0x61a   :  { %4995 = vmatprep.subr.bf16.mxu0 %v14676_v24  ;;  %5036 = vmatprep.subr.bf16.mxu1 %v14678_v25  ;;  %v17727_v24 = vld [vmem:[#allocation74_spill] sm:$0xff]  ;;  %v17728_v25 = vld [vmem:[#allocation75_spill] sm:$0xff] }
 0x61d   :  { %4996 = vmatpush1.bf16.msra.mxu0 %v14682_v26  ;;  %5037 = vmatpush1.bf16.msra.mxu1 %v14684_v27  ;;  %v17729_v26 = vld [vmem:[#allocation76_spill] sm:$0xff]  ;;  %v17730_v27 = vld [vmem:[#allocation77_spill] sm:$0xff] }
 0x61e   :  { %4997 = vmatprep.subr.bf16.mxu0 %v14688_v30  ;;  %5038 = vmatprep.subr.bf16.mxu1 %v14690_v31  ;;  %v17731_v30 = vld [vmem:[#allocation78_spill] sm:$0xff]  ;;  %v17732_v31 = vld [vmem:[#allocation79_spill] sm:$0xff] }
 0x621   :  { %4998 = vmatpush1.bf16.msra.mxu0 %v14694_v32  ;;  %5039 = vmatpush1.bf16.msra.mxu1 %v14696_v34  ;;  %v17733_v32 = vld [vmem:[#allocation80_spill] sm:$0xff]  ;;  %v17734_v34 = vld [vmem:[#allocation81_spill] sm:$0xff] }
 0x622   :  { %4999 = vmatprep.subr.bf16.mxu0 %v14700_v36  ;;  %5040 = vmatprep.subr.bf16.mxu1 %v14702_v48  ;;  %v17735_v36 = vld [vmem:[#allocation82_spill] sm:$0xff]  ;;  %v17736_v48 = vld [vmem:[#allocation83_spill] sm:$0xff] }
 0x625   :  { %5000 = vmatpush1.bf16.msra.mxu0 %v14706_v43  ;;  %5041 = vmatpush1.bf16.msra.mxu1 %v14708_v46  ;;  %v17737_v43 = vld [vmem:[#allocation84_spill] sm:$0xff]  ;;  %v17738_v46 = vld [vmem:[#allocation85_spill] sm:$0xff] }
 0x626   :  { %5481 = vmatprep.subr.bf16.mxu0 %v14719_v21  ;;  %5522 = vmatprep.subr.bf16.mxu1 %v14724_v40  ;;  %v17739_v21 = vld [vmem:[#allocation86_spill] sm:$0xff]  ;;  %v17740_v40 = vld [vmem:[#allocation87_spill] sm:$0xff] }
 0x628   :  { %5018 = vmatmul.mubr.bf16.vlgmr.msra.gmra.mxu0 %v4292_v58  ;;  %5059 = vmatmul.mubr.bf16.vlgmr.msra.gmra.mxu1 %v4292_v58 }
 0x629   :  { %5482 = vmatpush1.bf16.msra.mxu0 %v14729_v35  ;;  %5523 = vmatpush1.bf16.msra.mxu1 %v14734_v33  ;;  %v17741_v35 = vld [vmem:[#allocation88_spill] sm:$0xff]  ;;  %v17742_v33 = vld [vmem:[#allocation89_spill] sm:$0xff] }
 0x62a   :  { %5483 = vmatprep.subr.bf16.mxu0 %v14743_v50  ;;  %5524 = vmatprep.subr.bf16.mxu1 %v14748_v28  ;;  %v17743_v50 = vld [vmem:[#allocation90_spill] sm:$0xff]  ;;  %v17744_v28 = vld [vmem:[#allocation91_spill] sm:$0xff] }
 0x62d   :  { %5484 = vmatpush1.bf16.msra.mxu0 %v14753_v41  ;;  %5525 = vmatpush1.bf16.msra.mxu1 %v14758_v37  ;;  %v17745_v41 = vld [vmem:[#allocation92_spill] sm:$0xff]  ;;  %v17746_v37 = vld [vmem:[#allocation93_spill] sm:$0xff] }
 0x62e   :  { %5485 = vmatprep.subr.bf16.mxu0 %v14767_v55  ;;  %5526 = vmatprep.subr.bf16.mxu1 %v17708_v16  ;;  %v17747_v55 = vld [vmem:[#allocation94_spill] sm:$0xff] }
 0x631   :  { %5486 = vmatpush1.bf16.msra.mxu0 %v17709_v8  ;;  %5527 = vmatpush1.bf16.msra.mxu1 %v17710_v63 }
 0x632   :  { %5487 = vmatprep.subr.bf16.mxu0 %v17711_v14  ;;  %5528 = vmatprep.subr.bf16.mxu1 %v17712_v15  ;;  %v17764_v14 = vld [vmem:[#allocation14_spill] sm:$0xff] }
 0x635   :  { %5488 = vmatpush1.bf16.msra.mxu0 %v17713_v62  ;;  %5529 = vmatpush1.bf16.msra.mxu1 %v17714_v6 }
 0x636   :  { %5489 = vmatprep.subr.bf16.mxu0 %v17715_v9  ;;  %5530 = vmatprep.subr.bf16.mxu1 %v17716_v2 }
 0x639   :  { %5490 = vmatpush1.bf16.msra.mxu0 %v17717_v1  ;;  %5531 = vmatpush1.bf16.msra.mxu1 %v17718_v12  ;;  %v17765_v12 = vld [vmem:[#allocation15_spill] sm:$0xff] }
 0x63a   :  { %5491 = vmatprep.subr.bf16.mxu0 %v17719_v13  ;;  %5532 = vmatprep.subr.bf16.mxu1 %v17720_v7 }
 0x63d   :  { %5492 = vmatpush1.bf16.msra.mxu0 %v17721_v17  ;;  %5533 = vmatpush1.bf16.msra.mxu1 %v17722_v18  ;;  %v17766_v18 = vld [vmem:[#allocation16_spill] sm:$0xff] }
 0x63e   :  { %5493 = vmatprep.subr.bf16.mxu0 %v17723_v19  ;;  %5534 = vmatprep.subr.bf16.mxu1 %v17724_v20 }
 0x641   :  { %5494 = vmatpush1.bf16.msra.mxu0 %v17725_v22  ;;  %5535 = vmatpush1.bf16.msra.mxu1 %v17726_v23 }
 0x642   :  { %5495 = vmatprep.subr.bf16.mxu0 %v17727_v24  ;;  %5536 = vmatprep.subr.bf16.mxu1 %v17728_v25 }
 0x645   :  { %5496 = vmatpush1.bf16.msra.mxu0 %v17729_v26  ;;  %5537 = vmatpush1.bf16.msra.mxu1 %v17730_v27  ;;  %v17767_v27 = vld [vmem:[#allocation43_spill] sm:$0xff] }
 0x646   :  { %5497 = vmatprep.subr.bf16.mxu0 %v17731_v30  ;;  %5538 = vmatprep.subr.bf16.mxu1 %v17732_v31 }
 0x649   :  { %5498 = vmatpush2.bf16.msra.mxu0 %v17733_v32  ;;  %5539 = vmatpush2.bf16.msra.mxu1 %v17734_v34 }
 0x64a   :  { %5499 = vmatprep.subr.bf16.mxu0 %v17735_v36  ;;  %5540 = vmatprep.subr.bf16.mxu1 %v17736_v48 }
 0x64d   :  { %5500 = vmatpush2.bf16.msra.mxu0 %v17737_v43  ;;  %5541 = vmatpush2.bf16.msra.mxu1 %v17738_v46  ;;  %v17768_v43 = vld [vmem:[#allocation45_spill] sm:$0xff] }
 0x64e   :  { %5501 = vmatprep.subr.bf16.mxu0 %v17739_v21  ;;  %5542 = vmatprep.subr.bf16.mxu1 %v17740_v40 }
 0x651   :  { %5502 = vmatpush2.bf16.msra.mxu0 %v17741_v35  ;;  %5543 = vmatpush2.bf16.msra.mxu1 %v17742_v33 }
 0x652   :  { %5503 = vmatprep.subr.bf16.mxu0 %v17743_v50  ;;  %5544 = vmatprep.subr.bf16.mxu1 %v17744_v28 }
 0x655   :  { %5504 = vmatpush2.bf16.msra.mxu0 %v17745_v41  ;;  %5545 = vmatpush2.bf16.msra.mxu1 %v17746_v37 }
 0x656   :  { %5505 = vmatprep.subr.bf16.mxu0 %v17747_v55  ;;  %5546 = vmatprep.subr.bf16.mxu1 %v17748_v60 }
 0x659   :  { %5506 = vmatpush2.bf16.msra.mxu0 %v17749_v47  ;;  %5547 = vmatpush2.bf16.msra.mxu1 %v17750_v5  ;;  %v17769_v47 = vld [vmem:[#allocation44_spill] sm:$0xff] }
 0x65a   :  { %5507 = vmatprep.subr.bf16.mxu0 %v17751_v57  ;;  %5548 = vmatprep.subr.bf16.mxu1 %v17752_v52  ;;  %v17770_v52 = vld [vmem:[#allocation46_spill] sm:$0xff] }
 0x65d   :  { %5508 = vmatpush2.bf16.msra.mxu0 %v17753_v51  ;;  %5549 = vmatpush2.bf16.msra.mxu1 %v17754_v56 }
 0x65e   :  { %5509 = vmatprep.subr.bf16.mxu0 %v17755_v42  ;;  %5550 = vmatprep.subr.bf16.mxu1 %v17756_v3 }
 0x661   :  { %5510 = vmatpush2.bf16.msra.mxu0 %v17757_v38  ;;  %5551 = vmatpush2.bf16.msra.mxu1 %v17758_v45 }
 0x662   :  { %5511 = vmatprep.subr.bf16.mxu0 %v17759_v0  ;;  %5552 = vmatprep.subr.bf16.mxu1 %v17760_v53 }
 0x665   :  { %5512 = vmatpush2.bf16.msra.mxu0 %v17761_v39  ;;  %5553 = vmatpush2.bf16.msra.mxu1 %v17762_v59 }
 0x666   :  { %5788 = vmatprep.subr.bf16.mxu0 %v15217_v29  ;;  %5829 = vmatprep.subr.bf16.mxu1 %v15219_v61 }
 0x6c8   :  { %v4712_v4 = vpop.f32.mrf.mxu0  ;;  %v4753_v54 = vpop.f32.mrf.mxu1 }
 0x6c9   :  { %v4713_v58 = vadd.f32 %v4712_v4, %v17763_v49  ;;  %v4754_v13 = vadd.f32 %v4753_v54, %v17765_v12 }
 0x6ca   :  { %v4714_v16 = vpop.f32.mrf.mxu0  ;;  %v4755_v8 = vpop.f32.mrf.mxu1 }
 0x6cb   :  { %v10999_v63 = vmul.f32 -1.442695, %v4713_v58  ;;  %v4715_v15 = vadd.f32 %v4714_v16, %v17764_v14  ;;  %v11001_v7 = vmul.f32 -1.442695, %v4754_v13  ;;  %v4756_v19 = vadd.f32 %v4755_v8, %v17766_v18  ;;  %v15248_v13 = vld [vmem:[#allocation5 + $0xc4] ss:$16 sps:$4 sm:$0xff]  }
 0x6cc   :  { %v4716_v62 = vpop.f32.mrf.mxu0  ;;  %v4757_v6 = vpop.f32.mrf.mxu1 }
 0x6cd   :  { %12835 = vpow2.f32 %v10999_v63  ;;  %v11000_v9 = vmul.f32 -1.442695, %v4715_v15 }
 0x6ce   :  { %v4717_v2 = vpop.f32.mrf.mxu0  ;;  %v4758_v1 = vpop.f32.mrf.mxu1 }
 0x6cf   :  { %12837 = vpow2.f32 %v11000_v9  ;;  %v15242_v9 = vld [vmem:[#allocation5 + $0xe0] ss:$16 sps:$4 sm:$0xff]   ;;  %v15244_v2 = vld [vmem:[#allocation5 + $0xe8] ss:$16 sps:$4 sm:$0xff]  }
 0x6d0   :  { %12839 = vpow2.f32 %v11001_v7  ;;  %v15250_v7 = vld [vmem:[#allocation5 + $0xcc] ss:$16 sps:$4 sm:$0xff]  }
 0x6da   :  { %v12836_v17 = vpop.eup %12835 }
 0x6db   :  { %v4769_v20 = vadd.f32 1.0, %v12836_v17  ;;  %v15258_v17 = vld [vmem:[#allocation5 + $0xc8] ss:$16 sps:$4 sm:$0xff]  }
 0x6dc   :  { %v12838_v22 = vpop.eup %12837 }
 0x6dd   :  { %12841 = vrcp.f32 %v4769_v20  ;;  %v4770_v23 = vadd.f32 1.0, %v12838_v22  ;;  %v12840_v26 = vpop.eup %12839  ;;  %v15264_v20 = vld [vmem:[#allocation5 + $0xac] ss:$16 sps:$4 sm:$0xff]   ;;  %v15270_v22 = vld [vmem:[#allocation5 + $0xa0] ss:$16 sps:$4 sm:$0xff]  }
 0x6de   :  { %12843 = vtanh.f32 %v4756_v19  ;;  %v4771_v40 = vadd.f32 1.0, %v12840_v26  ;;  %v15262_v19 = vld [vmem:[#allocation5 + $0xa4] ss:$16 sps:$4 sm:$0xff]   ;;  %v15282_v26 = vld [vmem:[#allocation5 + $0x80] ss:$16 sps:$4 sm:$0xff]  }
 0x6df   :  { %12845 = vrcp.f32 %v4770_v23  ;;  %v15272_v23 = vld [vmem:[#allocation5 + $0xa8] ss:$16 sps:$4 sm:$0xff]  }
 0x6e8   :  { %v5019_v24 = vpop.f32.mrf.mxu0  ;;  %v5060_v25 = vpop.f32.mrf.mxu1 }
 0x6e9   :  { %v5067_v30 = vadd.f32 %v5019_v24, %v17767_v27  ;;  %v5069_v5 = vadd.f32 %v5060_v25, %v17769_v47  ;;  %v15276_v24 = vld [vmem:[#allocation5 + $0x84] ss:$16 sps:$4 sm:$0xff]   ;;  %v15278_v25 = vld [vmem:[#allocation5 + $0x8c] ss:$16 sps:$4 sm:$0xff]   ;;  %v15284_v27 = vld [vmem:[#allocation5 + $0x88] ss:$16 sps:$4 sm:$0xff]  }
 0x6ea   :  { %v12842_v31 = vpop.eup %12841  ;;  %v5021_v32 = vpop.f32.mrf.mxu0  ;;  %v15348_v47 = vld [vmem:[%s17117_s4 + $0xec] ss:$16 sps:$4 sm:$0xff]  }
 0x6eb   :  { %v5062_v34 = vpop.f32.mrf.mxu1  ;;  %v12844_v36 = vpop.eup %12843  ;;  %v11035_v48 = vmul.f32 -1.442695, %v5067_v30  ;;  %v5068_v46 = vadd.f32 %v5021_v32, %v17768_v43  ;;  %v11037_v57 = vmul.f32 -1.442695, %v5069_v5  ;;  %v15288_v30 = vld [vmem:[#allocation5 + $0x64] ss:$16 sps:$4 sm:$0xff]  }
 0x6ec   :  { %v12846_v21 = vpop.eup %12845  ;;  %v5023_v35 = vpop.f32.mrf.mxu0  ;;  %v4780_v28 = vmul.f32 %v12844_v36, %v12842_v31  ;;  %v5070_v51 = vadd.f32 %v5062_v34, %v17770_v52  ;;  %v15290_v31 = vld [vmem:[#allocation5 + $0x6c] ss:$16 sps:$4 sm:$0xff]   ;;  %v15294_v32 = vld [vmem:[#allocation5 + $0x60] ss:$16 sps:$4 sm:$0xff]   ;;  %v15296_v34 = vld [vmem:[#allocation5 + $0x68] ss:$16 sps:$4 sm:$0xff]  }
 0x6ed   :  { %v5064_v33 = vpop.f32.mrf.mxu1  ;;  %v4779_v50 = vmul.f32 %v12846_v21, %v15109_v44  ;;  %12847 = vpow2.f32 %v11035_v48  ;;  %v11036_v41 = vmul.f32 -1.442695, %v5068_v46  ;;  %v15300_v36 = vld [vmem:[#allocation5 + $0x44] ss:$16 sps:$4 sm:$0xff]   ;;  %v15302_v48 = vld [vmem:[#allocation5 + $0x4c] ss:$16 sps:$4 sm:$0xff]  }
 0x6ee   :  { %v5024_v37 = vpop.f32.mrf.mxu0  ;;  %v15306_v43 = vld [vmem:[#allocation5 + $0x40] ss:$16 sps:$4 sm:$0xff]   ;;  %v15308_v46 = vld [vmem:[#allocation5 + $0x48] ss:$16 sps:$4 sm:$0xff]   ;;  %v15312_v21 = vld [vmem:[#allocation5 + $0x24] ss:$16 sps:$4 sm:$0xff]  }
 0x6ef   :  { %v5065_v55 = vpop.f32.mrf.mxu1  ;;  %v15230_v60 = vadd.f32 %v4780_v28, %v4779_v50  ;;  %12849 = vpow2.f32 %v11036_v41  ;;  %v15318_v35 = vld [vmem:[#allocation5 + $0x20] ss:$16 sps:$4 sm:$0xff]   ;;  %v15320_v33 = vld [vmem:[#allocation5 + $0x28] ss:$16 sps:$4 sm:$0xff]   ;;  %v15324_v50 = vld [vmem:[#allocation5 + $0x4] ss:$16 sps:$4 sm:$0xff]  }
 0x6f0   :  { %12851 = vrcp.f32 %v4771_v40  ;;  %v15314_v40 = vld [vmem:[#allocation5 + $0x2c] ss:$16 sps:$4 sm:$0xff]   ;;  %v15330_v41 = vld [vmem:[#allocation5] ss:$16 sps:$4 sm:$0xff]   ;;  %v15332_v37 = vld [vmem:[#allocation5 + $0x8] ss:$16 sps:$4 sm:$0xff]  }
 0x6f1   :  { %12853 = vtanh.f32 %v15230_v60  ;;  %v15326_v28 = vld [vmem:[#allocation5 + $0xc] ss:$16 sps:$4 sm:$0xff]   ;;  %v15343_v55 = vld [vmem:[%s17117_s4 + $0xe4] ss:$16 sps:$4 sm:$0xff]   ;;  %v15353_v5 = vld [vmem:[%s17117_s4 + $0xe0] ss:$16 sps:$4 sm:$0xff]  }
 0x6f2   :  { %12855 = vpow2.f32 %v11037_v57  ;;  %v15358_v57 = vld [vmem:[%s17117_s4 + $0xe8] ss:$16 sps:$4 sm:$0xff]   ;;  %v15367_v52 = vld [vmem:[%s17117_s4 + $0xc4] ss:$16 sps:$4 sm:$0xff]  }
 0x6f3   :  { %12857 = vtanh.f32 %v5070_v51  ;;  %v15372_v51 = vld [vmem:[%s17117_s4 + $0xcc] ss:$16 sps:$4 sm:$0xff]  }
 0x6fa   :  { %v12848_v56 = vpop.eup %12847 }
 0x6fb   :  { %v5080_v42 = vadd.f32 1.0, %v12848_v56  ;;  %v15377_v56 = vld [vmem:[%s17117_s4 + $0xc0] ss:$16 sps:$4 sm:$0xff]  }
 0x6fc   :  { %v12850_v44 = vpop.eup %12849 }
 0x6fd   :  { %v12852_v3 = vpop.eup %12851  ;;  %12859 = vrcp.f32 %v5080_v42  ;;  %v5081_v38 = vadd.f32 1.0, %v12850_v44  ;;  %v15382_v42 = vld [vmem:[%s17117_s4 + $0xc8] ss:$16 sps:$4 sm:$0xff]   ;;  %v15391_v44 = vld [vmem:[%s17117_s4 + $0xa4] ss:$16 sps:$4 sm:$0xff]  }
 0x6fe   :  { %v12854_v45 = vpop.eup %12853 }
 0x6ff   :  { %12861 = vrcp.f32 %v5081_v38  ;;  %v4783_v0 = vmul.f32 %v12854_v45, %v12852_v3  ;;  %v12856_v39 = vpop.eup %12855  ;;  %v15396_v3 = vld [vmem:[%s17117_s4 + $0xac] ss:$16 sps:$4 sm:$0xff]   ;;  %v15401_v38 = vld [vmem:[%s17117_s4 + $0xa0] ss:$16 sps:$4 sm:$0xff]   ;;  %v15406_v45 = vld [vmem:[%s17117_s4 + $0xa8] ss:$16 sps:$4 sm:$0xff]  }
 0x700   :  { %v12858_v59 = vpop.eup %12857  ;;  %v5082_v16 = vadd.f32 1.0, %v12856_v39  ;;  %17771 = vst [vmem:[#allocation110_spill] sm:$0xff] %v15396_v3  ;;  %17772 = vst [vmem:[#allocation111_spill] sm:$0xff] %v15401_v38  ;;  %v15425_v39 = vld [vmem:[%s17117_s4 + $0x80] ss:$16 sps:$4 sm:$0xff]  }
 0x701   :  { %11002 = vst [vmem:[%s17119_s6 + $0x20] sm:$0xff] %v4783_v0  ;;  %v5096_v53 = vpack.c.bf16 %v4783_v0, %v4783_v0  ;;  %17773 = vst [vmem:[#allocation112_spill] sm:$0xff] %v15406_v45  ;;  %v15415_v0 = vld [vmem:[%s17117_s4 + $0x84] ss:$16 sps:$4 sm:$0xff]  }
 0x702   :  { %12863 = vrcp.f32 %v5082_v16  ;;  %17774 = vst [vmem:[#allocation113_spill] sm:$0xff] %v15415_v0  ;;  %17776 = vst [vmem:[#allocation37_spill] sm:$0xff] %v15425_v39  ;;  %v15454_v16 = vld [vmem:[%s17117_s4 + $0x68] ss:$16 sps:$4 sm:$0xff]  }
 0x703   :  { %5513 = vmatprep.mubr.bf16.mxu0 %v5096_v53  ;;  %5554 = vmatprep.mubr.bf16.mxu1 %v5096_v53  ;;  %v15420_v53 = vld [vmem:[%s17117_s4 + $0x8c] ss:$16 sps:$4 sm:$0xff]   ;;  %17781 = vst [vmem:[#allocation39_spill] sm:$0xff] %v15454_v16 }
 0x704   :  { %17775 = vst [vmem:[#allocation29_spill] sm:$0xff] %v15420_v53 }
 0x70a   :  { %v12860_v4 = vpop.eup %12859 }
 0x70b   :  { %v5091_v54 = vmul.f32 %v12860_v4, %v12858_v59  ;;  %v15430_v59 = vld [vmem:[%s17117_s4 + $0x88] ss:$16 sps:$4 sm:$0xff]   ;;  %v15439_v4 = vld [vmem:[%s17117_s4 + $0x64] ss:$16 sps:$4 sm:$0xff]  }
 0x70c   :  { %v12862_v58 = vpop.eup %12861  ;;  %17777 = vst [vmem:[#allocation35_spill] sm:$0xff] %v15430_v59  ;;  %17778 = vst [vmem:[#allocation36_spill] sm:$0xff] %v15439_v4 }
 0x70d   :  { %v5090_v8 = vmul.f32 %v12862_v58, %v15118_v11  ;;  %v15256_v11 = vld [vmem:[#allocation5 + $0xc0] ss:$16 sps:$4 sm:$0xff]  }
 0x70e   :  { %v15449_v58 = vld [vmem:[%s17117_s4 + $0x60] ss:$16 sps:$4 sm:$0xff]  }
 0x70f   :  { %v15239_v63 = vadd.f32 %v5091_v54, %v5090_v8  ;;  %v12864_v15 = vpop.eup %12863  ;;  %v15444_v54 = vld [vmem:[%s17117_s4 + $0x6c] ss:$16 sps:$4 sm:$0xff]   ;;  %17780 = vst [vmem:[#allocation38_spill] sm:$0xff] %v15449_v58  ;;  %v15463_v8 = vld [vmem:[%s17117_s4 + $0x44] ss:$16 sps:$4 sm:$0xff]  }
 0x710   :  { %17779 = vst [vmem:[#allocation30_spill] sm:$0xff] %v15444_v54  ;;  %17782 = vst [vmem:[#allocation41_spill] sm:$0xff] %v15463_v8 }
 0x711   :  { %12865 = vtanh.f32 %v15239_v63 }
 0x71e   :  { %v12866_v62 = vpop.eup %12865 }
 0x71f   :  { %v5094_v6 = vmul.f32 %v12866_v62, %v12864_v15  ;;  %v15468_v15 = vld [vmem:[%s17117_s4 + $0x4c] ss:$16 sps:$4 sm:$0xff]   ;;  %v15473_v62 = vld [vmem:[%s17117_s4 + $0x40] ss:$16 sps:$4 sm:$0xff]  }
 0x720   :  { %17783 = vst [vmem:[#allocation40_spill] sm:$0xff] %v15468_v15  ;;  %17784 = vst [vmem:[#allocation42_spill] sm:$0xff] %v15473_v62 }
 0x721   :  { %v15246_v1 = vpack.c.bf16 %v5094_v6, %v5094_v6  ;;  %v15478_v6 = vld [vmem:[%s17117_s4 + $0x48] ss:$16 sps:$4 sm:$0xff]  }
 0x722   :  { %17785 = vst [vmem:[#allocation31_spill] sm:$0xff] %v15478_v6 }
 0x723   :  { %5514 = vmatmul.mubr.bf16.vlgmr.msra.gmra.mxu0 %v15246_v1  ;;  %5555 = vmatmul.mubr.bf16.vlgmr.msra.gmra.mxu1 %v15246_v1 }
 0x724   :  { %5789 = vmatpush1.bf16.msra.mxu0 %v15242_v9  ;;  %5830 = vmatpush1.bf16.msra.mxu1 %v15244_v2 }
 0x725   :  { %5790 = vmatprep.subr.bf16.mxu0 %v15248_v13  ;;  %5831 = vmatprep.subr.bf16.mxu1 %v15250_v7 }
 0x726   :  { %5820 = vmatprep.mubr.bf16.mxu0 %v17499_v10  ;;  %5861 = vmatprep.mubr.bf16.mxu1 %v17499_v10 }
 0x728   :  { %5791 = vmatpush1.bf16.msra.mxu0 %v15256_v11  ;;  %5832 = vmatpush1.bf16.msra.mxu1 %v15258_v17 }
 0x729   :  { %5792 = vmatprep.subr.bf16.mxu0 %v15262_v19  ;;  %5833 = vmatprep.subr.bf16.mxu1 %v15264_v20 }
 0x72c   :  { %5793 = vmatpush1.bf16.msra.mxu0 %v15270_v22  ;;  %5834 = vmatpush1.bf16.msra.mxu1 %v15272_v23 }
 0x72d   :  { %5794 = vmatprep.subr.bf16.mxu0 %v15276_v24  ;;  %5835 = vmatprep.subr.bf16.mxu1 %v15278_v25 }
 0x730   :  { %5795 = vmatpush1.bf16.msra.mxu0 %v15282_v26  ;;  %5836 = vmatpush1.bf16.msra.mxu1 %v15284_v27 }
 0x731   :  { %5796 = vmatprep.subr.bf16.mxu0 %v15288_v30  ;;  %5837 = vmatprep.subr.bf16.mxu1 %v15290_v31 }
 0x734   :  { %5797 = vmatpush1.bf16.msra.mxu0 %v15294_v32  ;;  %5838 = vmatpush1.bf16.msra.mxu1 %v15296_v34 }
 0x735   :  { %5798 = vmatprep.subr.bf16.mxu0 %v15300_v36  ;;  %5839 = vmatprep.subr.bf16.mxu1 %v15302_v48 }
 0x738   :  { %5799 = vmatpush1.bf16.msra.mxu0 %v15306_v43  ;;  %5840 = vmatpush1.bf16.msra.mxu1 %v15308_v46 }
 0x739   :  { %5800 = vmatprep.subr.bf16.mxu0 %v15312_v21  ;;  %5841 = vmatprep.subr.bf16.mxu1 %v15314_v40 }
 0x73c   :  { %5801 = vmatpush1.bf16.msra.mxu0 %v15318_v35  ;;  %5842 = vmatpush1.bf16.msra.mxu1 %v15320_v33 }
 0x73d   :  { %5802 = vmatprep.subr.bf16.mxu0 %v15324_v50  ;;  %5843 = vmatprep.subr.bf16.mxu1 %v15326_v28 }
 0x740   :  { %5803 = vmatpush1.bf16.msra.mxu0 %v15330_v41  ;;  %5844 = vmatpush1.bf16.msra.mxu1 %v15332_v37 }
 0x741   :  { %6284 = vmatprep.subr.bf16.mxu0 %v15343_v55  ;;  %6325 = vmatprep.subr.bf16.mxu1 %v15348_v47 }
 0x743   :  { %5821 = vmatmul.mubr.bf16.vlgmr.msra.gmra.mxu0 %v15246_v1  ;;  %5862 = vmatmul.mubr.bf16.vlgmr.msra.gmra.mxu1 %v15246_v1  ;;  %v15487_v1 = vld [vmem:[%s17117_s4 + $0x24] ss:$16 sps:$4 sm:$0xff]  }
 0x744   :  { %6285 = vmatpush1.bf16.msra.mxu0 %v15353_v5  ;;  %6326 = vmatpush1.bf16.msra.mxu1 %v15358_v57  ;;  %17786 = vst [vmem:[#allocation33_spill] sm:$0xff] %v15487_v1 }
 0x745   :  { %6286 = vmatprep.subr.bf16.mxu0 %v15367_v52  ;;  %6327 = vmatprep.subr.bf16.mxu1 %v15372_v51 }
 0x748   :  { %6287 = vmatpush1.bf16.msra.mxu0 %v15377_v56  ;;  %6328 = vmatpush1.bf16.msra.mxu1 %v15382_v42 }
 0x749   :  { %6288 = vmatprep.subr.bf16.mxu0 %v15391_v44  ;;  %6329 = vmatprep.subr.bf16.mxu1 %v15396_v3 }
 0x74c   :  { %6289 = vmatpush1.bf16.msra.mxu0 %v15401_v38  ;;  %6330 = vmatpush1.bf16.msra.mxu1 %v15406_v45 }
 0x74d   :  { %6290 = vmatprep.subr.bf16.mxu0 %v15415_v0  ;;  %6331 = vmatprep.subr.bf16.mxu1 %v15420_v53 }
 0x750   :  { %6291 = vmatpush1.bf16.msra.mxu0 %v15425_v39  ;;  %6332 = vmatpush1.bf16.msra.mxu1 %v15430_v59 }
 0x751   :  { %6292 = vmatprep.subr.bf16.mxu0 %v15439_v4  ;;  %6333 = vmatprep.subr.bf16.mxu1 %v15444_v54 }
 0x754   :  { %6293 = vmatpush1.bf16.msra.mxu0 %v15449_v58  ;;  %6334 = vmatpush1.bf16.msra.mxu1 %v15454_v16  ;;  %v15492_v16 = vld [vmem:[%s17117_s4 + $0x2c] ss:$16 sps:$4 sm:$0xff]   ;;  %v15670_v58 = vld [vmem:[%s17117_s4 + $0x148] ss:$16 sps:$4 sm:$0xff]  }
 0x755   :  { %6294 = vmatprep.subr.bf16.mxu0 %v15463_v8  ;;  %6335 = vmatprep.subr.bf16.mxu1 %v15468_v15  ;;  %17787 = vst [vmem:[#allocation32_spill] sm:$0xff] %v15492_v16  ;;  %v15497_v8 = vld [vmem:[%s17117_s4 + $0x20] ss:$16 sps:$4 sm:$0xff]   ;;  %v15516_v15 = vld [vmem:[%s17117_s4 + $0xc] ss:$16 sps:$4 sm:$0xff]   ;;  %17817 = vst [vmem:[#allocation87_spill] sm:$0xff] %v15670_v58 }
 0x756   :  { %17788 = vst [vmem:[#allocation34_spill] sm:$0xff] %v15497_v8  ;;  %17791 = vst [vmem:[#allocation19_spill] sm:$0xff] %v15516_v15 }
 0x758   :  { %6295 = vmatpush1.bf16.msra.mxu0 %v15473_v62  ;;  %6336 = vmatpush1.bf16.msra.mxu1 %v15478_v6  ;;  %v15502_v62 = vld [vmem:[%s17117_s4 + $0x28] ss:$16 sps:$4 sm:$0xff]   ;;  %v15511_v6 = vld [vmem:[%s17117_s4 + $0x4] ss:$16 sps:$4 sm:$0xff]  }
 0x759   :  { %17789 = vst [vmem:[#allocation17_spill] sm:$0xff] %v15502_v62  ;;  %6296 = vmatprep.subr.bf16.mxu0 %v15487_v1  ;;  %6337 = vmatprep.subr.bf16.mxu1 %v15492_v16  ;;  %17790 = vst [vmem:[#allocation18_spill] sm:$0xff] %v15511_v6  ;;  %v15521_v1 = vld [vmem:[%s17117_s4] ss:$16 sps:$4 sm:$0xff]   ;;  %v15540_v16 = vld [vmem:[%s17117_s4 + $0x1ec] ss:$16 sps:$4 sm:$0xff]  }
 0x75a   :  { %17792 = vst [vmem:[#allocation20_spill] sm:$0xff] %v15521_v1  ;;  %17795 = vst [vmem:[#allocation23_spill] sm:$0xff] %v15540_v16 }
 0x75c   :  { %6297 = vmatpush1.bf16.msra.mxu0 %v15497_v8  ;;  %6338 = vmatpush1.bf16.msra.mxu1 %v15502_v62  ;;  %v15526_v8 = vld [vmem:[%s17117_s4 + $0x8] ss:$16 sps:$4 sm:$0xff]   ;;  %v15535_v62 = vld [vmem:[%s17117_s4 + $0x1e4] ss:$16 sps:$4 sm:$0xff]  }
 0x75d   :  { %17793 = vst [vmem:[#allocation21_spill] sm:$0xff] %v15526_v8  ;;  %6298 = vmatprep.subr.bf16.mxu0 %v15511_v6  ;;  %6339 = vmatprep.subr.bf16.mxu1 %v15516_v15  ;;  %17794 = vst [vmem:[#allocation22_spill] sm:$0xff] %v15535_v62  ;;  %v15545_v6 = vld [vmem:[%s17117_s4 + $0x1e0] ss:$16 sps:$4 sm:$0xff]   ;;  %v15564_v15 = vld [vmem:[%s17117_s4 + $0x1cc] ss:$16 sps:$4 sm:$0xff]  }
 0x75e   :  { %17796 = vst [vmem:[#allocation24_spill] sm:$0xff] %v15545_v6  ;;  %17799 = vst [vmem:[#allocation26_spill] sm:$0xff] %v15564_v15 }
 0x760   :  { %6299 = vmatpush1.bf16.msra.mxu0 %v15521_v1  ;;  %6340 = vmatpush1.bf16.msra.mxu1 %v15526_v8  ;;  %v15550_v1 = vld [vmem:[%s17117_s4 + $0x1e8] ss:$16 sps:$4 sm:$0xff]   ;;  %v15559_v8 = vld [vmem:[%s17117_s4 + $0x1c4] ss:$16 sps:$4 sm:$0xff]  }
 0x761   :  { %17797 = vst [vmem:[#allocation27_spill] sm:$0xff] %v15550_v1  ;;  %6300 = vmatprep.subr.bf16.mxu0 %v15535_v62  ;;  %6341 = vmatprep.subr.bf16.mxu1 %v15540_v16  ;;  %17798 = vst [vmem:[#allocation25_spill] sm:$0xff] %v15559_v8  ;;  %v15569_v62 = vld [vmem:[%s17117_s4 + $0x1c0] ss:$16 sps:$4 sm:$0xff]   ;;  %v15588_v16 = vld [vmem:[%s17117_s4 + $0x1ac] ss:$16 sps:$4 sm:$0xff]  }
 0x762   :  { %17800 = vst [vmem:[#allocation28_spill] sm:$0xff] %v15569_v62  ;;  %17803 = vst [vmem:[#allocation73_spill] sm:$0xff] %v15588_v16 }
 0x764   :  { %6301 = vmatpush2.bf16.msra.mxu0 %v15545_v6  ;;  %6342 = vmatpush2.bf16.msra.mxu1 %v15550_v1  ;;  %v15574_v6 = vld [vmem:[%s17117_s4 + $0x1c8] ss:$16 sps:$4 sm:$0xff]   ;;  %v15583_v1 = vld [vmem:[%s17117_s4 + $0x1a4] ss:$16 sps:$4 sm:$0xff]  }
 0x765   :  { %17801 = vst [vmem:[#allocation71_spill] sm:$0xff] %v15574_v6  ;;  %6302 = vmatprep.subr.bf16.mxu0 %v15559_v8  ;;  %6343 = vmatprep.subr.bf16.mxu1 %v15564_v15  ;;  %17802 = vst [vmem:[#allocation72_spill] sm:$0xff] %v15583_v1  ;;  %v15593_v8 = vld [vmem:[%s17117_s4 + $0x1a0] ss:$16 sps:$4 sm:$0xff]   ;;  %v15612_v15 = vld [vmem:[%s17117_s4 + $0x18c] ss:$16 sps:$4 sm:$0xff]  }
 0x766   :  { %17804 = vst [vmem:[#allocation74_spill] sm:$0xff] %v15593_v8  ;;  %17807 = vst [vmem:[#allocation77_spill] sm:$0xff] %v15612_v15 }
 0x768   :  { %6303 = vmatpush2.bf16.msra.mxu0 %v15569_v62  ;;  %6344 = vmatpush2.bf16.msra.mxu1 %v15574_v6  ;;  %v15598_v62 = vld [vmem:[%s17117_s4 + $0x1a8] ss:$16 sps:$4 sm:$0xff]   ;;  %v15607_v6 = vld [vmem:[%s17117_s4 + $0x184] ss:$16 sps:$4 sm:$0xff]  }
 0x769   :  { %17805 = vst [vmem:[#allocation75_spill] sm:$0xff] %v15598_v62  ;;  %6304 = vmatprep.subr.bf16.mxu0 %v15583_v1  ;;  %6345 = vmatprep.subr.bf16.mxu1 %v15588_v16  ;;  %17806 = vst [vmem:[#allocation76_spill] sm:$0xff] %v15607_v6  ;;  %v15617_v1 = vld [vmem:[%s17117_s4 + $0x180] ss:$16 sps:$4 sm:$0xff]  }
 0x76a   :  { %17808 = vst [vmem:[#allocation78_spill] sm:$0xff] %v15617_v1  ;;  %v15636_v16 = vld [vmem:[%s17117_s4 + $0x160] ss:$16 sps:$4 sm:$0xff]  }
 0x76b   :  { %17811 = vst [vmem:[#allocation81_spill] sm:$0xff] %v15636_v16 }
 0x76c   :  { %6305 = vmatpush2.bf16.msra.mxu0 %v15593_v8  ;;  %6346 = vmatpush2.bf16.msra.mxu1 %v15598_v62  ;;  %v15622_v8 = vld [vmem:[%s17117_s4 + $0x188] ss:$16 sps:$4 sm:$0xff]   ;;  %v15629_v62 = vld [vmem:[%s17117_s4 + $0x164] ss:$16 sps:$4 sm:$0xff]  }
 0x76d   :  { %17809 = vst [vmem:[#allocation79_spill] sm:$0xff] %v15622_v8  ;;  %6306 = vmatprep.subr.bf16.mxu0 %v15607_v6  ;;  %6347 = vmatprep.subr.bf16.mxu1 %v15612_v15  ;;  %17810 = vst [vmem:[#allocation80_spill] sm:$0xff] %v15629_v62  ;;  %v15641_v6 = vld [vmem:[%s17117_s4 + $0x168] ss:$16 sps:$4 sm:$0xff]   ;;  %v15646_v15 = vld [vmem:[%s17117_s4 + $0x16c] ss:$16 sps:$4 sm:$0xff]  }
 0x76e   :  { %17812 = vst [vmem:[#allocation82_spill] sm:$0xff] %v15641_v6  ;;  %17813 = vst [vmem:[#allocation83_spill] sm:$0xff] %v15646_v15 }
 0x770   :  { %6307 = vmatpush2.bf16.msra.mxu0 %v15617_v1  ;;  %6348 = vmatpush2.bf16.msra.mxu1 %v15622_v8  ;;  %v15652_v8 = vld [vmem:[%s17117_s4 + $0x144] ss:$16 sps:$4 sm:$0xff]   ;;  %v15657_v1 = vld [vmem:[%s17117_s4 + $0x14c] ss:$16 sps:$4 sm:$0xff]  }
 0x771   :  { %6308 = vmatprep.subr.bf16.mxu0 %v15629_v62  ;;  %17814 = vst [vmem:[#allocation84_spill] sm:$0xff] %v15652_v8  ;;  %17815 = vst [vmem:[#allocation85_spill] sm:$0xff] %v15657_v1  ;;  %6349 = vmatprep.subr.bf16.mxu1 %v15646_v15  ;;  %v15665_v62 = vld [vmem:[%s17117_s4 + $0x140] ss:$16 sps:$4 sm:$0xff]  }
 0x772   :  { %17816 = vst [vmem:[#allocation86_spill] sm:$0xff] %v15665_v62 }
 0x774   :  { %6309 = vmatpush2.bf16.msra.mxu0 %v15636_v16  ;;  %6350 = vmatpush2.bf16.msra.mxu1 %v15641_v6  ;;  %v15677_v16 = vld [vmem:[%s17117_s4 + $0x124] ss:$16 sps:$4 sm:$0xff]   ;;  %v15682_v6 = vld [vmem:[%s17117_s4 + $0x12c] ss:$16 sps:$4 sm:$0xff]  }
 0x775   :  { %6310 = vmatprep.subr.bf16.mxu0 %v15652_v8  ;;  %6351 = vmatprep.subr.bf16.mxu1 %v15657_v1  ;;  %17818 = vst [vmem:[#allocation88_spill] sm:$0xff] %v15677_v16  ;;  %17819 = vst [vmem:[#allocation89_spill] sm:$0xff] %v15682_v6  ;;  %v15689_v8 = vld [vmem:[%s17117_s4 + $0x120] ss:$16 sps:$4 sm:$0xff]   ;;  %v15694_v1 = vld [vmem:[%s17117_s4 + $0x128] ss:$16 sps:$4 sm:$0xff]  }
 0x776   :  { %17820 = vst [vmem:[#allocation90_spill] sm:$0xff] %v15689_v8  ;;  %17821 = vst [vmem:[#allocation91_spill] sm:$0xff] %v15694_v1 }
 0x778   :  { %6311 = vmatpush2.bf16.msra.mxu0 %v15665_v62  ;;  %6352 = vmatpush2.bf16.msra.mxu1 %v15670_v58  ;;  %v15701_v62 = vld [vmem:[%s17117_s4 + $0x104] ss:$16 sps:$4 sm:$0xff]   ;;  %v15706_v58 = vld [vmem:[%s17117_s4 + $0x10c] ss:$16 sps:$4 sm:$0xff]  }
 0x779   :  { %6312 = vmatprep.subr.bf16.mxu0 %v15677_v16  ;;  %6353 = vmatprep.subr.bf16.mxu1 %v15682_v6  ;;  %17822 = vst [vmem:[#allocation92_spill] sm:$0xff] %v15701_v62  ;;  %17823 = vst [vmem:[#allocation93_spill] sm:$0xff] %v15706_v58  ;;  %v15713_v16 = vld [vmem:[%s17117_s4 + $0x100] ss:$16 sps:$4 sm:$0xff]   ;;  %v15718_v6 = vld [vmem:[%s17117_s4 + $0x108] ss:$16 sps:$4 sm:$0xff]  }
 0x77a   :  { %17824 = vst [vmem:[#allocation94_spill] sm:$0xff] %v15713_v16  ;;  %17825 = vst [vmem:[#allocation97_spill] sm:$0xff] %v15718_v6 }
 0x77c   :  { %6313 = vmatpush2.bf16.msra.mxu0 %v15689_v8  ;;  %6354 = vmatpush2.bf16.msra.mxu1 %v15694_v1 }
 0x77d   :  { %6314 = vmatprep.subr.bf16.mxu0 %v15701_v62  ;;  %6355 = vmatprep.subr.bf16.mxu1 %v15706_v58 }
 0x780   :  { %6315 = vmatpush2.bf16.msra.mxu0 %v15713_v16  ;;  %6356 = vmatpush2.bf16.msra.mxu1 %v15718_v6 }
 0x781   :  { %6591 = vmatprep.subr.bf16.mxu0 %v15217_v29  ;;  %6632 = vmatprep.subr.bf16.mxu1 %v15219_v61 }
 0x7e3   :  { %v5515_v1 = vpop.f32.mrf.mxu0  ;;  %v5556_v8 = vpop.f32.mrf.mxu1 }
 0x7e4   :  { %v5516_v15 = vadd.f32 %v5515_v1, %v17763_v49  ;;  %v5557_v29 = vadd.f32 %v5556_v8, %v17765_v12  ;;  %v17827_v12 = vld [vmem:[#allocation49_spill] sm:$0xff] }
 0x7e5   :  { %v5517_v54 = vpop.f32.mrf.mxu0  ;;  %v5558_v4 = vpop.f32.mrf.mxu1 }
 0x7e6   :  { %v11102_v59 = vmul.f32 -1.442695, %v5516_v15  ;;  %v5518_v39 = vadd.f32 %v5517_v54, %v17764_v14  ;;  %v11104_v6 = vmul.f32 -1.442695, %v5557_v29  ;;  %v5559_v45 = vadd.f32 %v5558_v4, %v17766_v18 }
 0x7e7   :  { %v5519_v62 = vpop.f32.mrf.mxu0  ;;  %v5560_v53 = vpop.f32.mrf.mxu1 }
 0x7e8   :  { %12867 = vpow2.f32 %v11102_v59  ;;  %v11103_v58 = vmul.f32 -1.442695, %v5518_v39  ;;  %v17826_v39 = vld [vmem:[#allocation47_spill] sm:$0xff] }
 0x7e9   :  { %v5520_v16 = vpop.f32.mrf.mxu0  ;;  %v5561_v0 = vpop.f32.mrf.mxu1 }
 0x7ea   :  { %12869 = vpow2.f32 %v11103_v58 }
 0x7eb   :  { %12871 = vpow2.f32 %v11104_v6 }
 0x7f5   :  { %v12868_v61 = vpop.eup %12867 }
 0x7f6   :  { %v5572_v38 = vadd.f32 1.0, %v12868_v61 }
 0x7f7   :  { %v12870_v1 = vpop.eup %12869 }
 0x7f8   :  { %12873 = vrcp.f32 %v5572_v38  ;;  %v5573_v15 = vadd.f32 1.0, %v12870_v1  ;;  %v12872_v59 = vpop.eup %12871 }
 0x7f9   :  { %12875 = vtanh.f32 %v5559_v45  ;;  %v5574_v61 = vadd.f32 1.0, %v12872_v59 }
 0x7fa   :  { %12877 = vrcp.f32 %v5573_v15 }
 0x803   :  { %v5822_v54 = vpop.f32.mrf.mxu0  ;;  %v5863_v53 = vpop.f32.mrf.mxu1 }
 0x804   :  { %v5870_v16 = vadd.f32 %v5822_v54, %v17826_v39  ;;  %v17828_v54 = vld [vmem:[#allocation48_spill] sm:$0xff] }
 0x805   :  { %v12874_v0 = vpop.eup %12873  ;;  %v5824_v58 = vpop.f32.mrf.mxu0  ;;  %v5872_v39 = vadd.f32 %v5863_v53, %v17828_v54 }
 0x806   :  { %v5865_v62 = vpop.f32.mrf.mxu1  ;;  %v12876_v8 = vpop.eup %12875  ;;  %v11138_v29 = vmul.f32 -1.442695, %v5870_v16  ;;  %v5871_v14 = vadd.f32 %v5824_v58, %v17827_v12  ;;  %v17829_v16 = vld [vmem:[#allocation50_spill] sm:$0xff] }
 0x807   :  { %v12878_v4 = vpop.eup %12877  ;;  %v5826_v18 = vpop.f32.mrf.mxu0  ;;  %v5583_v45 = vmul.f32 %v12876_v8, %v12874_v0  ;;  %v11140_v12 = vmul.f32 -1.442695, %v5872_v39  ;;  %v5873_v59 = vadd.f32 %v5865_v62, %v17829_v16  ;;  %v17870_v16 = vld [vmem:[#allocation83_spill] sm:$0xff] }
 0x808   :  { %v5867_v6 = vpop.f32.mrf.mxu1  ;;  %v5582_v38 = vmul.f32 %v12878_v4, %v15230_v60  ;;  %12879 = vpow2.f32 %v11138_v29  ;;  %v11139_v1 = vmul.f32 -1.442695, %v5871_v14 }
 0x809   :  { %v5827_v15 = vpop.f32.mrf.mxu0 }
 0x80a   :  { %v5868_v49 = vpop.f32.mrf.mxu1  ;;  %v15733_v3 = vadd.f32 %v5583_v45, %v5582_v38  ;;  %12881 = vpow2.f32 %v11139_v1 }
 0x80b   :  { %12883 = vrcp.f32 %v5574_v61 }
 0x80c   :  { %12885 = vtanh.f32 %v15733_v3 }
 0x80d   :  { %12887 = vpow2.f32 %v11140_v12 }
 0x80e   :  { %12889 = vtanh.f32 %v5873_v59  ;;  %v17871_v59 = vld [vmem:[#allocation81_spill] sm:$0xff] }
 0x815   :  { %v12880_v18 = vpop.eup %12879 }
 0x816   :  { %v5883_v58 = vadd.f32 1.0, %v12880_v18  ;;  %v17872_v18 = vld [vmem:[#allocation82_spill] sm:$0xff] }
 0x817   :  { %v12882_v60 = vpop.eup %12881 }
 0x818   :  { %v12884_v0 = vpop.eup %12883  ;;  %12891 = vrcp.f32 %v5883_v58  ;;  %v5884_v14 = vadd.f32 1.0, %v12882_v60  ;;  %v17873_v58 = vld [vmem:[#allocation84_spill] sm:$0xff]  ;;  %v17874_v60 = vld [vmem:[#allocation85_spill] sm:$0xff] }
 0x819   :  { %v12886_v49 = vpop.eup %12885 }
 0x81a   :  { %12893 = vrcp.f32 %v5884_v14  ;;  %v5586_v8 = vmul.f32 %v12886_v49, %v12884_v0  ;;  %v12888_v53 = vpop.eup %12887  ;;  %v17875_v0 = vld [vmem:[#allocation86_spill] sm:$0xff]  ;;  %v17876_v14 = vld [vmem:[#allocation87_spill] sm:$0xff]  ;;  %v17877_v49 = vld [vmem:[#allocation88_spill] sm:$0xff] }
 0x81b   :  { %v12890_v62 = vpop.eup %12889  ;;  %v5885_v38 = vadd.f32 1.0, %v12888_v53  ;;  %v17880_v53 = vld [vmem:[#allocation91_spill] sm:$0xff] }
 0x81c   :  { %11105 = vst [vmem:[%s17119_s6 + $0x28] sm:$0xff] %v5586_v8  ;;  %v5899_v29 = vpack.c.bf16 %v5586_v8, %v5586_v8  ;;  %v17878_v8 = vld [vmem:[#allocation89_spill] sm:$0xff] }
 0x81d   :  { %12895 = vrcp.f32 %v5885_v38  ;;  %v15841_v38 = vld [vmem:[#allocation5 + $0xe4] ss:$16 sps:$4 sm:$0xff]  }
 0x81e   :  { %6316 = vmatprep.mubr.bf16.mxu0 %v5899_v29  ;;  %6357 = vmatprep.mubr.bf16.mxu1 %v5899_v29  ;;  %v17879_v29 = vld [vmem:[#allocation90_spill] sm:$0xff] }
 0x825   :  { %v12892_v4 = vpop.eup %12891 }
 0x826   :  { %v5894_v61 = vmul.f32 %v12892_v4, %v12890_v62  ;;  %v17881_v62 = vld [vmem:[#allocation92_spill] sm:$0xff]  ;;  %v17882_v4 = vld [vmem:[#allocation93_spill] sm:$0xff] }
 0x827   :  { %v12894_v6 = vpop.eup %12893 }
 0x828   :  { %v5893_v45 = vmul.f32 %v12894_v6, %v15239_v63  ;;  %v17830_v63 = vld [vmem:[#allocation110_spill] sm:$0xff]  ;;  %v17884_v6 = vld [vmem:[#allocation97_spill] sm:$0xff] }
 0x82a   :  { %v15742_v1 = vadd.f32 %v5894_v61, %v5893_v45  ;;  %v12896_v15 = vpop.eup %12895  ;;  %v17883_v61 = vld [vmem:[#allocation94_spill] sm:$0xff]  ;;  %v15843_v45 = vld [vmem:[#allocation5 + $0xec] ss:$16 sps:$4 sm:$0xff]  }
 0x82c   :  { %12897 = vtanh.f32 %v15742_v1 }
 0x839   :  { %v12898_v54 = vpop.eup %12897 }
 0x83a   :  { %v5897_v39 = vmul.f32 %v12898_v54, %v12896_v15 }
 0x83c   :  { %v5898_v12 = vpack.c.bf16 %v5897_v39, %v5897_v39  ;;  %v17885_v39 = vld [vmem:[#allocation13_spill] sm:$0xff] }
 0x83e   :  { %6317 = vmatmul.mubr.bf16.vlgmr.msra.gmra.mxu0 %v5898_v12  ;;  %6358 = vmatmul.mubr.bf16.vlgmr.msra.gmra.mxu1 %v5898_v12 }
 0x83f   :  { %6592 = vmatpush1.bf16.msra.mxu0 %v15242_v9  ;;  %6633 = vmatpush1.bf16.msra.mxu1 %v15244_v2  ;;  %v17831_v9 = vld [vmem:[#allocation111_spill] sm:$0xff]  ;;  %v17832_v2 = vld [vmem:[#allocation112_spill] sm:$0xff] }
 0x840   :  { %6593 = vmatprep.subr.bf16.mxu0 %v15248_v13  ;;  %6634 = vmatprep.subr.bf16.mxu1 %v15250_v7  ;;  %v17833_v13 = vld [vmem:[#allocation113_spill] sm:$0xff] }
 0x841   :  { %6623 = vmatprep.mubr.bf16.mxu0 %v17499_v10  ;;  %6664 = vmatprep.mubr.bf16.mxu1 %v17499_v10  ;;  %v17834_v7 = vld [vmem:[#allocation29_spill] sm:$0xff] }
 0x843   :  { %6594 = vmatpush1.bf16.msra.mxu0 %v15256_v11  ;;  %6635 = vmatpush1.bf16.msra.mxu1 %v15258_v17  ;;  %v17835_v11 = vld [vmem:[#allocation37_spill] sm:$0xff]  ;;  %v17836_v17 = vld [vmem:[#allocation35_spill] sm:$0xff] }
 0x844   :  { %6595 = vmatprep.subr.bf16.mxu0 %v15262_v19  ;;  %6636 = vmatprep.subr.bf16.mxu1 %v15264_v20  ;;  %v17837_v19 = vld [vmem:[#allocation36_spill] sm:$0xff]  ;;  %v17838_v20 = vld [vmem:[#allocation30_spill] sm:$0xff] }
 0x847   :  { %6596 = vmatpush1.bf16.msra.mxu0 %v15270_v22  ;;  %6637 = vmatpush1.bf16.msra.mxu1 %v15272_v23  ;;  %v17839_v22 = vld [vmem:[#allocation38_spill] sm:$0xff]  ;;  %v17840_v23 = vld [vmem:[#allocation39_spill] sm:$0xff] }
 0x848   :  { %6597 = vmatprep.subr.bf16.mxu0 %v15276_v24  ;;  %6638 = vmatprep.subr.bf16.mxu1 %v15278_v25  ;;  %v17841_v24 = vld [vmem:[#allocation41_spill] sm:$0xff]  ;;  %v17842_v25 = vld [vmem:[#allocation40_spill] sm:$0xff] }
 0x84b   :  { %6598 = vmatpush1.bf16.msra.mxu0 %v15282_v26  ;;  %6639 = vmatpush1.bf16.msra.mxu1 %v15284_v27  ;;  %v17843_v26 = vld [vmem:[#allocation42_spill] sm:$0xff]  ;;  %v17844_v27 = vld [vmem:[#allocation31_spill] sm:$0xff] }
 0x84c   :  { %6599 = vmatprep.subr.bf16.mxu0 %v15288_v30  ;;  %6640 = vmatprep.subr.bf16.mxu1 %v15290_v31  ;;  %v17845_v30 = vld [vmem:[#allocation33_spill] sm:$0xff]  ;;  %v17846_v31 = vld [vmem:[#allocation32_spill] sm:$0xff] }
 0x84f   :  { %6600 = vmatpush1.bf16.msra.mxu0 %v15294_v32  ;;  %6641 = vmatpush1.bf16.msra.mxu1 %v15296_v34  ;;  %v17847_v32 = vld [vmem:[#allocation34_spill] sm:$0xff]  ;;  %v17848_v34 = vld [vmem:[#allocation17_spill] sm:$0xff] }
 0x850   :  { %6601 = vmatprep.subr.bf16.mxu0 %v15300_v36  ;;  %6642 = vmatprep.subr.bf16.mxu1 %v15302_v48  ;;  %v17849_v36 = vld [vmem:[#allocation18_spill] sm:$0xff]  ;;  %v17850_v48 = vld [vmem:[#allocation19_spill] sm:$0xff] }
 0x853   :  { %6602 = vmatpush1.bf16.msra.mxu0 %v15306_v43  ;;  %6643 = vmatpush1.bf16.msra.mxu1 %v15308_v46  ;;  %v17851_v43 = vld [vmem:[#allocation20_spill] sm:$0xff]  ;;  %v17852_v46 = vld [vmem:[#allocation21_spill] sm:$0xff] }
 0x854   :  { %6603 = vmatprep.subr.bf16.mxu0 %v15312_v21  ;;  %6644 = vmatprep.subr.bf16.mxu1 %v15314_v40  ;;  %v17853_v21 = vld [vmem:[#allocation22_spill] sm:$0xff]  ;;  %v17854_v40 = vld [vmem:[#allocation23_spill] sm:$0xff] }
 0x857   :  { %6604 = vmatpush1.bf16.msra.mxu0 %v15318_v35  ;;  %6645 = vmatpush1.bf16.msra.mxu1 %v15320_v33  ;;  %v17855_v35 = vld [vmem:[#allocation24_spill] sm:$0xff]  ;;  %v17856_v33 = vld [vmem:[#allocation27_spill] sm:$0xff] }
 0x858   :  { %6605 = vmatprep.subr.bf16.mxu0 %v15324_v50  ;;  %6646 = vmatprep.subr.bf16.mxu1 %v15326_v28  ;;  %v17857_v50 = vld [vmem:[#allocation25_spill] sm:$0xff]  ;;  %v17858_v28 = vld [vmem:[#allocation26_spill] sm:$0xff] }
 0x85b   :  { %6606 = vmatpush1.bf16.msra.mxu0 %v15330_v41  ;;  %6647 = vmatpush1.bf16.msra.mxu1 %v15332_v37  ;;  %v17859_v41 = vld [vmem:[#allocation28_spill] sm:$0xff]  ;;  %v17860_v37 = vld [vmem:[#allocation71_spill] sm:$0xff] }
 0x85c   :  { %7087 = vmatprep.subr.bf16.mxu0 %v15343_v55  ;;  %7128 = vmatprep.subr.bf16.mxu1 %v15348_v47  ;;  %v17861_v55 = vld [vmem:[#allocation72_spill] sm:$0xff]  ;;  %v17862_v47 = vld [vmem:[#allocation73_spill] sm:$0xff] }
 0x85e   :  { %6624 = vmatmul.mubr.bf16.vlgmr.msra.gmra.mxu0 %v5898_v12  ;;  %6665 = vmatmul.mubr.bf16.vlgmr.msra.gmra.mxu1 %v5898_v12 }
 0x85f   :  { %7088 = vmatpush1.bf16.msra.mxu0 %v15353_v5  ;;  %7129 = vmatpush1.bf16.msra.mxu1 %v15358_v57  ;;  %v17863_v5 = vld [vmem:[#allocation74_spill] sm:$0xff]  ;;  %v17864_v57 = vld [vmem:[#allocation75_spill] sm:$0xff] }
 0x860   :  { %7089 = vmatprep.subr.bf16.mxu0 %v15367_v52  ;;  %7130 = vmatprep.subr.bf16.mxu1 %v15372_v51  ;;  %v17865_v52 = vld [vmem:[#allocation76_spill] sm:$0xff]  ;;  %v17866_v51 = vld [vmem:[#allocation77_spill] sm:$0xff] }
 0x863   :  { %7090 = vmatpush1.bf16.msra.mxu0 %v15377_v56  ;;  %7131 = vmatpush1.bf16.msra.mxu1 %v15382_v42  ;;  %v17867_v56 = vld [vmem:[#allocation78_spill] sm:$0xff]  ;;  %v17868_v42 = vld [vmem:[#allocation79_spill] sm:$0xff] }
 0x864   :  { %7091 = vmatprep.subr.bf16.mxu0 %v15391_v44  ;;  %7132 = vmatprep.subr.bf16.mxu1 %v17830_v63  ;;  %v17869_v44 = vld [vmem:[#allocation80_spill] sm:$0xff] }
 0x867   :  { %7092 = vmatpush1.bf16.msra.mxu0 %v17831_v9  ;;  %7133 = vmatpush1.bf16.msra.mxu1 %v17832_v2 }
 0x868   :  { %7093 = vmatprep.subr.bf16.mxu0 %v17833_v13  ;;  %7134 = vmatprep.subr.bf16.mxu1 %v17834_v7  ;;  %v17886_v13 = vld [vmem:[#allocation14_spill] sm:$0xff] }
 0x86b   :  { %7094 = vmatpush1.bf16.msra.mxu0 %v17835_v11  ;;  %7135 = vmatpush1.bf16.msra.mxu1 %v17836_v17 }
 0x86c   :  { %7095 = vmatprep.subr.bf16.mxu0 %v17837_v19  ;;  %7136 = vmatprep.subr.bf16.mxu1 %v17838_v20 }
 0x86f   :  { %7096 = vmatpush1.bf16.msra.mxu0 %v17839_v22  ;;  %7137 = vmatpush1.bf16.msra.mxu1 %v17840_v23  ;;  %v17887_v23 = vld [vmem:[#allocation15_spill] sm:$0xff] }
 0x870   :  { %7097 = vmatprep.subr.bf16.mxu0 %v17841_v24  ;;  %7138 = vmatprep.subr.bf16.mxu1 %v17842_v25 }
 0x873   :  { %7098 = vmatpush1.bf16.msra.mxu0 %v17843_v26  ;;  %7139 = vmatpush1.bf16.msra.mxu1 %v17844_v27  ;;  %v17888_v27 = vld [vmem:[#allocation16_spill] sm:$0xff] }
 0x874   :  { %7099 = vmatprep.subr.bf16.mxu0 %v17845_v30  ;;  %7140 = vmatprep.subr.bf16.mxu1 %v17846_v31 }
 0x877   :  { %7100 = vmatpush1.bf16.msra.mxu0 %v17847_v32  ;;  %7141 = vmatpush1.bf16.msra.mxu1 %v17848_v34 }
 0x878   :  { %7101 = vmatprep.subr.bf16.mxu0 %v17849_v36  ;;  %7142 = vmatprep.subr.bf16.mxu1 %v17850_v48 }
 0x87b   :  { %7102 = vmatpush1.bf16.msra.mxu0 %v17851_v43  ;;  %7143 = vmatpush1.bf16.msra.mxu1 %v17852_v46  ;;  %v17889_v46 = vld [vmem:[#allocation51_spill] sm:$0xff] }
 0x87c   :  { %7103 = vmatprep.subr.bf16.mxu0 %v17853_v21  ;;  %7144 = vmatprep.subr.bf16.mxu1 %v17854_v40 }
 0x87f   :  { %7104 = vmatpush2.bf16.msra.mxu0 %v17855_v35  ;;  %7145 = vmatpush2.bf16.msra.mxu1 %v17856_v33 }
 0x880   :  { %7105 = vmatprep.subr.bf16.mxu0 %v17857_v50  ;;  %7146 = vmatprep.subr.bf16.mxu1 %v17858_v28 }
 0x883   :  { %7106 = vmatpush2.bf16.msra.mxu0 %v17859_v41  ;;  %7147 = vmatpush2.bf16.msra.mxu1 %v17860_v37  ;;  %v17890_v41 = vld [vmem:[#allocation53_spill] sm:$0xff] }
 0x884   :  { %7107 = vmatprep.subr.bf16.mxu0 %v17861_v55  ;;  %7148 = vmatprep.subr.bf16.mxu1 %v17862_v47 }
 0x887   :  { %7108 = vmatpush2.bf16.msra.mxu0 %v17863_v5  ;;  %7149 = vmatpush2.bf16.msra.mxu1 %v17864_v57 }
 0x888   :  { %7109 = vmatprep.subr.bf16.mxu0 %v17865_v52  ;;  %7150 = vmatprep.subr.bf16.mxu1 %v17866_v51 }
 0x88b   :  { %7110 = vmatpush2.bf16.msra.mxu0 %v17867_v56  ;;  %7151 = vmatpush2.bf16.msra.mxu1 %v17868_v42 }
 0x88c   :  { %7111 = vmatprep.subr.bf16.mxu0 %v17869_v44  ;;  %7152 = vmatprep.subr.bf16.mxu1 %v17870_v16 }
 0x88f   :  { %7112 = vmatpush2.bf16.msra.mxu0 %v17871_v59  ;;  %7153 = vmatpush2.bf16.msra.mxu1 %v17872_v18  ;;  %v17891_v59 = vld [vmem:[#allocation52_spill] sm:$0xff] }
 0x890   :  { %7113 = vmatprep.subr.bf16.mxu0 %v17873_v58  ;;  %7154 = vmatprep.subr.bf16.mxu1 %v17874_v60  ;;  %v17892_v60 = vld [vmem:[#allocation54_spill] sm:$0xff] }
 0x893   :  { %7114 = vmatpush2.bf16.msra.mxu0 %v17875_v0  ;;  %7155 = vmatpush2.bf16.msra.mxu1 %v17876_v14 }
 0x894   :  { %7115 = vmatprep.subr.bf16.mxu0 %v17877_v49  ;;  %7156 = vmatprep.subr.bf16.mxu1 %v17878_v8 }
 0x897   :  { %7116 = vmatpush2.bf16.msra.mxu0 %v17879_v29  ;;  %7157 = vmatpush2.bf16.msra.mxu1 %v17880_v53 }
 0x898   :  { %7117 = vmatprep.subr.bf16.mxu0 %v17881_v62  ;;  %7158 = vmatprep.subr.bf16.mxu1 %v17882_v4 }
 0x89b   :  { %7118 = vmatpush2.bf16.msra.mxu0 %v17883_v61  ;;  %7159 = vmatpush2.bf16.msra.mxu1 %v17884_v6 }
 0x89c   :  { %7394 = vmatprep.subr.bf16.mxu0 %v15841_v38  ;;  %7435 = vmatprep.subr.bf16.mxu1 %v15843_v45 }
 0x8fe   :  { %v6318_v15 = vpop.f32.mrf.mxu0  ;;  %v6359_v54 = vpop.f32.mrf.mxu1 }
 0x8ff   :  { %v6319_v12 = vadd.f32 %v6318_v15, %v17885_v39  ;;  %v6360_v24 = vadd.f32 %v6359_v54, %v17887_v23 }
 0x900   :  { %v6320_v63 = vpop.f32.mrf.mxu0  ;;  %v6361_v9 = vpop.f32.mrf.mxu1 }
 0x901   :  { %v11205_v2 = vmul.f32 -1.442695, %v6319_v12  ;;  %v6321_v7 = vadd.f32 %v6320_v63, %v17886_v13  ;;  %v11207_v25 = vmul.f32 -1.442695, %v6360_v24  ;;  %v6362_v30 = vadd.f32 %v6361_v9, %v17888_v27  ;;  %v15872_v24 = vld [vmem:[#allocation5 + $0xc4] ss:$16 sps:$4 sm:$0xff]  }
 0x902   :  { %v6322_v11 = vpop.f32.mrf.mxu0  ;;  %v6363_v17 = vpop.f32.mrf.mxu1 }
 0x903   :  { %12899 = vpow2.f32 %v11205_v2  ;;  %v11206_v19 = vmul.f32 -1.442695, %v6321_v7 }
 0x904   :  { %v6323_v20 = vpop.f32.mrf.mxu0  ;;  %v6364_v22 = vpop.f32.mrf.mxu1 }
 0x905   :  { %12901 = vpow2.f32 %v11206_v19  ;;  %v15866_v19 = vld [vmem:[#allocation5 + $0xe0] ss:$16 sps:$4 sm:$0xff]   ;;  %v15868_v20 = vld [vmem:[#allocation5 + $0xe8] ss:$16 sps:$4 sm:$0xff]  }
 0x906   :  { %12903 = vpow2.f32 %v11207_v25  ;;  %v15874_v25 = vld [vmem:[#allocation5 + $0xcc] ss:$16 sps:$4 sm:$0xff]  }
 0x910   :  { %v12900_v26 = vpop.eup %12899 }
 0x911   :  { %v6375_v31 = vadd.f32 1.0, %v12900_v26  ;;  %v15882_v26 = vld [vmem:[#allocation5 + $0xc8] ss:$16 sps:$4 sm:$0xff]  }
 0x912   :  { %v12902_v32 = vpop.eup %12901 }
 0x913   :  { %12905 = vrcp.f32 %v6375_v31  ;;  %v6376_v34 = vadd.f32 1.0, %v12902_v32  ;;  %v12904_v43 = vpop.eup %12903  ;;  %v15888_v31 = vld [vmem:[#allocation5 + $0xac] ss:$16 sps:$4 sm:$0xff]   ;;  %v15894_v32 = vld [vmem:[#allocation5 + $0xa0] ss:$16 sps:$4 sm:$0xff]  }
 0x914   :  { %12907 = vtanh.f32 %v6362_v30  ;;  %v6377_v47 = vadd.f32 1.0, %v12904_v43  ;;  %v15886_v30 = vld [vmem:[#allocation5 + $0xa4] ss:$16 sps:$4 sm:$0xff]   ;;  %v15906_v43 = vld [vmem:[#allocation5 + $0x80] ss:$16 sps:$4 sm:$0xff]  }
 0x915   :  { %12909 = vrcp.f32 %v6376_v34  ;;  %v15896_v34 = vld [vmem:[#allocation5 + $0xa8] ss:$16 sps:$4 sm:$0xff]  }
 0x91e   :  { %v6625_v36 = vpop.f32.mrf.mxu0  ;;  %v6666_v48 = vpop.f32.mrf.mxu1 }
 0x91f   :  { %v6673_v21 = vadd.f32 %v6625_v36, %v17889_v46  ;;  %v6675_v18 = vadd.f32 %v6666_v48, %v17891_v59  ;;  %v15900_v36 = vld [vmem:[#allocation5 + $0x84] ss:$16 sps:$4 sm:$0xff]   ;;  %v15902_v48 = vld [vmem:[#allocation5 + $0x8c] ss:$16 sps:$4 sm:$0xff]   ;;  %v15908_v46 = vld [vmem:[#allocation5 + $0x88] ss:$16 sps:$4 sm:$0xff]  }
 0x920   :  { %v12906_v40 = vpop.eup %12905  ;;  %v6627_v35 = vpop.f32.mrf.mxu0  ;;  %v15972_v59 = vld [vmem:[%s17117_s4 + $0xec] ss:$16 sps:$4 sm:$0xff]  }
 0x921   :  { %v6668_v33 = vpop.f32.mrf.mxu1  ;;  %v12908_v50 = vpop.eup %12907  ;;  %v11241_v28 = vmul.f32 -1.442695, %v6673_v21  ;;  %v6674_v37 = vadd.f32 %v6627_v35, %v17890_v41  ;;  %v11243_v58 = vmul.f32 -1.442695, %v6675_v18  ;;  %v15912_v21 = vld [vmem:[#allocation5 + $0x64] ss:$16 sps:$4 sm:$0xff]  }
 0x922   :  { %v12910_v55 = vpop.eup %12909  ;;  %v6629_v5 = vpop.f32.mrf.mxu0  ;;  %v6386_v51 = vmul.f32 %v12908_v50, %v12906_v40  ;;  %v6676_v0 = vadd.f32 %v6668_v33, %v17892_v60  ;;  %v15914_v40 = vld [vmem:[#allocation5 + $0x6c] ss:$16 sps:$4 sm:$0xff]   ;;  %v15918_v35 = vld [vmem:[#allocation5 + $0x60] ss:$16 sps:$4 sm:$0xff]   ;;  %v15920_v33 = vld [vmem:[#allocation5 + $0x68] ss:$16 sps:$4 sm:$0xff]  }
 0x923   :  { %v6670_v57 = vpop.f32.mrf.mxu1  ;;  %v6385_v52 = vmul.f32 %v12910_v55, %v15733_v3  ;;  %12911 = vpow2.f32 %v11241_v28  ;;  %v11242_v56 = vmul.f32 -1.442695, %v6674_v37  ;;  %v15924_v50 = vld [vmem:[#allocation5 + $0x44] ss:$16 sps:$4 sm:$0xff]   ;;  %v15926_v28 = vld [vmem:[#allocation5 + $0x4c] ss:$16 sps:$4 sm:$0xff]  }
 0x924   :  { %v6630_v42 = vpop.f32.mrf.mxu0  ;;  %v15930_v41 = vld [vmem:[#allocation5 + $0x40] ss:$16 sps:$4 sm:$0xff]   ;;  %v15932_v37 = vld [vmem:[#allocation5 + $0x48] ss:$16 sps:$4 sm:$0xff]   ;;  %v15936_v55 = vld [vmem:[#allocation5 + $0x24] ss:$16 sps:$4 sm:$0xff]  }
 0x925   :  { %v6671_v44 = vpop.f32.mrf.mxu1  ;;  %v15854_v16 = vadd.f32 %v6386_v51, %v6385_v52  ;;  %12913 = vpow2.f32 %v11242_v56  ;;  %v15942_v5 = vld [vmem:[#allocation5 + $0x20] ss:$16 sps:$4 sm:$0xff]   ;;  %v15944_v57 = vld [vmem:[#allocation5 + $0x28] ss:$16 sps:$4 sm:$0xff]   ;;  %v15948_v52 = vld [vmem:[#allocation5 + $0x4] ss:$16 sps:$4 sm:$0xff]  }
 0x926   :  { %12915 = vrcp.f32 %v6377_v47  ;;  %v15938_v47 = vld [vmem:[#allocation5 + $0x2c] ss:$16 sps:$4 sm:$0xff]   ;;  %v15954_v56 = vld [vmem:[#allocation5] ss:$16 sps:$4 sm:$0xff]   ;;  %v15956_v42 = vld [vmem:[#allocation5 + $0x8] ss:$16 sps:$4 sm:$0xff]  }
 0x927   :  { %12917 = vtanh.f32 %v15854_v16  ;;  %v15950_v51 = vld [vmem:[#allocation5 + $0xc] ss:$16 sps:$4 sm:$0xff]   ;;  %v15967_v44 = vld [vmem:[%s17117_s4 + $0xe4] ss:$16 sps:$4 sm:$0xff]   ;;  %v15977_v18 = vld [vmem:[%s17117_s4 + $0xe0] ss:$16 sps:$4 sm:$0xff]  }
 0x928   :  { %12919 = vpow2.f32 %v11243_v58  ;;  %v15982_v58 = vld [vmem:[%s17117_s4 + $0xe8] ss:$16 sps:$4 sm:$0xff]   ;;  %v15991_v60 = vld [vmem:[%s17117_s4 + $0xc4] ss:$16 sps:$4 sm:$0xff]  }
 0x929   :  { %12921 = vtanh.f32 %v6676_v0  ;;  %v15996_v0 = vld [vmem:[%s17117_s4 + $0xcc] ss:$16 sps:$4 sm:$0xff]  }
 0x930   :  { %v12912_v14 = vpop.eup %12911 }
 0x931   :  { %v6686_v49 = vadd.f32 1.0, %v12912_v14  ;;  %v16001_v14 = vld [vmem:[%s17117_s4 + $0xc0] ss:$16 sps:$4 sm:$0xff]  }
 0x932   :  { %v12914_v3 = vpop.eup %12913 }
 0x933   :  { %v12916_v8 = vpop.eup %12915  ;;  %12923 = vrcp.f32 %v6686_v49  ;;  %v6687_v29 = vadd.f32 1.0, %v12914_v3  ;;  %v16006_v49 = vld [vmem:[%s17117_s4 + $0xc8] ss:$16 sps:$4 sm:$0xff]   ;;  %v16015_v3 = vld [vmem:[%s17117_s4 + $0xa4] ss:$16 sps:$4 sm:$0xff]  }
 0x934   :  { %v12918_v53 = vpop.eup %12917 }
 0x935   :  { %12925 = vrcp.f32 %v6687_v29  ;;  %v6389_v62 = vmul.f32 %v12918_v53, %v12916_v8  ;;  %v12920_v61 = vpop.eup %12919  ;;  %v16020_v8 = vld [vmem:[%s17117_s4 + $0xac] ss:$16 sps:$4 sm:$0xff]   ;;  %v16025_v29 = vld [vmem:[%s17117_s4 + $0xa0] ss:$16 sps:$4 sm:$0xff]   ;;  %v16030_v53 = vld [vmem:[%s17117_s4 + $0xa8] ss:$16 sps:$4 sm:$0xff]  }
 0x936   :  { %v12922_v6 = vpop.eup %12921  ;;  %v6688_v63 = vadd.f32 1.0, %v12920_v61  ;;  %17893 = vst [vmem:[#allocation95_spill] sm:$0xff] %v16020_v8  ;;  %17894 = vst [vmem:[#allocation96_spill] sm:$0xff] %v16025_v29  ;;  %v16049_v61 = vld [vmem:[%s17117_s4 + $0x80] ss:$16 sps:$4 sm:$0xff]  }
 0x937   :  { %11208 = vst [vmem:[%s17119_s6 + $0x30] sm:$0xff] %v6389_v62  ;;  %v6702_v4 = vpack.c.bf16 %v6389_v62, %v6389_v62  ;;  %17895 = vst [vmem:[#allocation98_spill] sm:$0xff] %v16030_v53  ;;  %v16039_v62 = vld [vmem:[%s17117_s4 + $0x84] ss:$16 sps:$4 sm:$0xff]  }
 0x938   :  { %12927 = vrcp.f32 %v6688_v63  ;;  %17896 = vst [vmem:[#allocation101_spill] sm:$0xff] %v16039_v62  ;;  %17898 = vst [vmem:[#allocation100_spill] sm:$0xff] %v16049_v61  ;;  %v16078_v63 = vld [vmem:[%s17117_s4 + $0x68] ss:$16 sps:$4 sm:$0xff]  }
 0x939   :  { %7119 = vmatprep.mubr.bf16.mxu0 %v6702_v4  ;;  %7160 = vmatprep.mubr.bf16.mxu1 %v6702_v4  ;;  %v16044_v4 = vld [vmem:[%s17117_s4 + $0x8c] ss:$16 sps:$4 sm:$0xff]   ;;  %17903 = vst [vmem:[#allocation106_spill] sm:$0xff] %v16078_v63 }
 0x93a   :  { %17897 = vst [vmem:[#allocation99_spill] sm:$0xff] %v16044_v4 }
 0x940   :  { %v12924_v15 = vpop.eup %12923 }
 0x941   :  { %v6697_v54 = vmul.f32 %v12924_v15, %v12922_v6  ;;  %v16054_v6 = vld [vmem:[%s17117_s4 + $0x88] ss:$16 sps:$4 sm:$0xff]   ;;  %v16063_v15 = vld [vmem:[%s17117_s4 + $0x64] ss:$16 sps:$4 sm:$0xff]  }
 0x942   :  { %v12926_v12 = vpop.eup %12925  ;;  %17899 = vst [vmem:[#allocation102_spill] sm:$0xff] %v16054_v6  ;;  %17900 = vst [vmem:[#allocation103_spill] sm:$0xff] %v16063_v15 }
 0x943   :  { %v6696_v9 = vmul.f32 %v12926_v12, %v15742_v1  ;;  %v15880_v1 = vld [vmem:[#allocation5 + $0xc0] ss:$16 sps:$4 sm:$0xff]  }
 0x944   :  { %v16073_v12 = vld [vmem:[%s17117_s4 + $0x60] ss:$16 sps:$4 sm:$0xff]  }
 0x945   :  { %v15863_v2 = vadd.f32 %v6697_v54, %v6696_v9  ;;  %v12928_v7 = vpop.eup %12927  ;;  %v16068_v54 = vld [vmem:[%s17117_s4 + $0x6c] ss:$16 sps:$4 sm:$0xff]   ;;  %17902 = vst [vmem:[#allocation105_spill] sm:$0xff] %v16073_v12  ;;  %v16087_v9 = vld [vmem:[%s17117_s4 + $0x44] ss:$16 sps:$4 sm:$0xff]  }
 0x946   :  { %17901 = vst [vmem:[#allocation104_spill] sm:$0xff] %v16068_v54  ;;  %17904 = vst [vmem:[#allocation107_spill] sm:$0xff] %v16087_v9 }
 0x947   :  { %12929 = vtanh.f32 %v15863_v2 }
 0x954   :  { %v12930_v11 = vpop.eup %12929 }
 0x955   :  { %v6700_v17 = vmul.f32 %v12930_v11, %v12928_v7  ;;  %v16092_v7 = vld [vmem:[%s17117_s4 + $0x4c] ss:$16 sps:$4 sm:$0xff]   ;;  %v16097_v11 = vld [vmem:[%s17117_s4 + $0x40] ss:$16 sps:$4 sm:$0xff]  }
 0x956   :  { %17905 = vst [vmem:[#allocation108_spill] sm:$0xff] %v16092_v7  ;;  %17906 = vst [vmem:[#allocation109_spill] sm:$0xff] %v16097_v11 }
 0x957   :  { %v15870_v22 = vpack.c.bf16 %v6700_v17, %v6700_v17  ;;  %v16102_v17 = vld [vmem:[%s17117_s4 + $0x48] ss:$16 sps:$4 sm:$0xff]  }
 0x958   :  { %17907 = vst [vmem:[#allocation43_spill] sm:$0xff] %v16102_v17 }
 0x959   :  { %7120 = vmatmul.mubr.bf16.vlgmr.msra.gmra.mxu0 %v15870_v22  ;;  %7161 = vmatmul.mubr.bf16.vlgmr.msra.gmra.mxu1 %v15870_v22 }
 0x95a   :  { %7395 = vmatpush1.bf16.msra.mxu0 %v15866_v19  ;;  %7436 = vmatpush1.bf16.msra.mxu1 %v15868_v20 }
 0x95b   :  { %7396 = vmatprep.subr.bf16.mxu0 %v15872_v24  ;;  %7437 = vmatprep.subr.bf16.mxu1 %v15874_v25 }
 0x95c   :  { %7426 = vmatprep.mubr.bf16.mxu0 %v17499_v10  ;;  %7467 = vmatprep.mubr.bf16.mxu1 %v17499_v10 }
 0x95e   :  { %7397 = vmatpush1.bf16.msra.mxu0 %v15880_v1  ;;  %7438 = vmatpush1.bf16.msra.mxu1 %v15882_v26 }
 0x95f   :  { %7398 = vmatprep.subr.bf16.mxu0 %v15886_v30  ;;  %7439 = vmatprep.subr.bf16.mxu1 %v15888_v31 }
 0x962   :  { %7399 = vmatpush1.bf16.msra.mxu0 %v15894_v32  ;;  %7440 = vmatpush1.bf16.msra.mxu1 %v15896_v34 }
 0x963   :  { %7400 = vmatprep.subr.bf16.mxu0 %v15900_v36  ;;  %7441 = vmatprep.subr.bf16.mxu1 %v15902_v48 }
 0x966   :  { %7401 = vmatpush1.bf16.msra.mxu0 %v15906_v43  ;;  %7442 = vmatpush1.bf16.msra.mxu1 %v15908_v46 }
 0x967   :  { %7402 = vmatprep.subr.bf16.mxu0 %v15912_v21  ;;  %7443 = vmatprep.subr.bf16.mxu1 %v15914_v40 }
 0x96a   :  { %7403 = vmatpush1.bf16.msra.mxu0 %v15918_v35  ;;  %7444 = vmatpush1.bf16.msra.mxu1 %v15920_v33 }
 0x96b   :  { %7404 = vmatprep.subr.bf16.mxu0 %v15924_v50  ;;  %7445 = vmatprep.subr.bf16.mxu1 %v15926_v28 }
 0x96e   :  { %7405 = vmatpush1.bf16.msra.mxu0 %v15930_v41  ;;  %7446 = vmatpush1.bf16.msra.mxu1 %v15932_v37 }
 0x96f   :  { %7406 = vmatprep.subr.bf16.mxu0 %v15936_v55  ;;  %7447 = vmatprep.subr.bf16.mxu1 %v15938_v47 }
 0x972   :  { %7407 = vmatpush1.bf16.msra.mxu0 %v15942_v5  ;;  %7448 = vmatpush1.bf16.msra.mxu1 %v15944_v57 }
 0x973   :  { %7408 = vmatprep.subr.bf16.mxu0 %v15948_v52  ;;  %7449 = vmatprep.subr.bf16.mxu1 %v15950_v51 }
 0x976   :  { %7409 = vmatpush1.bf16.msra.mxu0 %v15954_v56  ;;  %7450 = vmatpush1.bf16.msra.mxu1 %v15956_v42 }
 0x977   :  { %7890 = vmatprep.subr.bf16.mxu0 %v15967_v44  ;;  %7931 = vmatprep.subr.bf16.mxu1 %v15972_v59 }
 0x979   :  { %7427 = vmatmul.mubr.bf16.vlgmr.msra.gmra.mxu0 %v15870_v22  ;;  %7468 = vmatmul.mubr.bf16.vlgmr.msra.gmra.mxu1 %v15870_v22  ;;  %v16111_v22 = vld [vmem:[%s17117_s4 + $0x24] ss:$16 sps:$4 sm:$0xff]  }
 0x97a   :  { %7891 = vmatpush1.bf16.msra.mxu0 %v15977_v18  ;;  %7932 = vmatpush1.bf16.msra.mxu1 %v15982_v58  ;;  %17908 = vst [vmem:[#allocation45_spill] sm:$0xff] %v16111_v22 }
 0x97b   :  { %7892 = vmatprep.subr.bf16.mxu0 %v15991_v60  ;;  %7933 = vmatprep.subr.bf16.mxu1 %v15996_v0 }
 0x97e   :  { %7893 = vmatpush1.bf16.msra.mxu0 %v16001_v14  ;;  %7934 = vmatpush1.bf16.msra.mxu1 %v16006_v49 }
 0x97f   :  { %7894 = vmatprep.subr.bf16.mxu0 %v16015_v3  ;;  %7935 = vmatprep.subr.bf16.mxu1 %v16020_v8 }
 0x982   :  { %7895 = vmatpush1.bf16.msra.mxu0 %v16025_v29  ;;  %7936 = vmatpush1.bf16.msra.mxu1 %v16030_v53 }
 0x983   :  { %7896 = vmatprep.subr.bf16.mxu0 %v16039_v62  ;;  %7937 = vmatprep.subr.bf16.mxu1 %v16044_v4 }
 0x986   :  { %7897 = vmatpush1.bf16.msra.mxu0 %v16049_v61  ;;  %7938 = vmatpush1.bf16.msra.mxu1 %v16054_v6 }
 0x987   :  { %7898 = vmatprep.subr.bf16.mxu0 %v16063_v15  ;;  %7939 = vmatprep.subr.bf16.mxu1 %v16068_v54 }
 0x98a   :  { %7899 = vmatpush1.bf16.msra.mxu0 %v16073_v12  ;;  %7940 = vmatpush1.bf16.msra.mxu1 %v16078_v63  ;;  %v16116_v63 = vld [vmem:[%s17117_s4 + $0x2c] ss:$16 sps:$4 sm:$0xff]   ;;  %v16294_v12 = vld [vmem:[%s17117_s4 + $0x148] ss:$16 sps:$4 sm:$0xff]  }
 0x98b   :  { %7900 = vmatprep.subr.bf16.mxu0 %v16087_v9  ;;  %7941 = vmatprep.subr.bf16.mxu1 %v16092_v7  ;;  %17909 = vst [vmem:[#allocation44_spill] sm:$0xff] %v16116_v63  ;;  %v16121_v9 = vld [vmem:[%s17117_s4 + $0x20] ss:$16 sps:$4 sm:$0xff]   ;;  %v16140_v7 = vld [vmem:[%s17117_s4 + $0xc] ss:$16 sps:$4 sm:$0xff]   ;;  %17939 = vst [vmem:[#allocation23_spill] sm:$0xff] %v16294_v12 }
 0x98c   :  { %17910 = vst [vmem:[#allocation46_spill] sm:$0xff] %v16121_v9  ;;  %17913 = vst [vmem:[#allocation48_spill] sm:$0xff] %v16140_v7 }
 0x98e   :  { %7901 = vmatpush1.bf16.msra.mxu0 %v16097_v11  ;;  %7942 = vmatpush1.bf16.msra.mxu1 %v16102_v17  ;;  %v16126_v11 = vld [vmem:[%s17117_s4 + $0x28] ss:$16 sps:$4 sm:$0xff]   ;;  %v16135_v17 = vld [vmem:[%s17117_s4 + $0x4] ss:$16 sps:$4 sm:$0xff]  }
 0x98f   :  { %17911 = vst [vmem:[#allocation47_spill] sm:$0xff] %v16126_v11  ;;  %7902 = vmatprep.subr.bf16.mxu0 %v16111_v22  ;;  %7943 = vmatprep.subr.bf16.mxu1 %v16116_v63  ;;  %17912 = vst [vmem:[#allocation49_spill] sm:$0xff] %v16135_v17  ;;  %v16145_v22 = vld [vmem:[%s17117_s4] ss:$16 sps:$4 sm:$0xff]   ;;  %v16164_v63 = vld [vmem:[%s17117_s4 + $0x1ec] ss:$16 sps:$4 sm:$0xff]  }
 0x990   :  { %17914 = vst [vmem:[#allocation50_spill] sm:$0xff] %v16145_v22  ;;  %17917 = vst [vmem:[#allocation112_spill] sm:$0xff] %v16164_v63 }
 0x992   :  { %7903 = vmatpush1.bf16.msra.mxu0 %v16121_v9  ;;  %7944 = vmatpush1.bf16.msra.mxu1 %v16126_v11  ;;  %v16150_v9 = vld [vmem:[%s17117_s4 + $0x8] ss:$16 sps:$4 sm:$0xff]   ;;  %v16159_v11 = vld [vmem:[%s17117_s4 + $0x1e4] ss:$16 sps:$4 sm:$0xff]  }
 0x993   :  { %17915 = vst [vmem:[#allocation110_spill] sm:$0xff] %v16150_v9  ;;  %7904 = vmatprep.subr.bf16.mxu0 %v16135_v17  ;;  %7945 = vmatprep.subr.bf16.mxu1 %v16140_v7  ;;  %17916 = vst [vmem:[#allocation111_spill] sm:$0xff] %v16159_v11  ;;  %v16169_v17 = vld [vmem:[%s17117_s4 + $0x1e0] ss:$16 sps:$4 sm:$0xff]   ;;  %v16188_v7 = vld [vmem:[%s17117_s4 + $0x1cc] ss:$16 sps:$4 sm:$0xff]  }
 0x994   :  { %17918 = vst [vmem:[#allocation113_spill] sm:$0xff] %v16169_v17  ;;  %17921 = vst [vmem:[#allocation35_spill] sm:$0xff] %v16188_v7 }
 0x996   :  { %7905 = vmatpush1.bf16.msra.mxu0 %v16145_v22  ;;  %7946 = vmatpush1.bf16.msra.mxu1 %v16150_v9  ;;  %v16174_v22 = vld [vmem:[%s17117_s4 + $0x1e8] ss:$16 sps:$4 sm:$0xff]   ;;  %v16183_v9 = vld [vmem:[%s17117_s4 + $0x1c4] ss:$16 sps:$4 sm:$0xff]  }
 0x997   :  { %17919 = vst [vmem:[#allocation29_spill] sm:$0xff] %v16174_v22  ;;  %7906 = vmatprep.subr.bf16.mxu0 %v16159_v11  ;;  %7947 = vmatprep.subr.bf16.mxu1 %v16164_v63  ;;  %17920 = vst [vmem:[#allocation37_spill] sm:$0xff] %v16183_v9  ;;  %v16193_v11 = vld [vmem:[%s17117_s4 + $0x1c0] ss:$16 sps:$4 sm:$0xff]   ;;  %v16212_v63 = vld [vmem:[%s17117_s4 + $0x1ac] ss:$16 sps:$4 sm:$0xff]  }
 0x998   :  { %17922 = vst [vmem:[#allocation36_spill] sm:$0xff] %v16193_v11  ;;  %17925 = vst [vmem:[#allocation39_spill] sm:$0xff] %v16212_v63 }
 0x99a   :  { %7907 = vmatpush2.bf16.msra.mxu0 %v16169_v17  ;;  %7948 = vmatpush2.bf16.msra.mxu1 %v16174_v22  ;;  %v16198_v17 = vld [vmem:[%s17117_s4 + $0x1c8] ss:$16 sps:$4 sm:$0xff]   ;;  %v16207_v22 = vld [vmem:[%s17117_s4 + $0x1a4] ss:$16 sps:$4 sm:$0xff]  }
 0x99b   :  { %17923 = vst [vmem:[#allocation30_spill] sm:$0xff] %v16198_v17  ;;  %7908 = vmatprep.subr.bf16.mxu0 %v16183_v9  ;;  %7949 = vmatprep.subr.bf16.mxu1 %v16188_v7  ;;  %17924 = vst [vmem:[#allocation38_spill] sm:$0xff] %v16207_v22  ;;  %v16217_v9 = vld [vmem:[%s17117_s4 + $0x1a0] ss:$16 sps:$4 sm:$0xff]   ;;  %v16236_v7 = vld [vmem:[%s17117_s4 + $0x18c] ss:$16 sps:$4 sm:$0xff]  }
 0x99c   :  { %17926 = vst [vmem:[#allocation41_spill] sm:$0xff] %v16217_v9  ;;  %17929 = vst [vmem:[#allocation31_spill] sm:$0xff] %v16236_v7 }
 0x99e   :  { %7909 = vmatpush2.bf16.msra.mxu0 %v16193_v11  ;;  %7950 = vmatpush2.bf16.msra.mxu1 %v16198_v17  ;;  %v16222_v11 = vld [vmem:[%s17117_s4 + $0x1a8] ss:$16 sps:$4 sm:$0xff]   ;;  %v16231_v17 = vld [vmem:[%s17117_s4 + $0x184] ss:$16 sps:$4 sm:$0xff]  }
 0x99f   :  { %17927 = vst [vmem:[#allocation40_spill] sm:$0xff] %v16222_v11  ;;  %7910 = vmatprep.subr.bf16.mxu0 %v16207_v22  ;;  %7951 = vmatprep.subr.bf16.mxu1 %v16212_v63  ;;  %17928 = vst [vmem:[#allocation42_spill] sm:$0xff] %v16231_v17  ;;  %v16241_v22 = vld [vmem:[%s17117_s4 + $0x180] ss:$16 sps:$4 sm:$0xff]  }
 0x9a0   :  { %17930 = vst [vmem:[#allocation33_spill] sm:$0xff] %v16241_v22  ;;  %v16260_v63 = vld [vmem:[%s17117_s4 + $0x160] ss:$16 sps:$4 sm:$0xff]  }
 0x9a1   :  { %17933 = vst [vmem:[#allocation17_spill] sm:$0xff] %v16260_v63 }
 0x9a2   :  { %7911 = vmatpush2.bf16.msra.mxu0 %v16217_v9  ;;  %7952 = vmatpush2.bf16.msra.mxu1 %v16222_v11  ;;  %v16246_v9 = vld [vmem:[%s17117_s4 + $0x188] ss:$16 sps:$4 sm:$0xff]   ;;  %v16253_v11 = vld [vmem:[%s17117_s4 + $0x164] ss:$16 sps:$4 sm:$0xff]  }
 0x9a3   :  { %17931 = vst [vmem:[#allocation32_spill] sm:$0xff] %v16246_v9  ;;  %7912 = vmatprep.subr.bf16.mxu0 %v16231_v17  ;;  %7953 = vmatprep.subr.bf16.mxu1 %v16236_v7  ;;  %17932 = vst [vmem:[#allocation34_spill] sm:$0xff] %v16253_v11  ;;  %v16265_v17 = vld [vmem:[%s17117_s4 + $0x168] ss:$16 sps:$4 sm:$0xff]   ;;  %v16270_v7 = vld [vmem:[%s17117_s4 + $0x16c] ss:$16 sps:$4 sm:$0xff]  }
 0x9a4   :  { %17934 = vst [vmem:[#allocation18_spill] sm:$0xff] %v16265_v17  ;;  %17935 = vst [vmem:[#allocation19_spill] sm:$0xff] %v16270_v7 }
 0x9a6   :  { %7913 = vmatpush2.bf16.msra.mxu0 %v16241_v22  ;;  %7954 = vmatpush2.bf16.msra.mxu1 %v16246_v9  ;;  %v16276_v9 = vld [vmem:[%s17117_s4 + $0x144] ss:$16 sps:$4 sm:$0xff]   ;;  %v16281_v22 = vld [vmem:[%s17117_s4 + $0x14c] ss:$16 sps:$4 sm:$0xff]  }
 0x9a7   :  { %7914 = vmatprep.subr.bf16.mxu0 %v16253_v11  ;;  %17936 = vst [vmem:[#allocation20_spill] sm:$0xff] %v16276_v9  ;;  %17937 = vst [vmem:[#allocation21_spill] sm:$0xff] %v16281_v22  ;;  %7955 = vmatprep.subr.bf16.mxu1 %v16270_v7  ;;  %v16289_v11 = vld [vmem:[%s17117_s4 + $0x140] ss:$16 sps:$4 sm:$0xff]  }
 0x9a8   :  { %17938 = vst [vmem:[#allocation22_spill] sm:$0xff] %v16289_v11 }
 0x9aa   :  { %7915 = vmatpush2.bf16.msra.mxu0 %v16260_v63  ;;  %7956 = vmatpush2.bf16.msra.mxu1 %v16265_v17  ;;  %v16301_v63 = vld [vmem:[%s17117_s4 + $0x124] ss:$16 sps:$4 sm:$0xff]   ;;  %v16306_v17 = vld [vmem:[%s17117_s4 + $0x12c] ss:$16 sps:$4 sm:$0xff]  }
 0x9ab   :  { %7916 = vmatprep.subr.bf16.mxu0 %v16276_v9  ;;  %7957 = vmatprep.subr.bf16.mxu1 %v16281_v22  ;;  %17940 = vst [vmem:[#allocation24_spill] sm:$0xff] %v16301_v63  ;;  %17941 = vst [vmem:[#allocation27_spill] sm:$0xff] %v16306_v17  ;;  %v16313_v9 = vld [vmem:[%s17117_s4 + $0x120] ss:$16 sps:$4 sm:$0xff]   ;;  %v16318_v22 = vld [vmem:[%s17117_s4 + $0x128] ss:$16 sps:$4 sm:$0xff]  }
 0x9ac   :  { %17942 = vst [vmem:[#allocation25_spill] sm:$0xff] %v16313_v9  ;;  %17943 = vst [vmem:[#allocation26_spill] sm:$0xff] %v16318_v22 }
 0x9ae   :  { %7917 = vmatpush2.bf16.msra.mxu0 %v16289_v11  ;;  %7958 = vmatpush2.bf16.msra.mxu1 %v16294_v12  ;;  %v16325_v11 = vld [vmem:[%s17117_s4 + $0x104] ss:$16 sps:$4 sm:$0xff]   ;;  %v16330_v12 = vld [vmem:[%s17117_s4 + $0x10c] ss:$16 sps:$4 sm:$0xff]  }
 0x9af   :  { %7918 = vmatprep.subr.bf16.mxu0 %v16301_v63  ;;  %7959 = vmatprep.subr.bf16.mxu1 %v16306_v17  ;;  %17944 = vst [vmem:[#allocation28_spill] sm:$0xff] %v16325_v11  ;;  %17945 = vst [vmem:[#allocation71_spill] sm:$0xff] %v16330_v12  ;;  %v16337_v63 = vld [vmem:[%s17117_s4 + $0x100] ss:$16 sps:$4 sm:$0xff]   ;;  %v16342_v17 = vld [vmem:[%s17117_s4 + $0x108] ss:$16 sps:$4 sm:$0xff]  }
 0x9b0   :  { %17946 = vst [vmem:[#allocation72_spill] sm:$0xff] %v16337_v63  ;;  %17947 = vst [vmem:[#allocation73_spill] sm:$0xff] %v16342_v17 }
 0x9b2   :  { %7919 = vmatpush2.bf16.msra.mxu0 %v16313_v9  ;;  %7960 = vmatpush2.bf16.msra.mxu1 %v16318_v22 }
 0x9b3   :  { %7920 = vmatprep.subr.bf16.mxu0 %v16325_v11  ;;  %7961 = vmatprep.subr.bf16.mxu1 %v16330_v12 }
 0x9b6   :  { %7921 = vmatpush2.bf16.msra.mxu0 %v16337_v63  ;;  %7962 = vmatpush2.bf16.msra.mxu1 %v16342_v17 }
 0x9b7   :  { %8197 = vmatprep.subr.bf16.mxu0 %v15841_v38  ;;  %8238 = vmatprep.subr.bf16.mxu1 %v15843_v45 }
 0xa19   :  { %v7121_v22 = vpop.f32.mrf.mxu0  ;;  %v7162_v9 = vpop.f32.mrf.mxu1 }
 0xa1a   :  { %v7122_v7 = vadd.f32 %v7121_v22, %v17885_v39  ;;  %v7163_v38 = vadd.f32 %v7162_v9, %v17887_v23  ;;  %v17949_v23 = vld [vmem:[#allocation57_spill] sm:$0xff] }
 0xa1b   :  { %v7123_v54 = vpop.f32.mrf.mxu0  ;;  %v7164_v15 = vpop.f32.mrf.mxu1 }
 0xa1c   :  { %v11308_v6 = vmul.f32 -1.442695, %v7122_v7  ;;  %v7124_v61 = vadd.f32 %v7123_v54, %v17886_v13  ;;  %v11310_v17 = vmul.f32 -1.442695, %v7163_v38  ;;  %v7165_v53 = vadd.f32 %v7164_v15, %v17888_v27 }
 0xa1d   :  { %v7125_v11 = vpop.f32.mrf.mxu0  ;;  %v7166_v4 = vpop.f32.mrf.mxu1 }
 0xa1e   :  { %12931 = vpow2.f32 %v11308_v6  ;;  %v11309_v12 = vmul.f32 -1.442695, %v7124_v61  ;;  %v17948_v61 = vld [vmem:[#allocation55_spill] sm:$0xff] }
 0xa1f   :  { %v7126_v63 = vpop.f32.mrf.mxu0  ;;  %v7167_v62 = vpop.f32.mrf.mxu1 }
 0xa20   :  { %12933 = vpow2.f32 %v11309_v12 }
 0xa21   :  { %12935 = vpow2.f32 %v11310_v17 }
 0xa2b   :  { %v12932_v45 = vpop.eup %12931 }
 0xa2c   :  { %v7178_v29 = vadd.f32 1.0, %v12932_v45 }
 0xa2d   :  { %v12934_v22 = vpop.eup %12933 }
 0xa2e   :  { %12937 = vrcp.f32 %v7178_v29  ;;  %v7179_v7 = vadd.f32 1.0, %v12934_v22  ;;  %v12936_v6 = vpop.eup %12935 }
 0xa2f   :  { %12939 = vtanh.f32 %v7165_v53  ;;  %v7180_v45 = vadd.f32 1.0, %v12936_v6 }
 0xa30   :  { %12941 = vrcp.f32 %v7179_v7 }
 0xa39   :  { %v7428_v54 = vpop.f32.mrf.mxu0  ;;  %v7469_v4 = vpop.f32.mrf.mxu1 }
 0xa3a   :  { %v7476_v63 = vadd.f32 %v7428_v54, %v17948_v61  ;;  %v17950_v54 = vld [vmem:[#allocation56_spill] sm:$0xff] }
 0xa3b   :  { %v12938_v62 = vpop.eup %12937  ;;  %v7430_v12 = vpop.f32.mrf.mxu0  ;;  %v7478_v61 = vadd.f32 %v7469_v4, %v17950_v54 }
 0xa3c   :  { %v7471_v11 = vpop.f32.mrf.mxu1  ;;  %v12940_v9 = vpop.eup %12939  ;;  %v11344_v38 = vmul.f32 -1.442695, %v7476_v63  ;;  %v7477_v13 = vadd.f32 %v7430_v12, %v17949_v23  ;;  %v17951_v63 = vld [vmem:[#allocation58_spill] sm:$0xff] }
 0xa3d   :  { %v12942_v15 = vpop.eup %12941  ;;  %v7432_v27 = vpop.f32.mrf.mxu0  ;;  %v7189_v53 = vmul.f32 %v12940_v9, %v12938_v62  ;;  %v11346_v23 = vmul.f32 -1.442695, %v7478_v61  ;;  %v7479_v6 = vadd.f32 %v7471_v11, %v17951_v63  ;;  %v17992_v63 = vld [vmem:[#allocation19_spill] sm:$0xff] }
 0xa3e   :  { %v7473_v17 = vpop.f32.mrf.mxu1  ;;  %v7188_v29 = vmul.f32 %v12942_v15, %v15854_v16  ;;  %12943 = vpow2.f32 %v11344_v38  ;;  %v11345_v22 = vmul.f32 -1.442695, %v7477_v13 }
 0xa3f   :  { %v7433_v7 = vpop.f32.mrf.mxu0 }
 0xa40   :  { %v7474_v39 = vpop.f32.mrf.mxu1  ;;  %v16357_v8 = vadd.f32 %v7189_v53, %v7188_v29  ;;  %12945 = vpow2.f32 %v11345_v22 }
 0xa41   :  { %12947 = vrcp.f32 %v7180_v45 }
 0xa42   :  { %12949 = vtanh.f32 %v16357_v8 }
 0xa43   :  { %12951 = vpow2.f32 %v11346_v23 }
 0xa44   :  { %12953 = vtanh.f32 %v7479_v6  ;;  %v17993_v6 = vld [vmem:[#allocation17_spill] sm:$0xff] }
 0xa4b   :  { %v12944_v27 = vpop.eup %12943 }
 0xa4c   :  { %v7489_v12 = vadd.f32 1.0, %v12944_v27  ;;  %v17994_v27 = vld [vmem:[#allocation18_spill] sm:$0xff] }
 0xa4d   :  { %v12946_v16 = vpop.eup %12945 }
 0xa4e   :  { %v12948_v62 = vpop.eup %12947  ;;  %12955 = vrcp.f32 %v7489_v12  ;;  %v7490_v13 = vadd.f32 1.0, %v12946_v16  ;;  %v17995_v12 = vld [vmem:[#allocation20_spill] sm:$0xff]  ;;  %v17996_v16 = vld [vmem:[#allocation21_spill] sm:$0xff] }
 0xa4f   :  { %v12950_v39 = vpop.eup %12949 }
 0xa50   :  { %12957 = vrcp.f32 %v7490_v13  ;;  %v7192_v9 = vmul.f32 %v12950_v39, %v12948_v62  ;;  %v12952_v4 = vpop.eup %12951  ;;  %v17997_v62 = vld [vmem:[#allocation22_spill] sm:$0xff]  ;;  %v17998_v13 = vld [vmem:[#allocation23_spill] sm:$0xff]  ;;  %v17999_v39 = vld [vmem:[#allocation24_spill] sm:$0xff] }
 0xa51   :  { %v12954_v11 = vpop.eup %12953  ;;  %v7491_v29 = vadd.f32 1.0, %v12952_v4  ;;  %v18002_v4 = vld [vmem:[#allocation26_spill] sm:$0xff] }
 0xa52   :  { %11311 = vst [vmem:[%s17119_s6 + $0x38] sm:$0xff] %v7192_v9  ;;  %v7505_v38 = vpack.c.bf16 %v7192_v9, %v7192_v9  ;;  %v18000_v9 = vld [vmem:[#allocation27_spill] sm:$0xff] }
 0xa53   :  { %12959 = vrcp.f32 %v7491_v29  ;;  %v16465_v29 = vld [vmem:[#allocation5 + $0xe4] ss:$16 sps:$4 sm:$0xff]  }
 0xa54   :  { %7922 = vmatprep.mubr.bf16.mxu0 %v7505_v38  ;;  %7963 = vmatprep.mubr.bf16.mxu1 %v7505_v38  ;;  %v18001_v38 = vld [vmem:[#allocation25_spill] sm:$0xff] }
 0xa5b   :  { %v12956_v15 = vpop.eup %12955 }
 0xa5c   :  { %v7500_v45 = vmul.f32 %v12956_v15, %v12954_v11  ;;  %v18003_v11 = vld [vmem:[#allocation28_spill] sm:$0xff]  ;;  %v18004_v15 = vld [vmem:[#allocation71_spill] sm:$0xff] }
 0xa5d   :  { %v12958_v17 = vpop.eup %12957 }
 0xa5e   :  { %v7499_v53 = vmul.f32 %v12958_v17, %v15863_v2  ;;  %v17952_v2 = vld [vmem:[#allocation95_spill] sm:$0xff]  ;;  %v18006_v17 = vld [vmem:[#allocation73_spill] sm:$0xff] }
 0xa60   :  { %v16366_v22 = vadd.f32 %v7500_v45, %v7499_v53  ;;  %v12960_v7 = vpop.eup %12959  ;;  %v18005_v45 = vld [vmem:[#allocation72_spill] sm:$0xff]  ;;  %v16467_v53 = vld [vmem:[#allocation5 + $0xec] ss:$16 sps:$4 sm:$0xff]  }
 0xa62   :  { %12961 = vtanh.f32 %v16366_v22 }
 0xa6f   :  { %v12962_v54 = vpop.eup %12961 }
 0xa70   :  { %v7503_v61 = vmul.f32 %v12962_v54, %v12960_v7 }
 0xa72   :  { %v7504_v23 = vpack.c.bf16 %v7503_v61, %v7503_v61  ;;  %v18007_v61 = vld [vmem:[#allocation13_spill] sm:$0xff] }
 0xa74   :  { %7923 = vmatmul.mubr.bf16.vlgmr.msra.gmra.mxu0 %v7504_v23  ;;  %7964 = vmatmul.mubr.bf16.vlgmr.msra.gmra.mxu1 %v7504_v23 }
 0xa75   :  { %8198 = vmatpush1.bf16.msra.mxu0 %v15866_v19  ;;  %8239 = vmatpush1.bf16.msra.mxu1 %v15868_v20  ;;  %v17953_v19 = vld [vmem:[#allocation96_spill] sm:$0xff]  ;;  %v17954_v20 = vld [vmem:[#allocation98_spill] sm:$0xff] }
 0xa76   :  { %8199 = vmatprep.subr.bf16.mxu0 %v15872_v24  ;;  %8240 = vmatprep.subr.bf16.mxu1 %v15874_v25  ;;  %v17955_v24 = vld [vmem:[#allocation101_spill] sm:$0xff]  ;;  %v17956_v25 = vld [vmem:[#allocation99_spill] sm:$0xff] }
 0xa77   :  { %8229 = vmatprep.mubr.bf16.mxu0 %v17499_v10  ;;  %8270 = vmatprep.mubr.bf16.mxu1 %v17499_v10 }
 0xa79   :  { %8200 = vmatpush1.bf16.msra.mxu0 %v15880_v1  ;;  %8241 = vmatpush1.bf16.msra.mxu1 %v15882_v26  ;;  %v17957_v1 = vld [vmem:[#allocation100_spill] sm:$0xff]  ;;  %v17958_v26 = vld [vmem:[#allocation102_spill] sm:$0xff] }
 0xa7a   :  { %8201 = vmatprep.subr.bf16.mxu0 %v15886_v30  ;;  %8242 = vmatprep.subr.bf16.mxu1 %v15888_v31  ;;  %v17959_v30 = vld [vmem:[#allocation103_spill] sm:$0xff]  ;;  %v17960_v31 = vld [vmem:[#allocation104_spill] sm:$0xff] }
 0xa7d   :  { %8202 = vmatpush1.bf16.msra.mxu0 %v15894_v32  ;;  %8243 = vmatpush1.bf16.msra.mxu1 %v15896_v34  ;;  %v17961_v32 = vld [vmem:[#allocation105_spill] sm:$0xff]  ;;  %v17962_v34 = vld [vmem:[#allocation106_spill] sm:$0xff] }
 0xa7e   :  { %8203 = vmatprep.subr.bf16.mxu0 %v15900_v36  ;;  %8244 = vmatprep.subr.bf16.mxu1 %v15902_v48  ;;  %v17963_v36 = vld [vmem:[#allocation107_spill] sm:$0xff]  ;;  %v17964_v48 = vld [vmem:[#allocation108_spill] sm:$0xff] }
 0xa81   :  { %8204 = vmatpush1.bf16.msra.mxu0 %v15906_v43  ;;  %8245 = vmatpush1.bf16.msra.mxu1 %v15908_v46  ;;  %v17965_v43 = vld [vmem:[#allocation109_spill] sm:$0xff]  ;;  %v17966_v46 = vld [vmem:[#allocation43_spill] sm:$0xff] }
 0xa82   :  { %8205 = vmatprep.subr.bf16.mxu0 %v15912_v21  ;;  %8246 = vmatprep.subr.bf16.mxu1 %v15914_v40  ;;  %v17967_v21 = vld [vmem:[#allocation45_spill] sm:$0xff]  ;;  %v17968_v40 = vld [vmem:[#allocation44_spill] sm:$0xff] }
 0xa85   :  { %8206 = vmatpush1.bf16.msra.mxu0 %v15918_v35  ;;  %8247 = vmatpush1.bf16.msra.mxu1 %v15920_v33  ;;  %v17969_v35 = vld [vmem:[#allocation46_spill] sm:$0xff]  ;;  %v17970_v33 = vld [vmem:[#allocation47_spill] sm:$0xff] }
 0xa86   :  { %8207 = vmatprep.subr.bf16.mxu0 %v15924_v50  ;;  %8248 = vmatprep.subr.bf16.mxu1 %v15926_v28  ;;  %v17971_v50 = vld [vmem:[#allocation49_spill] sm:$0xff]  ;;  %v17972_v28 = vld [vmem:[#allocation48_spill] sm:$0xff] }
 0xa89   :  { %8208 = vmatpush1.bf16.msra.mxu0 %v15930_v41  ;;  %8249 = vmatpush1.bf16.msra.mxu1 %v15932_v37  ;;  %v17973_v41 = vld [vmem:[#allocation50_spill] sm:$0xff] }
 0xa8a   :  { %8209 = vmatprep.subr.bf16.mxu0 %v15936_v55  ;;  %8250 = vmatprep.subr.bf16.mxu1 %v15938_v47  ;;  %v17974_v37 = vld [vmem:[#allocation110_spill] sm:$0xff]  ;;  %v17975_v55 = vld [vmem:[#allocation111_spill] sm:$0xff]  ;;  %v17976_v47 = vld [vmem:[#allocation112_spill] sm:$0xff] }
 0xa8d   :  { %8210 = vmatpush1.bf16.msra.mxu0 %v15942_v5  ;;  %8251 = vmatpush1.bf16.msra.mxu1 %v15944_v57  ;;  %v17977_v5 = vld [vmem:[#allocation113_spill] sm:$0xff] }
 0xa8e   :  { %8211 = vmatprep.subr.bf16.mxu0 %v15948_v52  ;;  %8252 = vmatprep.subr.bf16.mxu1 %v15950_v51  ;;  %v17978_v57 = vld [vmem:[#allocation29_spill] sm:$0xff]  ;;  %v17980_v51 = vld [vmem:[#allocation35_spill] sm:$0xff] }
 0xa8f   :  { %v17979_v52 = vld [vmem:[#allocation37_spill] sm:$0xff] }
 0xa91   :  { %8212 = vmatpush1.bf16.msra.mxu0 %v15954_v56  ;;  %8253 = vmatpush1.bf16.msra.mxu1 %v15956_v42  ;;  %v17981_v56 = vld [vmem:[#allocation36_spill] sm:$0xff]  ;;  %v17982_v42 = vld [vmem:[#allocation30_spill] sm:$0xff] }
 0xa92   :  { %8693 = vmatprep.subr.bf16.mxu0 %v15967_v44  ;;  %8734 = vmatprep.subr.bf16.mxu1 %v15972_v59  ;;  %v17983_v44 = vld [vmem:[#allocation38_spill] sm:$0xff]  ;;  %v17984_v59 = vld [vmem:[#allocation39_spill] sm:$0xff] }
 0xa94   :  { %8230 = vmatmul.mubr.bf16.vlgmr.msra.gmra.mxu0 %v7504_v23  ;;  %8271 = vmatmul.mubr.bf16.vlgmr.msra.gmra.mxu1 %v7504_v23 }
 0xa95   :  { %8694 = vmatpush1.bf16.msra.mxu0 %v15977_v18  ;;  %8735 = vmatpush1.bf16.msra.mxu1 %v15982_v58  ;;  %v17985_v18 = vld [vmem:[#allocation41_spill] sm:$0xff]  ;;  %v17986_v58 = vld [vmem:[#allocation40_spill] sm:$0xff] }
 0xa96   :  { %8695 = vmatprep.subr.bf16.mxu0 %v15991_v60  ;;  %8736 = vmatprep.subr.bf16.mxu1 %v15996_v0  ;;  %v17987_v60 = vld [vmem:[#allocation42_spill] sm:$0xff]  ;;  %v17988_v0 = vld [vmem:[#allocation31_spill] sm:$0xff] }
 0xa99   :  { %8696 = vmatpush1.bf16.msra.mxu0 %v16001_v14  ;;  %8737 = vmatpush1.bf16.msra.mxu1 %v16006_v49  ;;  %v17989_v14 = vld [vmem:[#allocation33_spill] sm:$0xff]  ;;  %v17990_v49 = vld [vmem:[#allocation32_spill] sm:$0xff] }
 0xa9a   :  { %8697 = vmatprep.subr.bf16.mxu0 %v16015_v3  ;;  %8738 = vmatprep.subr.bf16.mxu1 %v17952_v2  ;;  %v17991_v3 = vld [vmem:[#allocation34_spill] sm:$0xff] }
 0xa9d   :  { %8698 = vmatpush1.bf16.msra.mxu0 %v17953_v19  ;;  %8739 = vmatpush1.bf16.msra.mxu1 %v17954_v20 }
 0xa9e   :  { %8699 = vmatprep.subr.bf16.mxu0 %v17955_v24  ;;  %8740 = vmatprep.subr.bf16.mxu1 %v17956_v25  ;;  %v18008_v24 = vld [vmem:[#allocation14_spill] sm:$0xff] }
 0xaa1   :  { %8700 = vmatpush1.bf16.msra.mxu0 %v17957_v1  ;;  %8741 = vmatpush1.bf16.msra.mxu1 %v17958_v26 }
 0xaa2   :  { %8701 = vmatprep.subr.bf16.mxu0 %v17959_v30  ;;  %8742 = vmatprep.subr.bf16.mxu1 %v17960_v31 }
 0xaa5   :  { %8702 = vmatpush1.bf16.msra.mxu0 %v17961_v32  ;;  %8743 = vmatpush1.bf16.msra.mxu1 %v17962_v34  ;;  %v18009_v34 = vld [vmem:[#allocation15_spill] sm:$0xff] }
 0xaa6   :  { %8703 = vmatprep.subr.bf16.mxu0 %v17963_v36  ;;  %8744 = vmatprep.subr.bf16.mxu1 %v17964_v48 }
 0xaa9   :  { %8704 = vmatpush1.bf16.msra.mxu0 %v17965_v43  ;;  %8745 = vmatpush1.bf16.msra.mxu1 %v17966_v46  ;;  %v18010_v46 = vld [vmem:[#allocation16_spill] sm:$0xff] }
 0xaaa   :  { %8705 = vmatprep.subr.bf16.mxu0 %v17967_v21  ;;  %8746 = vmatprep.subr.bf16.mxu1 %v17968_v40 }
 0xaad   :  { %8706 = vmatpush1.bf16.msra.mxu0 %v17969_v35  ;;  %8747 = vmatpush1.bf16.msra.mxu1 %v17970_v33 }
 0xaae   :  { %8707 = vmatprep.subr.bf16.mxu0 %v17971_v50  ;;  %8748 = vmatprep.subr.bf16.mxu1 %v17972_v28 }
 0xab1   :  { %8708 = vmatpush1.bf16.msra.mxu0 %v17973_v41  ;;  %8749 = vmatpush1.bf16.msra.mxu1 %v17974_v37  ;;  %v18011_v37 = vld [vmem:[#allocation59_spill] sm:$0xff] }
 0xab2   :  { %8709 = vmatprep.subr.bf16.mxu0 %v17975_v55  ;;  %8750 = vmatprep.subr.bf16.mxu1 %v17976_v47 }
 0xab5   :  { %8710 = vmatpush2.bf16.msra.mxu0 %v17977_v5  ;;  %8751 = vmatpush2.bf16.msra.mxu1 %v17978_v57 }
 0xab6   :  { %8711 = vmatprep.subr.bf16.mxu0 %v17979_v52  ;;  %8752 = vmatprep.subr.bf16.mxu1 %v17980_v51 }
 0xab9   :  { %8712 = vmatpush2.bf16.msra.mxu0 %v17981_v56  ;;  %8753 = vmatpush2.bf16.msra.mxu1 %v17982_v42  ;;  %v18012_v56 = vld [vmem:[#allocation61_spill] sm:$0xff] }
 0xaba   :  { %8713 = vmatprep.subr.bf16.mxu0 %v17983_v44  ;;  %8754 = vmatprep.subr.bf16.mxu1 %v17984_v59 }
 0xabd   :  { %8714 = vmatpush2.bf16.msra.mxu0 %v17985_v18  ;;  %8755 = vmatpush2.bf16.msra.mxu1 %v17986_v58 }
 0xabe   :  { %8715 = vmatprep.subr.bf16.mxu0 %v17987_v60  ;;  %8756 = vmatprep.subr.bf16.mxu1 %v17988_v0 }
 0xac1   :  { %8716 = vmatpush2.bf16.msra.mxu0 %v17989_v14  ;;  %8757 = vmatpush2.bf16.msra.mxu1 %v17990_v49 }
 0xac2   :  { %8717 = vmatprep.subr.bf16.mxu0 %v17991_v3  ;;  %8758 = vmatprep.subr.bf16.mxu1 %v17992_v63 }
 0xac5   :  { %8718 = vmatpush2.bf16.msra.mxu0 %v17993_v6  ;;  %8759 = vmatpush2.bf16.msra.mxu1 %v17994_v27  ;;  %v18013_v6 = vld [vmem:[#allocation60_spill] sm:$0xff] }
 0xac6   :  { %8719 = vmatprep.subr.bf16.mxu0 %v17995_v12  ;;  %8760 = vmatprep.subr.bf16.mxu1 %v17996_v16  ;;  %v18014_v16 = vld [vmem:[#allocation62_spill] sm:$0xff] }
 0xac9   :  { %8720 = vmatpush2.bf16.msra.mxu0 %v17997_v62  ;;  %8761 = vmatpush2.bf16.msra.mxu1 %v17998_v13 }
 0xaca   :  { %8721 = vmatprep.subr.bf16.mxu0 %v17999_v39  ;;  %8762 = vmatprep.subr.bf16.mxu1 %v18000_v9 }
 0xacd   :  { %8722 = vmatpush2.bf16.msra.mxu0 %v18001_v38  ;;  %8763 = vmatpush2.bf16.msra.mxu1 %v18002_v4 }
 0xace   :  { %8723 = vmatprep.subr.bf16.mxu0 %v18003_v11  ;;  %8764 = vmatprep.subr.bf16.mxu1 %v18004_v15 }
 0xad1   :  { %8724 = vmatpush2.bf16.msra.mxu0 %v18005_v45  ;;  %8765 = vmatpush2.bf16.msra.mxu1 %v18006_v17 }
 0xad2   :  { %9000 = vmatprep.subr.bf16.mxu0 %v16465_v29  ;;  %9041 = vmatprep.subr.bf16.mxu1 %v16467_v53 }
 0xb34   :  { %v7924_v7 = vpop.f32.mrf.mxu0  ;;  %v7965_v54 = vpop.f32.mrf.mxu1 }
 0xb35   :  { %v7925_v23 = vadd.f32 %v7924_v7, %v18007_v61  ;;  %v7966_v36 = vadd.f32 %v7965_v54, %v18009_v34 }
 0xb36   :  { %v7926_v2 = vpop.f32.mrf.mxu0  ;;  %v7967_v19 = vpop.f32.mrf.mxu1 }
 0xb37   :  { %v11411_v20 = vmul.f32 -1.442695, %v7925_v23  ;;  %v7927_v25 = vadd.f32 %v7926_v2, %v18008_v24  ;;  %v11413_v48 = vmul.f32 -1.442695, %v7966_v36  ;;  %v7968_v21 = vadd.f32 %v7967_v19, %v18010_v46  ;;  %v16496_v36 = vld [vmem:[#allocation5 + $0xc4] ss:$16 sps:$4 sm:$0xff]  }
 0xb38   :  { %v7928_v1 = vpop.f32.mrf.mxu0  ;;  %v7969_v26 = vpop.f32.mrf.mxu1 }
 0xb39   :  { %12963 = vpow2.f32 %v11411_v20  ;;  %v11412_v30 = vmul.f32 -1.442695, %v7927_v25 }
 0xb3a   :  { %v7929_v31 = vpop.f32.mrf.mxu0  ;;  %v7970_v32 = vpop.f32.mrf.mxu1 }
 0xb3b   :  { %12965 = vpow2.f32 %v11412_v30  ;;  %v16490_v30 = vld [vmem:[#allocation5 + $0xe0] ss:$16 sps:$4 sm:$0xff]   ;;  %v16492_v31 = vld [vmem:[#allocation5 + $0xe8] ss:$16 sps:$4 sm:$0xff]  }
 0xb3c   :  { %12967 = vpow2.f32 %v11413_v48  ;;  %v16498_v48 = vld [vmem:[#allocation5 + $0xcc] ss:$16 sps:$4 sm:$0xff]  }
 0xb46   :  { %v12964_v43 = vpop.eup %12963 }
 0xb47   :  { %v7981_v40 = vadd.f32 1.0, %v12964_v43  ;;  %v16506_v43 = vld [vmem:[#allocation5 + $0xc8] ss:$16 sps:$4 sm:$0xff]  }
 0xb48   :  { %v12966_v35 = vpop.eup %12965 }
 0xb49   :  { %12969 = vrcp.f32 %v7981_v40  ;;  %v7982_v33 = vadd.f32 1.0, %v12966_v35  ;;  %v12968_v41 = vpop.eup %12967  ;;  %v16512_v40 = vld [vmem:[#allocation5 + $0xac] ss:$16 sps:$4 sm:$0xff]   ;;  %v16518_v35 = vld [vmem:[#allocation5 + $0xa0] ss:$16 sps:$4 sm:$0xff]  }
 0xb4a   :  { %12971 = vtanh.f32 %v7968_v21  ;;  %v7983_v59 = vadd.f32 1.0, %v12968_v41  ;;  %v16510_v21 = vld [vmem:[#allocation5 + $0xa4] ss:$16 sps:$4 sm:$0xff]   ;;  %v16530_v41 = vld [vmem:[#allocation5 + $0x80] ss:$16 sps:$4 sm:$0xff]  }
 0xb4b   :  { %12973 = vrcp.f32 %v7982_v33  ;;  %v16520_v33 = vld [vmem:[#allocation5 + $0xa8] ss:$16 sps:$4 sm:$0xff]  }
 0xb54   :  { %v8231_v50 = vpop.f32.mrf.mxu0  ;;  %v8272_v28 = vpop.f32.mrf.mxu1 }
 0xb55   :  { %v8279_v55 = vadd.f32 %v8231_v50, %v18011_v37  ;;  %v8281_v27 = vadd.f32 %v8272_v28, %v18013_v6  ;;  %v16524_v50 = vld [vmem:[#allocation5 + $0x84] ss:$16 sps:$4 sm:$0xff]   ;;  %v16526_v28 = vld [vmem:[#allocation5 + $0x8c] ss:$16 sps:$4 sm:$0xff]   ;;  %v16532_v37 = vld [vmem:[#allocation5 + $0x88] ss:$16 sps:$4 sm:$0xff]  }
 0xb56   :  { %v12970_v47 = vpop.eup %12969  ;;  %v8233_v5 = vpop.f32.mrf.mxu0  ;;  %v16596_v6 = vld [vmem:[%s17117_s4 + $0xec] ss:$16 sps:$4 sm:$0xff]  }
 0xb57   :  { %v8274_v57 = vpop.f32.mrf.mxu1  ;;  %v12972_v52 = vpop.eup %12971  ;;  %v11447_v51 = vmul.f32 -1.442695, %v8279_v55  ;;  %v8280_v42 = vadd.f32 %v8233_v5, %v18012_v56  ;;  %v11449_v12 = vmul.f32 -1.442695, %v8281_v27  ;;  %v16536_v55 = vld [vmem:[#allocation5 + $0x64] ss:$16 sps:$4 sm:$0xff]  }
 0xb58   :  { %v12974_v44 = vpop.eup %12973  ;;  %v8235_v18 = vpop.f32.mrf.mxu0  ;;  %v7992_v0 = vmul.f32 %v12972_v52, %v12970_v47  ;;  %v8282_v62 = vadd.f32 %v8274_v57, %v18014_v16  ;;  %v16538_v47 = vld [vmem:[#allocation5 + $0x6c] ss:$16 sps:$4 sm:$0xff]   ;;  %v16542_v5 = vld [vmem:[#allocation5 + $0x60] ss:$16 sps:$4 sm:$0xff]   ;;  %v16544_v57 = vld [vmem:[#allocation5 + $0x68] ss:$16 sps:$4 sm:$0xff]  }
 0xb59   :  { %v8276_v58 = vpop.f32.mrf.mxu1  ;;  %v7991_v60 = vmul.f32 %v12974_v44, %v16357_v8  ;;  %12975 = vpow2.f32 %v11447_v51  ;;  %v11448_v14 = vmul.f32 -1.442695, %v8280_v42  ;;  %v16548_v52 = vld [vmem:[#allocation5 + $0x44] ss:$16 sps:$4 sm:$0xff]   ;;  %v16550_v51 = vld [vmem:[#allocation5 + $0x4c] ss:$16 sps:$4 sm:$0xff]  }
 0xb5a   :  { %v8236_v49 = vpop.f32.mrf.mxu0  ;;  %v16554_v56 = vld [vmem:[#allocation5 + $0x40] ss:$16 sps:$4 sm:$0xff]   ;;  %v16556_v42 = vld [vmem:[#allocation5 + $0x48] ss:$16 sps:$4 sm:$0xff]   ;;  %v16560_v44 = vld [vmem:[#allocation5 + $0x24] ss:$16 sps:$4 sm:$0xff]  }
 0xb5b   :  { %v8277_v3 = vpop.f32.mrf.mxu1  ;;  %v16478_v63 = vadd.f32 %v7992_v0, %v7991_v60  ;;  %12977 = vpow2.f32 %v11448_v14  ;;  %v16566_v18 = vld [vmem:[#allocation5 + $0x20] ss:$16 sps:$4 sm:$0xff]   ;;  %v16568_v58 = vld [vmem:[#allocation5 + $0x28] ss:$16 sps:$4 sm:$0xff]   ;;  %v16572_v60 = vld [vmem:[#allocation5 + $0x4] ss:$16 sps:$4 sm:$0xff]  }
 0xb5c   :  { %12979 = vrcp.f32 %v7983_v59  ;;  %v16562_v59 = vld [vmem:[#allocation5 + $0x2c] ss:$16 sps:$4 sm:$0xff]   ;;  %v16578_v14 = vld [vmem:[#allocation5] ss:$16 sps:$4 sm:$0xff]   ;;  %v16580_v49 = vld [vmem:[#allocation5 + $0x8] ss:$16 sps:$4 sm:$0xff]  }
 0xb5d   :  { %12981 = vtanh.f32 %v16478_v63  ;;  %v16574_v0 = vld [vmem:[#allocation5 + $0xc] ss:$16 sps:$4 sm:$0xff]   ;;  %v16591_v3 = vld [vmem:[%s17117_s4 + $0xe4] ss:$16 sps:$4 sm:$0xff]   ;;  %v16601_v27 = vld [vmem:[%s17117_s4 + $0xe0] ss:$16 sps:$4 sm:$0xff]  }
 0xb5e   :  { %12983 = vpow2.f32 %v11449_v12  ;;  %v16606_v12 = vld [vmem:[%s17117_s4 + $0xe8] ss:$16 sps:$4 sm:$0xff]   ;;  %v16615_v16 = vld [vmem:[%s17117_s4 + $0xc4] ss:$16 sps:$4 sm:$0xff]  }
 0xb5f   :  { %12985 = vtanh.f32 %v8282_v62  ;;  %v16620_v62 = vld [vmem:[%s17117_s4 + $0xcc] ss:$16 sps:$4 sm:$0xff]  }
 0xb66   :  { %v12976_v13 = vpop.eup %12975 }
 0xb67   :  { %v8292_v39 = vadd.f32 1.0, %v12976_v13  ;;  %v16625_v13 = vld [vmem:[%s17117_s4 + $0xc0] ss:$16 sps:$4 sm:$0xff]  }
 0xb68   :  { %v12978_v8 = vpop.eup %12977 }
 0xb69   :  { %v12980_v9 = vpop.eup %12979  ;;  %12987 = vrcp.f32 %v8292_v39  ;;  %v8293_v38 = vadd.f32 1.0, %v12978_v8  ;;  %v16630_v39 = vld [vmem:[%s17117_s4 + $0xc8] ss:$16 sps:$4 sm:$0xff]   ;;  %v16639_v8 = vld [vmem:[%s17117_s4 + $0xa4] ss:$16 sps:$4 sm:$0xff]  }
 0xb6a   :  { %v12982_v4 = vpop.eup %12981 }
 0xb6b   :  { %12989 = vrcp.f32 %v8293_v38  ;;  %v7995_v11 = vmul.f32 %v12982_v4, %v12980_v9  ;;  %v12984_v45 = vpop.eup %12983  ;;  %v16644_v9 = vld [vmem:[%s17117_s4 + $0xac] ss:$16 sps:$4 sm:$0xff]   ;;  %v16649_v38 = vld [vmem:[%s17117_s4 + $0xa0] ss:$16 sps:$4 sm:$0xff]   ;;  %v16654_v4 = vld [vmem:[%s17117_s4 + $0xa8] ss:$16 sps:$4 sm:$0xff]  }
 0xb6c   :  { %v12986_v17 = vpop.eup %12985  ;;  %v8294_v2 = vadd.f32 1.0, %v12984_v45  ;;  %18015 = vst [vmem:[#allocation74_spill] sm:$0xff] %v16644_v9  ;;  %18016 = vst [vmem:[#allocation75_spill] sm:$0xff] %v16649_v38  ;;  %v16673_v45 = vld [vmem:[%s17117_s4 + $0x80] ss:$16 sps:$4 sm:$0xff]  }
 0xb6d   :  { %11414 = vst [vmem:[%s17119_s6 + $0x40] sm:$0xff] %v7995_v11  ;;  %v8308_v15 = vpack.c.bf16 %v7995_v11, %v7995_v11  ;;  %18017 = vst [vmem:[#allocation76_spill] sm:$0xff] %v16654_v4  ;;  %v16663_v11 = vld [vmem:[%s17117_s4 + $0x84] ss:$16 sps:$4 sm:$0xff]  }
 0xb6e   :  { %12991 = vrcp.f32 %v8294_v2  ;;  %18018 = vst [vmem:[#allocation77_spill] sm:$0xff] %v16663_v11  ;;  %18020 = vst [vmem:[#allocation79_spill] sm:$0xff] %v16673_v45  ;;  %v16702_v2 = vld [vmem:[%s17117_s4 + $0x68] ss:$16 sps:$4 sm:$0xff]  }
 0xb6f   :  { %8725 = vmatprep.mubr.bf16.mxu0 %v8308_v15  ;;  %8766 = vmatprep.mubr.bf16.mxu1 %v8308_v15  ;;  %v16668_v15 = vld [vmem:[%s17117_s4 + $0x8c] ss:$16 sps:$4 sm:$0xff]   ;;  %18025 = vst [vmem:[#allocation84_spill] sm:$0xff] %v16702_v2 }
 0xb70   :  { %18019 = vst [vmem:[#allocation78_spill] sm:$0xff] %v16668_v15 }
 0xb76   :  { %v12988_v7 = vpop.eup %12987 }
 0xb77   :  { %v8303_v54 = vmul.f32 %v12988_v7, %v12986_v17  ;;  %v16678_v17 = vld [vmem:[%s17117_s4 + $0x88] ss:$16 sps:$4 sm:$0xff]   ;;  %v16687_v7 = vld [vmem:[%s17117_s4 + $0x64] ss:$16 sps:$4 sm:$0xff]  }
 0xb78   :  { %v12990_v23 = vpop.eup %12989  ;;  %18021 = vst [vmem:[#allocation80_spill] sm:$0xff] %v16678_v17  ;;  %18022 = vst [vmem:[#allocation83_spill] sm:$0xff] %v16687_v7 }
 0xb79   :  { %v8302_v19 = vmul.f32 %v12990_v23, %v16366_v22  ;;  %v16504_v22 = vld [vmem:[#allocation5 + $0xc0] ss:$16 sps:$4 sm:$0xff]  }
 0xb7a   :  { %v16697_v23 = vld [vmem:[%s17117_s4 + $0x60] ss:$16 sps:$4 sm:$0xff]  }
 0xb7b   :  { %v16487_v20 = vadd.f32 %v8303_v54, %v8302_v19  ;;  %v12992_v25 = vpop.eup %12991  ;;  %v16692_v54 = vld [vmem:[%s17117_s4 + $0x6c] ss:$16 sps:$4 sm:$0xff]   ;;  %18024 = vst [vmem:[#allocation82_spill] sm:$0xff] %v16697_v23  ;;  %v16711_v19 = vld [vmem:[%s17117_s4 + $0x44] ss:$16 sps:$4 sm:$0xff]  }
 0xb7c   :  { %18023 = vst [vmem:[#allocation81_spill] sm:$0xff] %v16692_v54  ;;  %18026 = vst [vmem:[#allocation85_spill] sm:$0xff] %v16711_v19 }
 0xb7d   :  { %12993 = vtanh.f32 %v16487_v20 }
 0xb8a   :  { %v12994_v1 = vpop.eup %12993 }
 0xb8b   :  { %v8306_v26 = vmul.f32 %v12994_v1, %v12992_v25  ;;  %v16716_v25 = vld [vmem:[%s17117_s4 + $0x4c] ss:$16 sps:$4 sm:$0xff]   ;;  %v16721_v1 = vld [vmem:[%s17117_s4 + $0x40] ss:$16 sps:$4 sm:$0xff]  }
 0xb8c   :  { %18027 = vst [vmem:[#allocation86_spill] sm:$0xff] %v16716_v25  ;;  %18028 = vst [vmem:[#allocation87_spill] sm:$0xff] %v16721_v1 }
 0xb8d   :  { %v16494_v32 = vpack.c.bf16 %v8306_v26, %v8306_v26  ;;  %v16726_v26 = vld [vmem:[%s17117_s4 + $0x48] ss:$16 sps:$4 sm:$0xff]  }
 0xb8e   :  { %18029 = vst [vmem:[#allocation88_spill] sm:$0xff] %v16726_v26 }
 0xb8f   :  { %8726 = vmatmul.mubr.bf16.vlgmr.msra.gmra.mxu0 %v16494_v32  ;;  %8767 = vmatmul.mubr.bf16.vlgmr.msra.gmra.mxu1 %v16494_v32 }
 0xb90   :  { %9001 = vmatpush1.bf16.msra.mxu0 %v16490_v30  ;;  %9042 = vmatpush1.bf16.msra.mxu1 %v16492_v31 }
 0xb91   :  { %9002 = vmatprep.subr.bf16.mxu0 %v16496_v36  ;;  %9043 = vmatprep.subr.bf16.mxu1 %v16498_v48 }
 0xb92   :  { %9032 = vmatprep.mubr.bf16.mxu0 %v17499_v10  ;;  %9073 = vmatprep.mubr.bf16.mxu1 %v17499_v10 }
 0xb94   :  { %9003 = vmatpush1.bf16.msra.mxu0 %v16504_v22  ;;  %9044 = vmatpush1.bf16.msra.mxu1 %v16506_v43 }
 0xb95   :  { %9004 = vmatprep.subr.bf16.mxu0 %v16510_v21  ;;  %9045 = vmatprep.subr.bf16.mxu1 %v16512_v40 }
 0xb98   :  { %9005 = vmatpush1.bf16.msra.mxu0 %v16518_v35  ;;  %9046 = vmatpush1.bf16.msra.mxu1 %v16520_v33 }
 0xb99   :  { %9006 = vmatprep.subr.bf16.mxu0 %v16524_v50  ;;  %9047 = vmatprep.subr.bf16.mxu1 %v16526_v28 }
 0xb9c   :  { %9007 = vmatpush1.bf16.msra.mxu0 %v16530_v41  ;;  %9048 = vmatpush1.bf16.msra.mxu1 %v16532_v37 }
 0xb9d   :  { %9008 = vmatprep.subr.bf16.mxu0 %v16536_v55  ;;  %9049 = vmatprep.subr.bf16.mxu1 %v16538_v47 }
 0xba0   :  { %9009 = vmatpush1.bf16.msra.mxu0 %v16542_v5  ;;  %9050 = vmatpush1.bf16.msra.mxu1 %v16544_v57 }
 0xba1   :  { %9010 = vmatprep.subr.bf16.mxu0 %v16548_v52  ;;  %9051 = vmatprep.subr.bf16.mxu1 %v16550_v51 }
 0xba4   :  { %9011 = vmatpush1.bf16.msra.mxu0 %v16554_v56  ;;  %9052 = vmatpush1.bf16.msra.mxu1 %v16556_v42 }
 0xba5   :  { %9012 = vmatprep.subr.bf16.mxu0 %v16560_v44  ;;  %9053 = vmatprep.subr.bf16.mxu1 %v16562_v59 }
 0xba8   :  { %9013 = vmatpush1.bf16.msra.mxu0 %v16566_v18  ;;  %9054 = vmatpush1.bf16.msra.mxu1 %v16568_v58 }
 0xba9   :  { %9014 = vmatprep.subr.bf16.mxu0 %v16572_v60  ;;  %9055 = vmatprep.subr.bf16.mxu1 %v16574_v0 }
 0xbac   :  { %9015 = vmatpush1.bf16.msra.mxu0 %v16578_v14  ;;  %9056 = vmatpush1.bf16.msra.mxu1 %v16580_v49 }
 0xbad   :  { %9496 = vmatprep.subr.bf16.mxu0 %v16591_v3  ;;  %9537 = vmatprep.subr.bf16.mxu1 %v16596_v6 }
 0xbaf   :  { %9033 = vmatmul.mubr.bf16.vlgmr.msra.gmra.mxu0 %v16494_v32  ;;  %9074 = vmatmul.mubr.bf16.vlgmr.msra.gmra.mxu1 %v16494_v32  ;;  %v16735_v32 = vld [vmem:[%s17117_s4 + $0x24] ss:$16 sps:$4 sm:$0xff]  }
 0xbb0   :  { %9497 = vmatpush1.bf16.msra.mxu0 %v16601_v27  ;;  %9538 = vmatpush1.bf16.msra.mxu1 %v16606_v12  ;;  %18030 = vst [vmem:[#allocation89_spill] sm:$0xff] %v16735_v32 }
 0xbb1   :  { %9498 = vmatprep.subr.bf16.mxu0 %v16615_v16  ;;  %9539 = vmatprep.subr.bf16.mxu1 %v16620_v62 }
 0xbb4   :  { %9499 = vmatpush1.bf16.msra.mxu0 %v16625_v13  ;;  %9540 = vmatpush1.bf16.msra.mxu1 %v16630_v39 }
 0xbb5   :  { %9500 = vmatprep.subr.bf16.mxu0 %v16639_v8  ;;  %9541 = vmatprep.subr.bf16.mxu1 %v16644_v9 }
 0xbb8   :  { %9501 = vmatpush1.bf16.msra.mxu0 %v16649_v38  ;;  %9542 = vmatpush1.bf16.msra.mxu1 %v16654_v4 }
 0xbb9   :  { %9502 = vmatprep.subr.bf16.mxu0 %v16663_v11  ;;  %9543 = vmatprep.subr.bf16.mxu1 %v16668_v15 }
 0xbbc   :  { %9503 = vmatpush1.bf16.msra.mxu0 %v16673_v45  ;;  %9544 = vmatpush1.bf16.msra.mxu1 %v16678_v17 }
 0xbbd   :  { %9504 = vmatprep.subr.bf16.mxu0 %v16687_v7  ;;  %9545 = vmatprep.subr.bf16.mxu1 %v16692_v54 }
 0xbc0   :  { %9505 = vmatpush1.bf16.msra.mxu0 %v16697_v23  ;;  %9546 = vmatpush1.bf16.msra.mxu1 %v16702_v2  ;;  %v16740_v2 = vld [vmem:[%s17117_s4 + $0x2c] ss:$16 sps:$4 sm:$0xff]   ;;  %v16918_v23 = vld [vmem:[%s17117_s4 + $0x148] ss:$16 sps:$4 sm:$0xff]  }
 0xbc1   :  { %9506 = vmatprep.subr.bf16.mxu0 %v16711_v19  ;;  %9547 = vmatprep.subr.bf16.mxu1 %v16716_v25  ;;  %18031 = vst [vmem:[#allocation90_spill] sm:$0xff] %v16740_v2  ;;  %v16745_v19 = vld [vmem:[%s17117_s4 + $0x20] ss:$16 sps:$4 sm:$0xff]   ;;  %v16764_v25 = vld [vmem:[%s17117_s4 + $0xc] ss:$16 sps:$4 sm:$0xff]   ;;  %18061 = vst [vmem:[#allocation44_spill] sm:$0xff] %v16918_v23 }
 0xbc2   :  { %18032 = vst [vmem:[#allocation91_spill] sm:$0xff] %v16745_v19  ;;  %18035 = vst [vmem:[#allocation94_spill] sm:$0xff] %v16764_v25 }
 0xbc4   :  { %9507 = vmatpush1.bf16.msra.mxu0 %v16721_v1  ;;  %9548 = vmatpush1.bf16.msra.mxu1 %v16726_v26  ;;  %v16750_v1 = vld [vmem:[%s17117_s4 + $0x28] ss:$16 sps:$4 sm:$0xff]   ;;  %v16759_v26 = vld [vmem:[%s17117_s4 + $0x4] ss:$16 sps:$4 sm:$0xff]  }
 0xbc5   :  { %18033 = vst [vmem:[#allocation92_spill] sm:$0xff] %v16750_v1  ;;  %9508 = vmatprep.subr.bf16.mxu0 %v16735_v32  ;;  %9549 = vmatprep.subr.bf16.mxu1 %v16740_v2  ;;  %18034 = vst [vmem:[#allocation93_spill] sm:$0xff] %v16759_v26  ;;  %v16769_v32 = vld [vmem:[%s17117_s4] ss:$16 sps:$4 sm:$0xff]   ;;  %v16788_v2 = vld [vmem:[%s17117_s4 + $0x1ec] ss:$16 sps:$4 sm:$0xff]  }
 0xbc6   :  { %18036 = vst [vmem:[#allocation97_spill] sm:$0xff] %v16769_v32  ;;  %18039 = vst [vmem:[#allocation52_spill] sm:$0xff] %v16788_v2 }
 0xbc8   :  { %9509 = vmatpush1.bf16.msra.mxu0 %v16745_v19  ;;  %9550 = vmatpush1.bf16.msra.mxu1 %v16750_v1  ;;  %v16774_v19 = vld [vmem:[%s17117_s4 + $0x8] ss:$16 sps:$4 sm:$0xff]   ;;  %v16783_v1 = vld [vmem:[%s17117_s4 + $0x1e4] ss:$16 sps:$4 sm:$0xff]  }
 0xbc9   :  { %18037 = vst [vmem:[#allocation51_spill] sm:$0xff] %v16774_v19  ;;  %9510 = vmatprep.subr.bf16.mxu0 %v16759_v26  ;;  %9551 = vmatprep.subr.bf16.mxu1 %v16764_v25  ;;  %18038 = vst [vmem:[#allocation53_spill] sm:$0xff] %v16783_v1  ;;  %v16793_v26 = vld [vmem:[%s17117_s4 + $0x1e0] ss:$16 sps:$4 sm:$0xff]   ;;  %v16812_v25 = vld [vmem:[%s17117_s4 + $0x1cc] ss:$16 sps:$4 sm:$0xff]  }
 0xbca   :  { %18040 = vst [vmem:[#allocation54_spill] sm:$0xff] %v16793_v26  ;;  %18043 = vst [vmem:[#allocation56_spill] sm:$0xff] %v16812_v25 }
 0xbcc   :  { %9511 = vmatpush1.bf16.msra.mxu0 %v16769_v32  ;;  %9552 = vmatpush1.bf16.msra.mxu1 %v16774_v19  ;;  %v16798_v32 = vld [vmem:[%s17117_s4 + $0x1e8] ss:$16 sps:$4 sm:$0xff]   ;;  %v16807_v19 = vld [vmem:[%s17117_s4 + $0x1c4] ss:$16 sps:$4 sm:$0xff]  }
 0xbcd   :  { %18041 = vst [vmem:[#allocation55_spill] sm:$0xff] %v16798_v32  ;;  %9512 = vmatprep.subr.bf16.mxu0 %v16783_v1  ;;  %9553 = vmatprep.subr.bf16.mxu1 %v16788_v2  ;;  %18042 = vst [vmem:[#allocation57_spill] sm:$0xff] %v16807_v19  ;;  %v16817_v1 = vld [vmem:[%s17117_s4 + $0x1c0] ss:$16 sps:$4 sm:$0xff]   ;;  %v16836_v2 = vld [vmem:[%s17117_s4 + $0x1ac] ss:$16 sps:$4 sm:$0xff]  }
 0xbce   :  { %18044 = vst [vmem:[#allocation58_spill] sm:$0xff] %v16817_v1  ;;  %18047 = vst [vmem:[#allocation98_spill] sm:$0xff] %v16836_v2 }
 0xbd0   :  { %9513 = vmatpush2.bf16.msra.mxu0 %v16793_v26  ;;  %9554 = vmatpush2.bf16.msra.mxu1 %v16798_v32  ;;  %v16822_v26 = vld [vmem:[%s17117_s4 + $0x1c8] ss:$16 sps:$4 sm:$0xff]   ;;  %v16831_v32 = vld [vmem:[%s17117_s4 + $0x1a4] ss:$16 sps:$4 sm:$0xff]  }
 0xbd1   :  { %18045 = vst [vmem:[#allocation95_spill] sm:$0xff] %v16822_v26  ;;  %9514 = vmatprep.subr.bf16.mxu0 %v16807_v19  ;;  %9555 = vmatprep.subr.bf16.mxu1 %v16812_v25  ;;  %18046 = vst [vmem:[#allocation96_spill] sm:$0xff] %v16831_v32  ;;  %v16841_v19 = vld [vmem:[%s17117_s4 + $0x1a0] ss:$16 sps:$4 sm:$0xff]   ;;  %v16860_v25 = vld [vmem:[%s17117_s4 + $0x18c] ss:$16 sps:$4 sm:$0xff]  }
 0xbd2   :  { %18048 = vst [vmem:[#allocation101_spill] sm:$0xff] %v16841_v19  ;;  %18051 = vst [vmem:[#allocation102_spill] sm:$0xff] %v16860_v25 }
 0xbd4   :  { %9515 = vmatpush2.bf16.msra.mxu0 %v16817_v1  ;;  %9556 = vmatpush2.bf16.msra.mxu1 %v16822_v26  ;;  %v16846_v1 = vld [vmem:[%s17117_s4 + $0x1a8] ss:$16 sps:$4 sm:$0xff]   ;;  %v16855_v26 = vld [vmem:[%s17117_s4 + $0x184] ss:$16 sps:$4 sm:$0xff]  }
 0xbd5   :  { %18049 = vst [vmem:[#allocation99_spill] sm:$0xff] %v16846_v1  ;;  %9516 = vmatprep.subr.bf16.mxu0 %v16831_v32  ;;  %9557 = vmatprep.subr.bf16.mxu1 %v16836_v2  ;;  %18050 = vst [vmem:[#allocation100_spill] sm:$0xff] %v16855_v26  ;;  %v16865_v32 = vld [vmem:[%s17117_s4 + $0x180] ss:$16 sps:$4 sm:$0xff]  }
 0xbd6   :  { %18052 = vst [vmem:[#allocation103_spill] sm:$0xff] %v16865_v32  ;;  %v16884_v2 = vld [vmem:[%s17117_s4 + $0x160] ss:$16 sps:$4 sm:$0xff]  }
 0xbd7   :  { %18055 = vst [vmem:[#allocation106_spill] sm:$0xff] %v16884_v2 }
 0xbd8   :  { %9517 = vmatpush2.bf16.msra.mxu0 %v16841_v19  ;;  %9558 = vmatpush2.bf16.msra.mxu1 %v16846_v1  ;;  %v16870_v19 = vld [vmem:[%s17117_s4 + $0x188] ss:$16 sps:$4 sm:$0xff]   ;;  %v16877_v1 = vld [vmem:[%s17117_s4 + $0x164] ss:$16 sps:$4 sm:$0xff]  }
 0xbd9   :  { %18053 = vst [vmem:[#allocation104_spill] sm:$0xff] %v16870_v19  ;;  %9518 = vmatprep.subr.bf16.mxu0 %v16855_v26  ;;  %9559 = vmatprep.subr.bf16.mxu1 %v16860_v25  ;;  %18054 = vst [vmem:[#allocation105_spill] sm:$0xff] %v16877_v1  ;;  %v16889_v26 = vld [vmem:[%s17117_s4 + $0x168] ss:$16 sps:$4 sm:$0xff]   ;;  %v16894_v25 = vld [vmem:[%s17117_s4 + $0x16c] ss:$16 sps:$4 sm:$0xff]  }
 0xbda   :  { %18056 = vst [vmem:[#allocation107_spill] sm:$0xff] %v16889_v26  ;;  %18057 = vst [vmem:[#allocation108_spill] sm:$0xff] %v16894_v25 }
 0xbdc   :  { %9519 = vmatpush2.bf16.msra.mxu0 %v16865_v32  ;;  %9560 = vmatpush2.bf16.msra.mxu1 %v16870_v19  ;;  %v16900_v19 = vld [vmem:[%s17117_s4 + $0x144] ss:$16 sps:$4 sm:$0xff]   ;;  %v16905_v32 = vld [vmem:[%s17117_s4 + $0x14c] ss:$16 sps:$4 sm:$0xff]  }
 0xbdd   :  { %9520 = vmatprep.subr.bf16.mxu0 %v16877_v1  ;;  %18058 = vst [vmem:[#allocation109_spill] sm:$0xff] %v16900_v19  ;;  %18059 = vst [vmem:[#allocation43_spill] sm:$0xff] %v16905_v32  ;;  %9561 = vmatprep.subr.bf16.mxu1 %v16894_v25  ;;  %v16913_v1 = vld [vmem:[%s17117_s4 + $0x140] ss:$16 sps:$4 sm:$0xff]  }
 0xbde   :  { %18060 = vst [vmem:[#allocation45_spill] sm:$0xff] %v16913_v1 }
 0xbe0   :  { %9521 = vmatpush2.bf16.msra.mxu0 %v16884_v2  ;;  %9562 = vmatpush2.bf16.msra.mxu1 %v16889_v26  ;;  %v16925_v2 = vld [vmem:[%s17117_s4 + $0x124] ss:$16 sps:$4 sm:$0xff]   ;;  %v16930_v26 = vld [vmem:[%s17117_s4 + $0x12c] ss:$16 sps:$4 sm:$0xff]  }
 0xbe1   :  { %9522 = vmatprep.subr.bf16.mxu0 %v16900_v19  ;;  %9563 = vmatprep.subr.bf16.mxu1 %v16905_v32  ;;  %18062 = vst [vmem:[#allocation46_spill] sm:$0xff] %v16925_v2  ;;  %18063 = vst [vmem:[#allocation47_spill] sm:$0xff] %v16930_v26  ;;  %v16937_v19 = vld [vmem:[%s17117_s4 + $0x120] ss:$16 sps:$4 sm:$0xff]   ;;  %v16942_v32 = vld [vmem:[%s17117_s4 + $0x128] ss:$16 sps:$4 sm:$0xff]  }
 0xbe2   :  { %18064 = vst [vmem:[#allocation49_spill] sm:$0xff] %v16937_v19  ;;  %18065 = vst [vmem:[#allocation48_spill] sm:$0xff] %v16942_v32 }
 0xbe4   :  { %9523 = vmatpush2.bf16.msra.mxu0 %v16913_v1  ;;  %9564 = vmatpush2.bf16.msra.mxu1 %v16918_v23  ;;  %v16949_v1 = vld [vmem:[%s17117_s4 + $0x104] ss:$16 sps:$4 sm:$0xff]   ;;  %v16954_v23 = vld [vmem:[%s17117_s4 + $0x10c] ss:$16 sps:$4 sm:$0xff]  }
 0xbe5   :  { %9524 = vmatprep.subr.bf16.mxu0 %v16925_v2  ;;  %9565 = vmatprep.subr.bf16.mxu1 %v16930_v26  ;;  %18066 = vst [vmem:[#allocation50_spill] sm:$0xff] %v16949_v1  ;;  %18067 = vst [vmem:[#allocation110_spill] sm:$0xff] %v16954_v23  ;;  %v16961_v2 = vld [vmem:[%s17117_s4 + $0x100] ss:$16 sps:$4 sm:$0xff]   ;;  %v16966_v26 = vld [vmem:[%s17117_s4 + $0x108] ss:$16 sps:$4 sm:$0xff]  }
 0xbe6   :  { %18068 = vst [vmem:[#allocation111_spill] sm:$0xff] %v16961_v2  ;;  %18069 = vst [vmem:[#allocation112_spill] sm:$0xff] %v16966_v26 }
 0xbe8   :  { %9525 = vmatpush2.bf16.msra.mxu0 %v16937_v19  ;;  %9566 = vmatpush2.bf16.msra.mxu1 %v16942_v32 }
 0xbe9   :  { %9526 = vmatprep.subr.bf16.mxu0 %v16949_v1  ;;  %9567 = vmatprep.subr.bf16.mxu1 %v16954_v23 }
 0xbec   :  { %9527 = vmatpush2.bf16.msra.mxu0 %v16961_v2  ;;  %9568 = vmatpush2.bf16.msra.mxu1 %v16966_v26 }
 0xbed   :  { %9803 = vmatprep.subr.bf16.mxu0 %v16465_v29  ;;  %9844 = vmatprep.subr.bf16.mxu1 %v16467_v53 }
 0xc4f   :  { %v8727_v32 = vpop.f32.mrf.mxu0  ;;  %v8768_v19 = vpop.f32.mrf.mxu1 }
 0xc50   :  { %v8728_v25 = vadd.f32 %v8727_v32, %v18007_v61  ;;  %v8769_v29 = vadd.f32 %v8768_v19, %v18009_v34  ;;  %v18071_v34 = vld [vmem:[#allocation65_spill] sm:$0xff] }
 0xc51   :  { %v8729_v54 = vpop.f32.mrf.mxu0  ;;  %v8770_v7 = vpop.f32.mrf.mxu1 }
 0xc52   :  { %v11514_v17 = vmul.f32 -1.442695, %v8728_v25  ;;  %v8730_v45 = vadd.f32 %v8729_v54, %v18008_v24  ;;  %v11516_v26 = vmul.f32 -1.442695, %v8769_v29  ;;  %v8771_v4 = vadd.f32 %v8770_v7, %v18010_v46 }
 0xc53   :  { %v8731_v1 = vpop.f32.mrf.mxu0  ;;  %v8772_v15 = vpop.f32.mrf.mxu1 }
 0xc54   :  { %12995 = vpow2.f32 %v11514_v17  ;;  %v11515_v23 = vmul.f32 -1.442695, %v8730_v45  ;;  %v18070_v45 = vld [vmem:[#allocation63_spill] sm:$0xff] }
 0xc55   :  { %v8732_v2 = vpop.f32.mrf.mxu0  ;;  %v8773_v11 = vpop.f32.mrf.mxu1 }
 0xc56   :  { %12997 = vpow2.f32 %v11515_v23 }
 0xc57   :  { %12999 = vpow2.f32 %v11516_v26 }
 0xc61   :  { %v12996_v53 = vpop.eup %12995 }
 0xc62   :  { %v8784_v38 = vadd.f32 1.0, %v12996_v53 }
 0xc63   :  { %v12998_v32 = vpop.eup %12997 }
 0xc64   :  { %13001 = vrcp.f32 %v8784_v38  ;;  %v8785_v25 = vadd.f32 1.0, %v12998_v32  ;;  %v13000_v17 = vpop.eup %12999 }
 0xc65   :  { %13003 = vtanh.f32 %v8771_v4  ;;  %v8786_v53 = vadd.f32 1.0, %v13000_v17 }
 0xc66   :  { %13005 = vrcp.f32 %v8785_v25 }
 0xc6f   :  { %v9034_v54 = vpop.f32.mrf.mxu0  ;;  %v9075_v15 = vpop.f32.mrf.mxu1 }
 0xc70   :  { %v9082_v2 = vadd.f32 %v9034_v54, %v18070_v45  ;;  %v18072_v54 = vld [vmem:[#allocation64_spill] sm:$0xff] }
 0xc71   :  { %v13002_v11 = vpop.eup %13001  ;;  %v9036_v23 = vpop.f32.mrf.mxu0  ;;  %v9084_v45 = vadd.f32 %v9075_v15, %v18072_v54 }
 0xc72   :  { %v9077_v1 = vpop.f32.mrf.mxu1  ;;  %v13004_v19 = vpop.eup %13003  ;;  %v11550_v29 = vmul.f32 -1.442695, %v9082_v2  ;;  %v9083_v24 = vadd.f32 %v9036_v23, %v18071_v34  ;;  %v18073_v2 = vld [vmem:[#allocation66_spill] sm:$0xff] }
 0xc73   :  { %v13006_v7 = vpop.eup %13005  ;;  %v9038_v46 = vpop.f32.mrf.mxu0  ;;  %v8795_v4 = vmul.f32 %v13004_v19, %v13002_v11  ;;  %v11552_v34 = vmul.f32 -1.442695, %v9084_v45  ;;  %v9085_v17 = vadd.f32 %v9077_v1, %v18073_v2  ;;  %v18115_v2 = vld [vmem:[#allocation106_spill] sm:$0xff] }
 0xc74   :  { %v9079_v26 = vpop.f32.mrf.mxu1  ;;  %v8794_v38 = vmul.f32 %v13006_v7, %v16478_v63  ;;  %13007 = vpow2.f32 %v11550_v29  ;;  %v11551_v32 = vmul.f32 -1.442695, %v9083_v24 }
 0xc75   :  { %v9039_v25 = vpop.f32.mrf.mxu0 }
 0xc76   :  { %v9080_v61 = vpop.f32.mrf.mxu1  ;;  %v16981_v9 = vadd.f32 %v8795_v4, %v8794_v38  ;;  %13009 = vpow2.f32 %v11551_v32 }
 0xc77   :  { %13011 = vrcp.f32 %v8786_v53 }
 0xc78   :  { %13013 = vtanh.f32 %v16981_v9 }
 0xc79   :  { %13015 = vpow2.f32 %v11552_v34 }
 0xc7a   :  { %13017 = vtanh.f32 %v9085_v17  ;;  %v18116_v17 = vld [vmem:[#allocation107_spill] sm:$0xff] }
 0xc81   :  { %v13008_v46 = vpop.eup %13007 }
 0xc82   :  { %v9095_v23 = vadd.f32 1.0, %v13008_v46  ;;  %v18117_v46 = vld [vmem:[#allocation109_spill] sm:$0xff] }
 0xc83   :  { %v13010_v63 = vpop.eup %13009 }
 0xc84   :  { %v13012_v11 = vpop.eup %13011  ;;  %13019 = vrcp.f32 %v9095_v23  ;;  %v9096_v24 = vadd.f32 1.0, %v13010_v63  ;;  %v18118_v23 = vld [vmem:[#allocation43_spill] sm:$0xff]  ;;  %v18119_v63 = vld [vmem:[#allocation45_spill] sm:$0xff] }
 0xc85   :  { %v13014_v61 = vpop.eup %13013 }
 0xc86   :  { %13021 = vrcp.f32 %v9096_v24  ;;  %v8798_v19 = vmul.f32 %v13014_v61, %v13012_v11  ;;  %v13016_v15 = vpop.eup %13015  ;;  %v18120_v11 = vld [vmem:[#allocation44_spill] sm:$0xff]  ;;  %v18121_v24 = vld [vmem:[#allocation46_spill] sm:$0xff]  ;;  %v18122_v61 = vld [vmem:[#allocation47_spill] sm:$0xff] }
 0xc87   :  { %v13018_v1 = vpop.eup %13017  ;;  %v9097_v38 = vadd.f32 1.0, %v13016_v15  ;;  %v18125_v15 = vld [vmem:[#allocation50_spill] sm:$0xff] }
 0xc88   :  { %11517 = vst [vmem:[%s17119_s6 + $0x48] sm:$0xff] %v8798_v19  ;;  %v9111_v29 = vpack.c.bf16 %v8798_v19, %v8798_v19  ;;  %v18123_v19 = vld [vmem:[#allocation49_spill] sm:$0xff] }
 0xc89   :  { %13023 = vrcp.f32 %v9097_v38 }
 0xc8a   :  { %9528 = vmatprep.mubr.bf16.mxu0 %v9111_v29  ;;  %9569 = vmatprep.mubr.bf16.mxu1 %v9111_v29  ;;  %v18124_v29 = vld [vmem:[#allocation48_spill] sm:$0xff] }
 0xc91   :  { %v13020_v7 = vpop.eup %13019 }
 0xc92   :  { %v9106_v53 = vmul.f32 %v13020_v7, %v13018_v1  ;;  %v18126_v1 = vld [vmem:[#allocation110_spill] sm:$0xff]  ;;  %v18127_v7 = vld [vmem:[#allocation111_spill] sm:$0xff] }
 0xc93   :  { %v13022_v26 = vpop.eup %13021 }
 0xc94   :  { %v9105_v4 = vmul.f32 %v13022_v26, %v16487_v20  ;;  %v18075_v20 = vld [vmem:[#allocation75_spill] sm:$0xff] }
 0xc96   :  { %v16990_v32 = vadd.f32 %v9106_v53, %v9105_v4  ;;  %v13024_v25 = vpop.eup %13023  ;;  %v18128_v53 = vld [vmem:[#allocation112_spill] sm:$0xff]  ;;  %v18129_v4 = vld [vmem:[#allocation13_spill] sm:$0xff] }
 0xc98   :  { %13025 = vtanh.f32 %v16990_v32 }
 0xca5   :  { %v13026_v54 = vpop.eup %13025 }
 0xca6   :  { %v9109_v45 = vmul.f32 %v13026_v54, %v13024_v25 }
 0xca8   :  { %v9110_v34 = vpack.c.bf16 %v9109_v45, %v9109_v45 }
 0xcaa   :  { %9529 = vmatmul.mubr.bf16.vlgmr.msra.gmra.mxu0 %v9110_v34  ;;  %9570 = vmatmul.mubr.bf16.vlgmr.msra.gmra.mxu1 %v9110_v34 }
 0xcab   :  { %9804 = vmatpush1.bf16.msra.mxu0 %v16490_v30  ;;  %9845 = vmatpush1.bf16.msra.mxu1 %v16492_v31  ;;  %v18076_v30 = vld [vmem:[#allocation76_spill] sm:$0xff]  ;;  %v18077_v31 = vld [vmem:[#allocation77_spill] sm:$0xff] }
 0xcac   :  { %9805 = vmatprep.subr.bf16.mxu0 %v16496_v36  ;;  %9846 = vmatprep.subr.bf16.mxu1 %v16498_v48  ;;  %v18078_v36 = vld [vmem:[#allocation78_spill] sm:$0xff]  ;;  %v18079_v48 = vld [vmem:[#allocation79_spill] sm:$0xff] }
 0xcad   :  { %9835 = vmatprep.mubr.bf16.mxu0 %v17499_v10  ;;  %9876 = vmatprep.mubr.bf16.mxu1 %v17499_v10  ;;  %v18074_v10 = vld [vmem:[#allocation74_spill] sm:$0xff] }
 0xcaf   :  { %9806 = vmatpush1.bf16.msra.mxu0 %v16504_v22  ;;  %9847 = vmatpush1.bf16.msra.mxu1 %v16506_v43  ;;  %v18080_v22 = vld [vmem:[#allocation80_spill] sm:$0xff]  ;;  %v18081_v43 = vld [vmem:[#allocation83_spill] sm:$0xff] }
 0xcb0   :  { %9807 = vmatprep.subr.bf16.mxu0 %v16510_v21  ;;  %9848 = vmatprep.subr.bf16.mxu1 %v16512_v40  ;;  %v18082_v21 = vld [vmem:[#allocation81_spill] sm:$0xff]  ;;  %v18083_v40 = vld [vmem:[#allocation82_spill] sm:$0xff] }
 0xcb3   :  { %9808 = vmatpush1.bf16.msra.mxu0 %v16518_v35  ;;  %9849 = vmatpush1.bf16.msra.mxu1 %v16520_v33  ;;  %v18084_v35 = vld [vmem:[#allocation84_spill] sm:$0xff]  ;;  %v18085_v33 = vld [vmem:[#allocation85_spill] sm:$0xff] }
 0xcb4   :  { %9809 = vmatprep.subr.bf16.mxu0 %v16524_v50  ;;  %9850 = vmatprep.subr.bf16.mxu1 %v16526_v28  ;;  %v18086_v50 = vld [vmem:[#allocation86_spill] sm:$0xff]  ;;  %v18087_v28 = vld [vmem:[#allocation87_spill] sm:$0xff] }
 0xcb7   :  { %9810 = vmatpush1.bf16.msra.mxu0 %v16530_v41  ;;  %9851 = vmatpush1.bf16.msra.mxu1 %v16532_v37  ;;  %v18088_v41 = vld [vmem:[#allocation88_spill] sm:$0xff]  ;;  %v18089_v37 = vld [vmem:[#allocation89_spill] sm:$0xff] }
 0xcb8   :  { %9811 = vmatprep.subr.bf16.mxu0 %v16536_v55  ;;  %9852 = vmatprep.subr.bf16.mxu1 %v16538_v47  ;;  %v18090_v55 = vld [vmem:[#allocation90_spill] sm:$0xff]  ;;  %v18091_v47 = vld [vmem:[#allocation91_spill] sm:$0xff] }
 0xcbb   :  { %9812 = vmatpush1.bf16.msra.mxu0 %v16542_v5  ;;  %9853 = vmatpush1.bf16.msra.mxu1 %v16544_v57  ;;  %v18092_v5 = vld [vmem:[#allocation92_spill] sm:$0xff]  ;;  %v18093_v57 = vld [vmem:[#allocation93_spill] sm:$0xff] }
 0xcbc   :  { %9813 = vmatprep.subr.bf16.mxu0 %v16548_v52  ;;  %9854 = vmatprep.subr.bf16.mxu1 %v16550_v51  ;;  %v18094_v52 = vld [vmem:[#allocation94_spill] sm:$0xff]  ;;  %v18095_v51 = vld [vmem:[#allocation97_spill] sm:$0xff] }
 0xcbf   :  { %9814 = vmatpush1.bf16.msra.mxu0 %v16554_v56  ;;  %9855 = vmatpush1.bf16.msra.mxu1 %v16556_v42  ;;  %v18096_v56 = vld [vmem:[#allocation51_spill] sm:$0xff]  ;;  %v18097_v42 = vld [vmem:[#allocation53_spill] sm:$0xff] }
 0xcc0   :  { %9815 = vmatprep.subr.bf16.mxu0 %v16560_v44  ;;  %9856 = vmatprep.subr.bf16.mxu1 %v16562_v59  ;;  %v18098_v44 = vld [vmem:[#allocation52_spill] sm:$0xff]  ;;  %v18099_v59 = vld [vmem:[#allocation54_spill] sm:$0xff] }
 0xcc3   :  { %9816 = vmatpush1.bf16.msra.mxu0 %v16566_v18  ;;  %9857 = vmatpush1.bf16.msra.mxu1 %v16568_v58  ;;  %v18100_v18 = vld [vmem:[#allocation55_spill] sm:$0xff]  ;;  %v18101_v58 = vld [vmem:[#allocation57_spill] sm:$0xff] }
 0xcc4   :  { %9817 = vmatprep.subr.bf16.mxu0 %v16572_v60  ;;  %9858 = vmatprep.subr.bf16.mxu1 %v16574_v0  ;;  %v18102_v60 = vld [vmem:[#allocation56_spill] sm:$0xff]  ;;  %v18103_v0 = vld [vmem:[#allocation58_spill] sm:$0xff] }
 0xcc7   :  { %9818 = vmatpush1.bf16.msra.mxu0 %v16578_v14  ;;  %9859 = vmatpush1.bf16.msra.mxu1 %v16580_v49  ;;  %v18104_v14 = vld [vmem:[#allocation95_spill] sm:$0xff]  ;;  %v18105_v49 = vld [vmem:[#allocation96_spill] sm:$0xff] }
 0xcc8   :  { %10299 = vmatprep.subr.bf16.mxu0 %v16591_v3  ;;  %10340 = vmatprep.subr.bf16.mxu1 %v16596_v6  ;;  %v18106_v3 = vld [vmem:[#allocation98_spill] sm:$0xff]  ;;  %v18107_v6 = vld [vmem:[#allocation101_spill] sm:$0xff] }
 0xcca   :  { %9836 = vmatmul.mubr.bf16.vlgmr.msra.gmra.mxu0 %v9110_v34  ;;  %9877 = vmatmul.mubr.bf16.vlgmr.msra.gmra.mxu1 %v9110_v34 }
 0xccb   :  { %10300 = vmatpush1.bf16.msra.mxu0 %v16601_v27  ;;  %10341 = vmatpush1.bf16.msra.mxu1 %v16606_v12  ;;  %v18108_v27 = vld [vmem:[#allocation99_spill] sm:$0xff]  ;;  %v18109_v12 = vld [vmem:[#allocation100_spill] sm:$0xff] }
 0xccc   :  { %10301 = vmatprep.subr.bf16.mxu0 %v16615_v16  ;;  %10342 = vmatprep.subr.bf16.mxu1 %v16620_v62  ;;  %v18110_v16 = vld [vmem:[#allocation102_spill] sm:$0xff]  ;;  %v18111_v62 = vld [vmem:[#allocation103_spill] sm:$0xff] }
 0xccf   :  { %10302 = vmatpush1.bf16.msra.mxu0 %v16625_v13  ;;  %10343 = vmatpush1.bf16.msra.mxu1 %v16630_v39  ;;  %v18112_v13 = vld [vmem:[#allocation104_spill] sm:$0xff]  ;;  %v18113_v39 = vld [vmem:[#allocation105_spill] sm:$0xff] }
 0xcd0   :  { %10303 = vmatprep.subr.bf16.mxu0 %v16639_v8  ;;  %10344 = vmatprep.subr.bf16.mxu1 %v18074_v10  ;;  %v18114_v8 = vld [vmem:[#allocation108_spill] sm:$0xff]  ;;  %v18130_v10 = vld [vmem:[#allocation14_spill] sm:$0xff] }
 0xcd3   :  { %10304 = vmatpush1.bf16.msra.mxu0 %v18075_v20  ;;  %10345 = vmatpush1.bf16.msra.mxu1 %v18076_v30 }
 0xcd4   :  { %10305 = vmatprep.subr.bf16.mxu0 %v18077_v31  ;;  %10346 = vmatprep.subr.bf16.mxu1 %v18078_v36 }
 0xcd7   :  { %10306 = vmatpush1.bf16.msra.mxu0 %v18079_v48  ;;  %10347 = vmatpush1.bf16.msra.mxu1 %v18080_v22 }
 0xcd8   :  { %10307 = vmatprep.subr.bf16.mxu0 %v18081_v43  ;;  %10348 = vmatprep.subr.bf16.mxu1 %v18082_v21  ;;  %v18131_v43 = vld [vmem:[#allocation15_spill] sm:$0xff] }
 0xcdb   :  { %10308 = vmatpush1.bf16.msra.mxu0 %v18083_v40  ;;  %10349 = vmatpush1.bf16.msra.mxu1 %v18084_v35 }
 0xcdc   :  { %10309 = vmatprep.subr.bf16.mxu0 %v18085_v33  ;;  %10350 = vmatprep.subr.bf16.mxu1 %v18086_v50  ;;  %v18132_v33 = vld [vmem:[#allocation16_spill] sm:$0xff] }
 0xcdf   :  { %10310 = vmatpush1.bf16.msra.mxu0 %v18087_v28  ;;  %10351 = vmatpush1.bf16.msra.mxu1 %v18088_v41 }
 0xce0   :  { %10311 = vmatprep.subr.bf16.mxu0 %v18089_v37  ;;  %10352 = vmatprep.subr.bf16.mxu1 %v18090_v55 }
 0xce3   :  { %10312 = vmatpush1.bf16.msra.mxu0 %v18091_v47  ;;  %10353 = vmatpush1.bf16.msra.mxu1 %v18092_v5 }
 0xce4   :  { %10313 = vmatprep.subr.bf16.mxu0 %v18093_v57  ;;  %10354 = vmatprep.subr.bf16.mxu1 %v18094_v52  ;;  %v18133_v57 = vld [vmem:[#allocation67_spill] sm:$0xff] }
 0xce7   :  { %10314 = vmatpush1.bf16.msra.mxu0 %v18095_v51  ;;  %10355 = vmatpush1.bf16.msra.mxu1 %v18096_v56 }
 0xce8   :  { %10315 = vmatprep.subr.bf16.mxu0 %v18097_v42  ;;  %10356 = vmatprep.subr.bf16.mxu1 %v18098_v44 }
 0xceb   :  { %10316 = vmatpush2.bf16.msra.mxu0 %v18099_v59  ;;  %10357 = vmatpush2.bf16.msra.mxu1 %v18100_v18  ;;  %v18134_v18 = vld [vmem:[#allocation69_spill] sm:$0xff] }
 0xcec   :  { %10317 = vmatprep.subr.bf16.mxu0 %v18101_v58  ;;  %10358 = vmatprep.subr.bf16.mxu1 %v18102_v60 }
 0xcef   :  { %10318 = vmatpush2.bf16.msra.mxu0 %v18103_v0  ;;  %10359 = vmatpush2.bf16.msra.mxu1 %v18104_v14 }
 0xcf0   :  { %10319 = vmatprep.subr.bf16.mxu0 %v18105_v49  ;;  %10360 = vmatprep.subr.bf16.mxu1 %v18106_v3 }
 0xcf3   :  { %10320 = vmatpush2.bf16.msra.mxu0 %v18107_v6  ;;  %10361 = vmatpush2.bf16.msra.mxu1 %v18108_v27 }
 0xcf4   :  { %10321 = vmatprep.subr.bf16.mxu0 %v18109_v12  ;;  %10362 = vmatprep.subr.bf16.mxu1 %v18110_v16 }
 0xcf7   :  { %10322 = vmatpush2.bf16.msra.mxu0 %v18111_v62  ;;  %10363 = vmatpush2.bf16.msra.mxu1 %v18112_v13  ;;  %v18135_v13 = vld [vmem:[#allocation68_spill] sm:$0xff] }
 0xcf8   :  { %10323 = vmatprep.subr.bf16.mxu0 %v18113_v39  ;;  %10364 = vmatprep.subr.bf16.mxu1 %v18114_v8 }
 0xcfb   :  { %10324 = vmatpush2.bf16.msra.mxu0 %v18115_v2  ;;  %10365 = vmatpush2.bf16.msra.mxu1 %v18116_v17  ;;  %v18136_v2 = vld [vmem:[#allocation70_spill] sm:$0xff] }
 0xcfc   :  { %10325 = vmatprep.subr.bf16.mxu0 %v18117_v46  ;;  %10366 = vmatprep.subr.bf16.mxu1 %v18118_v23 }
 0xcff   :  { %10326 = vmatpush2.bf16.msra.mxu0 %v18119_v63  ;;  %10367 = vmatpush2.bf16.msra.mxu1 %v18120_v11 }
 0xd00   :  { %10327 = vmatprep.subr.bf16.mxu0 %v18121_v24  ;;  %10368 = vmatprep.subr.bf16.mxu1 %v18122_v61 }
 0xd03   :  { %10328 = vmatpush2.bf16.msra.mxu0 %v18123_v19  ;;  %10369 = vmatpush2.bf16.msra.mxu1 %v18124_v29 }
 0xd04   :  { %10329 = vmatprep.subr.bf16.mxu0 %v18125_v15  ;;  %10370 = vmatprep.subr.bf16.mxu1 %v18126_v1 }
 0xd07   :  { %10330 = vmatpush2.bf16.msra.mxu0 %v18127_v7  ;;  %10371 = vmatpush2.bf16.msra.mxu1 %v18128_v53 }
 0xd6a   :  { %v9530_v26 = vpop.f32.mrf.mxu0  ;;  %v9571_v38 = vpop.f32.mrf.mxu1 }
 0xd6b   :  { %v9531_v25 = vadd.f32 %v9530_v26, %v18129_v4  ;;  %v9572_v21 = vadd.f32 %v9571_v38, %v18131_v43 }
 0xd6c   :  { %v9532_v54 = vpop.f32.mrf.mxu0  ;;  %v9573_v45 = vpop.f32.mrf.mxu1 }
 0xd6d   :  { %v11617_v34 = vmul.f32 -1.442695, %v9531_v25  ;;  %v9533_v20 = vadd.f32 %v9532_v54, %v18130_v10  ;;  %v11619_v40 = vmul.f32 -1.442695, %v9572_v21  ;;  %v9574_v50 = vadd.f32 %v9573_v45, %v18132_v33 }
 0xd6e   :  { %v9534_v30 = vpop.f32.mrf.mxu0  ;;  %v9575_v31 = vpop.f32.mrf.mxu1 }
 0xd6f   :  { %13027 = vpow2.f32 %v11617_v34  ;;  %v11618_v36 = vmul.f32 -1.442695, %v9533_v20 }
 0xd70   :  { %v9535_v48 = vpop.f32.mrf.mxu0  ;;  %v9576_v22 = vpop.f32.mrf.mxu1 }
 0xd71   :  { %13029 = vpow2.f32 %v11618_v36 }
 0xd72   :  { %13031 = vpow2.f32 %v11619_v40 }
 0xd7c   :  { %v13028_v35 = vpop.eup %13027 }
 0xd7d   :  { %v9587_v28 = vadd.f32 1.0, %v13028_v35 }
 0xd7e   :  { %v13030_v41 = vpop.eup %13029 }
 0xd7f   :  { %13033 = vrcp.f32 %v9587_v28  ;;  %v9588_v37 = vadd.f32 1.0, %v13030_v41  ;;  %v13032_v5 = vpop.eup %13031 }
 0xd80   :  { %13035 = vtanh.f32 %v9574_v50  ;;  %v9589_v0 = vadd.f32 1.0, %v13032_v5 }
 0xd81   :  { %13037 = vrcp.f32 %v9588_v37 }
 0xd8a   :  { %v9837_v55 = vpop.f32.mrf.mxu0  ;;  %v9878_v47 = vpop.f32.mrf.mxu1 }
 0xd8b   :  { %v9885_v52 = vadd.f32 %v9837_v55, %v18133_v57  ;;  %v9887_v39 = vadd.f32 %v9878_v47, %v18135_v13 }
 0xd8c   :  { %v13034_v51 = vpop.eup %13033  ;;  %v9839_v56 = vpop.f32.mrf.mxu0 }
 0xd8d   :  { %v9880_v42 = vpop.f32.mrf.mxu1  ;;  %v13036_v44 = vpop.eup %13035  ;;  %v11653_v59 = vmul.f32 -1.442695, %v9885_v52  ;;  %v9886_v58 = vadd.f32 %v9839_v56, %v18134_v18  ;;  %v11655_v8 = vmul.f32 -1.442695, %v9887_v39 }
 0xd8e   :  { %v13038_v60 = vpop.eup %13037  ;;  %v9841_v14 = vpop.f32.mrf.mxu0  ;;  %v9598_v6 = vmul.f32 %v13036_v44, %v13034_v51  ;;  %v9888_v17 = vadd.f32 %v9880_v42, %v18136_v2 }
 0xd8f   :  { %v9882_v49 = vpop.f32.mrf.mxu1  ;;  %v9597_v3 = vmul.f32 %v13038_v60, %v16981_v9  ;;  %13039 = vpow2.f32 %v11653_v59  ;;  %v11654_v27 = vmul.f32 -1.442695, %v9886_v58 }
 0xd90   :  { %v9842_v12 = vpop.f32.mrf.mxu0 }
 0xd91   :  { %v9883_v16 = vpop.f32.mrf.mxu1  ;;  %v17096_v62 = vadd.f32 %v9598_v6, %v9597_v3  ;;  %13041 = vpow2.f32 %v11654_v27 }
 0xd92   :  { %13043 = vrcp.f32 %v9589_v0 }
 0xd93   :  { %13045 = vtanh.f32 %v17096_v62 }
 0xd94   :  { %13047 = vpow2.f32 %v11655_v8 }
 0xd95   :  { %13049 = vtanh.f32 %v9888_v17 }
 0xd9c   :  { %v13040_v46 = vpop.eup %13039 }
 0xd9d   :  { %v9898_v23 = vadd.f32 1.0, %v13040_v46 }
 0xd9e   :  { %v13042_v9 = vpop.eup %13041 }
 0xd9f   :  { %v13044_v63 = vpop.eup %13043  ;;  %13051 = vrcp.f32 %v9898_v23  ;;  %v9899_v11 = vadd.f32 1.0, %v13042_v9 }
 0xda0   :  { %v13046_v24 = vpop.eup %13045 }
 0xda1   :  { %13053 = vrcp.f32 %v9899_v11  ;;  %v9601_v61 = vmul.f32 %v13046_v24, %v13044_v63  ;;  %v13048_v29 = vpop.eup %13047 }
 0xda2   :  { %v13050_v15 = vpop.eup %13049  ;;  %v9900_v26 = vadd.f32 1.0, %v13048_v29 }
 0xda3   :  { %11620 = vst [vmem:[%s17119_s6 + $0x50] sm:$0xff] %v9601_v61  ;;  %v9914_v19 = vpack.c.bf16 %v9601_v61, %v9601_v61 }
 0xda4   :  { %13055 = vrcp.f32 %v9900_v26 }
 0xda5   :  { %10331 = vmatprep.mubr.bf16.mxu0 %v9914_v19  ;;  %10372 = vmatprep.mubr.bf16.mxu1 %v9914_v19 }
 0xdac   :  { %v13052_v1 = vpop.eup %13051 }
 0xdad   :  { %v9909_v7 = vmul.f32 %v13052_v1, %v13050_v15 }
 0xdae   :  { %v13054_v53 = vpop.eup %13053 }
 0xdaf   :  { %v9908_v38 = vmul.f32 %v13054_v53, %v16990_v32 }
 0xdb1   :  { %v9910_v25 = vadd.f32 %v9909_v7, %v9908_v38  ;;  %v13056_v54 = vpop.eup %13055 }
 0xdb3   :  { %13057 = vtanh.f32 %v9910_v25 }
 0xdc0   :  { %v13058_v45 = vpop.eup %13057 }
 0xdc1   :  { %v9912_v34 = vmul.f32 %v13058_v45, %v13056_v54 }
 0xdc3   :  { %v9913_v20 = vpack.c.bf16 %v9912_v34, %v9912_v34 }
 0xdc5   :  { %10332 = vmatmul.mubr.bf16.vlgmr.msra.gmra.mxu0 %v9913_v20  ;;  %10373 = vmatmul.mubr.bf16.vlgmr.msra.gmra.mxu1 %v9913_v20 }
 0xe85   :  { %v10333_v30 = vpop.f32.mrf.mxu0  ;;  %v10374_v31 = vpop.f32.mrf.mxu1 }
 0xe86   :  { %v10334_v36 = vadd.f32 %v10333_v30, %v18129_v4  ;;  %v10375_v37 = vadd.f32 %v10374_v31, %v18131_v43 }
 0xe87   :  { %v10335_v48 = vpop.f32.mrf.mxu0  ;;  %v10376_v22 = vpop.f32.mrf.mxu1 }
 0xe88   :  { %v11720_v21 = vmul.f32 -1.442695, %v10334_v36  ;;  %v10336_v40 = vadd.f32 %v10335_v48, %v18130_v10  ;;  %v11722_v55 = vmul.f32 -1.442695, %v10375_v37  ;;  %v10377_v5 = vadd.f32 %v10376_v22, %v18132_v33 }
 0xe89   :  { %v10337_v35 = vpop.f32.mrf.mxu0  ;;  %v10378_v32 = vpop.f32.mrf.mxu1 }
 0xe8a   :  { %13059 = vpow2.f32 %v11720_v21  ;;  %v11721_v50 = vmul.f32 -1.442695, %v10336_v40 }
 0xe8b   :  { %v10338_v28 = vpop.f32.mrf.mxu0  ;;  %v10379_v41 = vpop.f32.mrf.mxu1 }
 0xe8c   :  { %13061 = vpow2.f32 %v11721_v50 }
 0xe8d   :  { %13063 = vpow2.f32 %v11722_v55 }
 0xe97   :  { %v13060_v47 = vpop.eup %13059 }
 0xe98   :  { %v10390_v57 = vadd.f32 1.0, %v13060_v47 }
 0xe99   :  { %v13062_v4 = vpop.eup %13061 }
 0xe9a   :  { %13065 = vrcp.f32 %v10390_v57  ;;  %v10391_v52 = vadd.f32 1.0, %v13062_v4  ;;  %v13064_v10 = vpop.eup %13063 }
 0xe9b   :  { %13067 = vtanh.f32 %v10377_v5  ;;  %v10392_v44 = vadd.f32 1.0, %v13064_v10 }
 0xe9c   :  { %13069 = vrcp.f32 %v10391_v52 }
 0xe9d   :  { %13071 = vrcp.f32 %v10392_v44 }
 0xea7   :  { %v13066_v51 = vpop.eup %13065 }
 0xea8   :  { %v13068_v56 = vpop.eup %13067 }
 0xea9   :  { %v13070_v42 = vpop.eup %13069  ;;  %v10401_v18 = vmul.f32 %v13068_v56, %v13066_v51 }
 0xeaa   :  { %v10400_v59 = vmul.f32 %v13070_v42, %v17096_v62  ;;  %v13072_v58 = vpop.eup %13071 }
 0xeac   :  { %v10402_v43 = vadd.f32 %v10401_v18, %v10400_v59 }
 0xeae   :  { %13073 = vtanh.f32 %v10402_v43 }
 0xebb   :  { %v13074_v33 = vpop.eup %13073 }
 0xebc   :  { %v10404_v60 = vmul.f32 %v13074_v33, %v13072_v58 }
 0xebe   :  { %11723 = vst [vmem:[%s17119_s6 + $0x58] sm:$0xff] %v10404_v60 }
 0xebf   :  { %10411 = vsyncpa [#allocation4], 1 }
 0xec0   :  { %10412 = vsyncpa [#allocation6], 1 }
 0xec1   :  { %10413 = vsyncpa [#allocation9], 1 }

</bundles_post_ra>
